<compile_context>
chip_gen: v7x
topology: tpu7x:2x2x1
jax: 0.10.0
libtpu: 0.0.40
codegen_flags: <defaults>
</compile_context>

<pallas_src>
import functools

import jax
import jax.numpy as jnp
from jax.experimental import pallas as pl
from jax.experimental.pallas import tpu as pltpu

CH = (64, 64, 64)  # DenseTemporalBlock channel_list


def _relu(x):
    return jnp.maximum(x, 0.0)


# ---------------------------------------------------------------------------
# Fused DenseTemporalBlock (+ GAP partial sums): one pass over HBM.
# ---------------------------------------------------------------------------
def _make_dense_gap_kernel(s_valid, t_s):
    """refs: x (C, tS); 20 weight/bias refs (resident); z4 (512, tS); sum (512, 1)."""

    def kernel(x_ref,
               wc1, bc1, wd1, bd1,
               wc2x, wc2z1, bc2, wd2, bd2,
               wc3x, wc3z1, wc3z2, bc3, wd3, bd3,
               wc4x, wc4z1, wc4z2, wc4z3, bc4,
               z4_ref, sum_ref):
        dot = functools.partial(jnp.dot, preferred_element_type=jnp.float32)
        x = x_ref[...]

        # cconv1 -> dconv1
        y1 = _relu(dot(wc1[...], x) + bc1[...])
        z1 = _relu(dot(wd1[...], y1) + bd1[...])
        # cconv2 on cat(x, z1) -> dconv2   (concat fused as two matmuls)
        y2 = _relu(dot(wc2x[...], x) + dot(wc2z1[...], z1) + bc2[...])
        z2 = _relu(dot(wd2[...], y2) + bd2[...])
        # cconv3 on cat(x, z1, z2) -> dconv3
        y3 = _relu(dot(wc3x[...], x) + dot(wc3z1[...], z1)
                   + dot(wc3z2[...], z2) + bc3[...])
        z3 = _relu(dot(wd3[...], y3) + bd3[...])
        # cconv4 on cat(x, z1, z2, z3)
        z4 = _relu(dot(wc4x[...], x) + dot(wc4z1[...], z1)
                   + dot(wc4z2[...], z2) + dot(wc4z3[...], z3) + bc4[...])

        z4_ref[...] = z4.astype(z4_ref.dtype)

        # Global-average-pool partial sums (mask zero-padded spatial lanes).
        s = pl.program_id(1)

        @pl.when(s == 0)
        def _():
            sum_ref[...] = jnp.zeros_like(sum_ref)

        lane = jax.lax.broadcasted_iota(jnp.int32, z4.shape, 1)
        valid = (s * t_s + lane) < s_valid
        sum_ref[...] += jnp.sum(jnp.where(valid, z4, 0.0),
                                axis=1, keepdims=True)

    return kernel


def dense_block_and_gap(xf, params, *, s_valid, t_s,
                        vmem_limit_bytes=40 * 1024 * 1024):
    """xf: (N, C, S_pad) -> (z4 (N, 512, S_pad), spatial sums (N, 512))."""
    N, C, S = xf.shape
    assert S % t_s == 0
    c1, c2, c3 = CH

    wc1, bc1 = params["cconv1"]; wd1, bd1 = params["dconv1"]
    wc2, bc2 = params["cconv2"]; wd2, bd2 = params["dconv2"]
    wc3, bc3 = params["cconv3"]; wd3, bd3 = params["dconv3"]
    wc4, bc4 = params["cconv4"]

    # Split concat-conv weight columns so torch.cat() is never materialized.
    wc2x, wc2z1 = wc2[:, :C], wc2[:, C:C + c1]
    wc3x, wc3z1 = wc3[:, :C], wc3[:, C:C + c1]
    wc3z2 = wc3[:, C + c1:C + c1 + c2]
    wc4x, wc4z1 = wc4[:, :C], wc4[:, C:C + c1]
    wc4z2 = wc4[:, C + c1:C + c1 + c2]
    wc4z3 = wc4[:, C + c1 + c2:C + c1 + c2 + c3]

    col = lambda b: b.reshape(-1, 1)
    weights = [wc1, col(bc1), wd1, col(bd1),
               wc2x, wc2z1, col(bc2), wd2, col(bd2),
               wc3x, wc3z1, wc3z2, col(bc3), wd3, col(bd3),
               wc4x, wc4z1, wc4z2, wc4z3, col(bc4)]

    C_out = int(wc4.shape[0])  # 512

    w_specs = [pl.BlockSpec(w.shape, lambda n, s: (0, 0)) for w in weights]
    in_specs = [pl.BlockSpec((None, C, t_s), lambda n, s: (n, 0, s))] + w_specs
    out_specs = [pl.BlockSpec((None, C_out, t_s), lambda n, s: (n, 0, s)),
                 pl.BlockSpec((None, C_out, 1), lambda n, s: (n, 0, 0))]

    w_elems = sum(int(w.size) for w in weights)
    flops_per_pos = 2 * int(wc1.size + wd1.size + wc2.size + wd2.size
                            + wc3.size + wd3.size + wc4.size)
    cost = pl.CostEstimate(
        flops=int(N) * int(S) * flops_per_pos,
        transcendentals=0,
        bytes_accessed=4 * (int(N) * int(S) * (C + C_out)
                            + w_elems + int(N) * C_out),
    )

    z4, sums = pl.pallas_call(
        _make_dense_gap_kernel(s_valid, t_s),
        out_shape=(jax.ShapeDtypeStruct((N, C_out, S), xf.dtype),
                   jax.ShapeDtypeStruct((N, C_out, 1), jnp.float32)),
        grid=(N, S // t_s),
        in_specs=in_specs,
        out_specs=out_specs,
        compiler_params=pltpu.CompilerParams(
            dimension_semantics=("parallel", "arbitrary"),
            vmem_limit_bytes=vmem_limit_bytes,
        ),
        cost_estimate=cost,
    )(xf, *weights)
    return z4, sums[:, :, 0]


# ---------------------------------------------------------------------------
# Channel-aware gating MLP: sigmoid(relu((sums/S) @ w1 + b1) @ w2 + b2)
# ---------------------------------------------------------------------------
def _make_gate_kernel(inv_s):
    def kernel(g_ref, w1_ref, b1_ref, w2_ref, b2_ref, o_ref):
        g = g_ref[...] * inv_s
        h = _relu(jnp.dot(g, w1_ref[...],
                          preferred_element_type=jnp.float32) + b1_ref[...])
        a = jnp.dot(h, w2_ref[...],
                    preferred_element_type=jnp.float32) + b2_ref[...]
        o_ref[...] = (1.0 / (1.0 + jnp.exp(-a))).astype(o_ref.dtype)

    return kernel


def gate_mlp(sums, w1, b1, w2, b2, *, s_valid):
    N, C_in = sums.shape
    Hd = int(w1.shape[1])
    C_out = int(w2.shape[1])
    return pl.pallas_call(
        _make_gate_kernel(1.0 / float(s_valid)),
        out_shape=jax.ShapeDtypeStruct((N, C_out), sums.dtype),
        grid=(1,),
        in_specs=[
            pl.BlockSpec((N, C_in), lambda i: (0, 0)),
            pl.BlockSpec((C_in, Hd), lambda i: (0, 0)),
            pl.BlockSpec((1, Hd), lambda i: (0, 0)),
            pl.BlockSpec((Hd, C_out), lambda i: (0, 0)),
            pl.BlockSpec((1, C_out), lambda i: (0, 0)),
        ],
        out_specs=pl.BlockSpec((N, C_out), lambda i: (0, 0)),
    )(sums, w1, b1.reshape(1, Hd), w2, b2.reshape(1, C_out))


# ---------------------------------------------------------------------------
# Channel-wise scaling:  out[n, c, s] = x[n, c, s] * a[n, c]
# ---------------------------------------------------------------------------
def _scale_kernel(a_ref, x_ref, o_ref):
    o_ref[...] = x_ref[...] * a_ref[...]


def channel_scale(x, a, *, t_s, vmem_limit_bytes=40 * 1024 * 1024):
    N, C, S = x.shape
    return pl.pallas_call(
        _scale_kernel,
        out_shape=jax.ShapeDtypeStruct(x.shape, x.dtype),
        grid=(N, S // t_s),
        in_specs=[
            pl.BlockSpec((None, C, 1), lambda n, s: (n, 0, 0)),
            pl.BlockSpec((None, C, t_s), lambda n, s: (n, 0, s)),
        ],
        out_specs=pl.BlockSpec((None, C, t_s), lambda n, s: (n, 0, s)),
        compiler_params=pltpu.CompilerParams(
            dimension_semantics=("parallel", "parallel"),
            vmem_limit_bytes=vmem_limit_bytes,
        ),
    )(a[:, :, None], x)


# ---------------------------------------------------------------------------
# Tile selection / parameter init / full forward
# ---------------------------------------------------------------------------
def _round_up(x, m):
    return (x + m - 1) // m * m


def _choose_spatial_tile(s, c_in, c_out, budget_bytes=28 * 1024 * 1024):
    """Largest lane tile (multiple of 128) s.t. double-buffered x/z4 blocks,
    in-kernel temporaries and resident weights fit the VMEM budget."""
    c1, c2, c3 = CH
    per_lane = 4 * (2 * c_in + 2 * c_out          # double-buffered x in, z4 out
                    + c_in + 256 + c1 + c2 + c3 + c_out)   # in-kernel temps
    w_elems = (256 * c_in + c1 * 256
               + 256 * (c_in + c1) + c2 * 256
               + 256 * (c_in + c1 + c2) + c3 * 256
               + c_out * (c_in + c1 + c2 + c3) + 2048)
    w_bytes = 2 * 4 * w_elems                     # pessimistic: double-buffered
    cap = (budget_bytes - w_bytes) // per_lane
    cap = max(128, min(2048, cap // 128 * 128))
    s128 = _round_up(s, 128)
    if s128 <= cap:
        return s128, s128
    n_tiles = -(-s128 // cap)
    t_s = _round_up(-(-s128 // n_tiles), 128)
    return t_s, n_tiles * t_s


def init_temporal_block_params(key, in_channels=512):
    ch = list(CH)

    def conv_init(k, c_out, c_in):
        k1, k2 = jax.random.split(k)
        bound = 1.0 / (c_in ** 0.5)
        w = jax.random.uniform(k1, (c_out, c_in), jnp.float32, -bound, bound)
        b = jax.random.uniform(k2, (c_out,), jnp.float32, -bound, bound)
        return w, b

    def linear_init(k, c_in, c_out):
        k1, k2 = jax.random.split(k)
        bound = 1.0 / (c_in ** 0.5)
        w = jax.random.uniform(k1, (c_in, c_out), jnp.float32, -bound, bound)
        b = jax.random.uniform(k2, (c_out,), jnp.float32, -bound, bound)
        return w, b

    keys = jax.random.split(key, 9)
    return {
        "cconv1": conv_init(keys[0], 256, in_channels),
        "dconv1": conv_init(keys[1], ch[0], 256),
        "cconv2": conv_init(keys[2], 256, in_channels + ch[0]),
        "dconv2": conv_init(keys[3], ch[1], 256),
        "cconv3": conv_init(keys[4], 256, in_channels + ch[0] + ch[1]),
        "dconv3": conv_init(keys[5], ch[2], 256),
        "cconv4": conv_init(keys[6], 512, in_channels + sum(ch)),
        "dense1": linear_init(keys[7], in_channels, 128),
        "dense2": linear_init(keys[8], 128, 512),
    }


@jax.jit
def temporal_block_forward(params, x):
    """x: (N, 512, D, H, W)  ->  (N, 512, D, H, W)   (NCDHW, as in PyTorch)."""
    N, C, D, H, W = x.shape
    S = D * H * W
    t_s, s_pad = _choose_spatial_tile(S, C, 512)

    # Channels on sublane axis, flattened spatial on lane axis: no transposes.
    xf = x.reshape(N, C, S)
    if s_pad != S:
        # 1x1x1 convs never mix spatial positions, so zero-padded lanes can't
        # contaminate valid lanes; only the GAP masks them out.
        xf = jnp.pad(xf, ((0, 0), (0, 0), (0, s_pad - S)))

    # DenseTemporalBlock + GAP partial sums in one fused pass.
    z4, sums = dense_block_and_gap(xf, params, s_valid=S, t_s=t_s)

    # TemporalChannelAwareBlock.
    w1, b1 = params["dense1"]; w2, b2 = params["dense2"]
    a = gate_mlp(sums, w1, b1, w2, b2, s_valid=S)        # (N, 512)
    out = channel_scale(z4, a, t_s=t_s)                  # (N, 512, s_pad)

    return out[:, :, :S].reshape(N, 512, D, H, W)


# ---------------------------------------------------------------------------
# Plain-JAX reference (mirrors the PyTorch forward).
# ---------------------------------------------------------------------------
def temporal_block_reference(params, x):
    N, C, D, H, W = x.shape
    xf = x.reshape(N, C, D * H * W)

    def conv(inp, wb):
        w, b = wb
        y = jnp.einsum("oc,ncs->nos", w, inp) + b[None, :, None]
        return jnp.maximum(y, 0.0)

    z1 = conv(conv(xf, params["cconv1"]), params["dconv1"])
    z2 = conv(conv(jnp.concatenate([xf, z1], axis=1), params["cconv2"]),
              params["dconv2"])
    z3 = conv(conv(jnp.concatenate([xf, z1, z2], axis=1), params["cconv3"]),
              params["dconv3"])
    z4 = conv(jnp.concatenate([xf, z1, z2, z3], axis=1), params["cconv4"])

    g = jnp.mean(z4, axis=2)
    w1, b1 = params["dense1"]; w2, b2 = params["dense2"]
    h = jnp.maximum(g @ w1 + b1, 0.0)
    a = 1.0 / (1.0 + jnp.exp(-(h @ w2 + b2)))
    out = z4 * a[:, :, None]
    return out.reshape(N, 512, D, H, W)


if __name__ == "__main__":
    key = jax.random.PRNGKey(0)
    k_params, k_x = jax.random.split(key)

    N, C_in = 2, 512
    D, H, W = 3, 4, 5          # S = 60 -> padded to 128 (exercises mask path)

    params = init_temporal_block_params(k_params, C_in)
    x = jax.random.normal(k_x, (N, C_in, D, H, W), jnp.float32)

    out = jax.block_until_ready(temporal_block_forward(params, x))
    ref = jax.block_until_ready(temporal_block_reference(params, x))

    assert out.shape == (N, 512, D, H, W)
    err = float(jnp.max(jnp.abs(out - ref)) / (jnp.max(jnp.abs(ref)) + 1e-6))
    assert err < 2e-2, f"max relative error too large: {err}"
    print("KERNEL_OK")
</pallas_src>

<mosaic_0001>
module attributes {stable_mosaic.version = 11 : i64} {
  func.func @kernel(%arg0: i32, %arg1: i32, %arg2: memref<1x512x128xf32, #tpu.memory_space<vmem>>, %arg3: memref<256x512xf32, #tpu.memory_space<vmem>>, %arg4: memref<256x1xf32, #tpu.memory_space<vmem>>, %arg5: memref<64x256xf32, #tpu.memory_space<vmem>>, %arg6: memref<64x1xf32, #tpu.memory_space<vmem>>, %arg7: memref<256x512xf32, #tpu.memory_space<vmem>>, %arg8: memref<256x64xf32, #tpu.memory_space<vmem>>, %arg9: memref<256x1xf32, #tpu.memory_space<vmem>>, %arg10: memref<64x256xf32, #tpu.memory_space<vmem>>, %arg11: memref<64x1xf32, #tpu.memory_space<vmem>>, %arg12: memref<256x512xf32, #tpu.memory_space<vmem>>, %arg13: memref<256x64xf32, #tpu.memory_space<vmem>>, %arg14: memref<256x64xf32, #tpu.memory_space<vmem>>, %arg15: memref<256x1xf32, #tpu.memory_space<vmem>>, %arg16: memref<64x256xf32, #tpu.memory_space<vmem>>, %arg17: memref<64x1xf32, #tpu.memory_space<vmem>>, %arg18: memref<512x512xf32, #tpu.memory_space<vmem>>, %arg19: memref<512x64xf32, #tpu.memory_space<vmem>>, %arg20: memref<512x64xf32, #tpu.memory_space<vmem>>, %arg21: memref<512x64xf32, #tpu.memory_space<vmem>>, %arg22: memref<512x1xf32, #tpu.memory_space<vmem>>, %arg23: memref<1x512x128xf32, #tpu.memory_space<vmem>>, %arg24: memref<1x512x1xf32, #tpu.memory_space<vmem>>) attributes {dimension_semantics = [#tpu.dimension_semantics<parallel>, #tpu.dimension_semantics<arbitrary>], iteration_bounds = array<i64: 2, 1>, scalar_prefetch = 0 : i64, scratch_operands = 0 : i64, tpu.core_type = #tpu.core_type<tc>, window_params = [{transform_indices = @transform_0, window_bounds = array<i64: 1, 512, 128>}, {pipeline_mode = #tpu.pipeline_mode<synchronous>, transform_indices = @transform_1, window_bounds = array<i64: 256, 512>}, {pipeline_mode = #tpu.pipeline_mode<synchronous>, transform_indices = @transform_2, window_bounds = array<i64: 256, 1>}, {pipeline_mode = #tpu.pipeline_mode<synchronous>, transform_indices = @transform_3, window_bounds = array<i64: 64, 256>}, {pipeline_mode = #tpu.pipeline_mode<synchronous>, transform_indices = @transform_4, window_bounds = array<i64: 64, 1>}, {pipeline_mode = #tpu.pipeline_mode<synchronous>, transform_indices = @transform_5, window_bounds = array<i64: 256, 512>}, {pipeline_mode = #tpu.pipeline_mode<synchronous>, transform_indices = @transform_6, window_bounds = array<i64: 256, 64>}, {pipeline_mode = #tpu.pipeline_mode<synchronous>, transform_indices = @transform_7, window_bounds = array<i64: 256, 1>}, {pipeline_mode = #tpu.pipeline_mode<synchronous>, transform_indices = @transform_8, window_bounds = array<i64: 64, 256>}, {pipeline_mode = #tpu.pipeline_mode<synchronous>, transform_indices = @transform_9, window_bounds = array<i64: 64, 1>}, {pipeline_mode = #tpu.pipeline_mode<synchronous>, transform_indices = @transform_10, window_bounds = array<i64: 256, 512>}, {pipeline_mode = #tpu.pipeline_mode<synchronous>, transform_indices = @transform_11, window_bounds = array<i64: 256, 64>}, {pipeline_mode = #tpu.pipeline_mode<synchronous>, transform_indices = @transform_12, window_bounds = array<i64: 256, 64>}, {pipeline_mode = #tpu.pipeline_mode<synchronous>, transform_indices = @transform_13, window_bounds = array<i64: 256, 1>}, {pipeline_mode = #tpu.pipeline_mode<synchronous>, transform_indices = @transform_14, window_bounds = array<i64: 64, 256>}, {pipeline_mode = #tpu.pipeline_mode<synchronous>, transform_indices = @transform_15, window_bounds = array<i64: 64, 1>}, {pipeline_mode = #tpu.pipeline_mode<synchronous>, transform_indices = @transform_16, window_bounds = array<i64: 512, 512>}, {pipeline_mode = #tpu.pipeline_mode<synchronous>, transform_indices = @transform_17, window_bounds = array<i64: 512, 64>}, {pipeline_mode = #tpu.pipeline_mode<synchronous>, transform_indices = @transform_18, window_bounds = array<i64: 512, 64>}, {pipeline_mode = #tpu.pipeline_mode<synchronous>, transform_indices = @transform_19, window_bounds = array<i64: 512, 64>}, {pipeline_mode = #tpu.pipeline_mode<synchronous>, transform_indices = @transform_20, window_bounds = array<i64: 512, 1>}, {transform_indices = @transform_21, window_bounds = array<i64: 1, 512, 128>}, {transform_indices = @transform_22, window_bounds = array<i64: 1, 512, 1>}]} {
    %c0 = arith.constant 0 : index
    %c0_0 = arith.constant 0 : index
    %c0_1 = arith.constant 0 : index
    %0 = vector.load %arg2[%c0, %c0_0, %c0_1] : memref<1x512x128xf32, #tpu.memory_space<vmem>>, vector<1x512x128xf32>
    %1 = vector.shape_cast %0 : vector<1x512x128xf32> to vector<512x128xf32>
    %c0_2 = arith.constant 0 : index
    %c0_3 = arith.constant 0 : index
    %2 = vector.load %arg3[%c0_2, %c0_3] : memref<256x512xf32, #tpu.memory_space<vmem>>, vector<256x512xf32>
    %cst = arith.constant dense<0.000000e+00> : vector<256x128xf32>
    %3 = tpu.matmul %2, %1, %cst {dimension_numbers = #tpu.dot_dimension_numbers<[1], [0], [0], [1], [0, 0, 1, 1], [], []>} : vector<256x512xf32>, vector<512x128xf32>, vector<256x128xf32> -> vector<256x128xf32>
    %c0_4 = arith.constant 0 : index
    %c0_5 = arith.constant 0 : index
    %4 = vector.load %arg4[%c0_4, %c0_5] : memref<256x1xf32, #tpu.memory_space<vmem>>, vector<256x1xf32>
    %5 = vector.broadcast %4 : vector<256x1xf32> to vector<256x128xf32>
    %6 = arith.addf %3, %5 : vector<256x128xf32>
    %cst_6 = arith.constant 0.000000e+00 : f32
    %7 = vector.broadcast %cst_6 : f32 to vector<256x128xf32>
    %8 = arith.maximumf %6, %7 : vector<256x128xf32>
    %c0_7 = arith.constant 0 : index
    %c0_8 = arith.constant 0 : index
    %9 = vector.load %arg5[%c0_7, %c0_8] : memref<64x256xf32, #tpu.memory_space<vmem>>, vector<64x256xf32>
    %cst_9 = arith.constant dense<0.000000e+00> : vector<64x128xf32>
    %10 = tpu.matmul %9, %8, %cst_9 {dimension_numbers = #tpu.dot_dimension_numbers<[1], [0], [0], [1], [0, 0, 1, 1], [], []>} : vector<64x256xf32>, vector<256x128xf32>, vector<64x128xf32> -> vector<64x128xf32>
    %c0_10 = arith.constant 0 : index
    %c0_11 = arith.constant 0 : index
    %11 = vector.load %arg6[%c0_10, %c0_11] : memref<64x1xf32, #tpu.memory_space<vmem>>, vector<64x1xf32>
    %12 = vector.broadcast %11 : vector<64x1xf32> to vector<64x128xf32>
    %13 = arith.addf %10, %12 : vector<64x128xf32>
    %cst_12 = arith.constant 0.000000e+00 : f32
    %14 = vector.broadcast %cst_12 : f32 to vector<64x128xf32>
    %15 = arith.maximumf %13, %14 : vector<64x128xf32>
    %c0_13 = arith.constant 0 : index
    %c0_14 = arith.constant 0 : index
    %16 = vector.load %arg7[%c0_13, %c0_14] : memref<256x512xf32, #tpu.memory_space<vmem>>, vector<256x512xf32>
    %cst_15 = arith.constant dense<0.000000e+00> : vector<256x128xf32>
    %17 = tpu.matmul %16, %1, %cst_15 {dimension_numbers = #tpu.dot_dimension_numbers<[1], [0], [0], [1], [0, 0, 1, 1], [], []>} : vector<256x512xf32>, vector<512x128xf32>, vector<256x128xf32> -> vector<256x128xf32>
    %c0_16 = arith.constant 0 : index
    %c0_17 = arith.constant 0 : index
    %18 = vector.load %arg8[%c0_16, %c0_17] : memref<256x64xf32, #tpu.memory_space<vmem>>, vector<256x64xf32>
    %cst_18 = arith.constant dense<0.000000e+00> : vector<256x128xf32>
    %19 = tpu.matmul %18, %15, %cst_18 {dimension_numbers = #tpu.dot_dimension_numbers<[1], [0], [0], [1], [0, 0, 1, 1], [], []>} : vector<256x64xf32>, vector<64x128xf32>, vector<256x128xf32> -> vector<256x128xf32>
    %20 = arith.addf %17, %19 : vector<256x128xf32>
    %c0_19 = arith.constant 0 : index
    %c0_20 = arith.constant 0 : index
    %21 = vector.load %arg9[%c0_19, %c0_20] : memref<256x1xf32, #tpu.memory_space<vmem>>, vector<256x1xf32>
    %22 = vector.broadcast %21 : vector<256x1xf32> to vector<256x128xf32>
    %23 = arith.addf %20, %22 : vector<256x128xf32>
    %cst_21 = arith.constant 0.000000e+00 : f32
    %24 = vector.broadcast %cst_21 : f32 to vector<256x128xf32>
    %25 = arith.maximumf %23, %24 : vector<256x128xf32>
    %c0_22 = arith.constant 0 : index
    %c0_23 = arith.constant 0 : index
    %26 = vector.load %arg10[%c0_22, %c0_23] : memref<64x256xf32, #tpu.memory_space<vmem>>, vector<64x256xf32>
    %cst_24 = arith.constant dense<0.000000e+00> : vector<64x128xf32>
    %27 = tpu.matmul %26, %25, %cst_24 {dimension_numbers = #tpu.dot_dimension_numbers<[1], [0], [0], [1], [0, 0, 1, 1], [], []>} : vector<64x256xf32>, vector<256x128xf32>, vector<64x128xf32> -> vector<64x128xf32>
    %c0_25 = arith.constant 0 : index
    %c0_26 = arith.constant 0 : index
    %28 = vector.load %arg11[%c0_25, %c0_26] : memref<64x1xf32, #tpu.memory_space<vmem>>, vector<64x1xf32>
    %29 = vector.broadcast %28 : vector<64x1xf32> to vector<64x128xf32>
    %30 = arith.addf %27, %29 : vector<64x128xf32>
    %cst_27 = arith.constant 0.000000e+00 : f32
    %31 = vector.broadcast %cst_27 : f32 to vector<64x128xf32>
    %32 = arith.maximumf %30, %31 : vector<64x128xf32>
    %c0_28 = arith.constant 0 : index
    %c0_29 = arith.constant 0 : index
    %33 = vector.load %arg12[%c0_28, %c0_29] : memref<256x512xf32, #tpu.memory_space<vmem>>, vector<256x512xf32>
    %cst_30 = arith.constant dense<0.000000e+00> : vector<256x128xf32>
    %34 = tpu.matmul %33, %1, %cst_30 {dimension_numbers = #tpu.dot_dimension_numbers<[1], [0], [0], [1], [0, 0, 1, 1], [], []>} : vector<256x512xf32>, vector<512x128xf32>, vector<256x128xf32> -> vector<256x128xf32>
    %c0_31 = arith.constant 0 : index
    %c0_32 = arith.constant 0 : index
    %35 = vector.load %arg13[%c0_31, %c0_32] : memref<256x64xf32, #tpu.memory_space<vmem>>, vector<256x64xf32>
    %cst_33 = arith.constant dense<0.000000e+00> : vector<256x128xf32>
    %36 = tpu.matmul %35, %15, %cst_33 {dimension_numbers = #tpu.dot_dimension_numbers<[1], [0], [0], [1], [0, 0, 1, 1], [], []>} : vector<256x64xf32>, vector<64x128xf32>, vector<256x128xf32> -> vector<256x128xf32>
    %37 = arith.addf %34, %36 : vector<256x128xf32>
    %c0_34 = arith.constant 0 : index
    %c0_35 = arith.constant 0 : index
    %38 = vector.load %arg14[%c0_34, %c0_35] : memref<256x64xf32, #tpu.memory_space<vmem>>, vector<256x64xf32>
    %cst_36 = arith.constant dense<0.000000e+00> : vector<256x128xf32>
    %39 = tpu.matmul %38, %32, %cst_36 {dimension_numbers = #tpu.dot_dimension_numbers<[1], [0], [0], [1], [0, 0, 1, 1], [], []>} : vector<256x64xf32>, vector<64x128xf32>, vector<256x128xf32> -> vector<256x128xf32>
    %40 = arith.addf %37, %39 : vector<256x128xf32>
    %c0_37 = arith.constant 0 : index
    %c0_38 = arith.constant 0 : index
    %41 = vector.load %arg15[%c0_37, %c0_38] : memref<256x1xf32, #tpu.memory_space<vmem>>, vector<256x1xf32>
    %42 = vector.broadcast %41 : vector<256x1xf32> to vector<256x128xf32>
    %43 = arith.addf %40, %42 : vector<256x128xf32>
    %cst_39 = arith.constant 0.000000e+00 : f32
    %44 = vector.broadcast %cst_39 : f32 to vector<256x128xf32>
    %45 = arith.maximumf %43, %44 : vector<256x128xf32>
    %c0_40 = arith.constant 0 : index
    %c0_41 = arith.constant 0 : index
    %46 = vector.load %arg16[%c0_40, %c0_41] : memref<64x256xf32, #tpu.memory_space<vmem>>, vector<64x256xf32>
    %cst_42 = arith.constant dense<0.000000e+00> : vector<64x128xf32>
    %47 = tpu.matmul %46, %45, %cst_42 {dimension_numbers = #tpu.dot_dimension_numbers<[1], [0], [0], [1], [0, 0, 1, 1], [], []>} : vector<64x256xf32>, vector<256x128xf32>, vector<64x128xf32> -> vector<64x128xf32>
    %c0_43 = arith.constant 0 : index
    %c0_44 = arith.constant 0 : index
    %48 = vector.load %arg17[%c0_43, %c0_44] : memref<64x1xf32, #tpu.memory_space<vmem>>, vector<64x1xf32>
    %49 = vector.broadcast %48 : vector<64x1xf32> to vector<64x128xf32>
    %50 = arith.addf %47, %49 : vector<64x128xf32>
    %cst_45 = arith.constant 0.000000e+00 : f32
    %51 = vector.broadcast %cst_45 : f32 to vector<64x128xf32>
    %52 = arith.maximumf %50, %51 : vector<64x128xf32>
    %c0_46 = arith.constant 0 : index
    %c0_47 = arith.constant 0 : index
    %53 = vector.load %arg18[%c0_46, %c0_47] : memref<512x512xf32, #tpu.memory_space<vmem>>, vector<512x512xf32>
    %cst_48 = arith.constant dense<0.000000e+00> : vector<512x128xf32>
    %54 = tpu.matmul %53, %1, %cst_48 {dimension_numbers = #tpu.dot_dimension_numbers<[1], [0], [0], [1], [0, 0, 1, 1], [], []>} : vector<512x512xf32>, vector<512x128xf32>, vector<512x128xf32> -> vector<512x128xf32>
    %c0_49 = arith.constant 0 : index
    %c0_50 = arith.constant 0 : index
    %55 = vector.load %arg19[%c0_49, %c0_50] : memref<512x64xf32, #tpu.memory_space<vmem>>, vector<512x64xf32>
    %cst_51 = arith.constant dense<0.000000e+00> : vector<512x128xf32>
    %56 = tpu.matmul %55, %15, %cst_51 {dimension_numbers = #tpu.dot_dimension_numbers<[1], [0], [0], [1], [0, 0, 1, 1], [], []>} : vector<512x64xf32>, vector<64x128xf32>, vector<512x128xf32> -> vector<512x128xf32>
    %57 = arith.addf %54, %56 : vector<512x128xf32>
    %c0_52 = arith.constant 0 : index
    %c0_53 = arith.constant 0 : index
    %58 = vector.load %arg20[%c0_52, %c0_53] : memref<512x64xf32, #tpu.memory_space<vmem>>, vector<512x64xf32>
    %cst_54 = arith.constant dense<0.000000e+00> : vector<512x128xf32>
    %59 = tpu.matmul %58, %32, %cst_54 {dimension_numbers = #tpu.dot_dimension_numbers<[1], [0], [0], [1], [0, 0, 1, 1], [], []>} : vector<512x64xf32>, vector<64x128xf32>, vector<512x128xf32> -> vector<512x128xf32>
    %60 = arith.addf %57, %59 : vector<512x128xf32>
    %c0_55 = arith.constant 0 : index
    %c0_56 = arith.constant 0 : index
    %61 = vector.load %arg21[%c0_55, %c0_56] : memref<512x64xf32, #tpu.memory_space<vmem>>, vector<512x64xf32>
    %cst_57 = arith.constant dense<0.000000e+00> : vector<512x128xf32>
    %62 = tpu.matmul %61, %52, %cst_57 {dimension_numbers = #tpu.dot_dimension_numbers<[1], [0], [0], [1], [0, 0, 1, 1], [], []>} : vector<512x64xf32>, vector<64x128xf32>, vector<512x128xf32> -> vector<512x128xf32>
    %63 = arith.addf %60, %62 : vector<512x128xf32>
    %c0_58 = arith.constant 0 : index
    %c0_59 = arith.constant 0 : index
    %64 = vector.load %arg22[%c0_58, %c0_59] : memref<512x1xf32, #tpu.memory_space<vmem>>, vector<512x1xf32>
    %65 = vector.broadcast %64 : vector<512x1xf32> to vector<512x128xf32>
    %66 = arith.addf %63, %65 : vector<512x128xf32>
    %cst_60 = arith.constant 0.000000e+00 : f32
    %67 = vector.broadcast %cst_60 : f32 to vector<512x128xf32>
    %68 = arith.maximumf %66, %67 : vector<512x128xf32>
    %c0_61 = arith.constant 0 : index
    %c0_62 = arith.constant 0 : index
    %c0_63 = arith.constant 0 : index
    %69 = vector.load %arg23[%c0_61, %c0_62, %c0_63] : memref<1x512x128xf32, #tpu.memory_space<vmem>>, vector<1x512x128xf32>
    %70 = vector.shape_cast %69 : vector<1x512x128xf32> to vector<512x128xf32>
    %71 = vector.shape_cast %68 : vector<512x128xf32> to vector<1x512x128xf32>
    tpu.vector_store %arg23[%c0_61, %c0_62, %c0_63], %71 {strides = array<i32>} : memref<1x512x128xf32, #tpu.memory_space<vmem>>, vector<1x512x128xf32>,
    %c0_i32 = arith.constant 0 : i32
    %72 = arith.cmpi eq, %arg1, %c0_i32 : i32
    %73 = arith.extui %72 : i1 to i32
    %c0_i32_64 = arith.constant 0 : i32
    %74 = arith.cmpi ne, %73, %c0_i32_64 : i32
    scf.if %74 {
      %cst_73 = arith.constant 0.000000e+00 : f32
      %91 = vector.broadcast %cst_73 : f32 to vector<512x1xf32>
      %c0_74 = arith.constant 0 : index
      %c0_75 = arith.constant 0 : index
      %c0_76 = arith.constant 0 : index
      %92 = vector.load %arg24[%c0_74, %c0_75, %c0_76] : memref<1x512x1xf32, #tpu.memory_space<vmem>>, vector<1x512x1xf32>
      %93 = vector.shape_cast %92 : vector<1x512x1xf32> to vector<512x1xf32>
      %94 = vector.shape_cast %91 : vector<512x1xf32> to vector<1x512x1xf32>
      tpu.vector_store %arg24[%c0_74, %c0_75, %c0_76], %94 {strides = array<i32>} : memref<1x512x1xf32, #tpu.memory_space<vmem>>, vector<1x512x1xf32>,
    } else {
    }
    %75 = tpu.iota {dimensions = array<i32: 1>} : vector<512x128xi32>
    %c128_i32 = arith.constant 128 : i32
    %76 = arith.muli %arg1, %c128_i32 : i32
    %77 = vector.broadcast %76 : i32 to vector<512x128xi32>
    %78 = arith.addi %77, %75 : vector<512x128xi32>
    %c60_i32 = arith.constant 60 : i32
    %79 = vector.broadcast %c60_i32 : i32 to vector<512x128xi32>
    %80 = arith.cmpi slt, %78, %79 : vector<512x128xi32>
    %c0_65 = arith.constant 0 : index
    %c0_66 = arith.constant 0 : index
    %c0_67 = arith.constant 0 : index
    %81 = vector.load %arg24[%c0_65, %c0_66, %c0_67] : memref<1x512x1xf32, #tpu.memory_space<vmem>>, vector<1x512x1xf32>
    %82 = vector.shape_cast %81 : vector<1x512x1xf32> to vector<512x1xf32>
    %cst_68 = arith.constant 0.000000e+00 : f32
    %83 = vector.broadcast %cst_68 : f32 to vector<512x128xf32>
    %84 = arith.select %80, %68, %83 : vector<512x128xi1>, vector<512x128xf32>
    %cst_69 = arith.constant dense<0.000000e+00> : vector<512xf32>
    %85 = vector.multi_reduction <add>, %84, %cst_69 [1] : vector<512x128xf32> to vector<512xf32>
    %86 = vector.shape_cast %85 : vector<512xf32> to vector<512x1xf32>
    %87 = arith.addf %82, %86 : vector<512x1xf32>
    %c0_70 = arith.constant 0 : index
    %c0_71 = arith.constant 0 : index
    %c0_72 = arith.constant 0 : index
    %88 = vector.load %arg24[%c0_70, %c0_71, %c0_72] : memref<1x512x1xf32, #tpu.memory_space<vmem>>, vector<1x512x1xf32>
    %89 = vector.shape_cast %88 : vector<1x512x1xf32> to vector<512x1xf32>
    %90 = vector.shape_cast %87 : vector<512x1xf32> to vector<1x512x1xf32>
    tpu.vector_store %arg24[%c0_70, %c0_71, %c0_72], %90 {strides = array<i32>} : memref<1x512x1xf32, #tpu.memory_space<vmem>>, vector<1x512x1xf32>,
    return
  }
  func.func @transform_0(%arg0: i32, %arg1: i32) -> (i32, i32, i32) {
    %c0_i32 = arith.constant 0 : i32
    %c0_i32_0 = arith.constant 0 : i32
    return %arg0, %c0_i32, %arg1 : i32, i32, i32
  }
  func.func @transform_1(%arg0: i32, %arg1: i32) -> (i32, i32) {
    %c0_i32 = arith.constant 0 : i32
    %c0_i32_0 = arith.constant 0 : i32
    %c0_i32_1 = arith.constant 0 : i32
    return %c0_i32, %c0_i32_0 : i32, i32
  }
  func.func @transform_2(%arg0: i32, %arg1: i32) -> (i32, i32) {
    %c0_i32 = arith.constant 0 : i32
    %c0_i32_0 = arith.constant 0 : i32
    %c0_i32_1 = arith.constant 0 : i32
    return %c0_i32, %c0_i32_0 : i32, i32
  }
  func.func @transform_3(%arg0: i32, %arg1: i32) -> (i32, i32) {
    %c0_i32 = arith.constant 0 : i32
    %c0_i32_0 = arith.constant 0 : i32
    %c0_i32_1 = arith.constant 0 : i32
    return %c0_i32, %c0_i32_0 : i32, i32
  }
  func.func @transform_4(%arg0: i32, %arg1: i32) -> (i32, i32) {
    %c0_i32 = arith.constant 0 : i32
    %c0_i32_0 = arith.constant 0 : i32
    %c0_i32_1 = arith.constant 0 : i32
    return %c0_i32, %c0_i32_0 : i32, i32
  }
  func.func @transform_5(%arg0: i32, %arg1: i32) -> (i32, i32) {
    %c0_i32 = arith.constant 0 : i32
    %c0_i32_0 = arith.constant 0 : i32
    %c0_i32_1 = arith.constant 0 : i32
    return %c0_i32, %c0_i32_0 : i32, i32
  }
  func.func @transform_6(%arg0: i32, %arg1: i32) -> (i32, i32) {
    %c0_i32 = arith.constant 0 : i32
    %c0_i32_0 = arith.constant 0 : i32
    %c0_i32_1 = arith.constant 0 : i32
    return %c0_i32, %c0_i32_0 : i32, i32
  }
  func.func @transform_7(%arg0: i32, %arg1: i32) -> (i32, i32) {
    %c0_i32 = arith.constant 0 : i32
    %c0_i32_0 = arith.constant 0 : i32
    %c0_i32_1 = arith.constant 0 : i32
    return %c0_i32, %c0_i32_0 : i32, i32
  }
  func.func @transform_8(%arg0: i32, %arg1: i32) -> (i32, i32) {
    %c0_i32 = arith.constant 0 : i32
    %c0_i32_0 = arith.constant 0 : i32
    %c0_i32_1 = arith.constant 0 : i32
    return %c0_i32, %c0_i32_0 : i32, i32
  }
  func.func @transform_9(%arg0: i32, %arg1: i32) -> (i32, i32) {
    %c0_i32 = arith.constant 0 : i32
    %c0_i32_0 = arith.constant 0 : i32
    %c0_i32_1 = arith.constant 0 : i32
    return %c0_i32, %c0_i32_0 : i32, i32
  }
  func.func @transform_10(%arg0: i32, %arg1: i32) -> (i32, i32) {
    %c0_i32 = arith.constant 0 : i32
    %c0_i32_0 = arith.constant 0 : i32
    %c0_i32_1 = arith.constant 0 : i32
    return %c0_i32, %c0_i32_0 : i32, i32
  }
  func.func @transform_11(%arg0: i32, %arg1: i32) -> (i32, i32) {
    %c0_i32 = arith.constant 0 : i32
    %c0_i32_0 = arith.constant 0 : i32
    %c0_i32_1 = arith.constant 0 : i32
    return %c0_i32, %c0_i32_0 : i32, i32
  }
  func.func @transform_12(%arg0: i32, %arg1: i32) -> (i32, i32) {
    %c0_i32 = arith.constant 0 : i32
    %c0_i32_0 = arith.constant 0 : i32
    %c0_i32_1 = arith.constant 0 : i32
    return %c0_i32, %c0_i32_0 : i32, i32
  }
  func.func @transform_13(%arg0: i32, %arg1: i32) -> (i32, i32) {
    %c0_i32 = arith.constant 0 : i32
    %c0_i32_0 = arith.constant 0 : i32
    %c0_i32_1 = arith.constant 0 : i32
    return %c0_i32, %c0_i32_0 : i32, i32
  }
  func.func @transform_14(%arg0: i32, %arg1: i32) -> (i32, i32) {
    %c0_i32 = arith.constant 0 : i32
    %c0_i32_0 = arith.constant 0 : i32
    %c0_i32_1 = arith.constant 0 : i32
    return %c0_i32, %c0_i32_0 : i32, i32
  }
  func.func @transform_15(%arg0: i32, %arg1: i32) -> (i32, i32) {
    %c0_i32 = arith.constant 0 : i32
    %c0_i32_0 = arith.constant 0 : i32
    %c0_i32_1 = arith.constant 0 : i32
    return %c0_i32, %c0_i32_0 : i32, i32
  }
  func.func @transform_16(%arg0: i32, %arg1: i32) -> (i32, i32) {
    %c0_i32 = arith.constant 0 : i32
    %c0_i32_0 = arith.constant 0 : i32
    %c0_i32_1 = arith.constant 0 : i32
    return %c0_i32, %c0_i32_0 : i32, i32
  }
  func.func @transform_17(%arg0: i32, %arg1: i32) -> (i32, i32) {
    %c0_i32 = arith.constant 0 : i32
    %c0_i32_0 = arith.constant 0 : i32
    %c0_i32_1 = arith.constant 0 : i32
    return %c0_i32, %c0_i32_0 : i32, i32
  }
  func.func @transform_18(%arg0: i32, %arg1: i32) -> (i32, i32) {
    %c0_i32 = arith.constant 0 : i32
    %c0_i32_0 = arith.constant 0 : i32
    %c0_i32_1 = arith.constant 0 : i32
    return %c0_i32, %c0_i32_0 : i32, i32
  }
  func.func @transform_19(%arg0: i32, %arg1: i32) -> (i32, i32) {
    %c0_i32 = arith.constant 0 : i32
    %c0_i32_0 = arith.constant 0 : i32
    %c0_i32_1 = arith.constant 0 : i32
    return %c0_i32, %c0_i32_0 : i32, i32
  }
  func.func @transform_20(%arg0: i32, %arg1: i32) -> (i32, i32) {
    %c0_i32 = arith.constant 0 : i32
    %c0_i32_0 = arith.constant 0 : i32
    %c0_i32_1 = arith.constant 0 : i32
    return %c0_i32, %c0_i32_0 : i32, i32
  }
  func.func @transform_21(%arg0: i32, %arg1: i32) -> (i32, i32, i32) {
    %c0_i32 = arith.constant 0 : i32
    %c0_i32_0 = arith.constant 0 : i32
    return %arg0, %c0_i32, %arg1 : i32, i32, i32
  }
  func.func @transform_22(%arg0: i32, %arg1: i32) -> (i32, i32, i32) {
    %c0_i32 = arith.constant 0 : i32
    %c0_i32_0 = arith.constant 0 : i32
    %c0_i32_1 = arith.constant 0 : i32
    return %arg0, %c0_i32, %c0_i32_0 : i32, i32, i32
  }
}

module attributes {stable_mosaic.version = 11 : i64} {
  func.func @kernel(%arg0: i32, %arg1: memref<2x512xf32, #tpu.memory_space<vmem>>, %arg2: memref<512x128xf32, #tpu.memory_space<vmem>>, %arg3: memref<1x128xf32, #tpu.memory_space<vmem>>, %arg4: memref<128x512xf32, #tpu.memory_space<vmem>>, %arg5: memref<1x512xf32, #tpu.memory_space<vmem>>, %arg6: memref<2x512xf32, #tpu.memory_space<vmem>>) attributes {dimension_semantics = [#tpu.dimension_semantics<arbitrary>], iteration_bounds = array<i64: 1>, scalar_prefetch = 0 : i64, scratch_operands = 0 : i64, tpu.core_type = #tpu.core_type<tc>, window_params = [{pipeline_mode = #tpu.pipeline_mode<synchronous>, transform_indices = @transform_0, window_bounds = array<i64: 2, 512>}, {pipeline_mode = #tpu.pipeline_mode<synchronous>, transform_indices = @transform_1, window_bounds = array<i64: 512, 128>}, {pipeline_mode = #tpu.pipeline_mode<synchronous>, transform_indices = @transform_2, window_bounds = array<i64: 1, 128>}, {pipeline_mode = #tpu.pipeline_mode<synchronous>, transform_indices = @transform_3, window_bounds = array<i64: 128, 512>}, {pipeline_mode = #tpu.pipeline_mode<synchronous>, transform_indices = @transform_4, window_bounds = array<i64: 1, 512>}, {pipeline_mode = #tpu.pipeline_mode<synchronous>, transform_indices = @transform_5, window_bounds = array<i64: 2, 512>}]} {
    %c0 = arith.constant 0 : index
    %c0_0 = arith.constant 0 : index
    %0 = vector.load %arg1[%c0, %c0_0] : memref<2x512xf32, #tpu.memory_space<vmem>>, vector<2x512xf32>
    %cst = arith.constant 0.0166666675 : f32
    %1 = vector.broadcast %cst : f32 to vector<2x512xf32>
    %2 = arith.mulf %0, %1 : vector<2x512xf32>
    %c0_1 = arith.constant 0 : index
    %c0_2 = arith.constant 0 : index
    %3 = vector.load %arg2[%c0_1, %c0_2] : memref<512x128xf32, #tpu.memory_space<vmem>>, vector<512x128xf32>
    %cst_3 = arith.constant dense<0.000000e+00> : vector<2x128xf32>
    %4 = tpu.matmul %2, %3, %cst_3 {dimension_numbers = #tpu.dot_dimension_numbers<[1], [0], [0], [1], [0, 0, 1, 1], [], []>} : vector<2x512xf32>, vector<512x128xf32>, vector<2x128xf32> -> vector<2x128xf32>
    %c0_4 = arith.constant 0 : index
    %c0_5 = arith.constant 0 : index
    %5 = vector.load %arg3[%c0_4, %c0_5] : memref<1x128xf32, #tpu.memory_space<vmem>>, vector<1x128xf32>
    %6 = vector.broadcast %5 : vector<1x128xf32> to vector<2x128xf32>
    %7 = arith.addf %4, %6 : vector<2x128xf32>
    %cst_6 = arith.constant 0.000000e+00 : f32
    %8 = vector.broadcast %cst_6 : f32 to vector<2x128xf32>
    %9 = arith.maximumf %7, %8 : vector<2x128xf32>
    %c0_7 = arith.constant 0 : index
    %c0_8 = arith.constant 0 : index
    %10 = vector.load %arg4[%c0_7, %c0_8] : memref<128x512xf32, #tpu.memory_space<vmem>>, vector<128x512xf32>
    %cst_9 = arith.constant dense<0.000000e+00> : vector<2x512xf32>
    %11 = tpu.matmul %9, %10, %cst_9 {dimension_numbers = #tpu.dot_dimension_numbers<[1], [0], [0], [1], [0, 0, 1, 1], [], []>} : vector<2x128xf32>, vector<128x512xf32>, vector<2x512xf32> -> vector<2x512xf32>
    %c0_10 = arith.constant 0 : index
    %c0_11 = arith.constant 0 : index
    %12 = vector.load %arg5[%c0_10, %c0_11] : memref<1x512xf32, #tpu.memory_space<vmem>>, vector<1x512xf32>
    %13 = vector.broadcast %12 : vector<1x512xf32> to vector<2x512xf32>
    %14 = arith.addf %11, %13 : vector<2x512xf32>
    %cst_12 = arith.constant 0.000000e+00 : f32
    %15 = vector.broadcast %cst_12 : f32 to vector<2x512xf32>
    %16 = arith.subf %15, %14 : vector<2x512xf32>
    %17 = math.exp %16 : vector<2x512xf32>
    %cst_13 = arith.constant 1.000000e+00 : f32
    %18 = vector.broadcast %cst_13 : f32 to vector<2x512xf32>
    %19 = arith.addf %18, %17 : vector<2x512xf32>
    %cst_14 = arith.constant 1.000000e+00 : f32
    %20 = vector.broadcast %cst_14 : f32 to vector<2x512xf32>
    %21 = arith.divf %20, %19 : vector<2x512xf32>
    %c0_15 = arith.constant 0 : index
    %c0_16 = arith.constant 0 : index
    %22 = vector.load %arg6[%c0_15, %c0_16] : memref<2x512xf32, #tpu.memory_space<vmem>>, vector<2x512xf32>
    tpu.vector_store %arg6[%c0_15, %c0_16], %21 {strides = array<i32>} : memref<2x512xf32, #tpu.memory_space<vmem>>, vector<2x512xf32>,
    return
  }
  func.func @transform_0(%arg0: i32) -> (i32, i32) {
    %c0_i32 = arith.constant 0 : i32
    %c0_i32_0 = arith.constant 0 : i32
    %c0_i32_1 = arith.constant 0 : i32
    return %c0_i32, %c0_i32_0 : i32, i32
  }
  func.func @transform_1(%arg0: i32) -> (i32, i32) {
    %c0_i32 = arith.constant 0 : i32
    %c0_i32_0 = arith.constant 0 : i32
    %c0_i32_1 = arith.constant 0 : i32
    return %c0_i32, %c0_i32_0 : i32, i32
  }
  func.func @transform_2(%arg0: i32) -> (i32, i32) {
    %c0_i32 = arith.constant 0 : i32
    %c0_i32_0 = arith.constant 0 : i32
    %c0_i32_1 = arith.constant 0 : i32
    return %c0_i32, %c0_i32_0 : i32, i32
  }
  func.func @transform_3(%arg0: i32) -> (i32, i32) {
    %c0_i32 = arith.constant 0 : i32
    %c0_i32_0 = arith.constant 0 : i32
    %c0_i32_1 = arith.constant 0 : i32
    return %c0_i32, %c0_i32_0 : i32, i32
  }
  func.func @transform_4(%arg0: i32) -> (i32, i32) {
    %c0_i32 = arith.constant 0 : i32
    %c0_i32_0 = arith.constant 0 : i32
    %c0_i32_1 = arith.constant 0 : i32
    return %c0_i32, %c0_i32_0 : i32, i32
  }
  func.func @transform_5(%arg0: i32) -> (i32, i32) {
    %c0_i32 = arith.constant 0 : i32
    %c0_i32_0 = arith.constant 0 : i32
    %c0_i32_1 = arith.constant 0 : i32
    return %c0_i32, %c0_i32_0 : i32, i32
  }
}

module attributes {stable_mosaic.version = 11 : i64} {
  func.func @_scale_kernel(%arg0: i32, %arg1: i32, %arg2: memref<1x512x1xf32, #tpu.memory_space<vmem>>, %arg3: memref<1x512x128xf32, #tpu.memory_space<vmem>>, %arg4: memref<1x512x128xf32, #tpu.memory_space<vmem>>) attributes {dimension_semantics = [#tpu.dimension_semantics<parallel>, #tpu.dimension_semantics<parallel>], iteration_bounds = array<i64: 2, 1>, scalar_prefetch = 0 : i64, scratch_operands = 0 : i64, tpu.core_type = #tpu.core_type<tc>, window_params = [{transform_indices = @transform_0, window_bounds = array<i64: 1, 512, 1>}, {transform_indices = @transform_1, window_bounds = array<i64: 1, 512, 128>}, {transform_indices = @transform_2, window_bounds = array<i64: 1, 512, 128>}]} {
    %c0 = arith.constant 0 : index
    %c0_0 = arith.constant 0 : index
    %c0_1 = arith.constant 0 : index
    %0 = vector.load %arg3[%c0, %c0_0, %c0_1] : memref<1x512x128xf32, #tpu.memory_space<vmem>>, vector<1x512x128xf32>
    %1 = vector.shape_cast %0 : vector<1x512x128xf32> to vector<512x128xf32>
    %c0_2 = arith.constant 0 : index
    %c0_3 = arith.constant 0 : index
    %c0_4 = arith.constant 0 : index
    %2 = vector.load %arg2[%c0_2, %c0_3, %c0_4] : memref<1x512x1xf32, #tpu.memory_space<vmem>>, vector<1x512x1xf32>
    %3 = vector.shape_cast %2 : vector<1x512x1xf32> to vector<512x1xf32>
    %4 = vector.broadcast %3 : vector<512x1xf32> to vector<512x128xf32>
    %5 = arith.mulf %1, %4 : vector<512x128xf32>
    %c0_5 = arith.constant 0 : index
    %c0_6 = arith.constant 0 : index
    %c0_7 = arith.constant 0 : index
    %6 = vector.load %arg4[%c0_5, %c0_6, %c0_7] : memref<1x512x128xf32, #tpu.memory_space<vmem>>, vector<1x512x128xf32>
    %7 = vector.shape_cast %6 : vector<1x512x128xf32> to vector<512x128xf32>
    %8 = vector.shape_cast %5 : vector<512x128xf32> to vector<1x512x128xf32>
    tpu.vector_store %arg4[%c0_5, %c0_6, %c0_7], %8 {strides = array<i32>} : memref<1x512x128xf32, #tpu.memory_space<vmem>>, vector<1x512x128xf32>,
    return
  }
  func.func @transform_0(%arg0: i32, %arg1: i32) -> (i32, i32, i32) {
    %c0_i32 = arith.constant 0 : i32
    %c0_i32_0 = arith.constant 0 : i32
    %c0_i32_1 = arith.constant 0 : i32
    return %arg0, %c0_i32, %c0_i32_0 : i32, i32, i32
  }
  func.func @transform_1(%arg0: i32, %arg1: i32) -> (i32, i32, i32) {
    %c0_i32 = arith.constant 0 : i32
    %c0_i32_0 = arith.constant 0 : i32
    return %arg0, %c0_i32, %arg1 : i32, i32, i32
  }
  func.func @transform_2(%arg0: i32, %arg1: i32) -> (i32, i32, i32) {
    %c0_i32 = arith.constant 0 : i32
    %c0_i32_0 = arith.constant 0 : i32
    return %arg0, %c0_i32, %arg1 : i32, i32, i32
  }
}

</mosaic_0001>

<bundles_post_ra>
// kernel: temporal_block_forward.4
= control target key start
LH: loop header
LB: loop body
LE: loop exit
PB: predicated region body
PF: predicated region fallthrough
CT: control target
= control target key end

     0   :  { %v752_v51 = vmov 1983009808   ;;  %v98_v53 = vlaneseq  ;;  %s1193_s1 = inlined_call_operand.vmem [shape: f32[512,128], index: 1, kind: input, shape index: {}]   ;;  %s1194_s0 = inlined_call_operand.vmem [shape: f32[2,512], index: 0, kind: input, shape index: {}]   ;;  %s1195_s3 = inlined_call_operand.vmem [shape: f32[128,512], index: 3, kind: input, shape index: {}]   ;;  %s1196_s2 = inlined_call_operand.vmem [shape: f32[1,128], index: 2, kind: input, shape index: {}]   ;;  %s1197_s4 = inlined_call_operand.vmem [shape: f32[1,512], index: 4, kind: input, shape index: {}]   ;;  %s1198_s5 = inlined_call_operand.vmem [shape: f32[2,512], index: 5, kind: output, shape index: {}]  }
   0x1   :  { %v38_v0 = vld [vmem:[%s1193_s1 + $0x80] sm:$0xff]  ;;  %v39_v1 = vld [vmem:[%s1193_s1 + $0x88] sm:$0xff]  ;;  %v40_v11 = vld [vmem:[%s1193_s1 + $0x90] sm:$0xff]  ;;  %v96_v52 = vunpack.c.l.s4 %v752_v51 }
   0x2   :  { %v22_v2 = vld [vmem:[%s1193_s1] sm:$0xff]  ;;  %v606_v3 = vpack.c.bf16 %v39_v1, %v38_v0  ;;  %v23_v4 = vld [vmem:[%s1193_s1 + $0x8] sm:$0xff]  ;;  %v41_v13 = vld [vmem:[%s1193_s1 + $0x98] sm:$0xff] }
   0x3   :  { %v70_v5 = vld [vmem:[%s1193_s1 + $0x180] sm:$0xff]  ;;  %v71_v6 = vld [vmem:[%s1193_s1 + $0x188] sm:$0xff]  ;;  %v608_v7 = vpack.c.bf16 %v23_v4, %v22_v2  ;;  %v24_v14 = vld [vmem:[%s1193_s1 + $0x10] sm:$0xff]  ;;  %v610_v16 = vpack.c.bf16 %v41_v13, %v40_v11  ;;  %v97_v2 = vunpack.c.0.s8 %v96_v52 }
   0x4   :  { %v638_v8 = vpack.c.bf16 %v71_v6, %v70_v5  ;;  %v54_v9 = vld [vmem:[%s1193_s1 + $0x100] sm:$0xff]  ;;  %v55_v10 = vld [vmem:[%s1193_s1 + $0x108] sm:$0xff]  ;;  %607 = vmatprep.subr.bf16.mxu0 %v606_v3  ;;  %v25_v15 = vld [vmem:[%s1193_s1 + $0x18] sm:$0xff]  ;;  %v916_v3 = vshrl.u32 %v98_v53, 7 }
   0x5   :  { %v640_v12 = vpack.c.bf16 %v55_v10, %v54_v9  ;;  %609 = vmatpush3.bf16.msra.mxu0 %v608_v7  ;;  %v612_v17 = vpack.c.bf16 %v25_v15, %v24_v14  ;;  %v72_v18 = vld [vmem:[%s1193_s1 + $0x190] sm:$0xff]  ;;  %v73_v19 = vld [vmem:[%s1193_s1 + $0x198] sm:$0xff]  ;;  %v42_v23 = vld [vmem:[%s1193_s1 + $0xa0] sm:$0xff] }
   0x6   :  { %639 = vmatprep.subr.bf16.mxu1 %v638_v8  ;;  %v56_v20 = vld [vmem:[%s1193_s1 + $0x110] sm:$0xff]  ;;  %v642_v21 = vpack.c.bf16 %v73_v19, %v72_v18  ;;  %v57_v22 = vld [vmem:[%s1193_s1 + $0x118] sm:$0xff]  ;;  %v43_v24 = vld [vmem:[%s1193_s1 + $0xa8] sm:$0xff]  ;;  %611 = vmatprep.subr.bf16.mxu0 %v610_v16 }
   0x7   :  { %641 = vmatpush3.bf16.msra.mxu1 %v640_v12  ;;  %v644_v25 = vpack.c.bf16 %v57_v22, %v56_v20  ;;  %v614_v26 = vpack.c.bf16 %v43_v24, %v42_v23  ;;  %v26_v27 = vld [vmem:[%s1193_s1 + $0x20] sm:$0xff]  ;;  %v27_v28 = vld [vmem:[%s1193_s1 + $0x28] sm:$0xff]  ;;  %v44_v35 = vld [vmem:[%s1193_s1 + $0xb0] sm:$0xff] }
   0x8   :  { %v74_v29 = vld [vmem:[%s1193_s1 + $0x1a0] sm:$0xff]  ;;  %643 = vmatprep.subr.bf16.mxu1 %v642_v21  ;;  %v75_v30 = vld [vmem:[%s1193_s1 + $0x1a8] sm:$0xff]  ;;  %v616_v33 = vpack.c.bf16 %v27_v28, %v26_v27  ;;  %v45_v36 = vld [vmem:[%s1193_s1 + $0xb8] sm:$0xff] }
   0x9   :  { %v58_v31 = vld [vmem:[%s1193_s1 + $0x120] sm:$0xff]  ;;  %v59_v32 = vld [vmem:[%s1193_s1 + $0x128] sm:$0xff]  ;;  %613 = vmatpush3.bf16.msra.mxu0 %v612_v17  ;;  %v646_v34 = vpack.c.bf16 %v75_v30, %v74_v29  ;;  %v28_v37 = vld [vmem:[%s1193_s1 + $0x30] sm:$0xff]  ;;  %v618_v39 = vpack.c.bf16 %v45_v36, %v44_v35  ;;  %v946_v17 = vsub.s32 %v97_v2, %v916_v3 }
   0xa   :  { %615 = vmatprep.subr.bf16.mxu0 %v614_v26  ;;  %v648_v38 = vpack.c.bf16 %v59_v32, %v58_v31  ;;  %v29_v40 = vld [vmem:[%s1193_s1 + $0x38] sm:$0xff]  ;;  %v76_v41 = vld [vmem:[%s1193_s1 + $0x1b0] sm:$0xff]  ;;  %v46_v46 = vld [vmem:[%s1193_s1 + $0xc0] sm:$0xff] }
   0xb   :  { %645 = vmatpush3.bf16.msra.mxu1 %v644_v25  ;;  %v77_v42 = vld [vmem:[%s1193_s1 + $0x1b8] sm:$0xff]  ;;  %v60_v44 = vld [vmem:[%s1193_s1 + $0x130] sm:$0xff]  ;;  %v47_v47 = vld [vmem:[%s1193_s1 + $0xc8] sm:$0xff]  ;;  %v620_v48 = vpack.c.bf16 %v29_v40, %v28_v37 }
   0xc   :  { %647 = vmatprep.subr.bf16.mxu1 %v646_v34  ;;  %v650_v43 = vpack.c.bf16 %v77_v42, %v76_v41  ;;  %v61_v45 = vld [vmem:[%s1193_s1 + $0x138] sm:$0xff]  ;;  %v78_v49 = vld [vmem:[%s1193_s1 + $0x1c0] sm:$0xff]  ;;  %v79_v50 = vld [vmem:[%s1193_s1 + $0x1c8] sm:$0xff]  ;;  %v622_v55 = vpack.c.bf16 %v47_v47, %v46_v46 }
   0xd   :  { %617 = vmatpush3.bf16.msra.mxu0 %v616_v33  ;;  %v652_v54 = vpack.c.bf16 %v61_v45, %v60_v44  ;;  %v30_v56 = vld [vmem:[%s1193_s1 + $0x40] sm:$0xff]  ;;  %v31_v57 = vld [vmem:[%s1193_s1 + $0x48] sm:$0xff]  ;;  %v654_v59 = vpack.c.bf16 %v79_v50, %v78_v49  ;;  %v48_v61 = vld [vmem:[%s1193_s1 + $0xd0] sm:$0xff] }
   0xe   :  { %619 = vmatprep.subr.bf16.mxu0 %v618_v39  ;;  %v62_v58 = vld [vmem:[%s1193_s1 + $0x140] sm:$0xff]  ;;  %v63_v60 = vld [vmem:[%s1193_s1 + $0x148] sm:$0xff]  ;;  %v49_v62 = vld [vmem:[%s1193_s1 + $0xd8] sm:$0xff]  ;;  %v624_v1 = vpack.c.bf16 %v31_v57, %v30_v56 }
   0xf   :  { %649 = vmatpush3.bf16.msra.mxu1 %v648_v38  ;;  %v80_v63 = vld [vmem:[%s1193_s1 + $0x1d0] sm:$0xff]  ;;  %v81_v0 = vld [vmem:[%s1193_s1 + $0x1d8] sm:$0xff]  ;;  %v656_v4 = vpack.c.bf16 %v63_v60, %v62_v58  ;;  %v626_v5 = vpack.c.bf16 %v49_v62, %v48_v61  ;;  %v50_v11 = vld [vmem:[%s1193_s1 + $0xe0] sm:$0xff] }
  0x10   :  { %651 = vmatprep.subr.bf16.mxu1 %v650_v43  ;;  %v32_v6 = vld [vmem:[%s1193_s1 + $0x50] sm:$0xff]  ;;  %v33_v7 = vld [vmem:[%s1193_s1 + $0x58] sm:$0xff]  ;;  %v658_v9 = vpack.c.bf16 %v81_v0, %v80_v63  ;;  %v51_v12 = vld [vmem:[%s1193_s1 + $0xe8] sm:$0xff] }
  0x11   :  { %621 = vmatpush3.bf16.msra.mxu0 %v620_v48  ;;  %v64_v8 = vld [vmem:[%s1193_s1 + $0x150] sm:$0xff]  ;;  %v65_v10 = vld [vmem:[%s1193_s1 + $0x158] sm:$0xff]  ;;  %v82_v13 = vld [vmem:[%s1193_s1 + $0x1e0] sm:$0xff]  ;;  %v628_v15 = vpack.c.bf16 %v33_v7, %v32_v6  ;;  %v630_v19 = vpack.c.bf16 %v51_v12, %v50_v11 }
  0x12   :  { %623 = vmatprep.subr.bf16.mxu0 %v622_v55  ;;  %v83_v14 = vld [vmem:[%s1193_s1 + $0x1e8] sm:$0xff]  ;;  %v34_v16 = vld [vmem:[%s1193_s1 + $0x60] sm:$0xff]  ;;  %v660_v18 = vpack.c.bf16 %v65_v10, %v64_v8  ;;  %v52_v25 = vld [vmem:[%s1193_s1 + $0xf0] sm:$0xff] }
  0x13   :  { %653 = vmatpush3.bf16.msra.mxu1 %v652_v54  ;;  %v35_v20 = vld [vmem:[%s1193_s1 + $0x68] sm:$0xff]  ;;  %v66_v21 = vld [vmem:[%s1193_s1 + $0x160] sm:$0xff]  ;;  %v662_v23 = vpack.c.bf16 %v83_v14, %v82_v13  ;;  %v53_v26 = vld [vmem:[%s1193_s1 + $0xf8] sm:$0xff] }
  0x14   :  { %655 = vmatprep.subr.bf16.mxu1 %v654_v59  ;;  %v20_v22 = vld [vmem:[%s1194_s0] sm:$0xff]  ;;  %v67_v24 = vld [vmem:[%s1193_s1 + $0x168] sm:$0xff]  ;;  %v84_v28 = vld [vmem:[%s1193_s1 + $0x1f0] sm:$0xff]  ;;  %v632_v30 = vpack.c.bf16 %v35_v20, %v34_v16  ;;  %v634_v34 = vpack.c.bf16 %v53_v26, %v52_v25 }
  0x15   :  { %625 = vmatpush3.bf16.msra.mxu0 %v624_v1  ;;  %v21_v27 = vmul.f32 0.016666668, %v20_v22  ;;  %v85_v29 = vld [vmem:[%s1193_s1 + $0x1f8] sm:$0xff]  ;;  %v664_v33 = vpack.c.bf16 %v67_v24, %v66_v21  ;;  %v36_v35 = vld [vmem:[%s1193_s1 + $0x70] sm:$0xff]  ;;  %v257_v42 = vld [vmem:[%s1195_s3 + $0x8] sm:$0xff] }
  0x16   :  { %627 = vmatprep.subr.bf16.mxu0 %v626_v5  ;;  %v37_v36 = vld [vmem:[%s1193_s1 + $0x78] sm:$0xff]  ;;  %v68_v37 = vld [vmem:[%s1193_s1 + $0x170] sm:$0xff]  ;;  %v666_v38 = vpack.c.bf16 %v85_v29, %v84_v28  ;;  %v261_v43 = vld [vmem:[%s1195_s3 + $0x28] sm:$0xff] }
  0x17   :  { %657 = vmatpush3.bf16.msra.mxu1 %v656_v4  ;;  %v101_v31 = vrot.slane %v21_v27, %v946_v17  ;;  %v94_v32 = vcombine.high %v21_v27, %v21_v27  ;;  %v69_v39 = vld [vmem:[%s1193_s1 + $0x178] sm:$0xff]  ;;  %v636_v46 = vpack.c.bf16 %v37_v36, %v36_v35  ;;  %v670_v49 = vpack.c.bf16 %v261_v43, %v257_v42  ;;  %v256_v50 = vld [vmem:[%s1195_s3] sm:$0xff]  ;;  %v258_v52 = vld [vmem:[%s1195_s3 + $0x10] sm:$0xff] }
  0x18   :  { %659 = vmatprep.subr.bf16.mxu1 %v658_v9  ;;  %v259_v44 = vld [vmem:[%s1195_s3 + $0x18] sm:$0xff]  ;;  %v668_v48 = vpack.c.bf16 %v69_v39, %v68_v37  ;;  %v260_v51 = vld [vmem:[%s1195_s3 + $0x20] sm:$0xff]  ;;  %v262_v54 = vld [vmem:[%s1195_s3 + $0x30] sm:$0xff] }
  0x19   :  { %629 = vmatpush3.bf16.msra.mxu0 %v628_v15  ;;  %v109_v40 = vcombine.high %v101_v31, %v101_v31  ;;  %v108_v41 = vrot.slane %v94_v32, %v946_v17  ;;  %v263_v45 = vld [vmem:[%s1195_s3 + $0x38] sm:$0xff]  ;;  %v265_v55 = vld [vmem:[%s1195_s3 + $0x48] sm:$0xff]  ;;  %v672_v59 = vpack.c.bf16 %v260_v51, %v256_v50  ;;  %v704_v60 = vpack.c.bf16 %v262_v54, %v258_v52  ;;  %v264_v62 = vld [vmem:[%s1195_s3 + $0x40] sm:$0xff] }
  0x1a   :  { %631 = vmatprep.subr.bf16.mxu0 %v630_v19  ;;  %v702_v53 = vpack.c.bf16 %v263_v45, %v259_v44  ;;  %v269_v56 = vld [vmem:[%s1195_s3 + $0x68] sm:$0xff]  ;;  %v267_v57 = vld [vmem:[%s1195_s3 + $0x58] sm:$0xff]  ;;  %v268_v63 = vld [vmem:[%s1195_s3 + $0x60] sm:$0xff] }
  0x1b   :  { %661 = vmatpush3.bf16.msra.mxu1 %v660_v18  ;;  %179 = vmatprep.mubr.f32.mxu0 %v109_v40  ;;  %v110_v47 = vcombine.high %v108_v41, %v108_v41  ;;  %v271_v58 = vld [vmem:[%s1195_s3 + $0x78] sm:$0xff]  ;;  %v674_v61 = vpack.c.bf16 %v269_v56, %v265_v55  ;;  %v266_v0 = vld [vmem:[%s1195_s3 + $0x50] sm:$0xff]  ;;  %v273_v4 = vld [vmem:[%s1195_s3 + $0x88] sm:$0xff]  ;;  %v676_v8 = vpack.c.bf16 %v268_v63, %v264_v62 }
  0x1c   :  { %663 = vmatprep.subr.bf16.mxu1 %v662_v23  ;;  %v706_v1 = vpack.c.bf16 %v271_v58, %v267_v57  ;;  %v270_v2 = vld [vmem:[%s1195_s3 + $0x70] sm:$0xff]  ;;  %v277_v5 = vld [vmem:[%s1195_s3 + $0xa8] sm:$0xff]  ;;  %v275_v6 = vld [vmem:[%s1195_s3 + $0x98] sm:$0xff] }
  0x1d   :  { %633 = vmatpush3.bf16.msra.mxu0 %v632_v30  ;;  %249 = vmatprep.mubr.f32.mxu1 %v110_v47  ;;  %v279_v7 = vld [vmem:[%s1195_s3 + $0xb8] sm:$0xff]  ;;  %v708_v9 = vpack.c.bf16 %v270_v2, %v266_v0  ;;  %v678_v10 = vpack.c.bf16 %v277_v5, %v273_v4  ;;  %v272_v11 = vld [vmem:[%s1195_s3 + $0x80] sm:$0xff]  ;;  %v274_v13 = vld [vmem:[%s1195_s3 + $0x90] sm:$0xff] }
  0x1e   :  { %635 = vmatprep.subr.bf16.mxu0 %v634_v34  ;;  %v276_v12 = vld [vmem:[%s1195_s3 + $0xa0] sm:$0xff]  ;;  %v710_v14 = vpack.c.bf16 %v279_v7, %v275_v6  ;;  %v278_v15 = vld [vmem:[%s1195_s3 + $0xb0] sm:$0xff]  ;;  %v281_v16 = vld [vmem:[%s1195_s3 + $0xc8] sm:$0xff] }
  0x1f   :  { %665 = vmatpush3.bf16.msra.mxu1 %v664_v33  ;;  %v285_v18 = vld [vmem:[%s1195_s3 + $0xe8] sm:$0xff]  ;;  %v283_v19 = vld [vmem:[%s1195_s3 + $0xd8] sm:$0xff]  ;;  %v680_v21 = vpack.c.bf16 %v276_v12, %v272_v11  ;;  %v712_v22 = vpack.c.bf16 %v278_v15, %v274_v13  ;;  %v280_v24 = vld [vmem:[%s1195_s3 + $0xc0] sm:$0xff] }
  0x20   :  { %667 = vmatprep.subr.bf16.mxu1 %v666_v38  ;;  %v287_v20 = vld [vmem:[%s1195_s3 + $0xf8] sm:$0xff]  ;;  %v682_v23 = vpack.c.bf16 %v285_v18, %v281_v16  ;;  %v284_v25 = vld [vmem:[%s1195_s3 + $0xe0] sm:$0xff]  ;;  %v282_v26 = vld [vmem:[%s1195_s3 + $0xd0] sm:$0xff]  ;;  %v753_v16 = vmov 0.0  }
  0x21   :  { %637 = vmatpush3.bf16.msra.mxu0 %v636_v46  ;;  %v714_v27 = vpack.c.bf16 %v287_v20, %v283_v19  ;;  %v286_v28 = vld [vmem:[%s1195_s3 + $0xf0] sm:$0xff]  ;;  %v289_v29 = vld [vmem:[%s1195_s3 + $0x108] sm:$0xff]  ;;  %v295_v32 = vld [vmem:[%s1195_s3 + $0x138] sm:$0xff]  ;;  %v684_v33 = vpack.c.bf16 %v284_v25, %v280_v24 }
  0x22   :  { %671 = vmatprep.subr.bf16.mxu0 %v670_v49  ;;  %v293_v30 = vld [vmem:[%s1195_s3 + $0x128] sm:$0xff]  ;;  %v716_v34 = vpack.c.bf16 %v286_v28, %v282_v26  ;;  %v288_v36 = vld [vmem:[%s1195_s3 + $0x100] sm:$0xff]  ;;  %v290_v38 = vld [vmem:[%s1195_s3 + $0x110] sm:$0xff]  ;;  %v324_v28 = vsub.s32 0, %v916_v3 }
  0x23   :  { %669 = vmatpush3.bf16.msra.mxu1 %v668_v48  ;;  %v686_v35 = vpack.c.bf16 %v293_v30, %v289_v29  ;;  %v292_v37 = vld [vmem:[%s1195_s3 + $0x120] sm:$0xff]  ;;  %v294_v40 = vld [vmem:[%s1195_s3 + $0x130] sm:$0xff]  ;;  %v301_v42 = vld [vmem:[%s1195_s3 + $0x168] sm:$0xff]  ;;  %v332_v29 = vsub.s32 2, %v916_v3 }
  0x24   :  { %703 = vmatprep.subr.bf16.mxu1 %v702_v53  ;;  %180 = vmatmul.mubr.f32.vlgmr.msra.gmra.mrb[0].mxu0 %v101_v31  ;;  %v291_v31 = vld [vmem:[%s1195_s3 + $0x118] sm:$0xff]  ;;  %v688_v45 = vpack.c.bf16 %v292_v37, %v288_v36  ;;  %v720_v46 = vpack.c.bf16 %v294_v40, %v290_v38  ;;  %v296_v48 = vld [vmem:[%s1195_s3 + $0x140] sm:$0xff]  ;;  %v298_v51 = vld [vmem:[%s1195_s3 + $0x150] sm:$0xff] }
  0x25   :  { %673 = vmatpush1.bf16.msra.mxu0 %v672_v59  ;;  %v718_v39 = vpack.c.bf16 %v295_v32, %v291_v31  ;;  %v299_v43 = vld [vmem:[%s1195_s3 + $0x158] sm:$0xff]  ;;  %v300_v49 = vld [vmem:[%s1195_s3 + $0x160] sm:$0xff]  ;;  %v302_v52 = vld [vmem:[%s1195_s3 + $0x170] sm:$0xff]  ;;  %406 = vmatprep.mubr.f32.mxu0 %v753_v16  ;;  %v328_v31 = vsub.s32 1, %v916_v3  ;;  %v336_v32 = vsub.s32 3, %v916_v3 }
  0x26   :  { %250 = vmatmul.mubr.f32.vlgmr.msra.gmra.mrb[0].mxu1 %v108_v41  ;;  %675 = vmatprep.subr.bf16.mxu0 %v674_v61  ;;  %v297_v41 = vld [vmem:[%s1195_s3 + $0x148] sm:$0xff]  ;;  %v303_v44 = vld [vmem:[%s1195_s3 + $0x178] sm:$0xff]  ;;  %v692_v53 = vpack.c.bf16 %v300_v49, %v296_v48  ;;  %v724_v54 = vpack.c.bf16 %v302_v52, %v298_v51  ;;  %v308_v61 = vld [vmem:[%s1195_s3 + $0x1a0] sm:$0xff] }
  0x27   :  { %705 = vmatpush1.bf16.msra.mxu1 %v704_v60  ;;  %v690_v47 = vpack.c.bf16 %v301_v42, %v297_v41  ;;  %v722_v50 = vpack.c.bf16 %v303_v44, %v299_v43  ;;  %v305_v55 = vld [vmem:[%s1195_s3 + $0x188] sm:$0xff]  ;;  %v307_v57 = vld [vmem:[%s1195_s3 + $0x198] sm:$0xff]  ;;  %v304_v60 = vld [vmem:[%s1195_s3 + $0x180] sm:$0xff]  ;;  %477 = vmatprep.mubr.f32.mxu1 %v753_v16 }
  0x28   :  { %707 = vmatprep.subr.bf16.mxu1 %v706_v1  ;;  %v309_v56 = vld [vmem:[%s1195_s3 + $0x1a8] sm:$0xff]  ;;  %v311_v59 = vld [vmem:[%s1195_s3 + $0x1b8] sm:$0xff]  ;;  %v696_v63 = vpack.c.bf16 %v308_v61, %v304_v60  ;;  %v306_v0 = vld [vmem:[%s1195_s3 + $0x190] sm:$0xff] }
  0x29   :  { %677 = vmatpush1.bf16.msra.mxu0 %v676_v8  ;;  %v694_v58 = vpack.c.bf16 %v309_v56, %v305_v55  ;;  %v726_v62 = vpack.c.bf16 %v311_v59, %v307_v57  ;;  %v310_v1 = vld [vmem:[%s1195_s3 + $0x1b0] sm:$0xff]  ;;  %v313_v4 = vld [vmem:[%s1195_s3 + $0x1c8] sm:$0xff]  ;;  %v315_v6 = vld [vmem:[%s1195_s3 + $0x1d8] sm:$0xff] }
  0x2a   :  { %679 = vmatprep.subr.bf16.mxu0 %v678_v10  ;;  %v728_v2 = vpack.c.bf16 %v310_v1, %v306_v0  ;;  %v317_v5 = vld [vmem:[%s1195_s3 + $0x1e8] sm:$0xff]  ;;  %v319_v8 = vld [vmem:[%s1195_s3 + $0x1f8] sm:$0xff]  ;;  %v316_v10 = vld [vmem:[%s1195_s3 + $0x1e0] sm:$0xff] }
  0x2b   :  { %709 = vmatpush1.bf16.msra.mxu1 %v708_v9  ;;  %v698_v7 = vpack.c.bf16 %v317_v5, %v313_v4  ;;  %v312_v9 = vld [vmem:[%s1195_s3 + $0x1c0] sm:$0xff]  ;;  %v730_v11 = vpack.c.bf16 %v319_v8, %v315_v6  ;;  %v314_v13 = vld [vmem:[%s1195_s3 + $0x1d0] sm:$0xff] }
  0x2c   :  { %711 = vmatprep.subr.bf16.mxu1 %v710_v14  ;;  %v700_v12 = vpack.c.bf16 %v316_v10, %v312_v9  ;;  %v318_v14 = vld [vmem:[%s1195_s3 + $0x1f0] sm:$0xff]  ;;  %v535_v19 = vld [vmem:[%s1196_s2] ss:$0 sm:$0xff] }
  0x2d   :  { %681 = vmatpush1.bf16.msra.mxu0 %v680_v21  ;;  %v732_v15 = vpack.c.bf16 %v318_v14, %v314_v13  ;;  %v320_v30 = vld [vmem:[%s1197_s4] sm:$0xf] }
  0x2e   :  { %683 = vmatprep.subr.bf16.mxu0 %v682_v23  ;;  %v337_v36 = vrot.slane %v320_v30, %v336_v32 }
  0x2f   :  { %713 = vmatpush1.bf16.msra.mxu1 %v712_v22 }
  0x30   :  { %715 = vmatprep.subr.bf16.mxu1 %v714_v27 }
  0x31   :  { %685 = vmatpush1.bf16.msra.mxu0 %v684_v33  ;;  %v325_v33 = vrot.slane %v320_v30, %v324_v28 }
  0x32   :  { %687 = vmatprep.subr.bf16.mxu0 %v686_v35  ;;  %v329_v35 = vrot.slane %v320_v30, %v328_v31 }
  0x33   :  { %717 = vmatpush1.bf16.msra.mxu1 %v716_v34  ;;  %v333_v34 = vrot.slane %v320_v30, %v332_v29 }
  0x34   :  { %719 = vmatprep.subr.bf16.mxu1 %v718_v39 }
  0x35   :  { %689 = vmatpush1.bf16.msra.mxu0 %v688_v45 }
  0x36   :  { %691 = vmatprep.subr.bf16.mxu0 %v690_v47 }
  0x37   :  { %721 = vmatpush1.bf16.msra.mxu1 %v720_v46 }
  0x38   :  { %723 = vmatprep.subr.bf16.mxu1 %v722_v50 }
  0x39   :  { %693 = vmatpush1.bf16.msra.mxu0 %v692_v53 }
  0x3a   :  { %695 = vmatprep.subr.bf16.mxu0 %v694_v58 }
  0x3b   :  { %725 = vmatpush1.bf16.msra.mxu1 %v724_v54 }
  0x3c   :  { %727 = vmatprep.subr.bf16.mxu1 %v726_v62 }
  0x3d   :  { %697 = vmatpush1.bf16.msra.mxu0 %v696_v63 }
  0x3e   :  { %699 = vmatprep.subr.bf16.mxu0 %v698_v7 }
  0x3f   :  { %729 = vmatpush1.bf16.msra.mxu1 %v728_v2 }
  0x40   :  { %731 = vmatprep.subr.bf16.mxu1 %v730_v11 }
  0x41   :  { %701 = vmatpush1.bf16.msra.mxu0 %v700_v12 }
  0x43   :  { %733 = vmatpush1.bf16.msra.mxu1 %v732_v15 }
  0xf7   :  { %v568_v18 = vpop.f32.mrb[0].mxu0 }
  0xf8   :  { %v569_v20 = vpop.f32.mrb[1].mxu0 }
  0xf9   :  { %v603_v21 = vpop.f32.mrb[0].mxu1  ;;  %v570_v22 = vadd.f32 %v569_v20, %v568_v18 }
  0xfa   :  { %v604_v23 = vpop.f32.mrb[1].mxu1 }
  0xfb   :  { %v605_v24 = vadd.f32 %v604_v23, %v603_v21  ;;  %v182_v25 = vadd.f32 %v570_v22, %v535_v19 }
  0xfd   :  { %v252_v26 = vadd.f32 %v605_v24, %v182_v25 }
  0xff   :  { %v255_v27 = vmax.f32 %v252_v26, 0.0 }
 0x101   :  { %407 = vmatmul.mubr.f32.vlgmr.msra.gmra.mrb[2].mxu0 %v255_v27  ;;  %478 = vmatmul.mubr.f32.vlgmr.msra.gmra.mrb[2].mxu1 %v255_v27 }
 0x1d4   :  { %v408_v37 = vpop.f32.mrb[2].mxu0  ;;  %v479_v38 = vpop.f32.mrb[2].mxu1 }
 0x1d5   :  { %v409_v39 = vadd.f32 %v408_v37, %v325_v33  ;;  %v480_v40 = vadd.f32 %v479_v38, %v333_v34  ;;  %v410_v41 = vpop.f32.mrb[3].mxu0  ;;  %v481_v42 = vpop.f32.mrb[3].mxu1 }
 0x1d6   :  { %v411_v43 = vadd.f32 %v410_v41, %v329_v35  ;;  %v482_v44 = vadd.f32 %v481_v42, %v337_v36 }
 0x1d7   :  { %v484_v45 = vsub.f32 0.0, %v409_v39  ;;  %v486_v46 = vsub.f32 0.0, %v480_v40 }
 0x1d8   :  { %v485_v47 = vsub.f32 0.0, %v411_v43  ;;  %v487_v48 = vsub.f32 0.0, %v482_v44 }
 0x1d9   :  { %v488_v49 = vmul.f32 1.442695, %v484_v45  ;;  %v492_v50 = vmul.f32 1.442695, %v486_v46 }
 0x1da   :  { %v490_v51 = vmul.f32 1.442695, %v485_v47  ;;  %v494_v3 = vmul.f32 1.442695, %v487_v48 }
 0x1db   :  { %736 = vpow2.f32 %v488_v49 }
 0x1dc   :  { %738 = vpow2.f32 %v492_v50 }
 0x1dd   :  { %740 = vpow2.f32 %v490_v51 }
 0x1de   :  { %742 = vpow2.f32 %v494_v3 }
 0x1e5   :  { %v737_v52 = vpop.eup %736 }
 0x1e6   :  { %v739_v53 = vpop.eup %738  ;;  %v496_v54 = vadd.f32 1.0, %v737_v52 }
 0x1e7   :  { %v741_v55 = vpop.eup %740  ;;  %v498_v56 = vadd.f32 1.0, %v739_v53 }
 0x1e8   :  { %v743_v57 = vpop.eup %742  ;;  %744 = vrcp.f32 %v496_v54  ;;  %v497_v58 = vadd.f32 1.0, %v741_v55 }
 0x1e9   :  { %746 = vrcp.f32 %v498_v56  ;;  %v499_v59 = vadd.f32 1.0, %v743_v57 }
 0x1ea   :  { %748 = vrcp.f32 %v497_v58 }
 0x1eb   :  { %750 = vrcp.f32 %v499_v59 }
 0x1f2   :  { %v745_v60 = vpop.eup %744 }
 0x1f3   :  { %v747_v61 = vpop.eup %746 }
 0x1f4   :  { %v749_v62 = vpop.eup %748 }
 0x1f5   :  { %v751_v63 = vpop.eup %750  ;;  %v512_v0 = vcombine.low %v745_v60, %v749_v62 }
 0x1f6   :  { %v513_v1 = vcombine.low %v747_v61, %v751_v63 }
 0x1f7   :  { %v520_v2 = vrot.slane %v512_v0, %v946_v17 }
 0x1f8   :  { %v527_v4 = vrot.slane %v513_v1, %v946_v17 }
 0x1fa   :  { %v528_v5 = vcombine.low %v520_v2, %v527_v4 }
 0x1fc   :  { %530 = vst [vmem:[%s1198_s5] sm:$0xff] %v528_v5 }

// kernel: temporal_block_forward.5
= control target key start
LH: loop header
LB: loop body
LE: loop exit
PB: predicated region body
PF: predicated region fallthrough
CT: control target
= control target key end

     0   :  { %s949_s9 = smov 0   ;;  %s951_s10 = smov 0   ;;  %s1188_s0 = inlined_call_operand.vmem [shape: f32[2,512,1], index: 0, kind: input, shape index: {}]   ;;  %s1189_s1 = inlined_call_operand.vmem [shape: f32[2,512,128], index: 1, kind: input, shape index: {}]   ;;  %s1190_s2 = inlined_call_operand.vmem [shape: f32[2,512,128], index: 2, kind: output, shape index: {}]  }
   0x1   :  { %s953_s11 = smov 0  }
   0x2 LB: > { %s24_s12 = sadd.s32 1, %s927_s10  ;;  %p870_p0 = scmp.ge.s32.totalorder %s931_s11, 1  ;;  %s931_s11 = sphi %s953_s11, %s12_s11   ;;  %s927_s10 = sphi %s951_s10, %s1192_s10   ;;  %s923_s9 = sphi %s949_s9, %s1191_s9  }
   0x3   : > { %p26_p1 = scmp.ge.s32.totalorder %s24_s12, 2  ;;  %p141_p2 = scmp.lt.s32.totalorder %s931_s11, 3 }
   0x5   : > { %s1194_s12 = smov (%p26_p1, %s24_s12), 0  ;;  %p142_p3 = pnand %p870_p0, %p141_p2 }
   0x6   : > { %p174_p4 = scmp.lt.s32.totalorder (!%p142_p3), %s923_s9, 1  ;;  %v933_v0 = vmov (!%p142_p3), 0  }
   0x7   : > { %145 = sbr.rel (%p142_p3) target bundleno = 273 (0x111), region = 28  ;;  %908 = vset.pattern.permute.xlu1 (!%p142_p3), %v933_v0  ;;  %907 = vset.pattern.permute.xlu0 (!%p142_p3), %v933_v0 }
   0xe   : > { %s1196_s9 = smov (!%p174_p4, %s923_s9), 1 }
   0xf   : > { %s967_s13 = sshll.u32 %s1196_s9, 9 }
  0x10   : > { %s973_s16 = scalar_lea.vmem %s1188_s0, %s967_s13  ;;  %s1043_s19 = scalar_lea.vmem %s1189_s1, %s967_s13 }
  0x11   : > { %v261_v1 = vld [vmem:[%s973_s16 + $0x10] sm:$0xff]  ;;  %v259_v2 = vld [vmem:[%s973_s16] sm:$0xff]  ;;  %v262_v3 = vld [vmem:[%s973_s16 + $0x18] sm:$0xff]  ;;  %s1051_s22 = scalar_lea.vmem %s1190_s2, %s967_s13 }
  0x12   : > { %335 = vperm.xlu1 %908, %v261_v1   ;;  %325 = vperm.xlu0 %907, %v259_v2   ;;  %v260_v4 = vld [vmem:[%s973_s16 + $0x8] sm:$0xff]  ;;  %v263_v6 = vld [vmem:[%s973_s16 + $0x20] sm:$0xff]  ;;  %v266_v7 = vld [vmem:[%s973_s16 + $0x38] sm:$0xff] }
  0x13   : > { %v264_v5 = vld [vmem:[%s973_s16 + $0x28] sm:$0xff]  ;;  %v265_v8 = vld [vmem:[%s973_s16 + $0x30] sm:$0xff]  ;;  %v267_v10 = vld [vmem:[%s973_s16 + $0x40] sm:$0xff] }
  0x14   : > { %v268_v9 = vld [vmem:[%s973_s16 + $0x48] sm:$0xff]  ;;  %v270_v11 = vld [vmem:[%s973_s16 + $0x58] sm:$0xff]  ;;  %v269_v12 = vld [vmem:[%s973_s16 + $0x50] sm:$0xff] }
  0x15   : > { %v272_v13 = vld [vmem:[%s973_s16 + $0x68] sm:$0xff]  ;;  %v271_v14 = vld [vmem:[%s973_s16 + $0x60] sm:$0xff]  ;;  %v274_v15 = vld [vmem:[%s973_s16 + $0x78] sm:$0xff] }
  0x16   : > { %340 = vperm.xlu1 %908, %v262_v3   ;;  %330 = vperm.xlu0 %907, %v260_v4   ;;  %v273_v16 = vld [vmem:[%s973_s16 + $0x70] sm:$0xff]  ;;  %v276_v17 = vld [vmem:[%s973_s16 + $0x88] sm:$0xff]  ;;  %v275_v18 = vld [vmem:[%s973_s16 + $0x80] sm:$0xff] }
  0x17   : > { %v278_v19 = vld [vmem:[%s973_s16 + $0x98] sm:$0xff]  ;;  %v277_v20 = vld [vmem:[%s973_s16 + $0x90] sm:$0xff]  ;;  %v280_v21 = vld [vmem:[%s973_s16 + $0xa8] sm:$0xff] }
  0x18   : > { %v279_v22 = vld [vmem:[%s973_s16 + $0xa0] sm:$0xff]  ;;  %v282_v23 = vld [vmem:[%s973_s16 + $0xb8] sm:$0xff]  ;;  %v281_v24 = vld [vmem:[%s973_s16 + $0xb0] sm:$0xff] }
  0x19   : > { %v284_v25 = vld [vmem:[%s973_s16 + $0xc8] sm:$0xff]  ;;  %v283_v26 = vld [vmem:[%s973_s16 + $0xc0] sm:$0xff]  ;;  %v286_v27 = vld [vmem:[%s973_s16 + $0xd8] sm:$0xff] }
  0x1a   : > { %350 = vperm.xlu1 %908, %v264_v5   ;;  %345 = vperm.xlu0 %907, %v263_v6   ;;  %v285_v28 = vld [vmem:[%s973_s16 + $0xd0] sm:$0xff]  ;;  %v288_v29 = vld [vmem:[%s973_s16 + $0xe8] sm:$0xff]  ;;  %v287_v30 = vld [vmem:[%s973_s16 + $0xe0] sm:$0xff] }
  0x1b   : > { %v290_v31 = vld [vmem:[%s973_s16 + $0xf8] sm:$0xff]  ;;  %v289_v32 = vld [vmem:[%s973_s16 + $0xf0] sm:$0xff]  ;;  %v292_v33 = vld [vmem:[%s973_s16 + $0x108] sm:$0xff] }
  0x1c   : > { %v291_v34 = vld [vmem:[%s973_s16 + $0x100] sm:$0xff]  ;;  %v294_v35 = vld [vmem:[%s973_s16 + $0x118] sm:$0xff]  ;;  %v293_v36 = vld [vmem:[%s973_s16 + $0x110] sm:$0xff] }
  0x1d   : > { %v296_v37 = vld [vmem:[%s973_s16 + $0x128] sm:$0xff]  ;;  %v295_v38 = vld [vmem:[%s973_s16 + $0x120] sm:$0xff]  ;;  %v298_v39 = vld [vmem:[%s973_s16 + $0x138] sm:$0xff] }
  0x1e   : > { %360 = vperm.xlu1 %908, %v266_v7   ;;  %355 = vperm.xlu0 %907, %v265_v8   ;;  %v297_v40 = vld [vmem:[%s973_s16 + $0x130] sm:$0xff]  ;;  %v300_v41 = vld [vmem:[%s973_s16 + $0x148] sm:$0xff]  ;;  %v299_v42 = vld [vmem:[%s973_s16 + $0x140] sm:$0xff] }
  0x1f   : > { %v302_v43 = vld [vmem:[%s973_s16 + $0x158] sm:$0xff]  ;;  %v301_v44 = vld [vmem:[%s973_s16 + $0x150] sm:$0xff]  ;;  %v304_v45 = vld [vmem:[%s973_s16 + $0x168] sm:$0xff] }
  0x20   : > { %v303_v46 = vld [vmem:[%s973_s16 + $0x160] sm:$0xff]  ;;  %v306_v47 = vld [vmem:[%s973_s16 + $0x178] sm:$0xff]  ;;  %v305_v48 = vld [vmem:[%s973_s16 + $0x170] sm:$0xff] }
  0x21   : > { %v308_v49 = vld [vmem:[%s973_s16 + $0x188] sm:$0xff]  ;;  %v307_v50 = vld [vmem:[%s973_s16 + $0x180] sm:$0xff]  ;;  %v310_v51 = vld [vmem:[%s973_s16 + $0x198] sm:$0xff] }
  0x22   : > { %370 = vperm.xlu1 %908, %v268_v9   ;;  %365 = vperm.xlu0 %907, %v267_v10   ;;  %v309_v52 = vld [vmem:[%s973_s16 + $0x190] sm:$0xff]  ;;  %v312_v53 = vld [vmem:[%s973_s16 + $0x1a8] sm:$0xff]  ;;  %v311_v54 = vld [vmem:[%s973_s16 + $0x1a0] sm:$0xff] }
  0x23   : > { %v314_v55 = vld [vmem:[%s973_s16 + $0x1b8] sm:$0xff]  ;;  %v313_v56 = vld [vmem:[%s973_s16 + $0x1b0] sm:$0xff]  ;;  %v316_v57 = vld [vmem:[%s973_s16 + $0x1c8] sm:$0xff] }
  0x24   : > { %v315_v58 = vld [vmem:[%s973_s16 + $0x1c0] sm:$0xff]  ;;  %v318_v59 = vld [vmem:[%s973_s16 + $0x1d8] sm:$0xff]  ;;  %v317_v60 = vld [vmem:[%s973_s16 + $0x1d0] sm:$0xff] }
  0x25   : > { %v320_v61 = vld [vmem:[%s973_s16 + $0x1e8] sm:$0xff]  ;;  %v319_v62 = vld [vmem:[%s973_s16 + $0x1e0] sm:$0xff]  ;;  %v322_v63 = vld [vmem:[%s973_s16 + $0x1f8] sm:$0xff] }
  0x26   : > { %380 = vperm.xlu1 %908, %v270_v11   ;;  %375 = vperm.xlu0 %907, %v269_v12   ;;  %v321_v0 = vld [vmem:[%s973_s16 + $0x1f0] sm:$0xff]  ;;  %v195_v2 = vld [vmem:[%s1043_s19] sm:$0xff]  ;;  %v198_v7 = vld [vmem:[%s1043_s19 + $0x18] sm:$0xff] }
  0x27   : > { %v197_v1 = vld [vmem:[%s1043_s19 + $0x10] sm:$0xff]  ;;  %v196_v8 = vld [vmem:[%s1043_s19 + $0x8] sm:$0xff] }
  0x2a   : > { %390 = vperm.xlu1 %908, %v272_v13   ;;  %385 = vperm.xlu0 %907, %v271_v14   ;;  %v200_v13 = vld [vmem:[%s1043_s19 + $0x28] sm:$0xff]  ;;  %v199_v14 = vld [vmem:[%s1043_s19 + $0x20] sm:$0xff] }
  0x2e   : > { %400 = vperm.xlu1 %908, %v274_v15   ;;  %395 = vperm.xlu0 %907, %v273_v16  }
  0x32   : > { %410 = vperm.xlu1 %908, %v276_v17   ;;  %405 = vperm.xlu0 %907, %v275_v18  }
  0x36   : > { %420 = vperm.xlu1 %908, %v278_v19   ;;  %415 = vperm.xlu0 %907, %v277_v20   ;;  %v202_v19 = vld [vmem:[%s1043_s19 + $0x38] sm:$0xff]  ;;  %v201_v20 = vld [vmem:[%s1043_s19 + $0x30] sm:$0xff] }
  0x3a   : > { %430 = vperm.xlu1 %908, %v280_v21   ;;  %425 = vperm.xlu0 %907, %v279_v22  }
  0x3e   : > { %440 = vperm.xlu1 %908, %v282_v23   ;;  %435 = vperm.xlu0 %907, %v281_v24  }
  0x42   : > { %450 = vperm.xlu1 %908, %v284_v25   ;;  %445 = vperm.xlu0 %907, %v283_v26   ;;  %v204_v25 = vld [vmem:[%s1043_s19 + $0x48] sm:$0xff]  ;;  %v203_v26 = vld [vmem:[%s1043_s19 + $0x40] sm:$0xff] }
  0x46   : > { %460 = vperm.xlu1 %908, %v286_v27   ;;  %455 = vperm.xlu0 %907, %v285_v28  }
  0x4a   : > { %470 = vperm.xlu1 %908, %v288_v29   ;;  %465 = vperm.xlu0 %907, %v287_v30  }
  0x4e   : > { %480 = vperm.xlu1 %908, %v290_v31   ;;  %475 = vperm.xlu0 %907, %v289_v32   ;;  %v206_v31 = vld [vmem:[%s1043_s19 + $0x58] sm:$0xff]  ;;  %v205_v32 = vld [vmem:[%s1043_s19 + $0x50] sm:$0xff] }
  0x52   : > { %490 = vperm.xlu1 %908, %v292_v33   ;;  %485 = vperm.xlu0 %907, %v291_v34  }
  0x56   : > { %500 = vperm.xlu1 %908, %v294_v35   ;;  %495 = vperm.xlu0 %907, %v293_v36  }
  0x5a   : > { %510 = vperm.xlu1 %908, %v296_v37   ;;  %505 = vperm.xlu0 %907, %v295_v38   ;;  %v208_v37 = vld [vmem:[%s1043_s19 + $0x68] sm:$0xff]  ;;  %v207_v38 = vld [vmem:[%s1043_s19 + $0x60] sm:$0xff] }
  0x5e   : > { %520 = vperm.xlu1 %908, %v298_v39   ;;  %515 = vperm.xlu0 %907, %v297_v40  }
  0x62   : > { %530 = vperm.xlu1 %908, %v300_v41   ;;  %525 = vperm.xlu0 %907, %v299_v42  }
  0x66   : > { %540 = vperm.xlu1 %908, %v302_v43   ;;  %535 = vperm.xlu0 %907, %v301_v44   ;;  %v210_v43 = vld [vmem:[%s1043_s19 + $0x78] sm:$0xff]  ;;  %v209_v44 = vld [vmem:[%s1043_s19 + $0x70] sm:$0xff] }
  0x6a   : > { %550 = vperm.xlu1 %908, %v304_v45   ;;  %545 = vperm.xlu0 %907, %v303_v46  }
  0x6e   : > { %560 = vperm.xlu1 %908, %v306_v47   ;;  %555 = vperm.xlu0 %907, %v305_v48  }
  0x72   : > { %570 = vperm.xlu1 %908, %v308_v49   ;;  %565 = vperm.xlu0 %907, %v307_v50   ;;  %v212_v49 = vld [vmem:[%s1043_s19 + $0x88] sm:$0xff]  ;;  %v211_v50 = vld [vmem:[%s1043_s19 + $0x80] sm:$0xff] }
  0x76   : > { %580 = vperm.xlu1 %908, %v310_v51   ;;  %575 = vperm.xlu0 %907, %v309_v52  }
  0x7a   : > { %590 = vperm.xlu1 %908, %v312_v53   ;;  %585 = vperm.xlu0 %907, %v311_v54  }
  0x7e   : > { %600 = vperm.xlu1 %908, %v314_v55   ;;  %595 = vperm.xlu0 %907, %v313_v56   ;;  %v214_v55 = vld [vmem:[%s1043_s19 + $0x98] sm:$0xff]  ;;  %v213_v56 = vld [vmem:[%s1043_s19 + $0x90] sm:$0xff] }
  0x82   : > { %610 = vperm.xlu1 %908, %v316_v57   ;;  %605 = vperm.xlu0 %907, %v315_v58  }
  0x86   : > { %620 = vperm.xlu1 %908, %v318_v59   ;;  %615 = vperm.xlu0 %907, %v317_v60  }
  0x8a   : > { %630 = vperm.xlu1 %908, %v320_v61   ;;  %625 = vperm.xlu0 %907, %v319_v62   ;;  %v216_v61 = vld [vmem:[%s1043_s19 + $0xa8] sm:$0xff]  ;;  %v215_v62 = vld [vmem:[%s1043_s19 + $0xa0] sm:$0xff] }
  0x8e   : > { %640 = vperm.xlu1 %908, %v322_v63   ;;  %635 = vperm.xlu0 %907, %v321_v0  }
  0x91   : > { %v336_v3 = vpop.permute.xlu1 %335  ;;  %v326_v4 = vpop.permute.xlu0 %325 }
  0x92   : > { %v645_v5 = vmul.f32 %v336_v3, %v197_v1  ;;  %v643_v6 = vmul.f32 %v326_v4, %v195_v2  ;;  %v218_v3 = vld [vmem:[%s1043_s19 + $0xb8] sm:$0xff]  ;;  %v217_v4 = vld [vmem:[%s1043_s19 + $0xb0] sm:$0xff] }
  0x94   : > { %709 = vst [vmem:[%s1051_s22 + $0x10] sm:$0xff] %v645_v5  ;;  %707 = vst [vmem:[%s1051_s22] sm:$0xff] %v643_v6 }
  0x95   : > { %v341_v9 = vpop.permute.xlu1 %340  ;;  %v331_v10 = vpop.permute.xlu0 %330 }
  0x96   : > { %v646_v11 = vmul.f32 %v341_v9, %v198_v7  ;;  %v644_v12 = vmul.f32 %v331_v10, %v196_v8  ;;  %v220_v9 = vld [vmem:[%s1043_s19 + $0xc8] sm:$0xff]  ;;  %v219_v10 = vld [vmem:[%s1043_s19 + $0xc0] sm:$0xff] }
  0x98   : > { %710 = vst [vmem:[%s1051_s22 + $0x18] sm:$0xff] %v646_v11  ;;  %708 = vst [vmem:[%s1051_s22 + $0x8] sm:$0xff] %v644_v12 }
  0x99   : > { %v351_v15 = vpop.permute.xlu1 %350  ;;  %v346_v16 = vpop.permute.xlu0 %345 }
  0x9a   : > { %v648_v17 = vmul.f32 %v351_v15, %v200_v13  ;;  %v647_v18 = vmul.f32 %v346_v16, %v199_v14  ;;  %v222_v15 = vld [vmem:[%s1043_s19 + $0xd8] sm:$0xff]  ;;  %v221_v16 = vld [vmem:[%s1043_s19 + $0xd0] sm:$0xff] }
  0x9c   : > { %712 = vst [vmem:[%s1051_s22 + $0x28] sm:$0xff] %v648_v17  ;;  %711 = vst [vmem:[%s1051_s22 + $0x20] sm:$0xff] %v647_v18 }
  0x9d   : > { %v361_v21 = vpop.permute.xlu1 %360  ;;  %v356_v22 = vpop.permute.xlu0 %355 }
  0x9e   : > { %v650_v23 = vmul.f32 %v361_v21, %v202_v19  ;;  %v649_v24 = vmul.f32 %v356_v22, %v201_v20  ;;  %v224_v21 = vld [vmem:[%s1043_s19 + $0xe8] sm:$0xff]  ;;  %v223_v22 = vld [vmem:[%s1043_s19 + $0xe0] sm:$0xff] }
  0xa0   : > { %714 = vst [vmem:[%s1051_s22 + $0x38] sm:$0xff] %v650_v23  ;;  %713 = vst [vmem:[%s1051_s22 + $0x30] sm:$0xff] %v649_v24 }
  0xa1   : > { %v371_v27 = vpop.permute.xlu1 %370  ;;  %v366_v28 = vpop.permute.xlu0 %365 }
  0xa2   : > { %v652_v29 = vmul.f32 %v371_v27, %v204_v25  ;;  %v651_v30 = vmul.f32 %v366_v28, %v203_v26  ;;  %v226_v27 = vld [vmem:[%s1043_s19 + $0xf8] sm:$0xff]  ;;  %v225_v28 = vld [vmem:[%s1043_s19 + $0xf0] sm:$0xff] }
  0xa4   : > { %716 = vst [vmem:[%s1051_s22 + $0x48] sm:$0xff] %v652_v29  ;;  %715 = vst [vmem:[%s1051_s22 + $0x40] sm:$0xff] %v651_v30 }
  0xa5   : > { %v381_v33 = vpop.permute.xlu1 %380  ;;  %v376_v34 = vpop.permute.xlu0 %375 }
  0xa6   : > { %v654_v35 = vmul.f32 %v381_v33, %v206_v31  ;;  %v653_v36 = vmul.f32 %v376_v34, %v205_v32  ;;  %v228_v33 = vld [vmem:[%s1043_s19 + $0x108] sm:$0xff]  ;;  %v227_v34 = vld [vmem:[%s1043_s19 + $0x100] sm:$0xff] }
  0xa8   : > { %718 = vst [vmem:[%s1051_s22 + $0x58] sm:$0xff] %v654_v35  ;;  %717 = vst [vmem:[%s1051_s22 + $0x50] sm:$0xff] %v653_v36 }
  0xa9   : > { %v391_v39 = vpop.permute.xlu1 %390  ;;  %v386_v40 = vpop.permute.xlu0 %385 }
  0xaa   : > { %v656_v41 = vmul.f32 %v391_v39, %v208_v37  ;;  %v655_v42 = vmul.f32 %v386_v40, %v207_v38  ;;  %v230_v39 = vld [vmem:[%s1043_s19 + $0x118] sm:$0xff]  ;;  %v229_v40 = vld [vmem:[%s1043_s19 + $0x110] sm:$0xff] }
  0xac   : > { %720 = vst [vmem:[%s1051_s22 + $0x68] sm:$0xff] %v656_v41  ;;  %719 = vst [vmem:[%s1051_s22 + $0x60] sm:$0xff] %v655_v42 }
  0xad   : > { %v401_v45 = vpop.permute.xlu1 %400  ;;  %v396_v46 = vpop.permute.xlu0 %395 }
  0xae   : > { %v658_v47 = vmul.f32 %v401_v45, %v210_v43  ;;  %v657_v48 = vmul.f32 %v396_v46, %v209_v44  ;;  %v232_v45 = vld [vmem:[%s1043_s19 + $0x128] sm:$0xff]  ;;  %v231_v46 = vld [vmem:[%s1043_s19 + $0x120] sm:$0xff] }
  0xb0   : > { %722 = vst [vmem:[%s1051_s22 + $0x78] sm:$0xff] %v658_v47  ;;  %721 = vst [vmem:[%s1051_s22 + $0x70] sm:$0xff] %v657_v48 }
  0xb1   : > { %v411_v51 = vpop.permute.xlu1 %410  ;;  %v406_v52 = vpop.permute.xlu0 %405 }
  0xb2   : > { %v660_v53 = vmul.f32 %v411_v51, %v212_v49  ;;  %v659_v54 = vmul.f32 %v406_v52, %v211_v50  ;;  %v234_v51 = vld [vmem:[%s1043_s19 + $0x138] sm:$0xff]  ;;  %v233_v52 = vld [vmem:[%s1043_s19 + $0x130] sm:$0xff] }
  0xb4   : > { %724 = vst [vmem:[%s1051_s22 + $0x88] sm:$0xff] %v660_v53  ;;  %723 = vst [vmem:[%s1051_s22 + $0x80] sm:$0xff] %v659_v54 }
  0xb5   : > { %v421_v57 = vpop.permute.xlu1 %420  ;;  %v416_v58 = vpop.permute.xlu0 %415 }
  0xb6   : > { %v662_v59 = vmul.f32 %v421_v57, %v214_v55  ;;  %v661_v60 = vmul.f32 %v416_v58, %v213_v56  ;;  %v236_v57 = vld [vmem:[%s1043_s19 + $0x148] sm:$0xff]  ;;  %v235_v58 = vld [vmem:[%s1043_s19 + $0x140] sm:$0xff] }
  0xb8   : > { %726 = vst [vmem:[%s1051_s22 + $0x98] sm:$0xff] %v662_v59  ;;  %725 = vst [vmem:[%s1051_s22 + $0x90] sm:$0xff] %v661_v60 }
  0xb9   : > { %v431_v63 = vpop.permute.xlu1 %430  ;;  %v426_v0 = vpop.permute.xlu0 %425 }
  0xba   : > { %v664_v1 = vmul.f32 %v431_v63, %v216_v61  ;;  %v663_v2 = vmul.f32 %v426_v0, %v215_v62  ;;  %v238_v63 = vld [vmem:[%s1043_s19 + $0x158] sm:$0xff]  ;;  %v237_v0 = vld [vmem:[%s1043_s19 + $0x150] sm:$0xff] }
  0xbc   : > { %728 = vst [vmem:[%s1051_s22 + $0xa8] sm:$0xff] %v664_v1  ;;  %727 = vst [vmem:[%s1051_s22 + $0xa0] sm:$0xff] %v663_v2 }
  0xbd   : > { %v441_v5 = vpop.permute.xlu1 %440  ;;  %v436_v6 = vpop.permute.xlu0 %435 }
  0xbe   : > { %v666_v7 = vmul.f32 %v441_v5, %v218_v3  ;;  %v665_v8 = vmul.f32 %v436_v6, %v217_v4  ;;  %v240_v5 = vld [vmem:[%s1043_s19 + $0x168] sm:$0xff]  ;;  %v239_v6 = vld [vmem:[%s1043_s19 + $0x160] sm:$0xff] }
  0xc0   : > { %730 = vst [vmem:[%s1051_s22 + $0xb8] sm:$0xff] %v666_v7  ;;  %729 = vst [vmem:[%s1051_s22 + $0xb0] sm:$0xff] %v665_v8 }
  0xc1   : > { %v451_v11 = vpop.permute.xlu1 %450  ;;  %v446_v12 = vpop.permute.xlu0 %445 }
  0xc2   : > { %v668_v13 = vmul.f32 %v451_v11, %v220_v9  ;;  %v667_v14 = vmul.f32 %v446_v12, %v219_v10  ;;  %v242_v11 = vld [vmem:[%s1043_s19 + $0x178] sm:$0xff]  ;;  %v241_v12 = vld [vmem:[%s1043_s19 + $0x170] sm:$0xff] }
  0xc4   : > { %732 = vst [vmem:[%s1051_s22 + $0xc8] sm:$0xff] %v668_v13  ;;  %731 = vst [vmem:[%s1051_s22 + $0xc0] sm:$0xff] %v667_v14 }
  0xc5   : > { %v461_v17 = vpop.permute.xlu1 %460  ;;  %v456_v18 = vpop.permute.xlu0 %455 }
  0xc6   : > { %v670_v19 = vmul.f32 %v461_v17, %v222_v15  ;;  %v669_v20 = vmul.f32 %v456_v18, %v221_v16  ;;  %v244_v17 = vld [vmem:[%s1043_s19 + $0x188] sm:$0xff]  ;;  %v243_v18 = vld [vmem:[%s1043_s19 + $0x180] sm:$0xff] }
  0xc8   : > { %734 = vst [vmem:[%s1051_s22 + $0xd8] sm:$0xff] %v670_v19  ;;  %733 = vst [vmem:[%s1051_s22 + $0xd0] sm:$0xff] %v669_v20 }
  0xc9   : > { %v471_v23 = vpop.permute.xlu1 %470  ;;  %v466_v24 = vpop.permute.xlu0 %465 }
  0xca   : > { %v672_v25 = vmul.f32 %v471_v23, %v224_v21  ;;  %v671_v26 = vmul.f32 %v466_v24, %v223_v22  ;;  %v246_v23 = vld [vmem:[%s1043_s19 + $0x198] sm:$0xff]  ;;  %v245_v24 = vld [vmem:[%s1043_s19 + $0x190] sm:$0xff] }
  0xcc   : > { %736 = vst [vmem:[%s1051_s22 + $0xe8] sm:$0xff] %v672_v25  ;;  %735 = vst [vmem:[%s1051_s22 + $0xe0] sm:$0xff] %v671_v26 }
  0xcd   : > { %v481_v29 = vpop.permute.xlu1 %480  ;;  %v476_v30 = vpop.permute.xlu0 %475 }
  0xce   : > { %v674_v31 = vmul.f32 %v481_v29, %v226_v27  ;;  %v673_v32 = vmul.f32 %v476_v30, %v225_v28  ;;  %v248_v29 = vld [vmem:[%s1043_s19 + $0x1a8] sm:$0xff]  ;;  %v247_v30 = vld [vmem:[%s1043_s19 + $0x1a0] sm:$0xff] }
  0xd0   : > { %738 = vst [vmem:[%s1051_s22 + $0xf8] sm:$0xff] %v674_v31  ;;  %737 = vst [vmem:[%s1051_s22 + $0xf0] sm:$0xff] %v673_v32 }
  0xd1   : > { %v491_v35 = vpop.permute.xlu1 %490  ;;  %v486_v36 = vpop.permute.xlu0 %485 }
  0xd2   : > { %v676_v37 = vmul.f32 %v491_v35, %v228_v33  ;;  %v675_v38 = vmul.f32 %v486_v36, %v227_v34  ;;  %v250_v35 = vld [vmem:[%s1043_s19 + $0x1b8] sm:$0xff]  ;;  %v249_v36 = vld [vmem:[%s1043_s19 + $0x1b0] sm:$0xff] }
  0xd4   : > { %740 = vst [vmem:[%s1051_s22 + $0x108] sm:$0xff] %v676_v37  ;;  %739 = vst [vmem:[%s1051_s22 + $0x100] sm:$0xff] %v675_v38 }
  0xd5   : > { %v501_v41 = vpop.permute.xlu1 %500  ;;  %v496_v42 = vpop.permute.xlu0 %495 }
  0xd6   : > { %v678_v43 = vmul.f32 %v501_v41, %v230_v39  ;;  %v677_v44 = vmul.f32 %v496_v42, %v229_v40  ;;  %v252_v41 = vld [vmem:[%s1043_s19 + $0x1c8] sm:$0xff]  ;;  %v251_v42 = vld [vmem:[%s1043_s19 + $0x1c0] sm:$0xff] }
  0xd8   : > { %742 = vst [vmem:[%s1051_s22 + $0x118] sm:$0xff] %v678_v43  ;;  %741 = vst [vmem:[%s1051_s22 + $0x110] sm:$0xff] %v677_v44 }
  0xd9   : > { %v511_v47 = vpop.permute.xlu1 %510  ;;  %v506_v48 = vpop.permute.xlu0 %505 }
  0xda   : > { %v680_v49 = vmul.f32 %v511_v47, %v232_v45  ;;  %v679_v50 = vmul.f32 %v506_v48, %v231_v46  ;;  %v254_v47 = vld [vmem:[%s1043_s19 + $0x1d8] sm:$0xff]  ;;  %v253_v48 = vld [vmem:[%s1043_s19 + $0x1d0] sm:$0xff] }
  0xdc   : > { %744 = vst [vmem:[%s1051_s22 + $0x128] sm:$0xff] %v680_v49  ;;  %743 = vst [vmem:[%s1051_s22 + $0x120] sm:$0xff] %v679_v50 }
  0xdd   : > { %v521_v53 = vpop.permute.xlu1 %520  ;;  %v516_v54 = vpop.permute.xlu0 %515 }
  0xde   : > { %v682_v55 = vmul.f32 %v521_v53, %v234_v51  ;;  %v681_v56 = vmul.f32 %v516_v54, %v233_v52  ;;  %v256_v53 = vld [vmem:[%s1043_s19 + $0x1e8] sm:$0xff]  ;;  %v255_v54 = vld [vmem:[%s1043_s19 + $0x1e0] sm:$0xff] }
  0xe0   : > { %746 = vst [vmem:[%s1051_s22 + $0x138] sm:$0xff] %v682_v55  ;;  %745 = vst [vmem:[%s1051_s22 + $0x130] sm:$0xff] %v681_v56 }
  0xe1   : > { %v531_v59 = vpop.permute.xlu1 %530  ;;  %v526_v60 = vpop.permute.xlu0 %525 }
  0xe2   : > { %v684_v61 = vmul.f32 %v531_v59, %v236_v57  ;;  %v683_v62 = vmul.f32 %v526_v60, %v235_v58  ;;  %v258_v59 = vld [vmem:[%s1043_s19 + $0x1f8] sm:$0xff]  ;;  %v257_v60 = vld [vmem:[%s1043_s19 + $0x1f0] sm:$0xff] }
  0xe4   : > { %748 = vst [vmem:[%s1051_s22 + $0x148] sm:$0xff] %v684_v61  ;;  %747 = vst [vmem:[%s1051_s22 + $0x140] sm:$0xff] %v683_v62 }
  0xe5   : > { %v541_v1 = vpop.permute.xlu1 %540  ;;  %v536_v2 = vpop.permute.xlu0 %535 }
  0xe6   : > { %v686_v3 = vmul.f32 %v541_v1, %v238_v63  ;;  %v685_v4 = vmul.f32 %v536_v2, %v237_v0 }
  0xe8   : > { %750 = vst [vmem:[%s1051_s22 + $0x158] sm:$0xff] %v686_v3  ;;  %749 = vst [vmem:[%s1051_s22 + $0x150] sm:$0xff] %v685_v4 }
  0xe9   : > { %v551_v7 = vpop.permute.xlu1 %550  ;;  %v546_v8 = vpop.permute.xlu0 %545 }
  0xea   : > { %v688_v9 = vmul.f32 %v551_v7, %v240_v5  ;;  %v687_v10 = vmul.f32 %v546_v8, %v239_v6 }
  0xec   : > { %752 = vst [vmem:[%s1051_s22 + $0x168] sm:$0xff] %v688_v9  ;;  %751 = vst [vmem:[%s1051_s22 + $0x160] sm:$0xff] %v687_v10 }
  0xed   : > { %v561_v13 = vpop.permute.xlu1 %560  ;;  %v556_v14 = vpop.permute.xlu0 %555 }
  0xee   : > { %v690_v15 = vmul.f32 %v561_v13, %v242_v11  ;;  %v689_v16 = vmul.f32 %v556_v14, %v241_v12 }
  0xf0   : > { %754 = vst [vmem:[%s1051_s22 + $0x178] sm:$0xff] %v690_v15  ;;  %753 = vst [vmem:[%s1051_s22 + $0x170] sm:$0xff] %v689_v16 }
  0xf1   : > { %v571_v19 = vpop.permute.xlu1 %570  ;;  %v566_v20 = vpop.permute.xlu0 %565 }
  0xf2   : > { %v692_v21 = vmul.f32 %v571_v19, %v244_v17  ;;  %v691_v22 = vmul.f32 %v566_v20, %v243_v18 }
  0xf4   : > { %756 = vst [vmem:[%s1051_s22 + $0x188] sm:$0xff] %v692_v21  ;;  %755 = vst [vmem:[%s1051_s22 + $0x180] sm:$0xff] %v691_v22 }
  0xf5   : > { %v581_v25 = vpop.permute.xlu1 %580  ;;  %v576_v26 = vpop.permute.xlu0 %575 }
  0xf6   : > { %v694_v27 = vmul.f32 %v581_v25, %v246_v23  ;;  %v693_v28 = vmul.f32 %v576_v26, %v245_v24 }
  0xf8   : > { %758 = vst [vmem:[%s1051_s22 + $0x198] sm:$0xff] %v694_v27  ;;  %757 = vst [vmem:[%s1051_s22 + $0x190] sm:$0xff] %v693_v28 }
  0xf9   : > { %v591_v31 = vpop.permute.xlu1 %590  ;;  %v586_v32 = vpop.permute.xlu0 %585 }
  0xfa   : > { %v696_v33 = vmul.f32 %v591_v31, %v248_v29  ;;  %v695_v34 = vmul.f32 %v586_v32, %v247_v30 }
  0xfc   : > { %760 = vst [vmem:[%s1051_s22 + $0x1a8] sm:$0xff] %v696_v33  ;;  %759 = vst [vmem:[%s1051_s22 + $0x1a0] sm:$0xff] %v695_v34 }
  0xfd   : > { %v601_v37 = vpop.permute.xlu1 %600  ;;  %v596_v38 = vpop.permute.xlu0 %595 }
  0xfe   : > { %v698_v39 = vmul.f32 %v601_v37, %v250_v35  ;;  %v697_v40 = vmul.f32 %v596_v38, %v249_v36 }
 0x100   : > { %762 = vst [vmem:[%s1051_s22 + $0x1b8] sm:$0xff] %v698_v39  ;;  %761 = vst [vmem:[%s1051_s22 + $0x1b0] sm:$0xff] %v697_v40 }
 0x101   : > { %v611_v43 = vpop.permute.xlu1 %610  ;;  %v606_v44 = vpop.permute.xlu0 %605 }
 0x102   : > { %v700_v45 = vmul.f32 %v611_v43, %v252_v41  ;;  %v699_v46 = vmul.f32 %v606_v44, %v251_v42 }
 0x104   : > { %764 = vst [vmem:[%s1051_s22 + $0x1c8] sm:$0xff] %v700_v45  ;;  %763 = vst [vmem:[%s1051_s22 + $0x1c0] sm:$0xff] %v699_v46 }
 0x105   : > { %v621_v49 = vpop.permute.xlu1 %620  ;;  %v616_v50 = vpop.permute.xlu0 %615 }
 0x106   : > { %v702_v51 = vmul.f32 %v621_v49, %v254_v47  ;;  %v701_v52 = vmul.f32 %v616_v50, %v253_v48 }
 0x108   : > { %766 = vst [vmem:[%s1051_s22 + $0x1d8] sm:$0xff] %v702_v51  ;;  %765 = vst [vmem:[%s1051_s22 + $0x1d0] sm:$0xff] %v701_v52 }
 0x109   : > { %v631_v55 = vpop.permute.xlu1 %630  ;;  %v626_v56 = vpop.permute.xlu0 %625 }
 0x10a   : > { %v704_v57 = vmul.f32 %v631_v55, %v256_v53  ;;  %v703_v58 = vmul.f32 %v626_v56, %v255_v54 }
 0x10c   : > { %768 = vst [vmem:[%s1051_s22 + $0x1e8] sm:$0xff] %v704_v57  ;;  %767 = vst [vmem:[%s1051_s22 + $0x1e0] sm:$0xff] %v703_v58 }
 0x10d   : > { %v641_v61 = vpop.permute.xlu1 %640  ;;  %v636_v62 = vpop.permute.xlu0 %635 }
 0x10e   : > { %v706_v63 = vmul.f32 %v641_v61, %v258_v59  ;;  %v705_v0 = vmul.f32 %v636_v62, %v257_v60 }
 0x110   : > { %770 = vst [vmem:[%s1051_s22 + $0x1f8] sm:$0xff] %v706_v63  ;;  %769 = vst [vmem:[%s1051_s22 + $0x1f0] sm:$0xff] %v705_v0 }
 0x111 PF: > { %s12_s11 = sadd.s32 1, %s931_s11   ;;  %s1191_s9 = smov %s927_s10 }
 0x112   : > { %p9_p5 = scmp.ge.s32.totalorder %s12_s11, 4   ;;  %s1192_s10 = smov %s1194_s12 }
 0x114   :  { %11 = sbr.rel (!%p9_p5) target bundleno = 2 (0x2), region = 61 }

// kernel: temporal_block_forward.3
= control target key start
LH: loop header
LB: loop body
LE: loop exit
PB: predicated region body
PF: predicated region fallthrough
CT: control target
= control target key end

     0   :  { %s11327_s28 = smov 0   ;;  %s11329_s29 = smov 0   ;;  %s17993_s0 = inlined_call_operand.vmem [shape: f32[2,512,128], index: 0, kind: input, shape index: {}]   ;;  %s17994_s1 = inlined_call_operand.vmem [shape: f32[256,512], index: 1, kind: input, shape index: {}]   ;;  %s17995_s2 = inlined_call_operand.vmem [shape: f32[256,1], index: 2, kind: input, shape index: {}]   ;;  %s17996_s3 = inlined_call_operand.vmem [shape: f32[64,256], index: 3, kind: input, shape index: {}]   ;;  %s17997_s4 = inlined_call_operand.vmem [shape: f32[64,1], index: 4, kind: input, shape index: {}]   ;;  %s17998_s5 = inlined_call_operand.vmem [shape: f32[256,512], index: 5, kind: input, shape index: {}]   ;;  %s17999_s6 = inlined_call_operand.vmem [shape: f32[256,64], index: 6, kind: input, shape index: {}]   ;;  %s18000_s7 = inlined_call_operand.vmem [shape: f32[256,1], index: 7, kind: input, shape index: {}]   ;;  %s18001_s8 = inlined_call_operand.vmem [shape: f32[64,256], index: 8, kind: input, shape index: {}]   ;;  %s18002_s9 = inlined_call_operand.vmem [shape: f32[64,1], index: 9, kind: input, shape index: {}]   ;;  %s18003_s10 = inlined_call_operand.vmem [shape: f32[256,512], index: 10, kind: input, shape index: {}]   ;;  %s18004_s11 = inlined_call_operand.vmem [shape: f32[256,64], index: 11, kind: input, shape index: {}]   ;;  %s18005_s12 = inlined_call_operand.vmem [shape: f32[256,64], index: 12, kind: input, shape index: {}]   ;;  %s18006_s13 = inlined_call_operand.vmem [shape: f32[256,1], index: 13, kind: input, shape index: {}]   ;;  %s18007_s14 = inlined_call_operand.vmem [shape: f32[64,256], index: 14, kind: input, shape index: {}]   ;;  %s18008_s15 = inlined_call_operand.vmem [shape: f32[64,1], index: 15, kind: input, shape index: {}]   ;;  %s18009_s16 = inlined_call_operand.vmem [shape: f32[512,512], index: 16, kind: input, shape index: {}]   ;;  %s18010_s17 = inlined_call_operand.vmem [shape: f32[512,64], index: 17, kind: input, shape index: {}]   ;;  %s18011_s18 = inlined_call_operand.vmem [shape: f32[512,64], index: 18, kind: input, shape index: {}]   ;;  %s18012_s19 = inlined_call_operand.vmem [shape: f32[512,64], index: 19, kind: input, shape index: {}]   ;;  %s18013_s20 = inlined_call_operand.vmem [shape: f32[512,1], index: 20, kind: input, shape index: {}]   ;;  %s18014_s21 = inlined_call_operand.vmem [shape: f32[2,512,128], index: 21, kind: output, shape index: {0}]   ;;  %s18015_s22 = inlined_call_operand.vmem [shape: f32[2,512,1], index: 22, kind: output, shape index: {1}]  }
   0x1   :  { %18122 = sst [smem:[#allocation84_spill]] %s17993_s0 }
   0x2   :  { %18123 = sst [smem:[#allocation85_spill]] %s17994_s1 }
   0x3   :  { %18124 = sst [smem:[#allocation86_spill]] %s17995_s2 }
   0x4   :  { %18125 = sst [smem:[#allocation87_spill]] %s17996_s3  ;;  %s11325_s3 = smov 0  }
   0x5   :  { %18126 = sst [smem:[#allocation88_spill]] %s17997_s4 }
   0x6   :  { %18127 = sst [smem:[#allocation89_spill]] %s17998_s5 }
   0x7   :  { %18128 = sst [smem:[#allocation90_spill]] %s17999_s6 }
   0x8   :  { %18129 = sst [smem:[#allocation91_spill]] %s18000_s7 }
   0x9   :  { %18130 = sst [smem:[#allocation92_spill]] %s18002_s9 }
   0xa LB: > { %s45_s30 = sadd.s32 1, %s11201_s28  ;;  %p9118_p0 = scmp.ge.s32.totalorder %s11205_s29, 1  ;;  %s11205_s29 = sphi %s11329_s29, %s33_s29   ;;  %s11201_s28 = sphi %s11327_s28, %s18522_s28   ;;  %s11197_s3 = sphi %s11325_s3, %s18521_s3  }
   0xb   : > { %p47_p1 = scmp.ge.s32.totalorder %s45_s30, 2  ;;  %p634_p2 = scmp.lt.s32.totalorder %s11205_s29, 3 }
   0xd   : > { %s18524_s30 = smov (%p47_p1, %s45_s30), 0  ;;  %p635_p3 = pnand %p9118_p0, %p634_p2 }
   0xf   : > { %638 = sbr.rel (%p635_p3) target bundleno = 2832 (0xb10), region = 104 }
  0x16   : > { %s18131_s23 = sld [smem:[#allocation86_spill]]  ;;  %p707_p4 = scmp.lt.s32.totalorder %s11197_s3, 1  ;;  %v11207_v2 = vmov 0   ;;  %v18023_v5 = vmov 0.0|0.0   ;;  %vm1931_vm0 = vcmask 523264   ;;  %vm8542_vm2 = vcmask 7168  }
  0x17   : > { %11182 = vset.pattern.permute.xlu1 %v11207_v2  ;;  %11181 = vset.pattern.permute.xlu0 %v11207_v2  ;;  %s18132_s0 = sld [smem:[#allocation84_spill]]  ;;  %s18150_s25 = sld [smem:[#allocation88_spill]] }
  0x18   : > { %s18526_s3 = smov (!%p707_p4, %s11197_s3), 1  ;;  %10450 = vmatprep.subr.bf16.mxu0 %v18023_v5  ;;  %s18155_s7 = sld [smem:[#allocation91_spill]] }
  0x19   : > { %s11356_s2 = sshll.u32 %s18526_s3, 9  ;;  %s18138_s3 = sld [smem:[#allocation85_spill]] }
  0x1a   : > { %s18169_s9 = sld [smem:[#allocation92_spill]]  ;;  %s18217_s26 = sld [smem:[#allocation90_spill]] }
  0x1b   : > { %s17218_s6 = scalar_lea.vmem %s18014_s21, %s11356_s2  ;;  %s17248_s4 = scalar_lea.vmem %s18015_s22, %s11356_s2 }
  0x1c   : > { %v936_v0 = vld [vmem:[%s18131_s23 + $0x80] sm:$0xff]  ;;  %v937_v3 = vld [vmem:[%s18131_s23 + $0x88] sm:$0xff]  ;;  %v938_v10 = vld [vmem:[%s18131_s23 + $0x90] sm:$0xff] }
  0x1d   : > { %v920_v1 = vld [vmem:[%s18131_s23] sm:$0xff]  ;;  %1034 = vperm.xlu0 %11181, %v936_v0   ;;  %v921_v4 = vld [vmem:[%s18131_s23 + $0x8] sm:$0xff]  ;;  %s11362_s1 = scalar_lea.vmem %s18132_s0, %s11356_s2  ;;  %v939_v11 = vld [vmem:[%s18131_s23 + $0x98] sm:$0xff] }
  0x1e   : > { %954 = vperm.xlu1 %11182, %v920_v1   ;;  %v728_v6 = vld [vmem:[%s11362_s1] sm:$0xff]  ;;  %v729_v7 = vld [vmem:[%s11362_s1 + $0x8] sm:$0xff]  ;;  %v730_v8 = vld [vmem:[%s11362_s1 + $0x10] sm:$0xff] }
  0x1f   : > { %v11367_v9 = vpack.c.bf16 %v729_v7, %v728_v6  ;;  %v731_v12 = vld [vmem:[%s11362_s1 + $0x18] sm:$0xff]  ;;  %v732_v14 = vld [vmem:[%s11362_s1 + $0x20] sm:$0xff]  ;;  %v733_v15 = vld [vmem:[%s11362_s1 + $0x28] sm:$0xff]  ;;  %s18139_s5 = smov %s18138_s3 }
  0x20   : > { %v11377_v13 = vpack.c.bf16 %v731_v12, %v730_v8  ;;  %v922_v16 = vld [vmem:[%s18131_s23 + $0x10] sm:$0xff]  ;;  %v923_v17 = vld [vmem:[%s18131_s23 + $0x18] sm:$0xff]  ;;  %v11389_v18 = vpack.c.bf16 %v733_v15, %v732_v14  ;;  %v940_v21 = vld [vmem:[%s18131_s23 + $0xa0] sm:$0xff] }
  0x21   : > { %1039 = vperm.xlu0 %11181, %v937_v3   ;;  %18133 = vst [vmem:[#allocation2_spill] sm:$0xff] %v11367_v9  ;;  %10452 = vmatpush1.bf16.msra.mxu0 %v11367_v9  ;;  %v734_v19 = vld [vmem:[%s11362_s1 + $0x30] sm:$0xff]  ;;  %v735_v20 = vld [vmem:[%s11362_s1 + $0x38] sm:$0xff]  ;;  %v941_v22 = vld [vmem:[%s18131_s23 + $0xa8] sm:$0xff] }
  0x22   : > { %959 = vperm.xlu1 %11182, %v921_v4   ;;  %18134 = vst [vmem:[#allocation3_spill] sm:$0xff] %v11377_v13  ;;  %10453 = vmatprep.subr.bf16.mxu0 %v18023_v5  ;;  %18135 = vst [vmem:[#allocation4_spill] sm:$0xff] %v11389_v18  ;;  %v11401_v23 = vpack.c.bf16 %v735_v20, %v734_v19  ;;  %v736_v24 = vld [vmem:[%s11362_s1 + $0x40] sm:$0xff]  ;;  %v737_v25 = vld [vmem:[%s11362_s1 + $0x48] sm:$0xff] }
  0x23   : > { %v924_v26 = vld [vmem:[%s18131_s23 + $0x20] sm:$0xff]  ;;  %v925_v27 = vld [vmem:[%s18131_s23 + $0x28] sm:$0xff]  ;;  %v11413_v28 = vpack.c.bf16 %v737_v25, %v736_v24  ;;  %v738_v29 = vld [vmem:[%s11362_s1 + $0x50] sm:$0xff] }
  0x24   : > { %18136 = vst [vmem:[#allocation5_spill] sm:$0xff] %v11401_v23  ;;  %v739_v30 = vld [vmem:[%s11362_s1 + $0x58] sm:$0xff]  ;;  %v793_v31 = vld [vmem:[%s18138_s3 + $0x8] sm:$0xff]  ;;  %v942_v32 = vld [vmem:[%s18131_s23 + $0xb0] sm:$0xff] }
  0x25   : > { %1044 = vperm.xlu0 %11181, %v938_v10   ;;  %10455 = vmatpush1.bf16.msra.mxu0 %v11377_v13  ;;  %18137 = vst [vmem:[#allocation6_spill] sm:$0xff] %v11413_v28  ;;  %v943_v33 = vld [vmem:[%s18131_s23 + $0xb8] sm:$0xff]  ;;  %v11428_v34 = vpack.c.bf16 %v739_v30, %v738_v29  ;;  %v740_v35 = vld [vmem:[%s11362_s1 + $0x60] sm:$0xff]  ;;  %v741_v36 = vld [vmem:[%s11362_s1 + $0x68] sm:$0xff] }
  0x26   : > { %1049 = vperm.xlu1 %11182, %v939_v11   ;;  %10456 = vmatprep.subr.bf16.mxu0 %v18023_v5  ;;  %v926_v37 = vld [vmem:[%s18131_s23 + $0x30] sm:$0xff]  ;;  %v927_v38 = vld [vmem:[%s18131_s23 + $0x38] sm:$0xff]  ;;  %v11440_v39 = vpack.c.bf16 %v741_v36, %v740_v35  ;;  %v944_v42 = vld [vmem:[%s18131_s23 + $0xc0] sm:$0xff] }
  0x27   : > { %1176 = vmatprep.mubr.f32.mxu0 %v793_v31  ;;  %18140 = vst [vmem:[#allocation7_spill] sm:$0xff] %v11428_v34  ;;  %v742_v40 = vld [vmem:[%s11362_s1 + $0x70] sm:$0xff]  ;;  %v743_v41 = vld [vmem:[%s11362_s1 + $0x78] sm:$0xff]  ;;  %v945_v43 = vld [vmem:[%s18131_s23 + $0xc8] sm:$0xff] }
  0x28   : > { %18141 = vst [vmem:[#allocation8_spill] sm:$0xff] %v11440_v39  ;;  %v11452_v44 = vpack.c.bf16 %v743_v41, %v742_v40  ;;  %v744_v45 = vld [vmem:[%s11362_s1 + $0x80] sm:$0xff]  ;;  %v745_v46 = vld [vmem:[%s11362_s1 + $0x88] sm:$0xff]  ;;  %v746_v50 = vld [vmem:[%s11362_s1 + $0x90] sm:$0xff] }
  0x29   : > { %964 = vperm.xlu0 %11181, %v922_v16   ;;  %10458 = vmatpush1.bf16.msra.mxu0 %v11389_v18  ;;  %v928_v47 = vld [vmem:[%s18131_s23 + $0x40] sm:$0xff]  ;;  %v929_v48 = vld [vmem:[%s18131_s23 + $0x48] sm:$0xff]  ;;  %v11464_v49 = vpack.c.bf16 %v745_v46, %v744_v45  ;;  %v747_v51 = vld [vmem:[%s11362_s1 + $0x98] sm:$0xff] }
  0x2a   : > { %969 = vperm.xlu1 %11182, %v923_v17   ;;  %10459 = vmatprep.subr.bf16.mxu0 %v18023_v5  ;;  %18142 = vst [vmem:[#allocation9_spill] sm:$0xff] %v11452_v44  ;;  %v946_v52 = vld [vmem:[%s18131_s23 + $0xd0] sm:$0xff]  ;;  %v947_v53 = vld [vmem:[%s18131_s23 + $0xd8] sm:$0xff]  ;;  %v11476_v54 = vpack.c.bf16 %v747_v51, %v746_v50  ;;  %v748_v55 = vld [vmem:[%s11362_s1 + $0xa0] sm:$0xff] }
  0x2b   : > { %18143 = vst [vmem:[#allocation10_spill] sm:$0xff] %v11464_v49  ;;  %v749_v56 = vld [vmem:[%s11362_s1 + $0xa8] sm:$0xff]  ;;  %v930_v57 = vld [vmem:[%s18131_s23 + $0x50] sm:$0xff]  ;;  %v931_v58 = vld [vmem:[%s18131_s23 + $0x58] sm:$0xff] }
  0x2c   : > { %18144 = vst [vmem:[#allocation11_spill] sm:$0xff] %v11476_v54  ;;  %v11488_v59 = vpack.c.bf16 %v749_v56, %v748_v55  ;;  %v750_v60 = vld [vmem:[%s11362_s1 + $0xb0] sm:$0xff]  ;;  %v751_v61 = vld [vmem:[%s11362_s1 + $0xb8] sm:$0xff]  ;;  %v948_v62 = vld [vmem:[%s18131_s23 + $0xe0] sm:$0xff] }
  0x2d   : > { %1054 = vperm.xlu0 %11181, %v940_v21   ;;  %10461 = vmatpush1.bf16.msra.mxu0 %v11401_v23  ;;  %v949_v63 = vld [vmem:[%s18131_s23 + $0xe8] sm:$0xff]  ;;  %v11500_v0 = vpack.c.bf16 %v751_v61, %v750_v60  ;;  %v752_v1 = vld [vmem:[%s11362_s1 + $0xc0] sm:$0xff]  ;;  %v754_v7 = vld [vmem:[%s11362_s1 + $0xd0] sm:$0xff] }
  0x2e   : > { %1059 = vperm.xlu1 %11182, %v941_v22   ;;  %10462 = vmatprep.subr.bf16.mxu0 %v18023_v5  ;;  %18145 = vst [vmem:[#allocation12_spill] sm:$0xff] %v11488_v59  ;;  %v753_v2 = vld [vmem:[%s11362_s1 + $0xc8] sm:$0xff]  ;;  %v932_v3 = vld [vmem:[%s18131_s23 + $0x60] sm:$0xff]  ;;  %v755_v8 = vld [vmem:[%s11362_s1 + $0xd8] sm:$0xff] }
  0x2f   : > { %18146 = vst [vmem:[#allocation13_spill] sm:$0xff] %v11500_v0  ;;  %v933_v4 = vld [vmem:[%s18131_s23 + $0x68] sm:$0xff]  ;;  %v11512_v6 = vpack.c.bf16 %v753_v2, %v752_v1  ;;  %v950_v10 = vld [vmem:[%s18131_s23 + $0xf0] sm:$0xff]  ;;  %v951_v11 = vld [vmem:[%s18131_s23 + $0xf8] sm:$0xff]  ;;  %v11524_v12 = vpack.c.bf16 %v755_v8, %v754_v7 }
  0x30   : > { %v756_v14 = vld [vmem:[%s11362_s1 + $0xe0] sm:$0xff]  ;;  %v757_v15 = vld [vmem:[%s11362_s1 + $0xe8] sm:$0xff]  ;;  %v934_v16 = vld [vmem:[%s18131_s23 + $0x70] sm:$0xff] }
  0x31   : > { %974 = vperm.xlu0 %11181, %v924_v26   ;;  %10464 = vmatpush1.bf16.msra.mxu0 %v11413_v28  ;;  %18147 = vst [vmem:[#allocation14_spill] sm:$0xff] %v11512_v6  ;;  %18148 = vst [vmem:[#allocation15_spill] sm:$0xff] %v11524_v12  ;;  %v935_v17 = vld [vmem:[%s18131_s23 + $0x78] sm:$0xff]  ;;  %v11536_v19 = vpack.c.bf16 %v757_v15, %v756_v14  ;;  %v758_v20 = vld [vmem:[%s11362_s1 + $0xf0] sm:$0xff]  ;;  %s18232_s23 = sld [smem:[#allocation89_spill]] }
  0x32   : > { %979 = vperm.xlu1 %11182, %v925_v27   ;;  %10465 = vmatprep.subr.bf16.mxu0 %v18023_v5  ;;  %v759_v21 = vld [vmem:[%s11362_s1 + $0xf8] sm:$0xff]  ;;  %v1610_v22 = vld [vmem:[%s18150_s25] sm:$0xff]  ;;  %v1611_v24 = vld [vmem:[%s18150_s25 + $0x8] sm:$0xff] }
  0x33   : > { %18149 = vst [vmem:[#allocation16_spill] sm:$0xff] %v11536_v19  ;;  %v11548_v25 = vpack.c.bf16 %v759_v21, %v758_v20  ;;  %v760_v26 = vld [vmem:[%s11362_s1 + $0x100] sm:$0xff]  ;;  %v761_v27 = vld [vmem:[%s11362_s1 + $0x108] sm:$0xff]  ;;  %v1612_v29 = vld [vmem:[%s18150_s25 + $0x10] sm:$0xff] }
  0x34   : > { %v1613_v30 = vld [vmem:[%s18150_s25 + $0x18] sm:$0xff]  ;;  %v792_v31 = vld [vmem:[%s18139_s5] sm:$0xff]  ;;  %v762_v35 = vld [vmem:[%s11362_s1 + $0x110] sm:$0xff] }
  0x35   : > { %1064 = vperm.xlu0 %11181, %v942_v32   ;;  %10467 = vmatpush1.bf16.msra.mxu0 %v11428_v34  ;;  %18151 = vst [vmem:[#allocation17_spill] sm:$0xff] %v11548_v25  ;;  %v11563_v32 = vpack.c.bf16 %v761_v27, %v760_v26  ;;  %v763_v36 = vld [vmem:[%s11362_s1 + $0x118] sm:$0xff]  ;;  %v796_v40 = vld [vmem:[%s18139_s5 + $0x20] sm:$0xff]  ;;  %v765_v45 = vld [vmem:[%s11362_s1 + $0x128] sm:$0xff] }
  0x36   : > { %1069 = vperm.xlu1 %11182, %v943_v33   ;;  %10468 = vmatprep.subr.bf16.mxu0 %v18023_v5  ;;  %v797_v33 = vld [vmem:[%s18139_s5 + $0x28] sm:$0xff]  ;;  %v11581_v41 = vpack.c.bf16 %v763_v36, %v762_v35  ;;  %v1616_v46 = vld [vmem:[%s18150_s25 + $0x30] sm:$0xff]  ;;  %v2719_v55 = vld [vmem:[%s18155_s7 + $0x80] sm:$0xff] }
  0x37   : > { %18152 = vst [vmem:[#allocation18_spill] sm:$0xff] %v11563_v32  ;;  %v805_v51 = vld [vmem:[%s18139_s5 + $0x68] sm:$0xff]  ;;  %v768_v61 = vld [vmem:[%s11362_s1 + $0x140] sm:$0xff]  ;;  %v770_v7 = vld [vmem:[%s11362_s1 + $0x150] sm:$0xff] }
  0x38   : > { %18153 = vst [vmem:[#allocation19_spill] sm:$0xff] %v11581_v41  ;;  %v2720_v56 = vld [vmem:[%s18155_s7 + $0x88] sm:$0xff]  ;;  %v808_v2 = vld [vmem:[%s18139_s5 + $0x80] sm:$0xff]  ;;  %v771_v8 = vld [vmem:[%s11362_s1 + $0x158] sm:$0xff] }
  0x39   : > { %984 = vperm.xlu0 %11181, %v926_v37   ;;  %10470 = vmatpush1.bf16.msra.mxu0 %v11440_v39  ;;  %v1614_v37 = vld [vmem:[%s18150_s25 + $0x20] sm:$0xff]  ;;  %v809_v60 = vld [vmem:[%s18139_s5 + $0x88] sm:$0xff]  ;;  %v11653_v15 = vpack.c.bf16 %v771_v8, %v770_v7  ;;  %v2705_v21 = vld [vmem:[%s18155_s7 + $0x10] sm:$0xff] }
  0x3a   : > { %989 = vperm.xlu1 %11182, %v927_v38   ;;  %10471 = vmatprep.subr.bf16.mxu0 %v18023_v5  ;;  %v1615_v38 = vld [vmem:[%s18150_s25 + $0x28] sm:$0xff]  ;;  %v812_v14 = vld [vmem:[%s18139_s5 + $0xa0] sm:$0xff]  ;;  %v782_v7 = vld [vmem:[%s11362_s1 + $0x1b0] sm:$0xff] }
  0x3b   : > { %v2704_v1 = vld [vmem:[%s18155_s7 + $0x8] sm:$0xff]  ;;  %18158 = vst [vmem:[#allocation23_spill] sm:$0xff] %v11653_v15  ;;  %v820_v35 = vld [vmem:[%s18139_s5 + $0xe0] sm:$0xff]  ;;  %v783_v8 = vld [vmem:[%s11362_s1 + $0x1b8] sm:$0xff] }
  0x3c   : > { %v773_v20 = vld [vmem:[%s11362_s1 + $0x168] sm:$0xff] }
  0x3d   : > { %1074 = vperm.xlu0 %11181, %v944_v42   ;;  %10473 = vmatpush1.bf16.msra.mxu0 %v11452_v44  ;;  %v801_v42 = vld [vmem:[%s18139_s5 + $0x48] sm:$0xff] }
  0x3e   : > { %1079 = vperm.xlu1 %11182, %v945_v43   ;;  %10474 = vmatprep.subr.bf16.mxu0 %v18023_v5  ;;  %v764_v43 = vld [vmem:[%s11362_s1 + $0x120] sm:$0xff]  ;;  %v821_v27 = vld [vmem:[%s18139_s5 + $0xe8] sm:$0xff] }
  0x3f   : > { %v11599_v50 = vpack.c.bf16 %v765_v45, %v764_v43  ;;  %v2708_v43 = vld [vmem:[%s18155_s7 + $0x28] sm:$0xff]  ;;  %v824_v45 = vld [vmem:[%s18139_s5 + $0x100] sm:$0xff] }
  0x41   : > { %994 = vperm.xlu0 %11181, %v928_v47   ;;  %10476 = vmatpush1.bf16.msra.mxu0 %v11464_v49  ;;  %v1617_v47 = vld [vmem:[%s18150_s25 + $0x38] sm:$0xff]  ;;  %18154 = vst [vmem:[#allocation20_spill] sm:$0xff] %v11599_v50 }
  0x42   : > { %999 = vperm.xlu1 %11182, %v929_v48   ;;  %10477 = vmatprep.subr.bf16.mxu0 %v18023_v5  ;;  %v800_v48 = vld [vmem:[%s18139_s5 + $0x40] sm:$0xff] }
  0x45   : > { %1084 = vperm.xlu0 %11181, %v946_v52   ;;  %10479 = vmatpush1.bf16.msra.mxu0 %v11476_v54  ;;  %v766_v52 = vld [vmem:[%s11362_s1 + $0x130] sm:$0xff] }
  0x46   : > { %1089 = vperm.xlu1 %11182, %v947_v53   ;;  %10480 = vmatprep.subr.bf16.mxu0 %v18023_v5  ;;  %v767_v53 = vld [vmem:[%s11362_s1 + $0x138] sm:$0xff] }
  0x49   : > { %1004 = vperm.xlu0 %11181, %v930_v57   ;;  %10482 = vmatpush1.bf16.msra.mxu0 %v11488_v59  ;;  %v804_v57 = vld [vmem:[%s18139_s5 + $0x60] sm:$0xff] }
  0x4a   : > { %1009 = vperm.xlu1 %11182, %v931_v58   ;;  %10483 = vmatprep.subr.bf16.mxu0 %v18023_v5  ;;  %v11617_v58 = vpack.c.bf16 %v767_v53, %v766_v52  ;;  %v2725_v52 = vld [vmem:[%s18155_s7 + $0xb0] sm:$0xff]  ;;  %v2726_v53 = vld [vmem:[%s18155_s7 + $0xb8] sm:$0xff] }
  0x4c   : > { %18156 = vst [vmem:[#allocation21_spill] sm:$0xff] %v11617_v58 }
  0x4d   : > { %1094 = vperm.xlu0 %11181, %v948_v62   ;;  %10485 = vmatpush1.bf16.msra.mxu0 %v11500_v0  ;;  %v769_v62 = vld [vmem:[%s11362_s1 + $0x148] sm:$0xff] }
  0x4e   : > { %1099 = vperm.xlu1 %11182, %v949_v63   ;;  %10486 = vmatprep.subr.bf16.mxu0 %v18023_v5  ;;  %v2703_v63 = vld [vmem:[%s18155_s7] sm:$0xff] }
  0x51   : > { %1014 = vperm.xlu0 %11181, %v932_v3   ;;  %10488 = vmatpush1.bf16.msra.mxu0 %v11512_v6  ;;  %v11635_v3 = vpack.c.bf16 %v769_v62, %v768_v61  ;;  %v781_v61 = vld [vmem:[%s11362_s1 + $0x1a8] sm:$0xff]  ;;  %v2709_v62 = vld [vmem:[%s18155_s7 + $0x30] sm:$0xff] }
  0x52   : > { %1019 = vperm.xlu1 %11182, %v933_v4   ;;  %10489 = vmatprep.subr.bf16.mxu0 %v18023_v5  ;;  %v813_v4 = vld [vmem:[%s18139_s5 + $0xa8] sm:$0xff] }
  0x53   : > { %18157 = vst [vmem:[#allocation22_spill] sm:$0xff] %v11635_v3 }
  0x55   : > { %1104 = vperm.xlu0 %11181, %v950_v10   ;;  %10491 = vmatpush1.bf16.msra.mxu0 %v11524_v12  ;;  %v2721_v10 = vld [vmem:[%s18155_s7 + $0x90] sm:$0xff] }
  0x56   : > { %1109 = vperm.xlu1 %11182, %v951_v11   ;;  %10492 = vmatprep.subr.bf16.mxu0 %v18023_v5  ;;  %v2722_v11 = vld [vmem:[%s18155_s7 + $0x98] sm:$0xff] }
  0x59   : > { %1024 = vperm.xlu0 %11181, %v934_v16   ;;  %10494 = vmatpush1.bf16.msra.mxu0 %v11536_v19  ;;  %v817_v16 = vld [vmem:[%s18139_s5 + $0xc8] sm:$0xff] }
  0x5a   : > { %1029 = vperm.xlu1 %11182, %v935_v17   ;;  %10495 = vmatprep.subr.bf16.mxu0 %v18023_v5  ;;  %v772_v17 = vld [vmem:[%s11362_s1 + $0x160] sm:$0xff] }
  0x5b   : > { %v11671_v26 = vpack.c.bf16 %v773_v20, %v772_v17  ;;  %v841_v17 = vld [vmem:[%s18139_s5 + $0x188] sm:$0xff]  ;;  %v784_v20 = vld [vmem:[%s11362_s1 + $0x1c0] sm:$0xff] }
  0x5d   : > { %1620 = vperm.xlu0 %11181, %v1610_v22   ;;  %10497 = vmatpush1.bf16.msra.mxu0 %v11548_v25  ;;  %v2706_v22 = vld [vmem:[%s18155_s7 + $0x18] sm:$0xff]  ;;  %18159 = vst [vmem:[#allocation24_spill] sm:$0xff] %v11671_v26  ;;  %v4730_v25 = vld [vmem:[%s18008_s15 + $0x30] sm:$0xff] }
  0x5e   : > { %1625 = vperm.xlu1 %11182, %v1611_v24   ;;  %10498 = vmatprep.subr.bf16.mxu0 %v18023_v5  ;;  %v816_v24 = vld [vmem:[%s18139_s5 + $0xc0] sm:$0xff] }
  0x60   : > { %1177 = vmatmul.mubr.f32.vlgmr.msra.gmra.mrb[0].mxu0 %v792_v31  ;;  %v2723_v31 = vld [vmem:[%s18155_s7 + $0xa0] sm:$0xff] }
  0x61   : > { %1630 = vperm.xlu0 %11181, %v1612_v29   ;;  %1181 = vmatprep.mubr.f32.mxu0 %v797_v33  ;;  %v774_v29 = vld [vmem:[%s11362_s1 + $0x170] sm:$0xff]  ;;  %v2724_v33 = vld [vmem:[%s18155_s7 + $0xa8] sm:$0xff] }
  0x62   : > { %1635 = vperm.xlu1 %11182, %v1613_v30   ;;  %10500 = vmatpush1.bf16.msra.mxu0 %v11563_v32  ;;  %v775_v30 = vld [vmem:[%s11362_s1 + $0x178] sm:$0xff]  ;;  %v4729_v32 = vld [vmem:[%s18008_s15 + $0x28] sm:$0xff] }
  0x63   : > { %10501 = vmatprep.subr.bf16.mxu0 %v18023_v5  ;;  %v11689_v36 = vpack.c.bf16 %v775_v30, %v774_v29  ;;  %v845_v30 = vld [vmem:[%s18139_s5 + $0x1a8] sm:$0xff] }
  0x64   : > { %1182 = vmatmul.mubr.f32.gmra.mrb[2].mxu0 %v796_v40  ;;  %v777_v40 = vld [vmem:[%s11362_s1 + $0x188] sm:$0xff] }
  0x65   : > { %1640 = vperm.xlu0 %11181, %v1614_v37   ;;  %1186 = vmatprep.mubr.f32.mxu0 %v801_v42  ;;  %18160 = vst [vmem:[#allocation25_spill] sm:$0xff] %v11689_v36  ;;  %v825_v37 = vld [vmem:[%s18139_s5 + $0x108] sm:$0xff]  ;;  %v2707_v42 = vld [vmem:[%s18155_s7 + $0x20] sm:$0xff] }
  0x66   : > { %1645 = vperm.xlu1 %11182, %v1615_v38   ;;  %10503 = vmatpush1.bf16.msra.mxu0 %v11581_v41  ;;  %v776_v38 = vld [vmem:[%s11362_s1 + $0x180] sm:$0xff] }
  0x67   : > { %10504 = vmatprep.subr.bf16.mxu0 %v18023_v5  ;;  %v4728_v41 = vld [vmem:[%s18008_s15 + $0x20] sm:$0xff] }
  0x68   : > { %1187 = vmatmul.mubr.f32.gmra.mrb[4].mxu0 %v800_v48  ;;  %v778_v48 = vld [vmem:[%s11362_s1 + $0x190] sm:$0xff] }
  0x69   : > { %1650 = vperm.xlu0 %11181, %v1616_v46   ;;  %1191 = vmatprep.mubr.f32.mxu0 %v805_v51  ;;  %v11707_v46 = vpack.c.bf16 %v777_v40, %v776_v38  ;;  %v779_v51 = vld [vmem:[%s11362_s1 + $0x198] sm:$0xff]  ;;  %v844_v38 = vld [vmem:[%s18139_s5 + $0x1a0] sm:$0xff] }
  0x6a   : > { %1655 = vperm.xlu1 %11182, %v1617_v47   ;;  %10506 = vmatpush1.bf16.msra.mxu0 %v11599_v50  ;;  %v829_v47 = vld [vmem:[%s18139_s5 + $0x128] sm:$0xff]  ;;  %v4727_v50 = vld [vmem:[%s18008_s15 + $0x18] sm:$0xff] }
  0x6b   : > { %10507 = vmatprep.subr.bf16.mxu0 %v18023_v5  ;;  %18161 = vst [vmem:[#allocation26_spill] sm:$0xff] %v11707_v46 }
  0x6c   : > { %1192 = vmatmul.mubr.f32.gmra.mrb[6].mxu0 %v804_v57  ;;  %v833_v57 = vld [vmem:[%s18139_s5 + $0x148] sm:$0xff] }
  0x6d   : > { %2817 = vperm.xlu0 %11181, %v2719_v55   ;;  %1196 = vmatprep.mubr.f32.mxu0 %v809_v60  ;;  %v828_v55 = vld [vmem:[%s18139_s5 + $0x120] sm:$0xff] }
  0x6e   : > { %2822 = vperm.xlu1 %11182, %v2720_v56   ;;  %10509 = vmatpush1.bf16.msra.mxu0 %v11617_v58  ;;  %v11725_v56 = vpack.c.bf16 %v779_v51, %v778_v48  ;;  %v780_v60 = vld [vmem:[%s11362_s1 + $0x1a0] sm:$0xff]  ;;  %v2714_v48 = vld [vmem:[%s18155_s7 + $0x58] sm:$0xff] }
  0x6f   : > { %10510 = vmatprep.subr.bf16.mxu0 %v18023_v5  ;;  %v848_v51 = vld [vmem:[%s18139_s5 + $0x1c0] sm:$0xff] }
  0x70   : > { %1197 = vmatmul.mubr.f32.gmra.mrb[8].mxu0 %v808_v2  ;;  %18162 = vst [vmem:[#allocation27_spill] sm:$0xff] %v11725_v56  ;;  %v11743_v2 = vpack.c.bf16 %v781_v61, %v780_v60  ;;  %v2731_v60 = vld [vmem:[%s18155_s7 + $0xe0] sm:$0xff]  ;;  %v2732_v61 = vld [vmem:[%s18155_s7 + $0xe8] sm:$0xff] }
  0x71   : > { %2737 = vperm.xlu0 %11181, %v2703_v63   ;;  %1201 = vmatprep.mubr.f32.mxu0 %v813_v4  ;;  %v2710_v63 = vld [vmem:[%s18155_s7 + $0x38] sm:$0xff]  ;;  %v837_v4 = vld [vmem:[%s18139_s5 + $0x168] sm:$0xff]  ;;  %v4724_v58 = vld [vmem:[%s18008_s15] sm:$0xff] }
  0x72   : > { %2742 = vperm.xlu1 %11182, %v2704_v1   ;;  %10512 = vmatpush1.bf16.msra.mxu0 %v11635_v3  ;;  %v832_v1 = vld [vmem:[%s18139_s5 + $0x140] sm:$0xff]  ;;  %18163 = vst [vmem:[#allocation28_spill] sm:$0xff] %v11743_v2  ;;  %v4467_v3 = vld [vmem:[%s18006_s13 + $0x78] sm:$0xff] }
  0x73   : > { %10513 = vmatprep.subr.bf16.mxu0 %v18023_v5 }
  0x74   : > { %1202 = vmatmul.mubr.f32.gmra.mrb[10].mxu0 %v812_v14  ;;  %v836_v14 = vld [vmem:[%s18139_s5 + $0x160] sm:$0xff] }
  0x75   : > { %2827 = vperm.xlu0 %11181, %v2721_v10   ;;  %1206 = vmatprep.mubr.f32.mxu0 %v817_v16  ;;  %v2727_v10 = vld [vmem:[%s18155_s7 + $0xc0] sm:$0xff]  ;;  %v11761_v16 = vpack.c.bf16 %v783_v8, %v782_v7  ;;  %v857_v7 = vld [vmem:[%s18139_s5 + $0x208] sm:$0xff] }
  0x76   : > { %2832 = vperm.xlu1 %11182, %v2722_v11   ;;  %10515 = vmatpush1.bf16.msra.mxu0 %v11653_v15  ;;  %v2728_v11 = vld [vmem:[%s18155_s7 + $0xc8] sm:$0xff]  ;;  %v2715_v8 = vld [vmem:[%s18155_s7 + $0x60] sm:$0xff]  ;;  %v4466_v15 = vld [vmem:[%s18006_s13 + $0x70] sm:$0xff] }
  0x77   : > { %10516 = vmatprep.subr.bf16.mxu0 %v18023_v5  ;;  %18164 = vst [vmem:[#allocation29_spill] sm:$0xff] %v11761_v16 }
  0x78   : > { %1207 = vmatmul.mubr.f32.gmra.mrb[12].mxu0 %v816_v24  ;;  %v2712_v24 = vld [vmem:[%s18155_s7 + $0x48] sm:$0xff] }
  0x79   : > { %2747 = vperm.xlu0 %11181, %v2705_v21   ;;  %1211 = vmatprep.mubr.f32.mxu0 %v821_v27  ;;  %v785_v21 = vld [vmem:[%s11362_s1 + $0x1c8] sm:$0xff]  ;;  %v840_v27 = vld [vmem:[%s18139_s5 + $0x180] sm:$0xff] }
  0x7a   : > { %2752 = vperm.xlu1 %11182, %v2706_v22   ;;  %10518 = vmatpush1.bf16.msra.mxu0 %v11671_v26  ;;  %v2711_v22 = vld [vmem:[%s18155_s7 + $0x40] sm:$0xff]  ;;  %v11779_v29 = vpack.c.bf16 %v785_v21, %v784_v20  ;;  %v861_v20 = vld [vmem:[%s18139_s5 + $0x228] sm:$0xff]  ;;  %v2733_v21 = vld [vmem:[%s18155_s7 + $0xf0] sm:$0xff] }
  0x7b   : > { %10519 = vmatprep.subr.bf16.mxu0 %v18023_v5  ;;  %v4483_v26 = vld [vmem:[%s18006_s13 + $0xf8] sm:$0xff] }
  0x7c   : > { %1212 = vmatmul.mubr.f32.gmra.mrb[14].mxu0 %v820_v35  ;;  %18165 = vst [vmem:[#allocation30_spill] sm:$0xff] %v11779_v29  ;;  %v2729_v35 = vld [vmem:[%s18155_s7 + $0xd0] sm:$0xff] }
  0x7d   : > { %2837 = vperm.xlu0 %11181, %v2723_v31   ;;  %1216 = vmatprep.mubr.f32.mxu0 %v825_v37  ;;  %v786_v31 = vld [vmem:[%s11362_s1 + $0x1d0] sm:$0xff]  ;;  %v2730_v37 = vld [vmem:[%s18155_s7 + $0xd8] sm:$0xff] }
  0x7e   : > { %2842 = vperm.xlu1 %11182, %v2724_v33   ;;  %10521 = vmatpush1.bf16.msra.mxu0 %v11689_v36  ;;  %v787_v33 = vld [vmem:[%s11362_s1 + $0x1d8] sm:$0xff]  ;;  %v4464_v36 = vld [vmem:[%s18006_s13 + $0x60] sm:$0xff] }
  0x7f   : > { %10522 = vmatprep.subr.bf16.mxu0 %v18023_v5  ;;  %v11797_v40 = vpack.c.bf16 %v787_v33, %v786_v31  ;;  %v865_v31 = vld [vmem:[%s18139_s5 + $0x248] sm:$0xff]  ;;  %v2717_v33 = vld [vmem:[%s18155_s7 + $0x70] sm:$0xff] }
  0x80   : > { %1217 = vmatmul.mubr.f32.gmra.mrb[16].mxu0 %v824_v45  ;;  %v789_v45 = vld [vmem:[%s11362_s1 + $0x1e8] sm:$0xff] }
  0x81   : > { %2757 = vperm.xlu0 %11181, %v2707_v42   ;;  %1221 = vmatprep.mubr.f32.mxu0 %v829_v47  ;;  %18166 = vst [vmem:[#allocation31_spill] sm:$0xff] %v11797_v40  ;;  %v849_v42 = vld [vmem:[%s18139_s5 + $0x1c8] sm:$0xff]  ;;  %v2713_v47 = vld [vmem:[%s18155_s7 + $0x50] sm:$0xff] }
  0x82   : > { %2762 = vperm.xlu1 %11182, %v2708_v43   ;;  %10524 = vmatpush1.bf16.msra.mxu0 %v11707_v46  ;;  %v788_v43 = vld [vmem:[%s11362_s1 + $0x1e0] sm:$0xff]  ;;  %v4481_v46 = vld [vmem:[%s18006_s13 + $0xe8] sm:$0xff] }
  0x83   : > { %10525 = vmatprep.subr.bf16.mxu0 %v18023_v5 }
  0x84   : > { %1222 = vmatmul.mubr.f32.gmra.mrb[18].mxu0 %v828_v55  ;;  %v790_v55 = vld [vmem:[%s11362_s1 + $0x1f0] sm:$0xff] }
  0x85   : > { %2847 = vperm.xlu0 %11181, %v2725_v52   ;;  %1226 = vmatprep.mubr.f32.mxu0 %v833_v57  ;;  %v11815_v52 = vpack.c.bf16 %v789_v45, %v788_v43  ;;  %v791_v57 = vld [vmem:[%s11362_s1 + $0x1f8] sm:$0xff]  ;;  %v869_v43 = vld [vmem:[%s18139_s5 + $0x268] sm:$0xff]  ;;  %v2975_v45 = vld [vmem:[%s18169_s9] sm:$0xff] }
  0x86   : > { %2852 = vperm.xlu1 %11182, %v2726_v53   ;;  %10527 = vmatpush1.bf16.msra.mxu0 %v11725_v56  ;;  %v853_v53 = vld [vmem:[%s18139_s5 + $0x1e8] sm:$0xff]  ;;  %v4480_v56 = vld [vmem:[%s18006_s13 + $0xe0] sm:$0xff] }
  0x87   : > { %10528 = vmatprep.subr.bf16.mxu0 %v18023_v5  ;;  %18167 = vst [vmem:[#allocation32_spill] sm:$0xff] %v11815_v52 }
  0x88   : > { %1227 = vmatmul.mubr.f32.gmra.mrb[20].mxu0 %v832_v1  ;;  %v852_v1 = vld [vmem:[%s18139_s5 + $0x1e0] sm:$0xff] }
  0x89   : > { %2767 = vperm.xlu0 %11181, %v2709_v62   ;;  %1231 = vmatprep.mubr.f32.mxu0 %v837_v4  ;;  %v11837_v4 = vpack.c.bf16 %v791_v57, %v790_v55  ;;  %v873_v55 = vld [vmem:[%s18139_s5 + $0x288] sm:$0xff]  ;;  %v2977_v57 = vld [vmem:[%s18169_s9 + $0x10] sm:$0xff] }
  0x8a   : > { %2772 = vperm.xlu1 %11182, %v2710_v63   ;;  %10530 = vmatpush1.bf16.msra.mxu0 %v11743_v2  ;;  %v4463_v2 = vld [vmem:[%s18006_s13 + $0x58] sm:$0xff] }
  0x8b   : > { %10531 = vmatprep.subr.bf16.mxu0 %v18023_v5  ;;  %18168 = vst [vmem:[#allocation33_spill] sm:$0xff] %v11837_v4 }
  0x8c   : > { %1232 = vmatmul.mubr.f32.gmra.mrb[22].mxu0 %v836_v14 }
  0x8d   : > { %2857 = vperm.xlu0 %11181, %v2727_v10   ;;  %1236 = vmatprep.mubr.f32.mxu0 %v841_v17  ;;  %v2716_v10 = vld [vmem:[%s18155_s7 + $0x68] sm:$0xff]  ;;  %v856_v17 = vld [vmem:[%s18139_s5 + $0x200] sm:$0xff] }
  0x8e   : > { %2862 = vperm.xlu1 %11182, %v2728_v11   ;;  %10533 = vmatpush1.bf16.msra.mxu0 %v11761_v16  ;;  %v4478_v16 = vld [vmem:[%s18006_s13 + $0xd0] sm:$0xff] }
  0x8f   : > { %10534 = vmatprep.subr.bf16.mxu0 %v18023_v5 }
  0x90   : > { %1237 = vmatmul.mubr.f32.gmra.mrb[24].mxu0 %v840_v27 }
  0x91   : > { %2777 = vperm.xlu0 %11181, %v2711_v22   ;;  %1241 = vmatprep.mubr.f32.mxu0 %v845_v30  ;;  %v2734_v22 = vld [vmem:[%s18155_s7 + $0xf8] sm:$0xff]  ;;  %v860_v30 = vld [vmem:[%s18139_s5 + $0x220] sm:$0xff] }
  0x92   : > { %2782 = vperm.xlu1 %11182, %v2712_v24   ;;  %10536 = vmatpush1.bf16.msra.mxu0 %v11779_v29  ;;  %v4461_v29 = vld [vmem:[%s18006_s13 + $0x48] sm:$0xff] }
  0x93   : > { %10537 = vmatprep.subr.bf16.mxu0 %v18023_v5 }
  0x94   : > { %1242 = vmatmul.mubr.f32.gmra.mrb[26].mxu0 %v844_v38 }
  0x95   : > { %2867 = vperm.xlu0 %11181, %v2729_v35   ;;  %1246 = vmatprep.mubr.f32.mxu0 %v849_v42  ;;  %v2718_v35 = vld [vmem:[%s18155_s7 + $0x78] sm:$0xff]  ;;  %v864_v42 = vld [vmem:[%s18139_s5 + $0x240] sm:$0xff]  ;;  %s18216_s7 = sld [smem:[#allocation87_spill]] }
  0x96   : > { %2872 = vperm.xlu1 %11182, %v2730_v37   ;;  %10539 = vmatpush1.bf16.msra.mxu0 %v11797_v40  ;;  %v4460_v40 = vld [vmem:[%s18006_s13 + $0x40] sm:$0xff] }
  0x97   : > { %10540 = vmatprep.subr.bf16.mxu0 %v18023_v5 }
  0x98   : > { %1247 = vmatmul.mubr.f32.gmra.mrb[28].mxu0 %v848_v51 }
  0x99   : > { %2787 = vperm.xlu0 %11181, %v2713_v47   ;;  %1251 = vmatprep.mubr.f32.mxu0 %v853_v53  ;;  %v2976_v47 = vld [vmem:[%s18169_s9 + $0x8] sm:$0xff]  ;;  %v868_v53 = vld [vmem:[%s18139_s5 + $0x260] sm:$0xff] }
  0x9a   : > { %2792 = vperm.xlu1 %11182, %v2714_v48   ;;  %10542 = vmatpush1.bf16.msra.mxu0 %v11815_v52  ;;  %v4477_v52 = vld [vmem:[%s18006_s13 + $0xc8] sm:$0xff] }
  0x9b   : > { %10543 = vmatprep.subr.bf16.mxu0 %v18023_v5  ;;  %v4475_v5 = vld [vmem:[%s18006_s13 + $0xb8] sm:$0xff] }
  0x9c   : > { %v11829_v62 = vpop.permute.xlu0 %1034  ;;  %1252 = vmatmul.mubr.f32.gmra.mrb[30].mxu0 %v852_v1 }
  0x9d   : > { %v11831_v63 = vpop.permute.xlu1 %954  ;;  %2877 = vperm.xlu0 %11181, %v2731_v60   ;;  %1256 = vmatprep.mubr.f32.mxu0 %v857_v7  ;;  %v2978_v60 = vld [vmem:[%s18169_s9 + $0x18] sm:$0xff]  ;;  %v872_v7 = vld [vmem:[%s18139_s5 + $0x280] sm:$0xff] }
  0x9e   : > { %2882 = vperm.xlu1 %11182, %v2732_v61   ;;  %10545 = vmatpush1.bf16.msra.mxu0 %v11837_v4  ;;  %v4458_v4 = vld [vmem:[%s18006_s13 + $0x30] sm:$0xff] }
  0xa0   : > { %v11849_v11 = vpop.permute.xlu0 %1039  ;;  %1257 = vmatmul.mubr.f32.gmra.mrb[32].mxu0 %v856_v17  ;;  %v2980_v17 = vld [vmem:[%s18169_s9 + $0x28] sm:$0xff] }
  0xa1   : > { %v11851_v14 = vpop.permute.xlu1 %959  ;;  %2797 = vperm.xlu0 %11181, %v2715_v8   ;;  %1261 = vmatprep.mubr.f32.mxu0 %v861_v20  ;;  %v877_v8 = vld [vmem:[%s18139_s5 + $0x2a8] sm:$0xff] }
  0xa2   : > { %2802 = vperm.xlu1 %11182, %v2716_v10   ;;  %v2979_v10 = vld [vmem:[%s18169_s9 + $0x20] sm:$0xff] }
  0xa4   : > { %v11866_v24 = vpop.permute.xlu0 %1044  ;;  %1262 = vmatmul.mubr.f32.gmra.mrb[34].mxu0 %v860_v30  ;;  %v881_v30 = vld [vmem:[%s18139_s5 + $0x2c8] sm:$0xff] }
  0xa5   : > { %v11868_v27 = vpop.permute.xlu1 %1049  ;;  %2887 = vperm.xlu0 %11181, %v2733_v21   ;;  %1266 = vmatprep.mubr.f32.mxu0 %v865_v31  ;;  %v2981_v31 = vld [vmem:[%s18169_s9 + $0x30] sm:$0xff] }
  0xa6   : > { %2892 = vperm.xlu1 %11182, %v2734_v22   ;;  %v876_v22 = vld [vmem:[%s18139_s5 + $0x2a0] sm:$0xff] }
  0xa8   : > { %v11882_v37 = vpop.permute.xlu0 %964  ;;  %1267 = vmatmul.mubr.f32.gmra.mrb[36].mxu0 %v864_v42 }
  0xa9   : > { %v11884_v38 = vpop.permute.xlu1 %969  ;;  %2807 = vperm.xlu0 %11181, %v2717_v33   ;;  %1271 = vmatprep.mubr.f32.mxu0 %v869_v43  ;;  %v2982_v33 = vld [vmem:[%s18169_s9 + $0x38] sm:$0xff]  ;;  %v880_v43 = vld [vmem:[%s18139_s5 + $0x2c0] sm:$0xff] }
  0xaa   : > { %2812 = vperm.xlu1 %11182, %v2718_v35  }
  0xac   : > { %v11898_v48 = vpop.permute.xlu0 %1054  ;;  %1272 = vmatmul.mubr.f32.gmra.mrb[38].mxu0 %v868_v53  ;;  %v4469_v53 = vld [vmem:[%s18006_s13 + $0x88] sm:$0xff] }
  0xad   : > { %v11900_v51 = vpop.permute.xlu1 %1059  ;;  %2985 = vperm.xlu0 %11181, %v2975_v45   ;;  %1276 = vmatprep.mubr.f32.mxu0 %v873_v55  ;;  %v885_v45 = vld [vmem:[%s18139_s5 + $0x2e8] sm:$0xff]  ;;  %v884_v55 = vld [vmem:[%s18139_s5 + $0x2e0] sm:$0xff] }
  0xae   : > { %2990 = vperm.xlu1 %11182, %v2976_v47   ;;  %v4468_v47 = vld [vmem:[%s18006_s13 + $0x80] sm:$0xff] }
  0xb0   : > { %v11914_v61 = vpop.permute.xlu0 %974  ;;  %1277 = vmatmul.mubr.f32.gmra.mrb[40].mxu0 %v872_v7  ;;  %v889_v7 = vld [vmem:[%s18139_s5 + $0x308] sm:$0xff] }
  0xb1   : > { %v11916_v1 = vpop.permute.xlu1 %979  ;;  %2995 = vperm.xlu0 %11181, %v2977_v57   ;;  %1281 = vmatprep.mubr.f32.mxu0 %v877_v8  ;;  %v4452_v8 = vld [vmem:[%s18006_s13] sm:$0xff] }
  0xb2   : > { %3000 = vperm.xlu1 %11182, %v2978_v60  }
  0xb4   : > { %v11930_v20 = vpop.permute.xlu0 %1064  ;;  %1282 = vmatmul.mubr.f32.gmra.mrb[42].mxu0 %v876_v22  ;;  %v893_v22 = vld [vmem:[%s18139_s5 + $0x328] sm:$0xff] }
  0xb5   : > { %v11932_v21 = vpop.permute.xlu1 %1069  ;;  %3005 = vperm.xlu0 %11181, %v2979_v10   ;;  %1286 = vmatprep.mubr.f32.mxu0 %v881_v30  ;;  %v4453_v10 = vld [vmem:[%s18006_s13 + $0x8] sm:$0xff]  ;;  %v4470_v30 = vld [vmem:[%s18006_s13 + $0x90] sm:$0xff] }
  0xb6   : > { %3010 = vperm.xlu1 %11182, %v2980_v17   ;;  %v888_v17 = vld [vmem:[%s18139_s5 + $0x300] sm:$0xff] }
  0xb8   : > { %v11946_v35 = vpop.permute.xlu0 %984  ;;  %1287 = vmatmul.mubr.f32.gmra.mrb[44].mxu0 %v880_v43 }
  0xb9   : > { %v11948_v42 = vpop.permute.xlu1 %989  ;;  %3015 = vperm.xlu0 %11181, %v2981_v31   ;;  %1291 = vmatprep.mubr.f32.mxu0 %v885_v45  ;;  %v4471_v31 = vld [vmem:[%s18006_s13 + $0x98] sm:$0xff]  ;;  %v892_v45 = vld [vmem:[%s18139_s5 + $0x320] sm:$0xff] }
  0xba   : > { %3020 = vperm.xlu1 %11182, %v2982_v33  }
  0xbc   : > { %v11965_v57 = vpop.permute.xlu0 %1074  ;;  %1292 = vmatmul.mubr.f32.gmra.mrb[46].mxu0 %v884_v55  ;;  %v4455_v55 = vld [vmem:[%s18006_s13 + $0x18] sm:$0xff] }
  0xbd   : > { %v11967_v60 = vpop.permute.xlu1 %1079  ;;  %4566 = vperm.xlu0 %11181, %v4468_v47   ;;  %1296 = vmatprep.mubr.f32.mxu0 %v889_v7  ;;  %v897_v47 = vld [vmem:[%s18139_s5 + $0x348] sm:$0xff]  ;;  %v896_v7 = vld [vmem:[%s18139_s5 + $0x340] sm:$0xff] }
  0xbe   : > { %4571 = vperm.xlu1 %11182, %v4469_v53   ;;  %v4454_v53 = vld [vmem:[%s18006_s13 + $0x10] sm:$0xff] }
  0xc0   : > { %v11990_v33 = vpop.permute.xlu0 %994  ;;  %1297 = vmatmul.mubr.f32.gmra.mrb[48].mxu0 %v888_v17  ;;  %v901_v17 = vld [vmem:[%s18139_s5 + $0x368] sm:$0xff] }
  0xc1   : > { %4486 = vperm.xlu0 %11181, %v4452_v8   ;;  %v11992_v43 = vpop.permute.xlu1 %999  ;;  %1301 = vmatprep.mubr.f32.mxu0 %v893_v22  ;;  %v4472_v22 = vld [vmem:[%s18006_s13 + $0xa0] sm:$0xff] }
  0xc2   : > { %4491 = vperm.xlu1 %11182, %v4453_v10  }
  0xc4   : > { %1302 = vmatmul.mubr.f32.gmra.mrb[50].mxu0 %v892_v45  ;;  %v12009_v8 = vpop.permute.xlu0 %1084  ;;  %v905_v45 = vld [vmem:[%s18139_s5 + $0x388] sm:$0xff] }
  0xc5   : > { %4576 = vperm.xlu0 %11181, %v4470_v30   ;;  %1306 = vmatprep.mubr.f32.mxu0 %v897_v47  ;;  %v12011_v10 = vpop.permute.xlu1 %1089  ;;  %v4473_v30 = vld [vmem:[%s18006_s13 + $0xa8] sm:$0xff]  ;;  %v4456_v47 = vld [vmem:[%s18006_s13 + $0x20] sm:$0xff] }
  0xc6   : > { %4581 = vperm.xlu1 %11182, %v4471_v31   ;;  %v900_v31 = vld [vmem:[%s18139_s5 + $0x360] sm:$0xff] }
  0xc8   : > { %1307 = vmatmul.mubr.f32.gmra.mrb[52].mxu0 %v896_v7 }
  0xc9   : > { %4496 = vperm.xlu0 %11181, %v4454_v53   ;;  %1311 = vmatprep.mubr.f32.mxu0 %v901_v17  ;;  %v4457_v53 = vld [vmem:[%s18006_s13 + $0x28] sm:$0xff]  ;;  %v12036_v7 = vpop.permute.xlu1 %1009  ;;  %v904_v17 = vld [vmem:[%s18139_s5 + $0x380] sm:$0xff] }
  0xca   : > { %4501 = vperm.xlu1 %11182, %v4455_v55   ;;  %v12034_v55 = vpop.permute.xlu0 %1004 }
  0xcc   : > { %1312 = vmatmul.mubr.f32.gmra.mrb[54].mxu0 %v900_v31  ;;  %v908_v31 = vld [vmem:[%s18139_s5 + $0x3a0] sm:$0xff] }
  0xcd   : > { %4586 = vperm.xlu0 %11181, %v4472_v22   ;;  %1316 = vmatprep.mubr.f32.mxu0 %v905_v45  ;;  %v909_v22 = vld [vmem:[%s18139_s5 + $0x3a8] sm:$0xff] }
  0xce   : > { %4591 = vperm.xlu1 %11182, %v4473_v30   ;;  %v4474_v30 = vld [vmem:[%s18006_s13 + $0xb0] sm:$0xff]  ;;  %v12053_v45 = vpop.permute.xlu0 %1094 }
  0xd0   : > { %1317 = vmatmul.mubr.f32.gmra.mrb[56].mxu0 %v904_v17  ;;  %v4459_v17 = vld [vmem:[%s18006_s13 + $0x38] sm:$0xff] }
  0xd1   : > { %4506 = vperm.xlu0 %11181, %v4456_v47   ;;  %1321 = vmatprep.mubr.f32.mxu0 %v909_v22  ;;  %v12055_v47 = vpop.permute.xlu1 %1099  ;;  %v912_v22 = vld [vmem:[%s18139_s5 + $0x3c0] sm:$0xff] }
  0xd2   : > { %4511 = vperm.xlu1 %11182, %v4457_v53   ;;  %v913_v53 = vld [vmem:[%s18139_s5 + $0x3c8] sm:$0xff] }
  0xd4   : > { %1322 = vmatmul.mubr.f32.gmra.mrb[58].mxu0 %v908_v31  ;;  %v12078_v31 = vpop.permute.xlu0 %1014 }
  0xd5   : > { %4596 = vperm.xlu0 %11181, %v4474_v30   ;;  %1326 = vmatprep.mubr.f32.mxu0 %v913_v53  ;;  %v4476_v30 = vld [vmem:[%s18006_s13 + $0xc0] sm:$0xff]  ;;  %v12080_v53 = vpop.permute.xlu1 %1019 }
  0xd6   : > { %4601 = vperm.xlu1 %11182, %v4475_v5   ;;  %v917_v5 = vld [vmem:[%s18139_s5 + $0x3e8] sm:$0xff] }
  0xd8   : > { %1327 = vmatmul.mubr.f32.gmra.mrb[60].mxu0 %v912_v22  ;;  %v794_v22 = vld [vmem:[%s18139_s5 + $0x10] sm:$0xff] }
  0xd9   : > { %4516 = vperm.xlu0 %11181, %v4458_v4   ;;  %1331 = vmatprep.mubr.f32.mxu0 %v917_v5  ;;  %v916_v4 = vld [vmem:[%s18139_s5 + $0x3e0] sm:$0xff]  ;;  %v12097_v5 = vpop.permute.xlu0 %1104 }
  0xda   : > { %4521 = vperm.xlu1 %11182, %v4459_v17   ;;  %v795_v17 = vld [vmem:[%s18139_s5 + $0x18] sm:$0xff] }
  0xdc   : > { %1332 = vmatmul.mubr.f32.gmra.mrb[62].mxu0 %v916_v4  ;;  %v4479_v4 = vld [vmem:[%s18006_s13 + $0xd8] sm:$0xff] }
  0xdd   : > { %4606 = vperm.xlu0 %11181, %v4476_v30   ;;  %1401 = vmatprep.mubr.f32.mxu0 %v795_v17  ;;  %v799_v30 = vld [vmem:[%s18139_s5 + $0x38] sm:$0xff]  ;;  %v798_v17 = vld [vmem:[%s18139_s5 + $0x30] sm:$0xff] }
  0xde   : > { %4611 = vperm.xlu1 %11182, %v4477_v52   ;;  %v12099_v52 = vpop.permute.xlu1 %1109 }
  0xe0   : > { %1402 = vmatmul.mubr.f32.vlgmr.msra.gmra.mrb[0].mxu0 %v794_v22  ;;  %v12122_v22 = vpop.permute.xlu0 %1024 }
  0xe1   : > { %4526 = vperm.xlu0 %11181, %v4460_v40   ;;  %1406 = vmatprep.mubr.f32.mxu0 %v799_v30  ;;  %v4462_v40 = vld [vmem:[%s18006_s13 + $0x50] sm:$0xff] }
  0xe2   : > { %4531 = vperm.xlu1 %11182, %v4461_v29   ;;  %v803_v29 = vld [vmem:[%s18139_s5 + $0x58] sm:$0xff]  ;;  %v12124_v30 = vpop.permute.xlu1 %1029 }
  0xe4   : > { %1407 = vmatmul.mubr.f32.gmra.mrb[2].mxu0 %v798_v17  ;;  %v806_v17 = vld [vmem:[%s18139_s5 + $0x70] sm:$0xff] }
  0xe5   : > { %4616 = vperm.xlu0 %11181, %v4478_v16   ;;  %1411 = vmatprep.mubr.f32.mxu0 %v803_v29  ;;  %v802_v16 = vld [vmem:[%s18139_s5 + $0x50] sm:$0xff]  ;;  %v12141_v29 = vpop.permute.xlu0 %1620 }
  0xe6   : > { %4621 = vperm.xlu1 %11182, %v4479_v4   ;;  %v807_v4 = vld [vmem:[%s18139_s5 + $0x78] sm:$0xff] }
  0xe8   : > { %1412 = vmatmul.mubr.f32.gmra.mrb[4].mxu0 %v802_v16  ;;  %v4465_v16 = vld [vmem:[%s18006_s13 + $0x68] sm:$0xff] }
  0xe9   : > { %4536 = vperm.xlu0 %11181, %v4462_v40   ;;  %1416 = vmatprep.mubr.f32.mxu0 %v807_v4  ;;  %v811_v40 = vld [vmem:[%s18139_s5 + $0x98] sm:$0xff]  ;;  %v810_v4 = vld [vmem:[%s18139_s5 + $0x90] sm:$0xff] }
  0xea   : > { %4541 = vperm.xlu1 %11182, %v4463_v2   ;;  %v12143_v2 = vpop.permute.xlu1 %1625 }
  0xec   : > { %1417 = vmatmul.mubr.f32.gmra.mrb[6].mxu0 %v806_v17  ;;  %v12166_v17 = vpop.permute.xlu0 %1630 }
  0xed   : > { %4626 = vperm.xlu0 %11181, %v4480_v56   ;;  %1421 = vmatprep.mubr.f32.mxu0 %v811_v40  ;;  %v4482_v56 = vld [vmem:[%s18006_s13 + $0xf0] sm:$0xff] }
  0xee   : > { %4631 = vperm.xlu1 %11182, %v4481_v46   ;;  %v815_v46 = vld [vmem:[%s18139_s5 + $0xb8] sm:$0xff]  ;;  %v12168_v40 = vpop.permute.xlu1 %1635 }
  0xf0   : > { %1422 = vmatmul.mubr.f32.gmra.mrb[8].mxu0 %v810_v4  ;;  %v818_v4 = vld [vmem:[%s18139_s5 + $0xd0] sm:$0xff] }
  0xf1   : > { %4546 = vperm.xlu0 %11181, %v4464_v36   ;;  %1426 = vmatprep.mubr.f32.mxu0 %v815_v46  ;;  %v814_v36 = vld [vmem:[%s18139_s5 + $0xb0] sm:$0xff]  ;;  %v12185_v46 = vpop.permute.xlu0 %1640 }
  0xf2   : > { %4551 = vperm.xlu1 %11182, %v4465_v16   ;;  %v819_v16 = vld [vmem:[%s18139_s5 + $0xd8] sm:$0xff] }
  0xf4   : > { %1427 = vmatmul.mubr.f32.gmra.mrb[10].mxu0 %v814_v36  ;;  %v4725_v36 = vld [vmem:[%s18008_s15 + $0x8] sm:$0xff] }
  0xf5   : > { %4636 = vperm.xlu0 %11181, %v4482_v56   ;;  %1431 = vmatprep.mubr.f32.mxu0 %v819_v16  ;;  %v823_v56 = vld [vmem:[%s18139_s5 + $0xf8] sm:$0xff]  ;;  %v822_v16 = vld [vmem:[%s18139_s5 + $0xf0] sm:$0xff] }
  0xf6   : > { %4641 = vperm.xlu1 %11182, %v4483_v26   ;;  %v12187_v26 = vpop.permute.xlu1 %1645 }
  0xf8   : > { %1432 = vmatmul.mubr.f32.gmra.mrb[12].mxu0 %v818_v4  ;;  %v12210_v4 = vpop.permute.xlu0 %1650 }
  0xf9   : > { %4556 = vperm.xlu0 %11181, %v4466_v15   ;;  %1436 = vmatprep.mubr.f32.mxu0 %v823_v56  ;;  %v4726_v15 = vld [vmem:[%s18008_s15 + $0x10] sm:$0xff] }
  0xfa   : > { %4561 = vperm.xlu1 %11182, %v4467_v3   ;;  %v827_v3 = vld [vmem:[%s18139_s5 + $0x118] sm:$0xff]  ;;  %v12212_v56 = vpop.permute.xlu1 %1655 }
  0xfc   : > { %1437 = vmatmul.mubr.f32.gmra.mrb[14].mxu0 %v822_v16  ;;  %v830_v16 = vld [vmem:[%s18139_s5 + $0x130] sm:$0xff] }
  0xfd   : > { %4734 = vperm.xlu0 %11181, %v4724_v58   ;;  %1441 = vmatprep.mubr.f32.mxu0 %v827_v3  ;;  %v826_v58 = vld [vmem:[%s18139_s5 + $0x110] sm:$0xff]  ;;  %v12229_v3 = vpop.permute.xlu0 %2817 }
  0xfe   : > { %4739 = vperm.xlu1 %11182, %v4725_v36   ;;  %v831_v36 = vld [vmem:[%s18139_s5 + $0x138] sm:$0xff]  ;;  %18170 = vst [vmem:[#allocation34_spill] sm:$0xff] %v12229_v3  ;;  %v7964_v3 = vld [vmem:[%s18013_s20 + $0x10] sm:$0xff] }
 0x100   : > { %1442 = vmatmul.mubr.f32.gmra.mrb[16].mxu0 %v826_v58  ;;  %v4731_v58 = vld [vmem:[%s18008_s15 + $0x38] sm:$0xff] }
 0x101   : > { %4744 = vperm.xlu0 %11181, %v4726_v15   ;;  %1446 = vmatprep.mubr.f32.mxu0 %v831_v36  ;;  %v835_v15 = vld [vmem:[%s18139_s5 + $0x158] sm:$0xff]  ;;  %v834_v36 = vld [vmem:[%s18139_s5 + $0x150] sm:$0xff] }
 0x102   : > { %4749 = vperm.xlu1 %11182, %v4727_v50   ;;  %v12231_v50 = vpop.permute.xlu1 %2822 }
 0x103   : > { %18171 = vst [vmem:[#allocation35_spill] sm:$0xff] %v12231_v50  ;;  %v7963_v50 = vld [vmem:[%s18013_s20 + $0x8] sm:$0xff] }
 0x104   : > { %1447 = vmatmul.mubr.f32.gmra.mrb[18].mxu0 %v830_v16  ;;  %v12254_v16 = vpop.permute.xlu0 %2737 }
 0x105   : > { %4754 = vperm.xlu0 %11181, %v4728_v41   ;;  %1451 = vmatprep.mubr.f32.mxu0 %v835_v15  ;;  %v7962_v41 = vld [vmem:[%s18013_s20] sm:$0xff]  ;;  %18172 = vst [vmem:[#allocation36_spill] sm:$0xff] %v12254_v16 }
 0x106   : > { %4759 = vperm.xlu1 %11182, %v4729_v32   ;;  %v839_v32 = vld [vmem:[%s18139_s5 + $0x178] sm:$0xff]  ;;  %v12256_v15 = vpop.permute.xlu1 %2742  ;;  %v7966_v16 = vld [vmem:[%s18013_s20 + $0x20] sm:$0xff] }
 0x107   : > { %18173 = vst [vmem:[#allocation37_spill] sm:$0xff] %v12256_v15  ;;  %v7965_v15 = vld [vmem:[%s18013_s20 + $0x18] sm:$0xff] }
 0x108   : > { %1452 = vmatmul.mubr.f32.gmra.mrb[20].mxu0 %v834_v36  ;;  %v842_v36 = vld [vmem:[%s18139_s5 + $0x190] sm:$0xff] }
 0x109   : > { %4764 = vperm.xlu0 %11181, %v4730_v25   ;;  %1456 = vmatprep.mubr.f32.mxu0 %v839_v32  ;;  %v838_v25 = vld [vmem:[%s18139_s5 + $0x170] sm:$0xff]  ;;  %v12273_v32 = vpop.permute.xlu0 %2827 }
 0x10a   : > { %4769 = vperm.xlu1 %11182, %v4731_v58   ;;  %v843_v58 = vld [vmem:[%s18139_s5 + $0x198] sm:$0xff]  ;;  %18174 = vst [vmem:[#allocation38_spill] sm:$0xff] %v12273_v32  ;;  %v7970_v32 = vld [vmem:[%s18013_s20 + $0x40] sm:$0xff] }
 0x10c   : > { %1457 = vmatmul.mubr.f32.gmra.mrb[22].mxu0 %v838_v25  ;;  %v7967_v25 = vld [vmem:[%s18013_s20 + $0x28] sm:$0xff] }
 0x10d   : > { %8028 = vperm.xlu0 %11181, %v7962_v41   ;;  %1461 = vmatprep.mubr.f32.mxu0 %v843_v58  ;;  %v847_v41 = vld [vmem:[%s18139_s5 + $0x1b8] sm:$0xff]  ;;  %v846_v58 = vld [vmem:[%s18139_s5 + $0x1b0] sm:$0xff] }
 0x10e   : > { %8033 = vperm.xlu1 %11182, %v7963_v50   ;;  %v12275_v50 = vpop.permute.xlu1 %2832 }
 0x10f   : > { %18175 = vst [vmem:[#allocation39_spill] sm:$0xff] %v12275_v50  ;;  %v7969_v50 = vld [vmem:[%s18013_s20 + $0x38] sm:$0xff] }
 0x110   : > { %1462 = vmatmul.mubr.f32.gmra.mrb[24].mxu0 %v842_v36  ;;  %v12298_v36 = vpop.permute.xlu0 %2747 }
 0x111   : > { %8038 = vperm.xlu0 %11181, %v7964_v3   ;;  %1466 = vmatprep.mubr.f32.mxu0 %v847_v41  ;;  %v851_v3 = vld [vmem:[%s18139_s5 + $0x1d8] sm:$0xff]  ;;  %18176 = vst [vmem:[#allocation40_spill] sm:$0xff] %v12298_v36  ;;  %v7972_v36 = vld [vmem:[%s18013_s20 + $0x50] sm:$0xff] }
 0x112   : > { %8043 = vperm.xlu1 %11182, %v7965_v15   ;;  %v7968_v15 = vld [vmem:[%s18013_s20 + $0x30] sm:$0xff]  ;;  %v12300_v41 = vpop.permute.xlu1 %2752 }
 0x113   : > { %18177 = vst [vmem:[#allocation41_spill] sm:$0xff] %v12300_v41  ;;  %v7971_v41 = vld [vmem:[%s18013_s20 + $0x48] sm:$0xff] }
 0x114   : > { %1467 = vmatmul.mubr.f32.gmra.mrb[26].mxu0 %v846_v58  ;;  %v854_v58 = vld [vmem:[%s18139_s5 + $0x1f0] sm:$0xff] }
 0x115   : > { %8048 = vperm.xlu0 %11181, %v7966_v16   ;;  %1471 = vmatprep.mubr.f32.mxu0 %v851_v3  ;;  %v850_v16 = vld [vmem:[%s18139_s5 + $0x1d0] sm:$0xff]  ;;  %v12317_v3 = vpop.permute.xlu0 %2837 }
 0x116   : > { %8053 = vperm.xlu1 %11182, %v7967_v25   ;;  %v855_v25 = vld [vmem:[%s18139_s5 + $0x1f8] sm:$0xff]  ;;  %18178 = vst [vmem:[#allocation42_spill] sm:$0xff] %v12317_v3  ;;  %v7976_v3 = vld [vmem:[%s18013_s20 + $0x70] sm:$0xff] }
 0x118   : > { %1472 = vmatmul.mubr.f32.gmra.mrb[28].mxu0 %v850_v16  ;;  %v7973_v16 = vld [vmem:[%s18013_s20 + $0x58] sm:$0xff] }
 0x119   : > { %8058 = vperm.xlu0 %11181, %v7968_v15   ;;  %1476 = vmatprep.mubr.f32.mxu0 %v855_v25  ;;  %v859_v15 = vld [vmem:[%s18139_s5 + $0x218] sm:$0xff]  ;;  %v858_v25 = vld [vmem:[%s18139_s5 + $0x210] sm:$0xff] }
 0x11a   : > { %8063 = vperm.xlu1 %11182, %v7969_v50   ;;  %v12319_v50 = vpop.permute.xlu1 %2842 }
 0x11b   : > { %18179 = vst [vmem:[#allocation43_spill] sm:$0xff] %v12319_v50  ;;  %v7975_v50 = vld [vmem:[%s18013_s20 + $0x68] sm:$0xff] }
 0x11c   : > { %1477 = vmatmul.mubr.f32.gmra.mrb[30].mxu0 %v854_v58  ;;  %v12342_v58 = vpop.permute.xlu0 %2757 }
 0x11d   : > { %8068 = vperm.xlu0 %11181, %v7970_v32   ;;  %1481 = vmatprep.mubr.f32.mxu0 %v859_v15  ;;  %v863_v32 = vld [vmem:[%s18139_s5 + $0x238] sm:$0xff]  ;;  %18180 = vst [vmem:[#allocation44_spill] sm:$0xff] %v12342_v58  ;;  %v7978_v58 = vld [vmem:[%s18013_s20 + $0x80] sm:$0xff] }
 0x11e   : > { %8073 = vperm.xlu1 %11182, %v7971_v41   ;;  %v7974_v41 = vld [vmem:[%s18013_s20 + $0x60] sm:$0xff]  ;;  %v12344_v15 = vpop.permute.xlu1 %2762 }
 0x11f   : > { %18181 = vst [vmem:[#allocation45_spill] sm:$0xff] %v12344_v15  ;;  %v7977_v15 = vld [vmem:[%s18013_s20 + $0x78] sm:$0xff] }
 0x120   : > { %1482 = vmatmul.mubr.f32.gmra.mrb[32].mxu0 %v858_v25  ;;  %v866_v25 = vld [vmem:[%s18139_s5 + $0x250] sm:$0xff] }
 0x121   : > { %8078 = vperm.xlu0 %11181, %v7972_v36   ;;  %1486 = vmatprep.mubr.f32.mxu0 %v863_v32  ;;  %v862_v36 = vld [vmem:[%s18139_s5 + $0x230] sm:$0xff]  ;;  %v12361_v32 = vpop.permute.xlu0 %2847 }
 0x122   : > { %8083 = vperm.xlu1 %11182, %v7973_v16   ;;  %v867_v16 = vld [vmem:[%s18139_s5 + $0x258] sm:$0xff]  ;;  %18182 = vst [vmem:[#allocation46_spill] sm:$0xff] %v12361_v32  ;;  %v7982_v32 = vld [vmem:[%s18013_s20 + $0xa0] sm:$0xff] }
 0x124   : > { %1487 = vmatmul.mubr.f32.gmra.mrb[34].mxu0 %v862_v36  ;;  %v7979_v36 = vld [vmem:[%s18013_s20 + $0x88] sm:$0xff] }
 0x125   : > { %8088 = vperm.xlu0 %11181, %v7974_v41   ;;  %1491 = vmatprep.mubr.f32.mxu0 %v867_v16  ;;  %v871_v41 = vld [vmem:[%s18139_s5 + $0x278] sm:$0xff]  ;;  %v870_v16 = vld [vmem:[%s18139_s5 + $0x270] sm:$0xff] }
 0x126   : > { %8093 = vperm.xlu1 %11182, %v7975_v50   ;;  %v12363_v50 = vpop.permute.xlu1 %2852 }
 0x127   : > { %18183 = vst [vmem:[#allocation47_spill] sm:$0xff] %v12363_v50  ;;  %v7981_v50 = vld [vmem:[%s18013_s20 + $0x98] sm:$0xff] }
 0x128   : > { %1492 = vmatmul.mubr.f32.gmra.mrb[36].mxu0 %v866_v25  ;;  %v12386_v25 = vpop.permute.xlu0 %2767 }
 0x129   : > { %8098 = vperm.xlu0 %11181, %v7976_v3   ;;  %1496 = vmatprep.mubr.f32.mxu0 %v871_v41  ;;  %v875_v3 = vld [vmem:[%s18139_s5 + $0x298] sm:$0xff]  ;;  %18184 = vst [vmem:[#allocation48_spill] sm:$0xff] %v12386_v25  ;;  %v7984_v25 = vld [vmem:[%s18013_s20 + $0xb0] sm:$0xff] }
 0x12a   : > { %8103 = vperm.xlu1 %11182, %v7977_v15   ;;  %v7980_v15 = vld [vmem:[%s18013_s20 + $0x90] sm:$0xff]  ;;  %v12388_v41 = vpop.permute.xlu1 %2772 }
 0x12b   : > { %18185 = vst [vmem:[#allocation49_spill] sm:$0xff] %v12388_v41  ;;  %v7983_v41 = vld [vmem:[%s18013_s20 + $0xa8] sm:$0xff] }
 0x12c   : > { %1497 = vmatmul.mubr.f32.gmra.mrb[38].mxu0 %v870_v16  ;;  %v878_v16 = vld [vmem:[%s18139_s5 + $0x2b0] sm:$0xff] }
 0x12d   : > { %8108 = vperm.xlu0 %11181, %v7978_v58   ;;  %1501 = vmatprep.mubr.f32.mxu0 %v875_v3  ;;  %v874_v58 = vld [vmem:[%s18139_s5 + $0x290] sm:$0xff]  ;;  %v12405_v3 = vpop.permute.xlu0 %2857 }
 0x12e   : > { %8113 = vperm.xlu1 %11182, %v7979_v36   ;;  %v879_v36 = vld [vmem:[%s18139_s5 + $0x2b8] sm:$0xff]  ;;  %18186 = vst [vmem:[#allocation50_spill] sm:$0xff] %v12405_v3  ;;  %v7988_v3 = vld [vmem:[%s18013_s20 + $0xd0] sm:$0xff] }
 0x130   : > { %1502 = vmatmul.mubr.f32.gmra.mrb[40].mxu0 %v874_v58  ;;  %v7985_v58 = vld [vmem:[%s18013_s20 + $0xb8] sm:$0xff] }
 0x131   : > { %8118 = vperm.xlu0 %11181, %v7980_v15   ;;  %1506 = vmatprep.mubr.f32.mxu0 %v879_v36  ;;  %v883_v15 = vld [vmem:[%s18139_s5 + $0x2d8] sm:$0xff]  ;;  %v882_v36 = vld [vmem:[%s18139_s5 + $0x2d0] sm:$0xff] }
 0x132   : > { %8123 = vperm.xlu1 %11182, %v7981_v50   ;;  %v12407_v50 = vpop.permute.xlu1 %2862 }
 0x133   : > { %18187 = vst [vmem:[#allocation51_spill] sm:$0xff] %v12407_v50  ;;  %v7987_v50 = vld [vmem:[%s18013_s20 + $0xc8] sm:$0xff] }
 0x134   : > { %1507 = vmatmul.mubr.f32.gmra.mrb[42].mxu0 %v878_v16  ;;  %v12430_v16 = vpop.permute.xlu0 %2777 }
 0x135   : > { %8128 = vperm.xlu0 %11181, %v7982_v32   ;;  %1511 = vmatprep.mubr.f32.mxu0 %v883_v15  ;;  %v887_v32 = vld [vmem:[%s18139_s5 + $0x2f8] sm:$0xff]  ;;  %18188 = vst [vmem:[#allocation52_spill] sm:$0xff] %v12430_v16  ;;  %v7990_v16 = vld [vmem:[%s18013_s20 + $0xe0] sm:$0xff] }
 0x136   : > { %8133 = vperm.xlu1 %11182, %v7983_v41   ;;  %v7986_v41 = vld [vmem:[%s18013_s20 + $0xc0] sm:$0xff]  ;;  %v12432_v15 = vpop.permute.xlu1 %2782 }
 0x137   : > { %18189 = vst [vmem:[#allocation53_spill] sm:$0xff] %v12432_v15  ;;  %v7989_v15 = vld [vmem:[%s18013_s20 + $0xd8] sm:$0xff] }
 0x138   : > { %1512 = vmatmul.mubr.f32.gmra.mrb[44].mxu0 %v882_v36  ;;  %v890_v36 = vld [vmem:[%s18139_s5 + $0x310] sm:$0xff] }
 0x139   : > { %8138 = vperm.xlu0 %11181, %v7984_v25   ;;  %1516 = vmatprep.mubr.f32.mxu0 %v887_v32  ;;  %v886_v25 = vld [vmem:[%s18139_s5 + $0x2f0] sm:$0xff]  ;;  %v12449_v32 = vpop.permute.xlu0 %2867 }
 0x13a   : > { %8143 = vperm.xlu1 %11182, %v7985_v58   ;;  %v891_v58 = vld [vmem:[%s18139_s5 + $0x318] sm:$0xff]  ;;  %18190 = vst [vmem:[#allocation54_spill] sm:$0xff] %v12449_v32  ;;  %v7994_v32 = vld [vmem:[%s18013_s20 + $0x100] sm:$0xff] }
 0x13c   : > { %1517 = vmatmul.mubr.f32.gmra.mrb[46].mxu0 %v886_v25  ;;  %v7991_v25 = vld [vmem:[%s18013_s20 + $0xe8] sm:$0xff] }
 0x13d   : > { %8148 = vperm.xlu0 %11181, %v7986_v41   ;;  %1521 = vmatprep.mubr.f32.mxu0 %v891_v58  ;;  %v895_v41 = vld [vmem:[%s18139_s5 + $0x338] sm:$0xff]  ;;  %v894_v58 = vld [vmem:[%s18139_s5 + $0x330] sm:$0xff] }
 0x13e   : > { %8153 = vperm.xlu1 %11182, %v7987_v50   ;;  %v12451_v50 = vpop.permute.xlu1 %2872 }
 0x13f   : > { %18191 = vst [vmem:[#allocation55_spill] sm:$0xff] %v12451_v50  ;;  %v7993_v50 = vld [vmem:[%s18013_s20 + $0xf8] sm:$0xff] }
 0x140   : > { %1522 = vmatmul.mubr.f32.gmra.mrb[48].mxu0 %v890_v36  ;;  %v12474_v36 = vpop.permute.xlu0 %2787 }
 0x141   : > { %8158 = vperm.xlu0 %11181, %v7988_v3   ;;  %1526 = vmatprep.mubr.f32.mxu0 %v895_v41  ;;  %v899_v3 = vld [vmem:[%s18139_s5 + $0x358] sm:$0xff]  ;;  %18192 = vst [vmem:[#allocation56_spill] sm:$0xff] %v12474_v36  ;;  %v7996_v36 = vld [vmem:[%s18013_s20 + $0x110] sm:$0xff] }
 0x142   : > { %8163 = vperm.xlu1 %11182, %v7989_v15   ;;  %v7992_v15 = vld [vmem:[%s18013_s20 + $0xf0] sm:$0xff]  ;;  %v12476_v41 = vpop.permute.xlu1 %2792 }
 0x143   : > { %18193 = vst [vmem:[#allocation57_spill] sm:$0xff] %v12476_v41  ;;  %v7995_v41 = vld [vmem:[%s18013_s20 + $0x108] sm:$0xff] }
 0x144   : > { %1527 = vmatmul.mubr.f32.gmra.mrb[50].mxu0 %v894_v58  ;;  %v902_v58 = vld [vmem:[%s18139_s5 + $0x370] sm:$0xff] }
 0x145   : > { %8168 = vperm.xlu0 %11181, %v7990_v16   ;;  %1531 = vmatprep.mubr.f32.mxu0 %v899_v3  ;;  %v898_v16 = vld [vmem:[%s18139_s5 + $0x350] sm:$0xff]  ;;  %v12493_v3 = vpop.permute.xlu0 %2877 }
 0x146   : > { %8173 = vperm.xlu1 %11182, %v7991_v25   ;;  %v903_v25 = vld [vmem:[%s18139_s5 + $0x378] sm:$0xff]  ;;  %18194 = vst [vmem:[#allocation58_spill] sm:$0xff] %v12493_v3  ;;  %v8000_v3 = vld [vmem:[%s18013_s20 + $0x130] sm:$0xff] }
 0x148   : > { %1532 = vmatmul.mubr.f32.gmra.mrb[52].mxu0 %v898_v16  ;;  %v7997_v16 = vld [vmem:[%s18013_s20 + $0x118] sm:$0xff] }
 0x149   : > { %8178 = vperm.xlu0 %11181, %v7992_v15   ;;  %1536 = vmatprep.mubr.f32.mxu0 %v903_v25  ;;  %v907_v15 = vld [vmem:[%s18139_s5 + $0x398] sm:$0xff]  ;;  %v906_v25 = vld [vmem:[%s18139_s5 + $0x390] sm:$0xff] }
 0x14a   : > { %8183 = vperm.xlu1 %11182, %v7993_v50   ;;  %v12495_v50 = vpop.permute.xlu1 %2882 }
 0x14b   : > { %18195 = vst [vmem:[#allocation59_spill] sm:$0xff] %v12495_v50  ;;  %v7999_v50 = vld [vmem:[%s18013_s20 + $0x128] sm:$0xff] }
 0x14c   : > { %1537 = vmatmul.mubr.f32.gmra.mrb[54].mxu0 %v902_v58  ;;  %v12518_v58 = vpop.permute.xlu0 %2797 }
 0x14d   : > { %8188 = vperm.xlu0 %11181, %v7994_v32   ;;  %1541 = vmatprep.mubr.f32.mxu0 %v907_v15  ;;  %v911_v32 = vld [vmem:[%s18139_s5 + $0x3b8] sm:$0xff]  ;;  %18196 = vst [vmem:[#allocation60_spill] sm:$0xff] %v12518_v58  ;;  %v8002_v58 = vld [vmem:[%s18013_s20 + $0x140] sm:$0xff] }
 0x14e   : > { %8193 = vperm.xlu1 %11182, %v7995_v41   ;;  %v7998_v41 = vld [vmem:[%s18013_s20 + $0x120] sm:$0xff]  ;;  %v12520_v15 = vpop.permute.xlu1 %2802 }
 0x14f   : > { %18197 = vst [vmem:[#allocation61_spill] sm:$0xff] %v12520_v15  ;;  %v8001_v15 = vld [vmem:[%s18013_s20 + $0x138] sm:$0xff] }
 0x150   : > { %1542 = vmatmul.mubr.f32.gmra.mrb[56].mxu0 %v906_v25  ;;  %v914_v25 = vld [vmem:[%s18139_s5 + $0x3d0] sm:$0xff] }
 0x151   : > { %8198 = vperm.xlu0 %11181, %v7996_v36   ;;  %1546 = vmatprep.mubr.f32.mxu0 %v911_v32  ;;  %v910_v36 = vld [vmem:[%s18139_s5 + $0x3b0] sm:$0xff]  ;;  %v12537_v32 = vpop.permute.xlu0 %2887 }
 0x152   : > { %8203 = vperm.xlu1 %11182, %v7997_v16   ;;  %v915_v16 = vld [vmem:[%s18139_s5 + $0x3d8] sm:$0xff]  ;;  %18198 = vst [vmem:[#allocation62_spill] sm:$0xff] %v12537_v32 }
 0x154   : > { %1547 = vmatmul.mubr.f32.gmra.mrb[58].mxu0 %v910_v36  ;;  %v8003_v36 = vld [vmem:[%s18013_s20 + $0x148] sm:$0xff] }
 0x155   : > { %8208 = vperm.xlu0 %11181, %v7998_v41   ;;  %1551 = vmatprep.mubr.f32.mxu0 %v915_v16  ;;  %v919_v41 = vld [vmem:[%s18139_s5 + $0x3f8] sm:$0xff]  ;;  %v918_v16 = vld [vmem:[%s18139_s5 + $0x3f0] sm:$0xff] }
 0x156   : > { %8213 = vperm.xlu1 %11182, %v7999_v50   ;;  %v12539_v50 = vpop.permute.xlu1 %2892 }
 0x157   : > { %18199 = vst [vmem:[#allocation63_spill] sm:$0xff] %v12539_v50  ;;  %v12559_v50 = vpop.permute.xlu0 %2807 }
 0x158   : > { %1552 = vmatmul.mubr.f32.gmra.mrb[60].mxu0 %v914_v25  ;;  %18200 = vst [vmem:[#allocation64_spill] sm:$0xff] %v12559_v50  ;;  %v8007_v25 = vld [vmem:[%s18013_s20 + $0x168] sm:$0xff] }
 0x159   : > { %8218 = vperm.xlu0 %11181, %v8000_v3   ;;  %1556 = vmatprep.mubr.f32.mxu0 %v919_v41  ;;  %v8004_v3 = vld [vmem:[%s18013_s20 + $0x150] sm:$0xff] }
 0x15a   : > { %8223 = vperm.xlu1 %11182, %v8001_v15   ;;  %v8005_v15 = vld [vmem:[%s18013_s20 + $0x158] sm:$0xff]  ;;  %v12561_v32 = vpop.permute.xlu1 %2812 }
 0x15b   : > { %18201 = vst [vmem:[#allocation65_spill] sm:$0xff] %v12561_v32  ;;  %v12569_v41 = vpop.permute.xlu0 %2985 }
 0x15c   : > { %1557 = vmatmul.mubr.f32.gmra.mrb[62].mxu0 %v918_v16  ;;  %18202 = vst [vmem:[#allocation66_spill] sm:$0xff] %v12569_v41  ;;  %v8008_v16 = vld [vmem:[%s18013_s20 + $0x170] sm:$0xff] }
 0x15d   : > { %8228 = vperm.xlu0 %11181, %v8002_v58   ;;  %v8006_v58 = vld [vmem:[%s18013_s20 + $0x160] sm:$0xff]  ;;  %v8012_v41 = vld [vmem:[%s18013_s20 + $0x190] sm:$0xff] }
 0x15e   : > { %8233 = vperm.xlu1 %11182, %v8003_v36   ;;  %v12571_v36 = vpop.permute.xlu1 %2990 }
 0x15f   : > { %18203 = vst [vmem:[#allocation67_spill] sm:$0xff] %v12571_v36  ;;  %v8011_v36 = vld [vmem:[%s18013_s20 + $0x188] sm:$0xff] }
 0x161   : > { %8238 = vperm.xlu0 %11181, %v8004_v3   ;;  %v8009_v3 = vld [vmem:[%s18013_s20 + $0x178] sm:$0xff] }
 0x162   : > { %8243 = vperm.xlu1 %11182, %v8005_v15   ;;  %v8010_v15 = vld [vmem:[%s18013_s20 + $0x180] sm:$0xff] }
 0x165   : > { %8248 = vperm.xlu0 %11181, %v8006_v58   ;;  %v12585_v58 = vpop.permute.xlu0 %2995 }
 0x166   : > { %8253 = vperm.xlu1 %11182, %v8007_v25   ;;  %18204 = vst [vmem:[#allocation68_spill] sm:$0xff] %v12585_v58  ;;  %v12587_v25 = vpop.permute.xlu1 %3000 }
 0x167   : > { %18205 = vst [vmem:[#allocation69_spill] sm:$0xff] %v12587_v25  ;;  %v8014_v25 = vld [vmem:[%s18013_s20 + $0x1a0] sm:$0xff] }
 0x169   : > { %8258 = vperm.xlu0 %11181, %v8008_v16   ;;  %v8013_v16 = vld [vmem:[%s18013_s20 + $0x198] sm:$0xff] }
 0x16a   : > { %8263 = vperm.xlu1 %11182, %v8009_v3   ;;  %v12595_v3 = vpop.permute.xlu0 %3005  ;;  %v12597_v32 = vpop.permute.xlu1 %3010 }
 0x16b   : > { %18206 = vst [vmem:[#allocation70_spill] sm:$0xff] %v12595_v3  ;;  %18207 = vst [vmem:[#allocation71_spill] sm:$0xff] %v12597_v32  ;;  %v8017_v32 = vld [vmem:[%s18013_s20 + $0x1b8] sm:$0xff]  ;;  %v8018_v3 = vld [vmem:[%s18013_s20 + $0x1c0] sm:$0xff] }
 0x16d   : > { %8268 = vperm.xlu0 %11181, %v8010_v15   ;;  %v8016_v15 = vld [vmem:[%s18013_s20 + $0x1b0] sm:$0xff] }
 0x16e   : > { %8273 = vperm.xlu1 %11182, %v8011_v36   ;;  %v8015_v36 = vld [vmem:[%s18013_s20 + $0x1a8] sm:$0xff] }
 0x171   : > { %8278 = vperm.xlu0 %11181, %v8012_v41   ;;  %v12611_v41 = vpop.permute.xlu0 %3015 }
 0x172   : > { %8283 = vperm.xlu1 %11182, %v8013_v16   ;;  %18208 = vst [vmem:[#allocation72_spill] sm:$0xff] %v12611_v41  ;;  %v12613_v16 = vpop.permute.xlu1 %3020 }
 0x173   : > { %18209 = vst [vmem:[#allocation73_spill] sm:$0xff] %v12613_v16  ;;  %v8020_v16 = vld [vmem:[%s18013_s20 + $0x1d0] sm:$0xff] }
 0x175   : > { %8288 = vperm.xlu0 %11181, %v8014_v25   ;;  %v8019_v25 = vld [vmem:[%s18013_s20 + $0x1c8] sm:$0xff] }
 0x176   : > { %8293 = vperm.xlu1 %11182, %v8015_v36   ;;  %v12621_v36 = vpop.permute.xlu0 %4566  ;;  %v12623_v58 = vpop.permute.xlu1 %4571 }
 0x177   : > { %18210 = vst [vmem:[#allocation74_spill] sm:$0xff] %v12621_v36  ;;  %18211 = vst [vmem:[#allocation75_spill] sm:$0xff] %v12623_v58  ;;  %v8023_v36 = vld [vmem:[%s18013_s20 + $0x1e8] sm:$0xff]  ;;  %v8024_v58 = vld [vmem:[%s18013_s20 + $0x1f0] sm:$0xff] }
 0x179   : > { %8298 = vperm.xlu0 %11181, %v8016_v15   ;;  %v8022_v15 = vld [vmem:[%s18013_s20 + $0x1e0] sm:$0xff] }
 0x17a   : > { %8303 = vperm.xlu1 %11182, %v8017_v32   ;;  %v8021_v32 = vld [vmem:[%s18013_s20 + $0x1d8] sm:$0xff] }
 0x17d   : > { %8308 = vperm.xlu0 %11181, %v8018_v3   ;;  %v12637_v3 = vpop.permute.xlu0 %4486 }
 0x17e   : > { %8313 = vperm.xlu1 %11182, %v8019_v25   ;;  %18212 = vst [vmem:[#allocation76_spill] sm:$0xff] %v12637_v3  ;;  %v12639_v25 = vpop.permute.xlu1 %4491 }
 0x17f   : > { %18213 = vst [vmem:[#allocation77_spill] sm:$0xff] %v12639_v25 }
 0x181   : > { %8318 = vperm.xlu0 %11181, %v8020_v16   ;;  %v8025_v16 = vld [vmem:[%s18013_s20 + $0x1f8] sm:$0xff] }
 0x182   : > { %8323 = vperm.xlu1 %11182, %v8021_v32   ;;  %v12647_v32 = vpop.permute.xlu0 %4576  ;;  %v12649_v41 = vpop.permute.xlu1 %4581 }
 0x183   : > { %18214 = vst [vmem:[#allocation78_spill] sm:$0xff] %v12647_v32  ;;  %18215 = vst [vmem:[#allocation79_spill] sm:$0xff] %v12649_v41 }
 0x185   : > { %8328 = vperm.xlu0 %11181, %v8022_v15  }
 0x186   : > { %8333 = vperm.xlu1 %11182, %v8023_v36   ;;  %v1595_v36 = vld [vmem:[%s18216_s7 + $0x8] sm:$0xff] }
 0x187   : > { %1722 = vmatprep.mubr.f32.mxu1 %v1595_v36 }
 0x189   : > { %8338 = vperm.xlu0 %11181, %v8024_v58  }
 0x18a   : > { %8343 = vperm.xlu1 %11182, %v8025_v16  }
 0x1b3   : > { %v1403_v50 = vpop.f32.mrb[0].mxu0 }
 0x1b4   : > { %v1405_v3 = vpop.f32.mrb[1].mxu0  ;;  %v11058_v25 = vadd.f32 %v1403_v50, %v11831_v63 }
 0x1b6   : > { %v1562_v6 = vmax.f32 %v11058_v25, 0.0 }
 0x1b7   : > { %v1408_v15 = vpop.f32.mrb[2].mxu0 }
 0x1b8   : > { %v11059_v19 = vadd.f32 %v1408_v15, %v11851_v14  ;;  %v1410_v12 = vpop.f32.mrb[3].mxu0 }
 0x1ba   : > { %v1563_v0 = vmax.f32 %v11059_v19, 0.0 }
 0x1bb   : > { %v1413_v32 = vpop.f32.mrb[4].mxu0 }
 0x1bc   : > { %v1415_v59 = vpop.f32.mrb[5].mxu0  ;;  %v12656_v41 = vpack.c.bf16 %v1563_v0, %v1562_v6  ;;  %v11060_v58 = vadd.f32 %v1413_v32, %v11882_v37 }
 0x1be   : > { %v1564_v16 = vmax.f32 %v11060_v58, 0.0 }
 0x1bf   : > { %v1418_v3 = vpop.f32.mrb[6].mxu0 }
 0x1c0   : > { %v11061_v63 = vadd.f32 %v1418_v3, %v11884_v38  ;;  %v1420_v50 = vpop.f32.mrb[7].mxu0 }
 0x1c2   : > { %v1565_v54 = vmax.f32 %v11061_v63, 0.0 }
 0x1c3   : > { %v1423_v49 = vpop.f32.mrb[8].mxu0 }
 0x1c4   : > { %v1425_v44 = vpop.f32.mrb[9].mxu0  ;;  %v12660_v39 = vpack.c.bf16 %v1565_v54, %v1564_v16  ;;  %v11062_v12 = vadd.f32 %v1423_v49, %v11914_v61 }
 0x1c6   : > { %v1566_v0 = vmax.f32 %v11062_v12, 0.0 }
 0x1c7   : > { %v1428_v14 = vpop.f32.mrb[10].mxu0 }
 0x1c8   : > { %v11063_v19 = vadd.f32 %v1428_v14, %v11916_v1  ;;  %v1430_v59 = vpop.f32.mrb[11].mxu0 }
 0x1ca   : > { %v1567_v6 = vmax.f32 %v11063_v19, 0.0 }
 0x1cb   : > { %v1433_v25 = vpop.f32.mrb[12].mxu0 }
 0x1cc   : > { %v1435_v37 = vpop.f32.mrb[13].mxu0  ;;  %v12664_v32 = vpack.c.bf16 %v1567_v6, %v1566_v0  ;;  %v11064_v38 = vadd.f32 %v1433_v25, %v11946_v35 }
 0x1ce   : > { %v1568_v54 = vmax.f32 %v11064_v38, 0.0 }
 0x1cf   : > { %v1438_v15 = vpop.f32.mrb[14].mxu0 }
 0x1d0   : > { %v11065_v36 = vadd.f32 %v1438_v15, %v11948_v42  ;;  %v1440_v44 = vpop.f32.mrb[15].mxu0 }
 0x1d2   : > { %v1569_v58 = vmax.f32 %v11065_v36, 0.0 }
 0x1d3   : > { %v1443_v3 = vpop.f32.mrb[16].mxu0 }
 0x1d4   : > { %v1445_v49 = vpop.f32.mrb[17].mxu0  ;;  %v12668_v61 = vpack.c.bf16 %v1569_v58, %v1568_v54  ;;  %v11066_v1 = vadd.f32 %v1443_v3, %v11990_v33 }
 0x1d6   : > { %v1570_v12 = vmax.f32 %v11066_v1, 0.0 }
 0x1d7   : > { %v1448_v63 = vpop.f32.mrb[18].mxu0 }
 0x1d8   : > { %v11067_v50 = vadd.f32 %v1448_v63, %v11992_v43  ;;  %v1450_v16 = vpop.f32.mrb[19].mxu0 }
 0x1da   : > { %v1571_v14 = vmax.f32 %v11067_v50, 0.0 }
 0x1db   : > { %v1453_v19 = vpop.f32.mrb[20].mxu0 }
 0x1dc   : > { %v1455_v35 = vpop.f32.mrb[21].mxu0  ;;  %v12672_v59 = vpack.c.bf16 %v1571_v14, %v1570_v12  ;;  %v11068_v42 = vadd.f32 %v1453_v19, %v12034_v55 }
 0x1de   : > { %v1572_v37 = vmax.f32 %v11068_v42, 0.0 }
 0x1df   : > { %v1458_v0 = vpop.f32.mrb[22].mxu0 }
 0x1e0   : > { %v11069_v6 = vadd.f32 %v1458_v0, %v12036_v7  ;;  %v1460_v25 = vpop.f32.mrb[23].mxu0 }
 0x1e2   : > { %v1573_v38 = vmax.f32 %v11069_v6, 0.0 }
 0x1e3   : > { %v1463_v15 = vpop.f32.mrb[24].mxu0 }
 0x1e4   : > { %v1465_v33 = vpop.f32.mrb[25].mxu0  ;;  %v12676_v36 = vpack.c.bf16 %v1573_v38, %v1572_v37  ;;  %v11070_v43 = vadd.f32 %v1463_v15, %v12078_v31 }
 0x1e6   : > { %v1574_v3 = vmax.f32 %v11070_v43, 0.0 }
 0x1e7   : > { %v1468_v44 = vpop.f32.mrb[26].mxu0 }
 0x1e8   : > { %v11071_v54 = vadd.f32 %v1468_v44, %v12080_v53  ;;  %v1470_v58 = vpop.f32.mrb[27].mxu0 }
 0x1ea   : > { %v1575_v49 = vmax.f32 %v11071_v54, 0.0 }
 0x1eb   : > { %v1473_v1 = vpop.f32.mrb[28].mxu0 }
 0x1ec   : > { %v1475_v55 = vpop.f32.mrb[29].mxu0  ;;  %v12680_v63 = vpack.c.bf16 %v1575_v49, %v1574_v3  ;;  %v11072_v7 = vadd.f32 %v1473_v1, %v12122_v22 }
 0x1ee   : > { %v1576_v14 = vmax.f32 %v11072_v7, 0.0 }
 0x1ef   : > { %v1478_v50 = vpop.f32.mrb[30].mxu0 }
 0x1f0   : > { %v11073_v16 = vadd.f32 %v1478_v50, %v12124_v30  ;;  %v1480_v12 = vpop.f32.mrb[31].mxu0 }
 0x1f2   : > { %v1577_v19 = vmax.f32 %v11073_v16, 0.0 }
 0x1f3   : > { %v1483_v35 = vpop.f32.mrb[32].mxu0 }
 0x1f4   : > { %v1485_v31 = vpop.f32.mrb[33].mxu0  ;;  %v12684_v42 = vpack.c.bf16 %v1577_v19, %v1576_v14  ;;  %v11074_v53 = vadd.f32 %v1483_v35, %v11829_v62 }
 0x1f6   : > { %v1578_v37 = vmax.f32 %v11074_v53, 0.0 }
 0x1f7   : > { %v1488_v0 = vpop.f32.mrb[34].mxu0 }
 0x1f8   : > { %v1490_v6 = vpop.f32.mrb[35].mxu0  ;;  %v11075_v25 = vadd.f32 %v1488_v0, %v11849_v11 }
 0x1fa   : > { %v1579_v38 = vmax.f32 %v11075_v25, 0.0 }
 0x1fb   : > { %v1493_v15 = vpop.f32.mrb[36].mxu0 }
 0x1fc   : > { %v1495_v22 = vpop.f32.mrb[37].mxu0  ;;  %v10546_v33 = vpack.c.bf16 %v1579_v38, %v1578_v37  ;;  %v11076_v30 = vadd.f32 %v1493_v15, %v11866_v24 }
 0x1fe   : > { %10547 = vmatprep.subr.bf16.mxu1 %v10546_v33  ;;  %v1580_v58 = vmax.f32 %v11076_v30, 0.0 }
 0x1ff   : > { %v1498_v43 = vpop.f32.mrb[38].mxu0  ;;  %10549 = vmatpush3.bf16.msra.mxu1 %v12656_v41 }
 0x200   : > { %v11077_v44 = vadd.f32 %v1498_v43, %v11868_v27  ;;  %v1500_v54 = vpop.f32.mrb[39].mxu0 }
 0x202   : > { %v1581_v62 = vmax.f32 %v11077_v44, 0.0 }
 0x203   : > { %v1503_v3 = vpop.f32.mrb[40].mxu0 }
 0x204   : > { %v1505_v49 = vpop.f32.mrb[41].mxu0  ;;  %v10550_v1 = vpack.c.bf16 %v1581_v62, %v1580_v58  ;;  %v11078_v11 = vadd.f32 %v1503_v3, %v11898_v48 }
 0x206   : > { %10551 = vmatprep.subr.bf16.mxu1 %v10550_v1  ;;  %v1582_v50 = vmax.f32 %v11078_v11, 0.0 }
 0x207   : > { %v1508_v55 = vpop.f32.mrb[42].mxu0  ;;  %10553 = vmatpush3.bf16.msra.mxu1 %v12660_v39 }
 0x208   : > { %v11079_v24 = vadd.f32 %v1508_v55, %v11900_v51  ;;  %v1510_v7 = vpop.f32.mrb[43].mxu0 }
 0x20a   : > { %v1583_v16 = vmax.f32 %v11079_v24, 0.0 }
 0x20b   : > { %v1513_v41 = vpop.f32.mrb[44].mxu0 }
 0x20c   : > { %v1515_v12 = vpop.f32.mrb[45].mxu0  ;;  %v10554_v27 = vpack.c.bf16 %v1583_v16, %v1582_v50  ;;  %v11080_v14 = vadd.f32 %v1513_v41, %v11930_v20 }
 0x20d   : > { %v1601_v12 = vld [vmem:[%s18216_s7 + $0x38] sm:$0xff] }
 0x20e   : > { %10555 = vmatprep.subr.bf16.mxu1 %v10554_v27  ;;  %v1584_v31 = vmax.f32 %v11080_v14, 0.0  ;;  %v1600_v27 = vld [vmem:[%s18216_s7 + $0x30] sm:$0xff]  ;;  %v1603_v14 = vld [vmem:[%s18216_s7 + $0x48] sm:$0xff] }
 0x20f   : > { %v1518_v19 = vpop.f32.mrb[46].mxu0  ;;  %10557 = vmatpush3.bf16.msra.mxu1 %v12664_v32 }
 0x210   : > { %v11081_v48 = vadd.f32 %v1518_v19, %v11932_v21  ;;  %v1520_v35 = vpop.f32.mrb[47].mxu0  ;;  %v1602_v19 = vld [vmem:[%s18216_s7 + $0x40] sm:$0xff] }
 0x211   : > { %v1604_v35 = vld [vmem:[%s18216_s7 + $0x50] sm:$0xff] }
 0x212   : > { %v1585_v53 = vmax.f32 %v11081_v48, 0.0  ;;  %v1605_v48 = vld [vmem:[%s18216_s7 + $0x58] sm:$0xff] }
 0x213   : > { %v1523_v39 = vpop.f32.mrb[48].mxu0 }
 0x214   : > { %v1525_v0 = vpop.f32.mrb[49].mxu0  ;;  %v10558_v51 = vpack.c.bf16 %v1585_v53, %v1584_v31  ;;  %v11082_v6 = vadd.f32 %v1523_v39, %v11965_v57  ;;  %v1607_v31 = vld [vmem:[%s18216_s7 + $0x68] sm:$0xff]  ;;  %v1606_v53 = vld [vmem:[%s18216_s7 + $0x60] sm:$0xff]  ;;  %v1609_v39 = vld [vmem:[%s18216_s7 + $0x78] sm:$0xff] }
 0x215   : > { %v1608_v0 = vld [vmem:[%s18216_s7 + $0x70] sm:$0xff] }
 0x216   : > { %10559 = vmatprep.subr.bf16.mxu1 %v10558_v51  ;;  %v1586_v38 = vmax.f32 %v11082_v6, 0.0  ;;  %v1899_v51 = vld [vmem:[%s18217_s26] sm:$0xff] }
 0x217   : > { %v1528_v25 = vpop.f32.mrb[50].mxu0  ;;  %10561 = vmatpush3.bf16.msra.mxu1 %v12668_v61 }
 0x218   : > { %v11083_v20 = vadd.f32 %v1528_v25, %v11967_v60  ;;  %v1530_v37 = vpop.f32.mrb[51].mxu0 }
 0x21a   : > { %v1587_v15 = vmax.f32 %v11083_v20, 0.0 }
 0x21b   : > { %v1533_v32 = vpop.f32.mrb[52].mxu0 }
 0x21c   : > { %v1535_v22 = vpop.f32.mrb[53].mxu0  ;;  %v10562_v21 = vpack.c.bf16 %v1587_v15, %v1586_v38  ;;  %v11084_v33 = vadd.f32 %v1533_v32, %v12009_v8 }
 0x21e   : > { %10563 = vmatprep.subr.bf16.mxu1 %v10562_v21  ;;  %v1588_v44 = vmax.f32 %v11084_v33, 0.0 }
 0x21f   : > { %v1538_v30 = vpop.f32.mrb[54].mxu0  ;;  %10565 = vmatpush3.bf16.msra.mxu1 %v12672_v59 }
 0x220   : > { %v11085_v57 = vadd.f32 %v1538_v30, %v12011_v10  ;;  %v1540_v43 = vpop.f32.mrb[55].mxu0 }
 0x222   : > { %v1589_v54 = vmax.f32 %v11085_v57, 0.0 }
 0x223   : > { %v1543_v61 = vpop.f32.mrb[56].mxu0 }
 0x224   : > { %v1545_v58 = vpop.f32.mrb[57].mxu0  ;;  %v10566_v60 = vpack.c.bf16 %v1589_v54, %v1588_v44  ;;  %v11086_v62 = vadd.f32 %v1543_v61, %v12053_v45 }
 0x226   : > { %10567 = vmatprep.subr.bf16.mxu1 %v10566_v60  ;;  %v1590_v1 = vmax.f32 %v11086_v62, 0.0 }
 0x227   : > { %v1548_v3 = vpop.f32.mrb[58].mxu0  ;;  %10569 = vmatpush3.bf16.msra.mxu1 %v12676_v36 }
 0x228   : > { %v11087_v8 = vadd.f32 %v1548_v3, %v12055_v47  ;;  %v1550_v49 = vpop.f32.mrb[59].mxu0  ;;  %v1594_v47 = vld [vmem:[%s18216_s7] sm:$0xff] }
 0x22a   : > { %v1591_v11 = vmax.f32 %v11087_v8, 0.0 }
 0x22b   : > { %v1553_v59 = vpop.f32.mrb[60].mxu0 }
 0x22c   : > { %v1555_v55 = vpop.f32.mrb[61].mxu0  ;;  %v10570_v10 = vpack.c.bf16 %v1591_v11, %v1590_v1  ;;  %v11088_v24 = vadd.f32 %v1553_v59, %v12097_v5  ;;  %v1597_v5 = vld [vmem:[%s18216_s7 + $0x18] sm:$0xff] }
 0x22e   : > { %10571 = vmatprep.subr.bf16.mxu1 %v10570_v10  ;;  %v1592_v16 = vmax.f32 %v11088_v24, 0.0 }
 0x22f   : > { %v1558_v7 = vpop.f32.mrb[62].mxu0  ;;  %10573 = vmatpush3.bf16.msra.mxu1 %v12680_v63  ;;  %v1599_v63 = vld [vmem:[%s18216_s7 + $0x28] sm:$0xff] }
 0x230   : > { %v11089_v45 = vadd.f32 %v1558_v7, %v12099_v52  ;;  %v1560_v50 = vpop.f32.mrb[63].mxu0  ;;  %v1596_v52 = vld [vmem:[%s18216_s7 + $0x10] sm:$0xff] }
 0x232   : > { %v1593_v41 = vmax.f32 %v11089_v45, 0.0 }
 0x234   : > { %v10574_v36 = vpack.c.bf16 %v1593_v41, %v1592_v16 }
 0x236   : > { %10575 = vmatprep.subr.bf16.mxu1 %v10574_v36 }
 0x237   : > { %10577 = vmatpush3.bf16.msra.mxu1 %v12684_v42  ;;  %v1598_v42 = vld [vmem:[%s18216_s7 + $0x20] sm:$0xff] }
 0x23a   : > { %1723 = vmatmul.mubr.f32.vlgmr.msra.gmra.mrb[0].mxu1 %v1594_v47 }
 0x23b   : > { %1727 = vmatprep.mubr.f32.mxu1 %v1597_v5 }
 0x23e   : > { %1728 = vmatmul.mubr.f32.gmra.mrb[2].mxu1 %v1596_v52 }
 0x23f   : > { %1732 = vmatprep.mubr.f32.mxu1 %v1599_v63 }
 0x242   : > { %1733 = vmatmul.mubr.f32.gmra.mrb[4].mxu1 %v1598_v42  ;;  %v1900_v42 = vld [vmem:[%s18217_s26 + $0x8] sm:$0xff] }
 0x243   : > { %1737 = vmatprep.mubr.f32.mxu1 %v1601_v12  ;;  %v1901_v12 = vld [vmem:[%s18217_s26 + $0x10] sm:$0xff] }
 0x246   : > { %1738 = vmatmul.mubr.f32.gmra.mrb[6].mxu1 %v1600_v27  ;;  %v1903_v27 = vld [vmem:[%s18217_s26 + $0x20] sm:$0xff] }
 0x247   : > { %1742 = vmatprep.mubr.f32.mxu1 %v1603_v14  ;;  %v1904_v14 = vld [vmem:[%s18217_s26 + $0x28] sm:$0xff] }
 0x24a   : > { %1743 = vmatmul.mubr.f32.gmra.mrb[8].mxu1 %v1602_v19  ;;  %v1905_v19 = vld [vmem:[%s18217_s26 + $0x30] sm:$0xff] }
 0x24b   : > { %1747 = vmatprep.mubr.f32.mxu1 %v1605_v48  ;;  %v1906_v48 = vld [vmem:[%s18217_s26 + $0x38] sm:$0xff] }
 0x24e   : > { %1748 = vmatmul.mubr.f32.gmra.mrb[10].mxu1 %v1604_v35  ;;  %v1907_v35 = vld [vmem:[%s18217_s26 + $0x40] sm:$0xff] }
 0x24f   : > { %1752 = vmatprep.mubr.f32.mxu1 %v1607_v31  ;;  %v1908_v31 = vld [vmem:[%s18217_s26 + $0x48] sm:$0xff] }
 0x252   : > { %1753 = vmatmul.mubr.f32.gmra.mrb[12].mxu1 %v1606_v53  ;;  %v1909_v53 = vld [vmem:[%s18217_s26 + $0x50] sm:$0xff] }
 0x253   : > { %1757 = vmatprep.mubr.f32.mxu1 %v1609_v39  ;;  %v1910_v39 = vld [vmem:[%s18217_s26 + $0x58] sm:$0xff] }
 0x256   : > { %1758 = vmatmul.mubr.f32.gmra.mrb[14].mxu1 %v1608_v0  ;;  %v1911_v0 = vld [vmem:[%s18217_s26 + $0x60] sm:$0xff] }
 0x257   : > { %9938 = vmatprep.mubr.msk.f32.mxu1 %vm1931_vm0, %v1899_v51  ;;  %v1912_v51 = vld [vmem:[%s18217_s26 + $0x68] sm:$0xff] }
 0x30d   : > { %v9450_v6 = vpop.f32.mrb[0].mxu1 }
 0x30e   : > { %v9451_v25 = vpop.f32.mrb[1].mxu1 }
 0x30f   : > { %v9452_v20 = vadd.f32 %v9451_v25, %v9450_v6  ;;  %v1913_v6 = vld [vmem:[%s18217_s26 + $0x70] sm:$0xff] }
 0x310   : > { %v18223_v25 = vld [vmem:[#allocation8_spill] sm:$0xff] }
 0x311   : > { %v9453_v37 = vpop.f32.mrb[2].mxu1  ;;  %v1725_v15 = vadd.f32 %v9452_v20, %v12141_v29  ;;  %v1914_v20 = vld [vmem:[%s18217_s26 + $0x78] sm:$0xff] }
 0x312   : > { %v9454_v38 = vpop.f32.mrb[3].mxu1 }
 0x313   : > { %v9455_v32 = vadd.f32 %v9454_v38, %v9453_v37  ;;  %v1763_v30 = vmax.f32 %v1725_v15, 0.0  ;;  %v1915_v37 = vld [vmem:[%s18217_s26 + $0x80] sm:$0xff]  ;;  %v18224_v38 = vld [vmem:[#allocation9_spill] sm:$0xff]  ;;  %v1916_v15 = vld [vmem:[%s18217_s26 + $0x88] sm:$0xff] }
 0x315   : > { %v1730_v22 = vadd.f32 %v9455_v32, %v12143_v2  ;;  %v9456_v21 = vpop.f32.mrb[4].mxu1  ;;  %v1917_v32 = vld [vmem:[%s18217_s26 + $0x90] sm:$0xff] }
 0x316   : > { %v9457_v33 = vpop.f32.mrb[5].mxu1 }
 0x317   : > { %v1764_v57 = vmax.f32 %v1730_v22, 0.0  ;;  %v9458_v43 = vadd.f32 %v9457_v33, %v9456_v21  ;;  %v18225_v22 = vld [vmem:[#allocation10_spill] sm:$0xff]  ;;  %v1918_v21 = vld [vmem:[%s18217_s26 + $0x98] sm:$0xff] }
 0x318   : > { %v1919_v33 = vld [vmem:[%s18217_s26 + $0xa0] sm:$0xff] }
 0x319   : > { %v12761_v44 = vpack.c.bf16 %v1764_v57, %v1763_v30  ;;  %v9459_v54 = vpop.f32.mrb[6].mxu1  ;;  %v1735_v58 = vadd.f32 %v9458_v43, %v12166_v17  ;;  %v18226_v30 = vld [vmem:[#allocation11_spill] sm:$0xff]  ;;  %v1921_v43 = vld [vmem:[%s18217_s26 + $0xb0] sm:$0xff] }
 0x31a   : > { %v9460_v61 = vpop.f32.mrb[7].mxu1  ;;  %v1920_v57 = vld [vmem:[%s18217_s26 + $0xa8] sm:$0xff] }
 0x31b   : > { %18218 = vst [vmem:[#allocation80_spill] sm:$0xff] %v12761_v44  ;;  %v9461_v60 = vadd.f32 %v9460_v61, %v9459_v54  ;;  %10579 = vmatprep.subr.bf16.mxu1 %v12761_v44  ;;  %v1765_v3 = vmax.f32 %v1735_v58, 0.0  ;;  %v18227_v54 = vld [vmem:[#allocation12_spill] sm:$0xff]  ;;  %v1922_v61 = vld [vmem:[%s18217_s26 + $0xb8] sm:$0xff]  ;;  %v1923_v58 = vld [vmem:[%s18217_s26 + $0xc0] sm:$0xff] }
 0x31c   : > { %10581 = vmatpush3.bf16.msra.mxu1 %v12761_v44 }
 0x31d   : > { %v1740_v29 = vadd.f32 %v9461_v60, %v12168_v40  ;;  %v9462_v62 = vpop.f32.mrb[8].mxu1  ;;  %v18228_v60 = vld [vmem:[#allocation13_spill] sm:$0xff] }
 0x31e   : > { %v9463_v2 = vpop.f32.mrb[9].mxu1 }
 0x31f   : > { %v1766_v8 = vmax.f32 %v1740_v29, 0.0  ;;  %v9464_v49 = vadd.f32 %v9463_v2, %v9462_v62  ;;  %v1924_v29 = vld [vmem:[%s18217_s26 + $0xc8] sm:$0xff]  ;;  %v1925_v62 = vld [vmem:[%s18217_s26 + $0xd0] sm:$0xff]  ;;  %v18229_v2 = vld [vmem:[#allocation14_spill] sm:$0xff] }
 0x321   : > { %v12767_v1 = vpack.c.bf16 %v1766_v8, %v1765_v3  ;;  %v9465_v11 = vpop.f32.mrb[10].mxu1  ;;  %v1745_v55 = vadd.f32 %v9464_v49, %v12185_v46  ;;  %v1926_v3 = vld [vmem:[%s18217_s26 + $0xd8] sm:$0xff]  ;;  %v1927_v8 = vld [vmem:[%s18217_s26 + $0xe0] sm:$0xff]  ;;  %v18230_v49 = vld [vmem:[#allocation15_spill] sm:$0xff] }
 0x322   : > { %v9466_v59 = vpop.f32.mrb[11].mxu1 }
 0x323   : > { %18219 = vst [vmem:[#allocation81_spill] sm:$0xff] %v12767_v1  ;;  %v9467_v10 = vadd.f32 %v9466_v59, %v9465_v11  ;;  %10583 = vmatprep.subr.bf16.mxu1 %v12767_v1  ;;  %v1767_v7 = vmax.f32 %v1745_v55, 0.0  ;;  %v1928_v11 = vld [vmem:[%s18217_s26 + $0xe8] sm:$0xff]  ;;  %v1929_v59 = vld [vmem:[%s18217_s26 + $0xf0] sm:$0xff] }
 0x324   : > { %10585 = vmatpush3.bf16.msra.mxu1 %v12767_v1  ;;  %v18231_v55 = vld [vmem:[#allocation16_spill] sm:$0xff] }
 0x325   : > { %v1750_v17 = vadd.f32 %v9467_v10, %v12187_v26  ;;  %v9468_v24 = vpop.f32.mrb[12].mxu1  ;;  %v1930_v10 = vld [vmem:[%s18217_s26 + $0xf8] sm:$0xff] }
 0x326   : > { %v9469_v40 = vpop.f32.mrb[13].mxu1 }
 0x327   : > { %v1768_v45 = vmax.f32 %v1750_v17, 0.0  ;;  %v9470_v50 = vadd.f32 %v9469_v40, %v9468_v24  ;;  %v1772_v17 = vld [vmem:[%s18232_s23 + $0x8] sm:$0xff]  ;;  %v18233_v24 = vld [vmem:[#allocation17_spill] sm:$0xff]  ;;  %v1771_v40 = vld [vmem:[%s18232_s23] sm:$0xff] }
 0x329   : > { %v12773_v16 = vpack.c.bf16 %v1768_v45, %v1767_v7  ;;  %v9471_v41 = vpop.f32.mrb[14].mxu1  ;;  %v1755_v47 = vadd.f32 %v9470_v50, %v12210_v4  ;;  %v18222_v4 = vmov 0.0|0.0   ;;  %v1776_v7 = vld [vmem:[%s18232_s23 + $0x28] sm:$0xff]  ;;  %v1775_v45 = vld [vmem:[%s18232_s23 + $0x20] sm:$0xff] }
 0x32a   : > { %v9472_v36 = vpop.f32.mrb[15].mxu1  ;;  %v18234_v50 = vld [vmem:[#allocation18_spill] sm:$0xff] }
 0x32b   : > { %18220 = vst [vmem:[#allocation82_spill] sm:$0xff] %v12773_v16  ;;  %v9473_v5 = vadd.f32 %v9472_v36, %v9471_v41  ;;  %10587 = vmatprep.subr.bf16.mxu1 %v12773_v16  ;;  %v1769_v52 = vmax.f32 %v1755_v47, 0.0  ;;  %v1780_v41 = vld [vmem:[%s18232_s23 + $0x48] sm:$0xff]  ;;  %v1779_v36 = vld [vmem:[%s18232_s23 + $0x40] sm:$0xff] }
 0x32c   : > { %10589 = vmatpush3.bf16.msra.mxu1 %v12773_v16  ;;  %v18235_v47 = vld [vmem:[#allocation19_spill] sm:$0xff] }
 0x32d   : > { %v1760_v46 = vadd.f32 %v9473_v5, %v12212_v56  ;;  %v1902_v56 = vld [vmem:[%s18217_s26 + $0x18] sm:$0xff]  ;;  %v1784_v5 = vld [vmem:[%s18232_s23 + $0x68] sm:$0xff] }
 0x32f   : > { %v1770_v26 = vmax.f32 %v1760_v46, 0.0  ;;  %v1783_v46 = vld [vmem:[%s18232_s23 + $0x60] sm:$0xff] }
 0x331   : > { %v12779_v63 = vpack.c.bf16 %v1770_v26, %v1769_v52  ;;  %v18236_v52 = vld [vmem:[#allocation20_spill] sm:$0xff]  ;;  %v1788_v26 = vld [vmem:[%s18232_s23 + $0x88] sm:$0xff] }
 0x333   : > { %18221 = vst [vmem:[#allocation83_spill] sm:$0xff] %v12779_v63  ;;  %10591 = vmatprep.subr.bf16.mxu1 %v12779_v63 }
 0x334   : > { %10593 = vmatpush3.bf16.msra.mxu1 %v12779_v63 }
 0x335   : > { %10594 = vmatprep.subr.bf16.mxu1 %v18222_v4 }
 0x337   : > { %9939 = vmatmul.mubr.msk.f32.vlgmr.msra.gmra.mrb[16].mxu1 %vm1931_vm0, %v1900_v42  ;;  %v1787_v42 = vld [vmem:[%s18232_s23 + $0x80] sm:$0xff] }
 0x338   : > { %10596 = vmatpush1.bf16.msra.mxu1 %v11367_v9  ;;  %9941 = vmatprep.mubr.msk.f32.mxu1 %vm1931_vm0, %v1901_v12  ;;  %v18237_v12 = vld [vmem:[#allocation21_spill] sm:$0xff] }
 0x339   : > { %10597 = vmatprep.subr.bf16.mxu1 %v18222_v4 }
 0x33b   : > { %9942 = vmatmul.mubr.msk.f32.gmra.mrb[18].mxu1 %vm1931_vm0, %v1902_v56  ;;  %v1792_v56 = vld [vmem:[%s18232_s23 + $0xa8] sm:$0xff] }
 0x33c   : > { %10599 = vmatpush1.bf16.msra.mxu1 %v11377_v13  ;;  %9944 = vmatprep.mubr.msk.f32.mxu1 %vm1931_vm0, %v1903_v27  ;;  %v1791_v27 = vld [vmem:[%s18232_s23 + $0xa0] sm:$0xff] }
 0x33d   : > { %10600 = vmatprep.subr.bf16.mxu1 %v18222_v4 }
 0x33f   : > { %9945 = vmatmul.mubr.msk.f32.gmra.mrb[20].mxu1 %vm1931_vm0, %v1904_v14  ;;  %v18238_v14 = vld [vmem:[#allocation22_spill] sm:$0xff] }
 0x340   : > { %10602 = vmatpush1.bf16.msra.mxu1 %v11389_v18  ;;  %9947 = vmatprep.mubr.msk.f32.mxu1 %vm1931_vm0, %v1905_v19  ;;  %v1796_v19 = vld [vmem:[%s18232_s23 + $0xc8] sm:$0xff] }
 0x341   : > { %10603 = vmatprep.subr.bf16.mxu1 %v18222_v4 }
 0x343   : > { %9948 = vmatmul.mubr.msk.f32.gmra.mrb[22].mxu1 %vm1931_vm0, %v1906_v48  ;;  %v1795_v48 = vld [vmem:[%s18232_s23 + $0xc0] sm:$0xff] }
 0x344   : > { %10605 = vmatpush1.bf16.msra.mxu1 %v11401_v23  ;;  %9950 = vmatprep.mubr.msk.f32.mxu1 %vm1931_vm0, %v1907_v35  ;;  %v18239_v35 = vld [vmem:[#allocation23_spill] sm:$0xff] }
 0x345   : > { %10606 = vmatprep.subr.bf16.mxu1 %v18222_v4 }
 0x347   : > { %9951 = vmatmul.mubr.msk.f32.gmra.mrb[24].mxu1 %vm1931_vm0, %v1908_v31  ;;  %v1800_v31 = vld [vmem:[%s18232_s23 + $0xe8] sm:$0xff] }
 0x348   : > { %10608 = vmatpush1.bf16.msra.mxu1 %v11413_v28  ;;  %9953 = vmatprep.mubr.msk.f32.mxu1 %vm1931_vm0, %v1909_v53  ;;  %v1799_v53 = vld [vmem:[%s18232_s23 + $0xe0] sm:$0xff] }
 0x349   : > { %10609 = vmatprep.subr.bf16.mxu1 %v18222_v4 }
 0x34b   : > { %9954 = vmatmul.mubr.msk.f32.gmra.mrb[26].mxu1 %vm1931_vm0, %v1910_v39  ;;  %v18240_v39 = vld [vmem:[#allocation24_spill] sm:$0xff] }
 0x34c   : > { %10611 = vmatpush1.bf16.msra.mxu1 %v11428_v34  ;;  %9956 = vmatprep.mubr.msk.f32.mxu1 %vm1931_vm0, %v1911_v0  ;;  %v1804_v0 = vld [vmem:[%s18232_s23 + $0x108] sm:$0xff] }
 0x34d   : > { %10612 = vmatprep.subr.bf16.mxu1 %v18222_v4 }
 0x34f   : > { %9957 = vmatmul.mubr.msk.f32.gmra.mrb[28].mxu1 %vm1931_vm0, %v1912_v51  ;;  %v1803_v51 = vld [vmem:[%s18232_s23 + $0x100] sm:$0xff] }
 0x350   : > { %10614 = vmatpush1.bf16.msra.mxu1 %v18223_v25  ;;  %9959 = vmatprep.mubr.msk.f32.mxu1 %vm1931_vm0, %v1913_v6  ;;  %v18241_v6 = vld [vmem:[#allocation25_spill] sm:$0xff] }
 0x351   : > { %10615 = vmatprep.subr.bf16.mxu1 %v18222_v4 }
 0x353   : > { %9960 = vmatmul.mubr.msk.f32.gmra.mrb[30].mxu1 %vm1931_vm0, %v1914_v20  ;;  %v1808_v20 = vld [vmem:[%s18232_s23 + $0x128] sm:$0xff] }
 0x354   : > { %10617 = vmatpush1.bf16.msra.mxu1 %v18224_v38  ;;  %9962 = vmatprep.mubr.msk.f32.mxu1 %vm1931_vm0, %v1915_v37  ;;  %v1807_v37 = vld [vmem:[%s18232_s23 + $0x120] sm:$0xff] }
 0x355   : > { %10618 = vmatprep.subr.bf16.mxu1 %v18222_v4 }
 0x357   : > { %9963 = vmatmul.mubr.msk.f32.gmra.mrb[32].mxu1 %vm1931_vm0, %v1916_v15  ;;  %v18242_v15 = vld [vmem:[#allocation26_spill] sm:$0xff] }
 0x358   : > { %10620 = vmatpush1.bf16.msra.mxu1 %v18225_v22  ;;  %9965 = vmatprep.mubr.msk.f32.mxu1 %vm1931_vm0, %v1917_v32  ;;  %v1812_v32 = vld [vmem:[%s18232_s23 + $0x148] sm:$0xff] }
 0x359   : > { %10621 = vmatprep.subr.bf16.mxu1 %v18222_v4 }
 0x35b   : > { %9966 = vmatmul.mubr.msk.f32.gmra.mrb[34].mxu1 %vm1931_vm0, %v1918_v21  ;;  %v1811_v21 = vld [vmem:[%s18232_s23 + $0x140] sm:$0xff] }
 0x35c   : > { %10623 = vmatpush1.bf16.msra.mxu1 %v18226_v30  ;;  %9968 = vmatprep.mubr.msk.f32.mxu1 %vm1931_vm0, %v1919_v33  ;;  %v18243_v33 = vld [vmem:[#allocation27_spill] sm:$0xff] }
 0x35d   : > { %10624 = vmatprep.subr.bf16.mxu1 %v18222_v4 }
 0x35f   : > { %9969 = vmatmul.mubr.msk.f32.gmra.mrb[36].mxu1 %vm1931_vm0, %v1920_v57  ;;  %v1816_v57 = vld [vmem:[%s18232_s23 + $0x168] sm:$0xff] }
 0x360   : > { %10626 = vmatpush1.bf16.msra.mxu1 %v18227_v54  ;;  %9971 = vmatprep.mubr.msk.f32.mxu1 %vm1931_vm0, %v1921_v43  ;;  %v1815_v43 = vld [vmem:[%s18232_s23 + $0x160] sm:$0xff] }
 0x361   : > { %10627 = vmatprep.subr.bf16.mxu1 %v18222_v4 }
 0x363   : > { %9972 = vmatmul.mubr.msk.f32.gmra.mrb[38].mxu1 %vm1931_vm0, %v1922_v61  ;;  %v18244_v61 = vld [vmem:[#allocation28_spill] sm:$0xff] }
 0x364   : > { %10629 = vmatpush1.bf16.msra.mxu1 %v18228_v60  ;;  %9974 = vmatprep.mubr.msk.f32.mxu1 %vm1931_vm0, %v1923_v58  ;;  %v1820_v58 = vld [vmem:[%s18232_s23 + $0x188] sm:$0xff] }
 0x365   : > { %10630 = vmatprep.subr.bf16.mxu1 %v18222_v4 }
 0x367   : > { %9975 = vmatmul.mubr.msk.f32.gmra.mrb[40].mxu1 %vm1931_vm0, %v1924_v29  ;;  %v1819_v29 = vld [vmem:[%s18232_s23 + $0x180] sm:$0xff] }
 0x368   : > { %10632 = vmatpush1.bf16.msra.mxu1 %v18229_v2  ;;  %9977 = vmatprep.mubr.msk.f32.mxu1 %vm1931_vm0, %v1925_v62  ;;  %v18245_v62 = vld [vmem:[#allocation29_spill] sm:$0xff] }
 0x369   : > { %10633 = vmatprep.subr.bf16.mxu1 %v18222_v4 }
 0x36b   : > { %9978 = vmatmul.mubr.msk.f32.gmra.mrb[42].mxu1 %vm1931_vm0, %v1926_v3  ;;  %v1824_v3 = vld [vmem:[%s18232_s23 + $0x1a8] sm:$0xff] }
 0x36c   : > { %10635 = vmatpush1.bf16.msra.mxu1 %v18230_v49  ;;  %9980 = vmatprep.mubr.msk.f32.mxu1 %vm1931_vm0, %v1927_v8  ;;  %v1823_v8 = vld [vmem:[%s18232_s23 + $0x1a0] sm:$0xff] }
 0x36d   : > { %10636 = vmatprep.subr.bf16.mxu1 %v18222_v4 }
 0x36f   : > { %9981 = vmatmul.mubr.msk.f32.gmra.mrb[44].mxu1 %vm1931_vm0, %v1928_v11  ;;  %v18246_v11 = vld [vmem:[#allocation30_spill] sm:$0xff] }
 0x370   : > { %10638 = vmatpush1.bf16.msra.mxu1 %v18231_v55  ;;  %9983 = vmatprep.mubr.msk.f32.mxu1 %vm1931_vm0, %v1929_v59  ;;  %v1828_v59 = vld [vmem:[%s18232_s23 + $0x1c8] sm:$0xff] }
 0x371   : > { %10639 = vmatprep.subr.bf16.mxu1 %v18222_v4 }
 0x373   : > { %9984 = vmatmul.mubr.msk.f32.gmra.mrb[46].mxu1 %vm1931_vm0, %v1930_v10  ;;  %v1827_v10 = vld [vmem:[%s18232_s23 + $0x1c0] sm:$0xff] }
 0x374   : > { %10641 = vmatpush1.bf16.msra.mxu1 %v18233_v24  ;;  %2317 = vmatprep.mubr.f32.mxu1 %v1772_v17  ;;  %v18247_v17 = vld [vmem:[#allocation31_spill] sm:$0xff] }
 0x375   : > { %10642 = vmatprep.subr.bf16.mxu1 %v18222_v4 }
 0x377   : > { %2318 = vmatmul.mubr.f32.vlgmr.msra.gmra.mrb[48].mxu1 %v1771_v40  ;;  %v1832_v40 = vld [vmem:[%s18232_s23 + $0x1e8] sm:$0xff] }
 0x378   : > { %2322 = vmatprep.mubr.f32.mxu1 %v1776_v7  ;;  %10644 = vmatpush1.bf16.msra.mxu1 %v18234_v50  ;;  %v1831_v7 = vld [vmem:[%s18232_s23 + $0x1e0] sm:$0xff] }
 0x379   : > { %10645 = vmatprep.subr.bf16.mxu1 %v18222_v4 }
 0x37b   : > { %2323 = vmatmul.mubr.f32.gmra.mrb[50].mxu1 %v1775_v45  ;;  %v18248_v45 = vld [vmem:[#allocation32_spill] sm:$0xff] }
 0x37c   : > { %2327 = vmatprep.mubr.f32.mxu1 %v1780_v41  ;;  %10647 = vmatpush1.bf16.msra.mxu1 %v18235_v47  ;;  %v1836_v41 = vld [vmem:[%s18232_s23 + $0x208] sm:$0xff] }
 0x37d   : > { %10648 = vmatprep.subr.bf16.mxu1 %v18222_v4 }
 0x37f   : > { %2328 = vmatmul.mubr.f32.gmra.mrb[52].mxu1 %v1779_v36  ;;  %v1835_v36 = vld [vmem:[%s18232_s23 + $0x200] sm:$0xff] }
 0x380   : > { %2332 = vmatprep.mubr.f32.mxu1 %v1784_v5  ;;  %10650 = vmatpush1.bf16.msra.mxu1 %v18236_v52  ;;  %v18249_v5 = vld [vmem:[#allocation33_spill] sm:$0xff] }
 0x381   : > { %10651 = vmatprep.subr.bf16.mxu1 %v18222_v4 }
 0x383   : > { %2333 = vmatmul.mubr.f32.gmra.mrb[54].mxu1 %v1783_v46  ;;  %v1840_v46 = vld [vmem:[%s18232_s23 + $0x228] sm:$0xff] }
 0x384   : > { %2337 = vmatprep.mubr.f32.mxu1 %v1788_v26  ;;  %10653 = vmatpush1.bf16.msra.mxu1 %v18237_v12  ;;  %v1839_v26 = vld [vmem:[%s18232_s23 + $0x220] sm:$0xff] }
 0x385   : > { %10654 = vmatprep.subr.bf16.mxu1 %v18222_v4 }
 0x387   : > { %2338 = vmatmul.mubr.f32.gmra.mrb[56].mxu1 %v1787_v42  ;;  %v1844_v42 = vld [vmem:[%s18232_s23 + $0x248] sm:$0xff] }
 0x388   : > { %2342 = vmatprep.mubr.f32.mxu1 %v1792_v56  ;;  %10656 = vmatpush1.bf16.msra.mxu1 %v18238_v14  ;;  %v1843_v56 = vld [vmem:[%s18232_s23 + $0x240] sm:$0xff] }
 0x389   : > { %10657 = vmatprep.subr.bf16.mxu1 %v18222_v4 }
 0x38b   : > { %2343 = vmatmul.mubr.f32.gmra.mrb[58].mxu1 %v1791_v27  ;;  %v1848_v27 = vld [vmem:[%s18232_s23 + $0x268] sm:$0xff] }
 0x38c   : > { %2347 = vmatprep.mubr.f32.mxu1 %v1796_v19  ;;  %10659 = vmatpush1.bf16.msra.mxu1 %v18239_v35  ;;  %v1847_v19 = vld [vmem:[%s18232_s23 + $0x260] sm:$0xff] }
 0x38d   : > { %10660 = vmatprep.subr.bf16.mxu1 %v18222_v4 }
 0x38f   : > { %2348 = vmatmul.mubr.f32.gmra.mrb[60].mxu1 %v1795_v48  ;;  %v1852_v48 = vld [vmem:[%s18232_s23 + $0x288] sm:$0xff] }
 0x390   : > { %2352 = vmatprep.mubr.f32.mxu1 %v1800_v31  ;;  %10662 = vmatpush1.bf16.msra.mxu1 %v18240_v39  ;;  %v1851_v31 = vld [vmem:[%s18232_s23 + $0x280] sm:$0xff] }
 0x391   : > { %10663 = vmatprep.subr.bf16.mxu1 %v18222_v4 }
 0x393   : > { %2353 = vmatmul.mubr.f32.gmra.mrb[62].mxu1 %v1799_v53  ;;  %v1856_v53 = vld [vmem:[%s18232_s23 + $0x2a8] sm:$0xff] }
 0x394   : > { %2357 = vmatprep.mubr.f32.mxu1 %v1804_v0  ;;  %10665 = vmatpush1.bf16.msra.mxu1 %v18241_v6  ;;  %v1855_v0 = vld [vmem:[%s18232_s23 + $0x2a0] sm:$0xff] }
 0x395   : > { %10666 = vmatprep.subr.bf16.mxu1 %v18222_v4 }
 0x397   : > { %2358 = vmatmul.mubr.f32.gmra.mrb[64].mxu1 %v1803_v51  ;;  %v1860_v51 = vld [vmem:[%s18232_s23 + $0x2c8] sm:$0xff] }
 0x398   : > { %2362 = vmatprep.mubr.f32.mxu1 %v1808_v20  ;;  %10668 = vmatpush1.bf16.msra.mxu1 %v18242_v15  ;;  %v1859_v20 = vld [vmem:[%s18232_s23 + $0x2c0] sm:$0xff] }
 0x399   : > { %10669 = vmatprep.subr.bf16.mxu1 %v18222_v4 }
 0x39b   : > { %2363 = vmatmul.mubr.f32.gmra.mrb[66].mxu1 %v1807_v37  ;;  %v1864_v37 = vld [vmem:[%s18232_s23 + $0x2e8] sm:$0xff] }
 0x39c   : > { %2367 = vmatprep.mubr.f32.mxu1 %v1812_v32  ;;  %10671 = vmatpush1.bf16.msra.mxu1 %v18243_v33  ;;  %v1863_v32 = vld [vmem:[%s18232_s23 + $0x2e0] sm:$0xff] }
 0x39d   : > { %10672 = vmatprep.subr.bf16.mxu1 %v18222_v4 }
 0x39f   : > { %2368 = vmatmul.mubr.f32.gmra.mrb[68].mxu1 %v1811_v21  ;;  %v1868_v21 = vld [vmem:[%s18232_s23 + $0x308] sm:$0xff] }
 0x3a0   : > { %2372 = vmatprep.mubr.f32.mxu1 %v1816_v57  ;;  %10674 = vmatpush1.bf16.msra.mxu1 %v18244_v61  ;;  %v1867_v57 = vld [vmem:[%s18232_s23 + $0x300] sm:$0xff] }
 0x3a1   : > { %10675 = vmatprep.subr.bf16.mxu1 %v18222_v4 }
 0x3a3   : > { %2373 = vmatmul.mubr.f32.gmra.mrb[70].mxu1 %v1815_v43  ;;  %v1872_v43 = vld [vmem:[%s18232_s23 + $0x328] sm:$0xff] }
 0x3a4   : > { %2377 = vmatprep.mubr.f32.mxu1 %v1820_v58  ;;  %10677 = vmatpush1.bf16.msra.mxu1 %v18245_v62  ;;  %v1871_v58 = vld [vmem:[%s18232_s23 + $0x320] sm:$0xff] }
 0x3a5   : > { %10678 = vmatprep.subr.bf16.mxu1 %v18222_v4 }
 0x3a7   : > { %2378 = vmatmul.mubr.f32.gmra.mrb[72].mxu1 %v1819_v29  ;;  %v1876_v29 = vld [vmem:[%s18232_s23 + $0x348] sm:$0xff] }
 0x3a8   : > { %2382 = vmatprep.mubr.f32.mxu1 %v1824_v3  ;;  %10680 = vmatpush1.bf16.msra.mxu1 %v18246_v11  ;;  %v1875_v3 = vld [vmem:[%s18232_s23 + $0x340] sm:$0xff] }
 0x3a9   : > { %10681 = vmatprep.subr.bf16.mxu1 %v18222_v4 }
 0x3ab   : > { %2383 = vmatmul.mubr.f32.gmra.mrb[74].mxu1 %v1823_v8  ;;  %v1880_v8 = vld [vmem:[%s18232_s23 + $0x368] sm:$0xff] }
 0x3ac   : > { %2387 = vmatprep.mubr.f32.mxu1 %v1828_v59  ;;  %10683 = vmatpush1.bf16.msra.mxu1 %v18247_v17  ;;  %v1879_v59 = vld [vmem:[%s18232_s23 + $0x360] sm:$0xff] }
 0x3ad   : > { %10684 = vmatprep.subr.bf16.mxu1 %v18222_v4 }
 0x3af   : > { %2388 = vmatmul.mubr.f32.gmra.mrb[76].mxu1 %v1827_v10  ;;  %v1884_v10 = vld [vmem:[%s18232_s23 + $0x388] sm:$0xff] }
 0x3b0   : > { %2392 = vmatprep.mubr.f32.mxu1 %v1832_v40  ;;  %10686 = vmatpush1.bf16.msra.mxu1 %v18248_v45  ;;  %v1883_v40 = vld [vmem:[%s18232_s23 + $0x380] sm:$0xff] }
 0x3b1   : > { %10687 = vmatprep.subr.bf16.mxu1 %v18222_v4 }
 0x3b3   : > { %2393 = vmatmul.mubr.f32.gmra.mrb[78].mxu1 %v1831_v7  ;;  %v1888_v7 = vld [vmem:[%s18232_s23 + $0x3a8] sm:$0xff] }
 0x3b4   : > { %2397 = vmatprep.mubr.f32.mxu1 %v1836_v41  ;;  %10689 = vmatpush1.bf16.msra.mxu1 %v18249_v5  ;;  %v1887_v41 = vld [vmem:[%s18232_s23 + $0x3a0] sm:$0xff] }
 0x3b5   : > { %10738 = vmatprep.subr.bf16.mxu1 %v18222_v4 }
 0x3b7   : > { %2398 = vmatmul.mubr.f32.gmra.mrb[80].mxu1 %v1835_v36  ;;  %v1892_v36 = vld [vmem:[%s18232_s23 + $0x3c8] sm:$0xff] }
 0x3b8   : > { %2402 = vmatprep.mubr.f32.mxu1 %v1840_v46  ;;  %v1891_v46 = vld [vmem:[%s18232_s23 + $0x3c0] sm:$0xff] }
 0x3bb   : > { %2403 = vmatmul.mubr.f32.gmra.mrb[82].mxu1 %v1839_v26  ;;  %v1896_v26 = vld [vmem:[%s18232_s23 + $0x3e8] sm:$0xff] }
 0x3bc   : > { %2407 = vmatprep.mubr.f32.mxu1 %v1844_v42  ;;  %v1895_v42 = vld [vmem:[%s18232_s23 + $0x3e0] sm:$0xff] }
 0x3bf   : > { %2408 = vmatmul.mubr.f32.gmra.mrb[84].mxu1 %v1843_v56  ;;  %v1774_v56 = vld [vmem:[%s18232_s23 + $0x18] sm:$0xff] }
 0x3c0   : > { %2412 = vmatprep.mubr.f32.mxu1 %v1848_v27  ;;  %v1773_v27 = vld [vmem:[%s18232_s23 + $0x10] sm:$0xff] }
 0x3c3   : > { %2413 = vmatmul.mubr.f32.gmra.mrb[86].mxu1 %v1847_v19  ;;  %v1778_v19 = vld [vmem:[%s18232_s23 + $0x38] sm:$0xff] }
 0x3c4   : > { %2417 = vmatprep.mubr.f32.mxu1 %v1852_v48  ;;  %v1777_v48 = vld [vmem:[%s18232_s23 + $0x30] sm:$0xff] }
 0x3c7   : > { %2418 = vmatmul.mubr.f32.gmra.mrb[88].mxu1 %v1851_v31  ;;  %v1782_v31 = vld [vmem:[%s18232_s23 + $0x58] sm:$0xff] }
 0x3c8   : > { %2422 = vmatprep.mubr.f32.mxu1 %v1856_v53  ;;  %v1781_v53 = vld [vmem:[%s18232_s23 + $0x50] sm:$0xff] }
 0x3cb   : > { %2423 = vmatmul.mubr.f32.gmra.mrb[90].mxu1 %v1855_v0  ;;  %v1786_v0 = vld [vmem:[%s18232_s23 + $0x78] sm:$0xff] }
 0x3cc   : > { %2427 = vmatprep.mubr.f32.mxu1 %v1860_v51  ;;  %v1785_v51 = vld [vmem:[%s18232_s23 + $0x70] sm:$0xff] }
 0x3cf   : > { %2428 = vmatmul.mubr.f32.gmra.mrb[92].mxu1 %v1859_v20  ;;  %v1790_v20 = vld [vmem:[%s18232_s23 + $0x98] sm:$0xff] }
 0x3d0   : > { %2432 = vmatprep.mubr.f32.mxu1 %v1864_v37  ;;  %v1789_v37 = vld [vmem:[%s18232_s23 + $0x90] sm:$0xff] }
 0x3d3   : > { %2433 = vmatmul.mubr.f32.gmra.mrb[94].mxu1 %v1863_v32  ;;  %v1794_v32 = vld [vmem:[%s18232_s23 + $0xb8] sm:$0xff] }
 0x3d4   : > { %2437 = vmatprep.mubr.f32.mxu1 %v1868_v21  ;;  %v1793_v21 = vld [vmem:[%s18232_s23 + $0xb0] sm:$0xff] }
 0x3d7   : > { %2438 = vmatmul.mubr.f32.gmra.mrb[96].mxu1 %v1867_v57  ;;  %v1798_v57 = vld [vmem:[%s18232_s23 + $0xd8] sm:$0xff] }
 0x3d8   : > { %2442 = vmatprep.mubr.f32.mxu1 %v1872_v43 }
 0x3db   : > { %2443 = vmatmul.mubr.f32.gmra.mrb[98].mxu1 %v1871_v58 }
 0x3dc   : > { %2447 = vmatprep.mubr.f32.mxu1 %v1876_v29  ;;  %v1797_v29 = vld [vmem:[%s18232_s23 + $0xd0] sm:$0xff] }
 0x3df   : > { %2448 = vmatmul.mubr.f32.gmra.mrb[100].mxu1 %v1875_v3  ;;  %v1802_v3 = vld [vmem:[%s18232_s23 + $0xf8] sm:$0xff] }
 0x3e0   : > { %2452 = vmatprep.mubr.f32.mxu1 %v1880_v8 }
 0x3e3   : > { %2453 = vmatmul.mubr.f32.gmra.mrb[102].mxu1 %v1879_v59 }
 0x3e4   : > { %2457 = vmatprep.mubr.f32.mxu1 %v1884_v10  ;;  %v1801_v10 = vld [vmem:[%s18232_s23 + $0xf0] sm:$0xff] }
 0x3e7   : > { %2458 = vmatmul.mubr.f32.gmra.mrb[104].mxu1 %v1883_v40  ;;  %v1806_v40 = vld [vmem:[%s18232_s23 + $0x118] sm:$0xff] }
 0x3e8   : > { %2462 = vmatprep.mubr.f32.mxu1 %v1888_v7 }
 0x3eb   : > { %2463 = vmatmul.mubr.f32.gmra.mrb[106].mxu1 %v1887_v41 }
 0x3ec   : > { %2467 = vmatprep.mubr.f32.mxu1 %v1892_v36  ;;  %v1805_v36 = vld [vmem:[%s18232_s23 + $0x110] sm:$0xff] }
 0x3ef   : > { %2468 = vmatmul.mubr.f32.gmra.mrb[108].mxu1 %v1891_v46  ;;  %v1810_v46 = vld [vmem:[%s18232_s23 + $0x138] sm:$0xff] }
 0x3f0   : > { %2472 = vmatprep.mubr.f32.mxu1 %v1896_v26 }
 0x3f3   : > { %2473 = vmatmul.mubr.f32.gmra.mrb[110].mxu1 %v1895_v42 }
 0x3f4   : > { %2542 = vmatprep.mubr.f32.mxu1 %v1774_v56  ;;  %v1809_v56 = vld [vmem:[%s18232_s23 + $0x130] sm:$0xff] }
 0x3f7   : > { %2543 = vmatmul.mubr.f32.vlgmr.msra.gmra.mrb[112].mxu1 %v1773_v27  ;;  %v1814_v27 = vld [vmem:[%s18232_s23 + $0x158] sm:$0xff] }
 0x3f8   : > { %2547 = vmatprep.mubr.f32.mxu1 %v1778_v19  ;;  %10740 = vmatpush1.bf16.msra.mxu1 %v11367_v9 }
 0x3f9   : > { %10741 = vmatprep.subr.bf16.mxu1 %v18222_v4 }
 0x3fb   : > { %2548 = vmatmul.mubr.f32.gmra.mrb[114].mxu1 %v1777_v48 }
 0x3fc   : > { %2552 = vmatprep.mubr.f32.mxu1 %v1782_v31  ;;  %10743 = vmatpush1.bf16.msra.mxu1 %v11377_v13  ;;  %v1813_v31 = vld [vmem:[%s18232_s23 + $0x150] sm:$0xff] }
 0x3fd   : > { %10744 = vmatprep.subr.bf16.mxu1 %v18222_v4 }
 0x3ff   : > { %2553 = vmatmul.mubr.f32.gmra.mrb[116].mxu1 %v1781_v53  ;;  %v1818_v53 = vld [vmem:[%s18232_s23 + $0x178] sm:$0xff] }
 0x400   : > { %2557 = vmatprep.mubr.f32.mxu1 %v1786_v0  ;;  %10746 = vmatpush1.bf16.msra.mxu1 %v11389_v18 }
 0x401   : > { %10747 = vmatprep.subr.bf16.mxu1 %v18222_v4 }
 0x403   : > { %2558 = vmatmul.mubr.f32.gmra.mrb[118].mxu1 %v1785_v51 }
 0x404   : > { %2562 = vmatprep.mubr.f32.mxu1 %v1790_v20  ;;  %10749 = vmatpush1.bf16.msra.mxu1 %v11401_v23  ;;  %v1817_v20 = vld [vmem:[%s18232_s23 + $0x170] sm:$0xff] }
 0x405   : > { %10750 = vmatprep.subr.bf16.mxu1 %v18222_v4 }
 0x407   : > { %2563 = vmatmul.mubr.f32.gmra.mrb[120].mxu1 %v1789_v37  ;;  %v1822_v37 = vld [vmem:[%s18232_s23 + $0x198] sm:$0xff] }
 0x408   : > { %2567 = vmatprep.mubr.f32.mxu1 %v1794_v32  ;;  %10752 = vmatpush1.bf16.msra.mxu1 %v11413_v28 }
 0x409   : > { %10753 = vmatprep.subr.bf16.mxu1 %v18222_v4 }
 0x40a   : > { %v13213_v43 = vpop.f32.mrb[16].mxu1 }
 0x40b   : > { %v13215_v58 = vpop.f32.mrb[17].mxu1  ;;  %2568 = vmatmul.mubr.f32.gmra.mrb[122].mxu1 %v1793_v21 }
 0x40c   : > { %2572 = vmatprep.mubr.f32.mxu1 %v1798_v57  ;;  %10755 = vmatpush1.bf16.msra.mxu1 %v11428_v34  ;;  %v1821_v57 = vld [vmem:[%s18232_s23 + $0x190] sm:$0xff] }
 0x40d   : > { %10756 = vmatprep.subr.bf16.mxu1 %v18222_v4 }
 0x40e   : > { %v13225_v8 = vpop.f32.mrb[18].mxu1 }
 0x40f   : > { %v13227_v59 = vpop.f32.mrb[19].mxu1  ;;  %2573 = vmatmul.mubr.f32.gmra.mrb[124].mxu1 %v1797_v29  ;;  %v1826_v29 = vld [vmem:[%s18232_s23 + $0x1b8] sm:$0xff] }
 0x410   : > { %2577 = vmatprep.mubr.f32.mxu1 %v1802_v3  ;;  %10758 = vmatpush1.bf16.msra.mxu1 %v18223_v25  ;;  %v1857_v25 = vld [vmem:[%s18232_s23 + $0x2b0] sm:$0xff] }
 0x411   : > { %10759 = vmatprep.subr.bf16.mxu1 %v18222_v4 }
 0x412   : > { %v13237_v7 = vpop.f32.mrb[20].mxu1 }
 0x413   : > { %v13239_v41 = vpop.f32.mrb[21].mxu1  ;;  %2578 = vmatmul.mubr.f32.gmra.mrb[126].mxu1 %v1801_v10 }
 0x414   : > { %2582 = vmatprep.mubr.f32.mxu1 %v1806_v40  ;;  %10761 = vmatpush1.bf16.msra.mxu1 %v18224_v38  ;;  %v1825_v40 = vld [vmem:[%s18232_s23 + $0x1b0] sm:$0xff] }
 0x415   : > { %10762 = vmatprep.subr.bf16.mxu1 %v18222_v4 }
 0x416   : > { %v13249_v26 = vpop.f32.mrb[22].mxu1 }
 0x417   : > { %v13251_v42 = vpop.f32.mrb[23].mxu1  ;;  %2583 = vmatmul.mubr.f32.gmra.mrb[128].mxu1 %v1805_v36  ;;  %v1830_v36 = vld [vmem:[%s18232_s23 + $0x1d8] sm:$0xff] }
 0x418   : > { %2587 = vmatprep.mubr.f32.mxu1 %v1810_v46  ;;  %10764 = vmatpush1.bf16.msra.mxu1 %v18225_v22  ;;  %v1853_v22 = vld [vmem:[%s18232_s23 + $0x290] sm:$0xff] }
 0x419   : > { %10765 = vmatprep.subr.bf16.mxu1 %v18222_v4 }
 0x41a   : > { %v13261_v19 = vpop.f32.mrb[24].mxu1 }
 0x41b   : > { %v13263_v48 = vpop.f32.mrb[25].mxu1  ;;  %2588 = vmatmul.mubr.f32.gmra.mrb[130].mxu1 %v1809_v56 }
 0x41c   : > { %2592 = vmatprep.mubr.f32.mxu1 %v1814_v27  ;;  %10767 = vmatpush1.bf16.msra.mxu1 %v18226_v30  ;;  %v1829_v27 = vld [vmem:[%s18232_s23 + $0x1d0] sm:$0xff] }
 0x41d   : > { %10768 = vmatprep.subr.bf16.mxu1 %v18222_v4 }
 0x41e   : > { %v13273_v0 = vpop.f32.mrb[26].mxu1 }
 0x41f   : > { %v13275_v51 = vpop.f32.mrb[27].mxu1  ;;  %2593 = vmatmul.mubr.f32.gmra.mrb[132].mxu1 %v1813_v31  ;;  %v1834_v31 = vld [vmem:[%s18232_s23 + $0x1f8] sm:$0xff] }
 0x420   : > { %2597 = vmatprep.mubr.f32.mxu1 %v1818_v53  ;;  %10770 = vmatpush1.bf16.msra.mxu1 %v18227_v54  ;;  %v1849_v54 = vld [vmem:[%s18232_s23 + $0x270] sm:$0xff] }
 0x421   : > { %10771 = vmatprep.subr.bf16.mxu1 %v18222_v4 }
 0x422   : > { %v13285_v32 = vpop.f32.mrb[28].mxu1 }
 0x423   : > { %v13287_v21 = vpop.f32.mrb[29].mxu1  ;;  %2598 = vmatmul.mubr.f32.gmra.mrb[134].mxu1 %v1817_v20 }
 0x424   : > { %2602 = vmatprep.mubr.f32.mxu1 %v1822_v37  ;;  %10773 = vmatpush1.bf16.msra.mxu1 %v18228_v60  ;;  %v1833_v37 = vld [vmem:[%s18232_s23 + $0x1f0] sm:$0xff] }
 0x425   : > { %10774 = vmatprep.subr.bf16.mxu1 %v18222_v4 }
 0x426   : > { %v13297_v3 = vpop.f32.mrb[30].mxu1 }
 0x427   : > { %v13299_v10 = vpop.f32.mrb[31].mxu1  ;;  %2603 = vmatmul.mubr.f32.gmra.mrb[136].mxu1 %v1821_v57  ;;  %v1838_v57 = vld [vmem:[%s18232_s23 + $0x218] sm:$0xff] }
 0x428   : > { %2607 = vmatprep.mubr.f32.mxu1 %v1826_v29  ;;  %10776 = vmatpush1.bf16.msra.mxu1 %v18229_v2  ;;  %v1845_v2 = vld [vmem:[%s18232_s23 + $0x250] sm:$0xff] }
 0x429   : > { %10777 = vmatprep.subr.bf16.mxu1 %v18222_v4 }
 0x42a   : > { %v13309_v46 = vpop.f32.mrb[32].mxu1 }
 0x42b   : > { %v13311_v56 = vpop.f32.mrb[33].mxu1  ;;  %2608 = vmatmul.mubr.f32.gmra.mrb[138].mxu1 %v1825_v40 }
 0x42c   : > { %2612 = vmatprep.mubr.f32.mxu1 %v1830_v36  ;;  %10779 = vmatpush1.bf16.msra.mxu1 %v18230_v49  ;;  %v1837_v36 = vld [vmem:[%s18232_s23 + $0x210] sm:$0xff] }
 0x42d   : > { %10780 = vmatprep.subr.bf16.mxu1 %v18222_v4 }
 0x42e   : > { %v13321_v53 = vpop.f32.mrb[34].mxu1 }
 0x42f   : > { %v13323_v20 = vpop.f32.mrb[35].mxu1  ;;  %2613 = vmatmul.mubr.f32.gmra.mrb[140].mxu1 %v1829_v27  ;;  %v1842_v27 = vld [vmem:[%s18232_s23 + $0x238] sm:$0xff] }
 0x430   : > { %2617 = vmatprep.mubr.f32.mxu1 %v1834_v31  ;;  %10782 = vmatpush1.bf16.msra.mxu1 %v18231_v55 }
 0x431   : > { %10783 = vmatprep.subr.bf16.mxu1 %v18222_v4 }
 0x432   : > { %v13333_v29 = vpop.f32.mrb[36].mxu1 }
 0x433   : > { %v13335_v40 = vpop.f32.mrb[37].mxu1  ;;  %2618 = vmatmul.mubr.f32.gmra.mrb[142].mxu1 %v1833_v37  ;;  %v1841_v37 = vld [vmem:[%s18232_s23 + $0x230] sm:$0xff] }
 0x434   : > { %2622 = vmatprep.mubr.f32.mxu1 %v1838_v57  ;;  %10785 = vmatpush1.bf16.msra.mxu1 %v18233_v24  ;;  %v1846_v57 = vld [vmem:[%s18232_s23 + $0x258] sm:$0xff] }
 0x435   : > { %11026 = vmatprep.subr.bf16.mxu1 %v18222_v4 }
 0x436   : > { %v13345_v31 = vpop.f32.mrb[38].mxu1 }
 0x437   : > { %v13347_v55 = vpop.f32.mrb[39].mxu1  ;;  %2623 = vmatmul.mubr.f32.gmra.mrb[144].mxu1 %v1837_v36  ;;  %v1850_v36 = vld [vmem:[%s18232_s23 + $0x278] sm:$0xff] }
 0x438   : > { %2627 = vmatprep.mubr.f32.mxu1 %v1842_v27 }
 0x43a   : > { %v13355_v24 = vpop.f32.mrb[40].mxu1 }
 0x43b   : > { %v13357_v49 = vpop.f32.mrb[41].mxu1  ;;  %2628 = vmatmul.mubr.f32.gmra.mrb[146].mxu1 %v1841_v37  ;;  %v1854_v37 = vld [vmem:[%s18232_s23 + $0x298] sm:$0xff] }
 0x43c   : > { %2632 = vmatprep.mubr.f32.mxu1 %v1846_v57 }
 0x43e   : > { %v13365_v27 = vpop.f32.mrb[42].mxu1 }
 0x43f   : > { %v13367_v60 = vpop.f32.mrb[43].mxu1  ;;  %2633 = vmatmul.mubr.f32.gmra.mrb[148].mxu1 %v1845_v2  ;;  %v1858_v2 = vld [vmem:[%s18232_s23 + $0x2b8] sm:$0xff] }
 0x440   : > { %2637 = vmatprep.mubr.f32.mxu1 %v1850_v36 }
 0x442   : > { %v13375_v57 = vpop.f32.mrb[44].mxu1 }
 0x443   : > { %v13377_v30 = vpop.f32.mrb[45].mxu1  ;;  %2638 = vmatmul.mubr.f32.gmra.mrb[150].mxu1 %v1849_v54  ;;  %v1862_v54 = vld [vmem:[%s18232_s23 + $0x2d8] sm:$0xff] }
 0x444   : > { %2642 = vmatprep.mubr.f32.mxu1 %v1854_v37 }
 0x446   : > { %v13385_v36 = vpop.f32.mrb[46].mxu1 }
 0x447   : > { %v13387_v38 = vpop.f32.mrb[47].mxu1  ;;  %2643 = vmatmul.mubr.f32.gmra.mrb[152].mxu1 %v1853_v22  ;;  %v1861_v22 = vld [vmem:[%s18232_s23 + $0x2d0] sm:$0xff] }
 0x448   : > { %2647 = vmatprep.mubr.f32.mxu1 %v1858_v2  ;;  %v1866_v2 = vld [vmem:[%s18232_s23 + $0x2f8] sm:$0xff] }
 0x44a   : > { %v2319_v37 = vpop.f32.mrb[48].mxu1 }
 0x44b   : > { %v13396_v34 = vadd.f32 %v2319_v37, %v13215_v58  ;;  %v2321_v28 = vpop.f32.mrb[49].mxu1  ;;  %2648 = vmatmul.mubr.f32.gmra.mrb[154].mxu1 %v1857_v25  ;;  %v1870_v25 = vld [vmem:[%s18232_s23 + $0x318] sm:$0xff] }
 0x44c   : > { %2652 = vmatprep.mubr.f32.mxu1 %v1862_v54  ;;  %v1865_v28 = vld [vmem:[%s18232_s23 + $0x2f0] sm:$0xff] }
 0x44e   : > { %v2324_v23 = vpop.f32.mrb[50].mxu1 }
 0x44f   : > { %v13405_v18 = vadd.f32 %v13213_v43, %v2324_v23  ;;  %v2326_v13 = vpop.f32.mrb[51].mxu1  ;;  %2653 = vmatmul.mubr.f32.gmra.mrb[156].mxu1 %v1861_v22  ;;  %v1874_v23 = vld [vmem:[%s18232_s23 + $0x338] sm:$0xff] }
 0x450   : > { %2657 = vmatprep.mubr.f32.mxu1 %v1866_v2  ;;  %v1869_v13 = vld [vmem:[%s18232_s23 + $0x310] sm:$0xff] }
 0x452   : > { %v2329_v58 = vpop.f32.mrb[52].mxu1 }
 0x453   : > { %v13414_v54 = vadd.f32 %v2329_v58, %v13227_v59  ;;  %v2331_v37 = vpop.f32.mrb[53].mxu1  ;;  %2658 = vmatmul.mubr.f32.gmra.mrb[158].mxu1 %v1865_v28  ;;  %v1873_v59 = vld [vmem:[%s18232_s23 + $0x330] sm:$0xff]  ;;  %v1878_v28 = vld [vmem:[%s18232_s23 + $0x358] sm:$0xff] }
 0x454   : > { %2662 = vmatprep.mubr.f32.mxu1 %v1870_v25 }
 0x456   : > { %v2334_v43 = vpop.f32.mrb[54].mxu1 }
 0x457   : > { %v13423_v22 = vadd.f32 %v13225_v8, %v2334_v43  ;;  %v2336_v2 = vpop.f32.mrb[55].mxu1  ;;  %2663 = vmatmul.mubr.f32.gmra.mrb[160].mxu1 %v1869_v13  ;;  %v1877_v8 = vld [vmem:[%s18232_s23 + $0x350] sm:$0xff]  ;;  %v1882_v13 = vld [vmem:[%s18232_s23 + $0x378] sm:$0xff] }
 0x458   : > { %2667 = vmatprep.mubr.f32.mxu1 %v1874_v23 }
 0x45a   : > { %v2339_v25 = vpop.f32.mrb[56].mxu1 }
 0x45b   : > { %v13432_v58 = vadd.f32 %v2339_v25, %v13239_v41  ;;  %v2341_v37 = vpop.f32.mrb[57].mxu1  ;;  %2668 = vmatmul.mubr.f32.gmra.mrb[162].mxu1 %v1873_v59  ;;  %v1881_v41 = vld [vmem:[%s18232_s23 + $0x370] sm:$0xff]  ;;  %v1886_v59 = vld [vmem:[%s18232_s23 + $0x398] sm:$0xff] }
 0x45c   : > { %2672 = vmatprep.mubr.f32.mxu1 %v1878_v28 }
 0x45e   : > { %v2344_v23 = vpop.f32.mrb[58].mxu1 }
 0x45f   : > { %v13441_v43 = vadd.f32 %v13237_v7, %v2344_v23  ;;  %v2346_v2 = vpop.f32.mrb[59].mxu1  ;;  %2673 = vmatmul.mubr.f32.gmra.mrb[164].mxu1 %v1877_v8  ;;  %v1885_v7 = vld [vmem:[%s18232_s23 + $0x390] sm:$0xff]  ;;  %v1890_v8 = vld [vmem:[%s18232_s23 + $0x3b8] sm:$0xff] }
 0x460   : > { %2677 = vmatprep.mubr.f32.mxu1 %v1882_v13 }
 0x462   : > { %v2349_v28 = vpop.f32.mrb[60].mxu1 }
 0x463   : > { %v13450_v25 = vadd.f32 %v2349_v28, %v13251_v42  ;;  %v2351_v37 = vpop.f32.mrb[61].mxu1  ;;  %2678 = vmatmul.mubr.f32.gmra.mrb[166].mxu1 %v1881_v41  ;;  %v1889_v42 = vld [vmem:[%s18232_s23 + $0x3b0] sm:$0xff]  ;;  %v1894_v41 = vld [vmem:[%s18232_s23 + $0x3d8] sm:$0xff] }
 0x464   : > { %2682 = vmatprep.mubr.f32.mxu1 %v1886_v59 }
 0x466   : > { %v2354_v13 = vpop.f32.mrb[62].mxu1 }
 0x467   : > { %v13459_v23 = vadd.f32 %v13249_v26, %v2354_v13  ;;  %v2356_v2 = vpop.f32.mrb[63].mxu1  ;;  %2683 = vmatmul.mubr.f32.gmra.mrb[168].mxu1 %v1885_v7  ;;  %v1893_v26 = vld [vmem:[%s18232_s23 + $0x3d0] sm:$0xff]  ;;  %v1898_v7 = vld [vmem:[%s18232_s23 + $0x3f8] sm:$0xff] }
 0x468   : > { %2687 = vmatprep.mubr.f32.mxu1 %v1890_v8 }
 0x46a   : > { %v2359_v59 = vpop.f32.mrb[64].mxu1 }
 0x46b   : > { %v13468_v28 = vadd.f32 %v2359_v59, %v13263_v48  ;;  %v2361_v37 = vpop.f32.mrb[65].mxu1  ;;  %2688 = vmatmul.mubr.f32.gmra.mrb[170].mxu1 %v1889_v42  ;;  %v1897_v48 = vld [vmem:[%s18232_s23 + $0x3f0] sm:$0xff] }
 0x46c   : > { %2692 = vmatprep.mubr.f32.mxu1 %v1894_v41 }
 0x46e   : > { %v2364_v8 = vpop.f32.mrb[66].mxu1 }
 0x46f   : > { %v13477_v13 = vadd.f32 %v13261_v19, %v2364_v8  ;;  %v2366_v2 = vpop.f32.mrb[67].mxu1  ;;  %2693 = vmatmul.mubr.f32.gmra.mrb[172].mxu1 %v1893_v26 }
 0x470   : > { %2697 = vmatprep.mubr.f32.mxu1 %v1898_v7 }
 0x472   : > { %v2369_v42 = vpop.f32.mrb[68].mxu1 }
 0x473   : > { %v13483_v41 = vadd.f32 %v2369_v42, %v13275_v51  ;;  %v2371_v59 = vpop.f32.mrb[69].mxu1  ;;  %2698 = vmatmul.mubr.f32.gmra.mrb[174].mxu1 %v1897_v48 }
 0x476   : > { %v2374_v37 = vpop.f32.mrb[70].mxu1 }
 0x477   : > { %v13486_v9 = vadd.f32 %v13273_v0, %v2374_v37  ;;  %v2376_v63 = vpop.f32.mrb[71].mxu1 }
 0x47a   : > { %v2379_v19 = vpop.f32.mrb[72].mxu1 }
 0x47b   : > { %v13489_v8 = vadd.f32 %v2379_v19, %v13287_v21  ;;  %v2381_v26 = vpop.f32.mrb[73].mxu1 }
 0x47e   : > { %v2384_v7 = vpop.f32.mrb[74].mxu1 }
 0x47f   : > { %v13492_v2 = vadd.f32 %v13285_v32, %v2384_v7  ;;  %v2386_v16 = vpop.f32.mrb[75].mxu1 }
 0x482   : > { %v2389_v1 = vpop.f32.mrb[76].mxu1 }
 0x483   : > { %v13495_v51 = vadd.f32 %v2389_v1, %v13299_v10  ;;  %v2391_v48 = vpop.f32.mrb[77].mxu1 }
 0x486   : > { %v2394_v42 = vpop.f32.mrb[78].mxu1 }
 0x487   : > { %v13498_v0 = vadd.f32 %v13297_v3, %v2394_v42  ;;  %v2396_v63 = vpop.f32.mrb[79].mxu1 }
 0x48a   : > { %v2399_v59 = vpop.f32.mrb[80].mxu1 }
 0x48b   : > { %v13501_v21 = vadd.f32 %v2399_v59, %v13311_v56  ;;  %v2401_v37 = vpop.f32.mrb[81].mxu1 }
 0x48e   : > { %v2404_v19 = vpop.f32.mrb[82].mxu1 }
 0x48f   : > { %v13504_v32 = vadd.f32 %v13309_v46, %v2404_v19  ;;  %v2406_v16 = vpop.f32.mrb[83].mxu1 }
 0x492   : > { %v2409_v26 = vpop.f32.mrb[84].mxu1 }
 0x493   : > { %v13507_v1 = vadd.f32 %v2409_v26, %v13323_v20  ;;  %v2411_v10 = vpop.f32.mrb[85].mxu1 }
 0x496   : > { %v2414_v7 = vpop.f32.mrb[86].mxu1 }
 0x497   : > { %v13510_v3 = vadd.f32 %v13321_v53, %v2414_v7  ;;  %v2416_v48 = vpop.f32.mrb[87].mxu1 }
 0x49a   : > { %v2419_v42 = vpop.f32.mrb[88].mxu1 }
 0x49b   : > { %v13513_v56 = vadd.f32 %v2419_v42, %v13335_v40  ;;  %v2421_v63 = vpop.f32.mrb[89].mxu1 }
 0x49e   : > { %v2424_v59 = vpop.f32.mrb[90].mxu1 }
 0x49f   : > { %v13516_v46 = vadd.f32 %v13333_v29, %v2424_v59  ;;  %v2426_v37 = vpop.f32.mrb[91].mxu1 }
 0x4a2   : > { %v2429_v19 = vpop.f32.mrb[92].mxu1 }
 0x4a3   : > { %v13519_v20 = vadd.f32 %v2429_v19, %v13347_v55  ;;  %v2431_v16 = vpop.f32.mrb[93].mxu1 }
 0x4a6   : > { %v2434_v26 = vpop.f32.mrb[94].mxu1 }
 0x4a7   : > { %v13522_v53 = vadd.f32 %v13345_v31, %v2434_v26  ;;  %v2436_v10 = vpop.f32.mrb[95].mxu1 }
 0x4aa   : > { %v2439_v7 = vpop.f32.mrb[96].mxu1 }
 0x4ab   : > { %v13525_v40 = vadd.f32 %v2439_v7, %v13357_v49  ;;  %v2441_v48 = vpop.f32.mrb[97].mxu1 }
 0x4ae   : > { %v2444_v42 = vpop.f32.mrb[98].mxu1 }
 0x4af   : > { %v13528_v29 = vadd.f32 %v13355_v24, %v2444_v42  ;;  %v2446_v63 = vpop.f32.mrb[99].mxu1 }
 0x4b2   : > { %v2449_v59 = vpop.f32.mrb[100].mxu1 }
 0x4b3   : > { %v13531_v55 = vadd.f32 %v2449_v59, %v13367_v60  ;;  %v2451_v37 = vpop.f32.mrb[101].mxu1 }
 0x4b6   : > { %v2454_v19 = vpop.f32.mrb[102].mxu1 }
 0x4b7   : > { %v13534_v31 = vadd.f32 %v13365_v27, %v2454_v19  ;;  %v2456_v16 = vpop.f32.mrb[103].mxu1 }
 0x4ba   : > { %v2459_v26 = vpop.f32.mrb[104].mxu1 }
 0x4bb   : > { %v13537_v49 = vadd.f32 %v2459_v26, %v13377_v30  ;;  %v2461_v10 = vpop.f32.mrb[105].mxu1 }
 0x4bc   : > { %v18250_v10 = vld [vmem:[#allocation36_spill] sm:$0xff] }
 0x4be   : > { %v2464_v7 = vpop.f32.mrb[106].mxu1 }
 0x4bf   : > { %v13540_v24 = vadd.f32 %v13375_v57, %v2464_v7  ;;  %v2466_v48 = vpop.f32.mrb[107].mxu1 }
 0x4c0   : > { %v18251_v48 = vld [vmem:[#allocation37_spill] sm:$0xff] }
 0x4c2   : > { %v2469_v42 = vpop.f32.mrb[108].mxu1 }
 0x4c3   : > { %v13543_v60 = vadd.f32 %v2469_v42, %v13387_v38  ;;  %v2471_v63 = vpop.f32.mrb[109].mxu1  ;;  %v3137_v38 = vld [vmem:[%s18003_s10 + $0x8] sm:$0xff] }
 0x4c4   : > { %3681 = vmatprep.mubr.f32.mxu1 %v3137_v38  ;;  %v3145_v38 = vld [vmem:[%s18003_s10 + $0x48] sm:$0xff] }
 0x4c6   : > { %v2474_v59 = vpop.f32.mrb[110].mxu1 }
 0x4c7   : > { %v13546_v27 = vadd.f32 %v13385_v36, %v2474_v59  ;;  %v2476_v37 = vpop.f32.mrb[111].mxu1  ;;  %v2960_v36 = vld [vmem:[%s18001_s8 + $0x8] sm:$0xff] }
 0x4c8   : > { %3087 = vmatprep.mubr.f32.mxu0 %v2960_v36  ;;  %v3144_v36 = vld [vmem:[%s18003_s10 + $0x40] sm:$0xff] }
 0x4ca   : > { %v2544_v19 = vpop.f32.mrb[112].mxu1 }
 0x4cb   : > { %v2545_v30 = vadd.f32 %v2544_v19, %v13396_v34  ;;  %v2546_v16 = vpop.f32.mrb[113].mxu1  ;;  %v3136_v34 = vld [vmem:[%s18003_s10] sm:$0xff] }
 0x4cc   : > { %3682 = vmatmul.mubr.f32.vlgmr.msra.gmra.mrb[176].mxu1 %v3136_v34 }
 0x4cd   : > { %v2895_v44 = vadd.f32 %v18250_v10, %v2545_v30  ;;  %11042 = vmatpush1.bf16.msra.mxu1 %v18234_v50  ;;  %v3141_v30 = vld [vmem:[%s18003_s10 + $0x28] sm:$0xff]  ;;  %v18252_v10 = vld [vmem:[#allocation40_spill] sm:$0xff] }
 0x4ce   : > { %v2549_v26 = vpop.f32.mrb[114].mxu1  ;;  %11027 = vmatprep.subr.bf16.mxu1 %v18222_v4  ;;  %3686 = vmatprep.mubr.f32.mxu1 %v3141_v30  ;;  %v3148_v30 = vld [vmem:[%s18003_s10 + $0x60] sm:$0xff] }
 0x4cf   : > { %v2550_v57 = vadd.f32 %v2549_v26, %v13405_v18  ;;  %v2551_v7 = vpop.f32.mrb[115].mxu1  ;;  %v2927_v18 = vmax.f32 %v2895_v44, 0.0  ;;  %v3140_v26 = vld [vmem:[%s18003_s10 + $0x20] sm:$0xff] }
 0x4d0   : > { %3687 = vmatmul.mubr.f32.gmra.mrb[178].mxu1 %v3140_v26 }
 0x4d1   : > { %v2896_v42 = vadd.f32 %v18251_v48, %v2550_v57  ;;  %11043 = vmatpush1.bf16.msra.mxu1 %v18235_v47  ;;  %v18253_v48 = vld [vmem:[#allocation41_spill] sm:$0xff]  ;;  %3691 = vmatprep.mubr.f32.mxu1 %v3145_v38 }
 0x4d2   : > { %v2554_v63 = vpop.f32.mrb[116].mxu1  ;;  %11028 = vmatprep.subr.bf16.mxu1 %v18222_v4 }
 0x4d3   : > { %v2928_v59 = vmax.f32 %v2896_v42, 0.0  ;;  %v2555_v37 = vadd.f32 %v2554_v63, %v13414_v54  ;;  %v2556_v19 = vpop.f32.mrb[117].mxu1 }
 0x4d4   : > { %3692 = vmatmul.mubr.f32.gmra.mrb[180].mxu1 %v3144_v36 }
 0x4d5   : > { %v13567_v16 = vpack.c.bf16 %v2928_v59, %v2927_v18  ;;  %v2897_v54 = vadd.f32 %v18252_v10, %v2555_v37  ;;  %11044 = vmatpush1.bf16.msra.mxu1 %v18236_v52  ;;  %v3149_v37 = vld [vmem:[%s18003_s10 + $0x68] sm:$0xff] }
 0x4d6   : > { %v2559_v44 = vpop.f32.mrb[118].mxu1  ;;  %11029 = vmatprep.subr.bf16.mxu1 %v18222_v4  ;;  %3696 = vmatprep.mubr.f32.mxu1 %v3149_v37 }
 0x4d7   : > { %v2560_v57 = vadd.f32 %v2559_v44, %v13423_v22  ;;  %v2561_v7 = vpop.f32.mrb[119].mxu1  ;;  %v2929_v63 = vmax.f32 %v2897_v54, 0.0  ;;  %v18254_v44 = vld [vmem:[#allocation44_spill] sm:$0xff] }
 0x4d8   : > { %3697 = vmatmul.mubr.f32.gmra.mrb[182].mxu1 %v3148_v30  ;;  %v18255_v7 = vld [vmem:[#allocation45_spill] sm:$0xff]  ;;  %v18256_v30 = vld [vmem:[#allocation48_spill] sm:$0xff] }
 0x4d9   : > { %v2898_v42 = vadd.f32 %v18253_v48, %v2560_v57  ;;  %11045 = vmatpush1.bf16.msra.mxu1 %v18237_v12  ;;  %v3153_v57 = vld [vmem:[%s18003_s10 + $0x88] sm:$0xff]  ;;  %v3152_v48 = vld [vmem:[%s18003_s10 + $0x80] sm:$0xff] }
 0x4da   : > { %v2564_v34 = vpop.f32.mrb[120].mxu1  ;;  %11030 = vmatprep.subr.bf16.mxu1 %v18222_v4  ;;  %3701 = vmatprep.mubr.f32.mxu1 %v3153_v57  ;;  %v3160_v57 = vld [vmem:[%s18003_s10 + $0xc0] sm:$0xff] }
 0x4db   : > { %v2930_v22 = vmax.f32 %v2898_v42, 0.0  ;;  %v2565_v18 = vadd.f32 %v2564_v34, %v13432_v58  ;;  %v2566_v59 = vpop.f32.mrb[121].mxu1 }
 0x4dc   : > { %3702 = vmatmul.mubr.f32.gmra.mrb[184].mxu1 %v3152_v48  ;;  %v3156_v59 = vld [vmem:[%s18003_s10 + $0xa0] sm:$0xff] }
 0x4dd   : > { %v13589_v19 = vpack.c.bf16 %v2930_v22, %v2929_v63  ;;  %v2899_v58 = vadd.f32 %v18254_v44, %v2565_v18  ;;  %11046 = vmatpush1.bf16.msra.mxu1 %v18238_v14  ;;  %v3157_v22 = vld [vmem:[%s18003_s10 + $0xa8] sm:$0xff] }
 0x4de   : > { %v2569_v26 = vpop.f32.mrb[122].mxu1  ;;  %11031 = vmatprep.subr.bf16.mxu1 %v18222_v4  ;;  %3706 = vmatprep.mubr.f32.mxu1 %v3157_v22  ;;  %v18258_v22 = vld [vmem:[#allocation52_spill] sm:$0xff] }
 0x4df   : > { %v2570_v10 = vadd.f32 %v2569_v26, %v13441_v43  ;;  %v2571_v54 = vpop.f32.mrb[123].mxu1  ;;  %v2931_v36 = vmax.f32 %v2899_v58, 0.0  ;;  %v3161_v58 = vld [vmem:[%s18003_s10 + $0xc8] sm:$0xff] }
 0x4e0   : > { %3707 = vmatmul.mubr.f32.gmra.mrb[186].mxu1 %v3156_v59 }
 0x4e1   : > { %v2900_v38 = vadd.f32 %v18255_v7, %v2570_v10  ;;  %11047 = vmatpush1.bf16.msra.mxu1 %v18239_v35  ;;  %v18257_v10 = vld [vmem:[#allocation49_spill] sm:$0xff]  ;;  %3711 = vmatprep.mubr.f32.mxu1 %v3161_v58 }
 0x4e2   : > { %v2574_v42 = vpop.f32.mrb[124].mxu1  ;;  %11032 = vmatprep.subr.bf16.mxu1 %v18222_v4 }
 0x4e3   : > { %v2932_v43 = vmax.f32 %v2900_v38, 0.0  ;;  %v2575_v34 = vadd.f32 %v2574_v42, %v13450_v25  ;;  %v2576_v63 = vpop.f32.mrb[125].mxu1 }
 0x4e4   : > { %3712 = vmatmul.mubr.f32.gmra.mrb[188].mxu1 %v3160_v57 }
 0x4e5   : > { %v13611_v18 = vpack.c.bf16 %v2932_v43, %v2931_v36  ;;  %v2901_v25 = vadd.f32 %v18256_v30, %v2575_v34  ;;  %11048 = vmatpush1.bf16.msra.mxu1 %v18240_v39  ;;  %v3165_v36 = vld [vmem:[%s18003_s10 + $0xe8] sm:$0xff]  ;;  %v3164_v34 = vld [vmem:[%s18003_s10 + $0xe0] sm:$0xff] }
 0x4e6   : > { %v2579_v37 = vpop.f32.mrb[126].mxu1  ;;  %11033 = vmatprep.subr.bf16.mxu1 %v18222_v4  ;;  %3716 = vmatprep.mubr.f32.mxu1 %v3165_v36  ;;  %v3169_v30 = vld [vmem:[%s18003_s10 + $0x108] sm:$0xff] }
 0x4e7   : > { %v2580_v26 = vadd.f32 %v2579_v37, %v13459_v23  ;;  %v2581_v44 = vpop.f32.mrb[127].mxu1  ;;  %v2933_v38 = vmax.f32 %v2901_v25, 0.0  ;;  %v18259_v25 = vld [vmem:[#allocation53_spill] sm:$0xff] }
 0x4e8   : > { %3717 = vmatmul.mubr.f32.gmra.mrb[190].mxu1 %v3164_v34  ;;  %v3168_v44 = vld [vmem:[%s18003_s10 + $0x100] sm:$0xff] }
 0x4e9   : > { %v2902_v54 = vadd.f32 %v18257_v10, %v2580_v26  ;;  %11049 = vmatpush1.bf16.msra.mxu1 %v18241_v6  ;;  %3721 = vmatprep.mubr.f32.mxu1 %v3169_v30 }
 0x4ea   : > { %v2584_v7 = vpop.f32.mrb[128].mxu1  ;;  %11034 = vmatprep.subr.bf16.mxu1 %v18222_v4 }
 0x4eb   : > { %v2934_v23 = vmax.f32 %v2902_v54, 0.0  ;;  %v2585_v48 = vadd.f32 %v2584_v7, %v13468_v28  ;;  %v2586_v42 = vpop.f32.mrb[129].mxu1  ;;  %v3173_v7 = vld [vmem:[%s18003_s10 + $0x128] sm:$0xff] }
 0x4ec   : > { %3722 = vmatmul.mubr.f32.gmra.mrb[192].mxu1 %v3168_v44  ;;  %v18260_v42 = vld [vmem:[#allocation56_spill] sm:$0xff]  ;;  %v3181_v44 = vld [vmem:[%s18003_s10 + $0x168] sm:$0xff] }
 0x4ed   : > { %v13633_v43 = vpack.c.bf16 %v2934_v23, %v2933_v38  ;;  %v2903_v28 = vadd.f32 %v18258_v22, %v2585_v48  ;;  %11050 = vmatpush1.bf16.msra.mxu1 %v18242_v15  ;;  %3726 = vmatprep.mubr.f32.mxu1 %v3173_v7  ;;  %v3172_v23 = vld [vmem:[%s18003_s10 + $0x120] sm:$0xff]  ;;  %v18261_v22 = vld [vmem:[#allocation57_spill] sm:$0xff] }
 0x4ee   : > { %v2589_v63 = vpop.f32.mrb[130].mxu1  ;;  %11035 = vmatprep.subr.bf16.mxu1 %v18222_v4 }
 0x4ef   : > { %v2590_v59 = vadd.f32 %v2589_v63, %v13477_v13  ;;  %v2591_v37 = vpop.f32.mrb[131].mxu1  ;;  %v2935_v10 = vmax.f32 %v2903_v28, 0.0  ;;  %v3177_v63 = vld [vmem:[%s18003_s10 + $0x148] sm:$0xff] }
 0x4f0   : > { %3727 = vmatmul.mubr.f32.gmra.mrb[194].mxu1 %v3172_v23  ;;  %v3185_v23 = vld [vmem:[%s18003_s10 + $0x188] sm:$0xff] }
 0x4f1   : > { %v2904_v26 = vadd.f32 %v18259_v25, %v2590_v59  ;;  %11051 = vmatpush1.bf16.msra.mxu1 %v18243_v33  ;;  %3731 = vmatprep.mubr.f32.mxu1 %v3177_v63  ;;  %v3176_v59 = vld [vmem:[%s18003_s10 + $0x140] sm:$0xff] }
 0x4f2   : > { %v2594_v58 = vpop.f32.mrb[132].mxu1  ;;  %11036 = vmatprep.subr.bf16.mxu1 %v18222_v4 }
 0x4f3   : > { %v2936_v13 = vmax.f32 %v2904_v26, 0.0  ;;  %v2595_v54 = vadd.f32 %v2594_v58, %v13483_v41  ;;  %v2596_v57 = vpop.f32.mrb[133].mxu1 }
 0x4f4   : > { %3732 = vmatmul.mubr.f32.gmra.mrb[196].mxu1 %v3176_v59 }
 0x4f5   : > { %v13655_v38 = vpack.c.bf16 %v2936_v13, %v2935_v10  ;;  %v2905_v41 = vadd.f32 %v18260_v42, %v2595_v54  ;;  %11052 = vmatpush1.bf16.msra.mxu1 %v18244_v61  ;;  %3736 = vmatprep.mubr.f32.mxu1 %v3181_v44  ;;  %v3180_v10 = vld [vmem:[%s18003_s10 + $0x160] sm:$0xff]  ;;  %v18262_v54 = vld [vmem:[#allocation60_spill] sm:$0xff]  ;;  %v3193_v44 = vld [vmem:[%s18003_s10 + $0x1c8] sm:$0xff] }
 0x4f6   : > { %v2599_v48 = vpop.f32.mrb[134].mxu1  ;;  %11037 = vmatprep.subr.bf16.mxu1 %v18222_v4 }
 0x4f7   : > { %v2600_v36 = vadd.f32 %v2599_v48, %v13486_v9  ;;  %v2601_v34 = vpop.f32.mrb[135].mxu1  ;;  %v2937_v30 = vmax.f32 %v2905_v41, 0.0  ;;  %v18263_v48 = vld [vmem:[#allocation61_spill] sm:$0xff]  ;;  %v3184_v41 = vld [vmem:[%s18003_s10 + $0x180] sm:$0xff] }
 0x4f8   : > { %3737 = vmatmul.mubr.f32.gmra.mrb[198].mxu1 %v3180_v10  ;;  %v18265_v10 = vld [vmem:[#allocation65_spill] sm:$0xff] }
 0x4f9   : > { %v2906_v28 = vadd.f32 %v18261_v22, %v2600_v36  ;;  %11053 = vmatpush1.bf16.msra.mxu1 %v18245_v62  ;;  %3741 = vmatprep.mubr.f32.mxu1 %v3185_v23 }
 0x4fa   : > { %v2604_v37 = vpop.f32.mrb[136].mxu1  ;;  %11038 = vmatprep.subr.bf16.mxu1 %v18222_v4 }
 0x4fb   : > { %v2938_v9 = vmax.f32 %v2906_v28, 0.0  ;;  %v2605_v25 = vadd.f32 %v2604_v37, %v13489_v8  ;;  %v2606_v26 = vpop.f32.mrb[137].mxu1  ;;  %v3189_v28 = vld [vmem:[%s18003_s10 + $0x1a8] sm:$0xff]  ;;  %v3188_v37 = vld [vmem:[%s18003_s10 + $0x1a0] sm:$0xff] }
 0x4fc   : > { %3742 = vmatmul.mubr.f32.gmra.mrb[200].mxu1 %v3184_v41  ;;  %v3196_v41 = vld [vmem:[%s18003_s10 + $0x1e0] sm:$0xff] }
 0x4fd   : > { %v13677_v58 = vpack.c.bf16 %v2938_v9, %v2937_v30  ;;  %v2907_v8 = vadd.f32 %v18262_v54, %v2605_v25  ;;  %11054 = vmatpush1.bf16.msra.mxu1 %v18246_v11  ;;  %3746 = vmatprep.mubr.f32.mxu1 %v3189_v28  ;;  %v18264_v9 = vld [vmem:[#allocation64_spill] sm:$0xff]  ;;  %v3192_v54 = vld [vmem:[%s18003_s10 + $0x1c0] sm:$0xff]  ;;  %v18267_v28 = vld [vmem:[#allocation35_spill] sm:$0xff] }
 0x4fe   : > { %v2609_v13 = vpop.f32.mrb[138].mxu1  ;;  %11039 = vmatprep.subr.bf16.mxu1 %v18222_v4 }
 0x4ff   : > { %v2610_v57 = vadd.f32 %v2609_v13, %v13492_v2  ;;  %v2611_v7 = vpop.f32.mrb[139].mxu1  ;;  %v2939_v34 = vmax.f32 %v2907_v8, 0.0 }
 0x500   : > { %3747 = vmatmul.mubr.f32.gmra.mrb[202].mxu1 %v3188_v37 }
 0x501   : > { %v2908_v42 = vadd.f32 %v18263_v48, %v2610_v57  ;;  %11055 = vmatpush1.bf16.msra.mxu1 %v18247_v17  ;;  %3751 = vmatprep.mubr.f32.mxu1 %v3193_v44  ;;  %v3197_v48 = vld [vmem:[%s18003_s10 + $0x1e8] sm:$0xff] }
 0x502   : > { %v2614_v36 = vpop.f32.mrb[140].mxu1  ;;  %11040 = vmatprep.subr.bf16.mxu1 %v18222_v4  ;;  %v3205_v44 = vld [vmem:[%s18003_s10 + $0x228] sm:$0xff] }
 0x503   : > { %v2940_v2 = vmax.f32 %v2908_v42, 0.0  ;;  %v2615_v63 = vadd.f32 %v2614_v36, %v13495_v51  ;;  %v2616_v22 = vpop.f32.mrb[141].mxu1 }
 0x504   : > { %3752 = vmatmul.mubr.f32.gmra.mrb[204].mxu1 %v3192_v54  ;;  %v3201_v22 = vld [vmem:[%s18003_s10 + $0x208] sm:$0xff] }
 0x505   : > { %v13699_v59 = vpack.c.bf16 %v2940_v2, %v2939_v34  ;;  %v2909_v51 = vadd.f32 %v18264_v9, %v2615_v63  ;;  %11056 = vmatpush1.bf16.msra.mxu1 %v18248_v45  ;;  %3756 = vmatprep.mubr.f32.mxu1 %v3197_v48  ;;  %v18266_v34 = vld [vmem:[#allocation34_spill] sm:$0xff] }
 0x506   : > { %v2619_v30 = vpop.f32.mrb[142].mxu1  ;;  %11041 = vmatprep.subr.bf16.mxu1 %v18222_v4 }
 0x507   : > { %v2620_v25 = vadd.f32 %v2619_v30, %v13498_v0  ;;  %v2621_v26 = vpop.f32.mrb[143].mxu1  ;;  %v2941_v57 = vmax.f32 %v2909_v51, 0.0  ;;  %v3200_v30 = vld [vmem:[%s18003_s10 + $0x200] sm:$0xff] }
 0x508   : > { %3757 = vmatmul.mubr.f32.gmra.mrb[206].mxu1 %v3196_v41  ;;  %v3208_v41 = vld [vmem:[%s18003_s10 + $0x240] sm:$0xff] }
 0x509   : > { %v2910_v13 = vadd.f32 %v18265_v10, %v2620_v25  ;;  %11057 = vmatpush1.bf16.msra.mxu1 %v18249_v5  ;;  %3761 = vmatprep.mubr.f32.mxu1 %v3201_v22  ;;  %v3212_v22 = vld [vmem:[%s18003_s10 + $0x260] sm:$0xff] }
 0x50a   : > { %v2624_v8 = vpop.f32.mrb[144].mxu1 }
 0x50b   : > { %v2942_v0 = vmax.f32 %v2910_v13, 0.0  ;;  %v2625_v7 = vadd.f32 %v2624_v8, %v13501_v21  ;;  %v2626_v23 = vpop.f32.mrb[145].mxu1  ;;  %v3204_v13 = vld [vmem:[%s18003_s10 + $0x220] sm:$0xff] }
 0x50c   : > { %3762 = vmatmul.mubr.f32.gmra.mrb[208].mxu1 %v3200_v30  ;;  %v18268_v8 = vld [vmem:[#allocation38_spill] sm:$0xff]  ;;  %v18269_v23 = vld [vmem:[#allocation39_spill] sm:$0xff] }
 0x50d   : > { %v13721_v42 = vpack.c.bf16 %v2942_v0, %v2941_v57  ;;  %v2911_v21 = vadd.f32 %v18266_v34, %v2625_v7  ;;  %3766 = vmatprep.mubr.f32.mxu1 %v3205_v44  ;;  %v3209_v7 = vld [vmem:[%s18003_s10 + $0x248] sm:$0xff] }
 0x50e   : > { %v2629_v36 = vpop.f32.mrb[146].mxu1 }
 0x50f   : > { %v2630_v2 = vadd.f32 %v2629_v36, %v13504_v32  ;;  %v2631_v63 = vpop.f32.mrb[147].mxu1  ;;  %v2943_v32 = vmax.f32 %v2911_v21, 0.0 }
 0x510   : > { %3767 = vmatmul.mubr.f32.gmra.mrb[210].mxu1 %v3204_v13 }
 0x511   : > { %v2912_v37 = vadd.f32 %v18267_v28, %v2630_v2  ;;  %3771 = vmatprep.mubr.f32.mxu1 %v3209_v7 }
 0x512   : > { %v2634_v9 = vpop.f32.mrb[148].mxu1 }
 0x513   : > { %v2635_v51 = vadd.f32 %v2634_v9, %v13507_v1  ;;  %v2636_v25 = vpop.f32.mrb[149].mxu1  ;;  %v2944_v26 = vmax.f32 %v2912_v37, 0.0  ;;  %v18270_v37 = vld [vmem:[#allocation42_spill] sm:$0xff] }
 0x514   : > { %3772 = vmatmul.mubr.f32.gmra.mrb[212].mxu1 %v3208_v41  ;;  %v18271_v25 = vld [vmem:[#allocation43_spill] sm:$0xff] }
 0x515   : > { %v10690_v10 = vpack.c.bf16 %v2944_v26, %v2943_v32  ;;  %v2913_v57 = vadd.f32 %v18268_v8, %v2635_v51  ;;  %v3217_v51 = vld [vmem:[%s18003_s10 + $0x288] sm:$0xff]  ;;  %v3216_v26 = vld [vmem:[%s18003_s10 + $0x280] sm:$0xff] }
 0x516   : > { %v2639_v54 = vpop.f32.mrb[150].mxu1  ;;  %v18273_v41 = vld [vmem:[#allocation47_spill] sm:$0xff] }
 0x517   : > { %v2640_v0 = vadd.f32 %v2639_v54, %v13510_v3  ;;  %10691 = vmatprep.subr.bf16.mxu0 %v10690_v10  ;;  %v2641_v1 = vpop.f32.mrb[151].mxu1  ;;  %v2945_v21 = vmax.f32 %v2913_v57, 0.0  ;;  %v3220_v57 = vld [vmem:[%s18003_s10 + $0x2a0] sm:$0xff] }
 0x518   : > { %10693 = vmatpush3.bf16.msra.mxu0 %v13567_v16  ;;  %v3213_v16 = vld [vmem:[%s18003_s10 + $0x268] sm:$0xff]  ;;  %v18272_v1 = vld [vmem:[#allocation46_spill] sm:$0xff] }
 0x519   : > { %v2914_v48 = vadd.f32 %v18269_v23, %v2640_v0  ;;  %3776 = vmatprep.mubr.f32.mxu1 %v3213_v16 }
 0x51a   : > { %v2644_v36 = vpop.f32.mrb[152].mxu1  ;;  %3777 = vmatmul.mubr.f32.gmra.mrb[214].mxu1 %v3212_v22  ;;  %v3228_v22 = vld [vmem:[%s18003_s10 + $0x2e0] sm:$0xff] }
 0x51b   : > { %v2645_v34 = vadd.f32 %v2644_v36, %v13513_v56  ;;  %v2646_v3 = vpop.f32.mrb[153].mxu1  ;;  %v2946_v2 = vmax.f32 %v2914_v48, 0.0  ;;  %3781 = vmatprep.mubr.f32.mxu1 %v3217_v51  ;;  %v3225_v48 = vld [vmem:[%s18003_s10 + $0x2c8] sm:$0xff] }
 0x51c   : > { %v18275_v51 = vld [vmem:[#allocation51_spill] sm:$0xff] }
 0x51d   : > { %v10694_v63 = vpack.c.bf16 %v2946_v2, %v2945_v21  ;;  %v2915_v30 = vadd.f32 %v18270_v37, %v2645_v34  ;;  %v3224_v34 = vld [vmem:[%s18003_s10 + $0x2c0] sm:$0xff] }
 0x51e   : > { %v2649_v28 = vpop.f32.mrb[154].mxu1  ;;  %3782 = vmatmul.mubr.f32.gmra.mrb[216].mxu1 %v3216_v26  ;;  %v18274_v37 = vld [vmem:[#allocation50_spill] sm:$0xff] }
 0x51f   : > { %v2650_v9 = vadd.f32 %v2649_v28, %v13516_v46  ;;  %10695 = vmatprep.subr.bf16.mxu0 %v10694_v63  ;;  %v2651_v56 = vpop.f32.mrb[155].mxu1  ;;  %v2947_v13 = vmax.f32 %v2915_v30, 0.0 }
 0x520   : > { %10697 = vmatpush3.bf16.msra.mxu0 %v13589_v19  ;;  %v3221_v19 = vld [vmem:[%s18003_s10 + $0x2a8] sm:$0xff] }
 0x521   : > { %v2916_v32 = vadd.f32 %v18271_v25, %v2650_v9  ;;  %3786 = vmatprep.mubr.f32.mxu1 %v3221_v19  ;;  %v3233_v56 = vld [vmem:[%s18003_s10 + $0x308] sm:$0xff] }
 0x522   : > { %v2654_v44 = vpop.f32.mrb[156].mxu1  ;;  %3787 = vmatmul.mubr.f32.gmra.mrb[218].mxu1 %v3220_v57 }
 0x523   : > { %v2655_v10 = vadd.f32 %v2654_v44, %v13519_v20  ;;  %v2656_v46 = vpop.f32.mrb[157].mxu1  ;;  %v2948_v54 = vmax.f32 %v2916_v32, 0.0  ;;  %3791 = vmatprep.mubr.f32.mxu1 %v3225_v48  ;;  %v3232_v32 = vld [vmem:[%s18003_s10 + $0x300] sm:$0xff] }
 0x525   : > { %v10698_v8 = vpack.c.bf16 %v2948_v54, %v2947_v13  ;;  %v2917_v7 = vadd.f32 %v18272_v1, %v2655_v10  ;;  %v3236_v54 = vld [vmem:[%s18003_s10 + $0x320] sm:$0xff]  ;;  %v3241_v1 = vld [vmem:[%s18003_s10 + $0x348] sm:$0xff] }
 0x526   : > { %v2659_v0 = vpop.f32.mrb[158].mxu1  ;;  %3792 = vmatmul.mubr.f32.gmra.mrb[220].mxu1 %v3224_v34 }
 0x527   : > { %v2660_v23 = vadd.f32 %v2659_v0, %v13522_v53  ;;  %10699 = vmatprep.subr.bf16.mxu0 %v10698_v8  ;;  %v2661_v20 = vpop.f32.mrb[159].mxu1  ;;  %v2949_v2 = vmax.f32 %v2917_v7, 0.0  ;;  %v18276_v8 = vld [vmem:[#allocation54_spill] sm:$0xff]  ;;  %v18277_v7 = vld [vmem:[#allocation55_spill] sm:$0xff] }
 0x528   : > { %10701 = vmatpush3.bf16.msra.mxu0 %v13611_v18  ;;  %v3229_v18 = vld [vmem:[%s18003_s10 + $0x2e8] sm:$0xff]  ;;  %v3240_v20 = vld [vmem:[%s18003_s10 + $0x340] sm:$0xff] }
 0x529   : > { %v2918_v36 = vadd.f32 %v18273_v41, %v2660_v23  ;;  %3796 = vmatprep.mubr.f32.mxu1 %v3229_v18 }
 0x52a   : > { %v2664_v3 = vpop.f32.mrb[160].mxu1  ;;  %3797 = vmatmul.mubr.f32.gmra.mrb[222].mxu1 %v3228_v22  ;;  %v18279_v22 = vld [vmem:[#allocation59_spill] sm:$0xff] }
 0x52b   : > { %v2665_v21 = vadd.f32 %v2664_v3, %v13525_v40  ;;  %v2666_v53 = vpop.f32.mrb[161].mxu1  ;;  %v2950_v16 = vmax.f32 %v2918_v36, 0.0  ;;  %3801 = vmatprep.mubr.f32.mxu1 %v3233_v56 }
 0x52d   : > { %v10702_v63 = vpack.c.bf16 %v2950_v16, %v2949_v2  ;;  %v2919_v30 = vadd.f32 %v18274_v37, %v2665_v21  ;;  %v3244_v21 = vld [vmem:[%s18003_s10 + $0x360] sm:$0xff] }
 0x52e   : > { %v2669_v28 = vpop.f32.mrb[162].mxu1  ;;  %3802 = vmatmul.mubr.f32.gmra.mrb[224].mxu1 %v3232_v32  ;;  %v18278_v2 = vld [vmem:[#allocation58_spill] sm:$0xff] }
 0x52f   : > { %v2670_v9 = vadd.f32 %v2669_v28, %v13528_v29  ;;  %10703 = vmatprep.subr.bf16.mxu0 %v10702_v63  ;;  %v2671_v40 = vpop.f32.mrb[163].mxu1  ;;  %v2951_v10 = vmax.f32 %v2919_v30, 0.0  ;;  %v3249_v63 = vld [vmem:[%s18003_s10 + $0x388] sm:$0xff]  ;;  %v3248_v37 = vld [vmem:[%s18003_s10 + $0x380] sm:$0xff] }
 0x530   : > { %10705 = vmatpush3.bf16.msra.mxu0 %v13633_v43  ;;  %v3237_v43 = vld [vmem:[%s18003_s10 + $0x328] sm:$0xff] }
 0x531   : > { %v2920_v25 = vadd.f32 %v18275_v51, %v2670_v9  ;;  %3806 = vmatprep.mubr.f32.mxu1 %v3237_v43 }
 0x532   : > { %v2674_v26 = vpop.f32.mrb[164].mxu1  ;;  %3807 = vmatmul.mubr.f32.gmra.mrb[226].mxu1 %v3236_v54 }
 0x533   : > { %v2675_v44 = vadd.f32 %v2674_v26, %v13531_v55  ;;  %v2676_v29 = vpop.f32.mrb[165].mxu1  ;;  %v2952_v46 = vmax.f32 %v2920_v25, 0.0  ;;  %3811 = vmatprep.mubr.f32.mxu1 %v3241_v1  ;;  %v3252_v25 = vld [vmem:[%s18003_s10 + $0x3a0] sm:$0xff]  ;;  %v2962_v1 = vld [vmem:[%s18001_s8 + $0x18] sm:$0xff] }
 0x534   : > { %v18280_v26 = vld [vmem:[#allocation62_spill] sm:$0xff] }
 0x535   : > { %v10706_v13 = vpack.c.bf16 %v2952_v46, %v2951_v10  ;;  %v2921_v57 = vadd.f32 %v18276_v8, %v2675_v44  ;;  %v3257_v10 = vld [vmem:[%s18003_s10 + $0x3c8] sm:$0xff] }
 0x536   : > { %v2679_v19 = vpop.f32.mrb[166].mxu1  ;;  %3812 = vmatmul.mubr.f32.gmra.mrb[228].mxu1 %v3240_v20  ;;  %v18281_v46 = vld [vmem:[#allocation63_spill] sm:$0xff]  ;;  %v18283_v20 = vld [vmem:[#allocation81_spill] sm:$0xff] }
 0x537   : > { %v2680_v0 = vadd.f32 %v2679_v19, %v13534_v31  ;;  %10707 = vmatprep.subr.bf16.mxu0 %v10706_v13  ;;  %v2681_v55 = vpop.f32.mrb[167].mxu1  ;;  %v2953_v36 = vmax.f32 %v2921_v57, 0.0  ;;  %v3256_v13 = vld [vmem:[%s18003_s10 + $0x3c0] sm:$0xff] }
 0x538   : > { %10709 = vmatpush3.bf16.msra.mxu0 %v13655_v38  ;;  %v3245_v38 = vld [vmem:[%s18003_s10 + $0x368] sm:$0xff]  ;;  %v2959_v57 = vld [vmem:[%s18001_s8] sm:$0xff]  ;;  %v18282_v55 = vld [vmem:[#allocation80_spill] sm:$0xff] }
 0x539   : > { %v2922_v23 = vadd.f32 %v18277_v7, %v2680_v0  ;;  %3816 = vmatprep.mubr.f32.mxu1 %v3245_v38  ;;  %v3203_v0 = vld [vmem:[%s18003_s10 + $0x218] sm:$0xff]  ;;  %v3202_v7 = vld [vmem:[%s18003_s10 + $0x210] sm:$0xff] }
 0x53a   : > { %v2684_v48 = vpop.f32.mrb[168].mxu1  ;;  %3817 = vmatmul.mubr.f32.gmra.mrb[230].mxu1 %v3244_v21  ;;  %v2966_v38 = vld [vmem:[%s18001_s8 + $0x38] sm:$0xff]  ;;  %v2965_v21 = vld [vmem:[%s18001_s8 + $0x30] sm:$0xff] }
 0x53b   : > { %v2685_v41 = vadd.f32 %v2684_v48, %v13537_v49  ;;  %v2686_v31 = vpop.f32.mrb[169].mxu1  ;;  %v2954_v34 = vmax.f32 %v2922_v23, 0.0  ;;  %3821 = vmatprep.mubr.f32.mxu1 %v3249_v63  ;;  %v3207_v23 = vld [vmem:[%s18003_s10 + $0x238] sm:$0xff]  ;;  %v2964_v48 = vld [vmem:[%s18001_s8 + $0x28] sm:$0xff] }
 0x53c   : > { %v2963_v31 = vld [vmem:[%s18001_s8 + $0x20] sm:$0xff]  ;;  %v3219_v63 = vld [vmem:[%s18003_s10 + $0x298] sm:$0xff] }
 0x53d   : > { %v10710_v3 = vpack.c.bf16 %v2954_v34, %v2953_v36  ;;  %v2923_v16 = vadd.f32 %v18278_v2, %v2685_v41  ;;  %v3206_v41 = vld [vmem:[%s18003_s10 + $0x230] sm:$0xff]  ;;  %v3211_v36 = vld [vmem:[%s18003_s10 + $0x258] sm:$0xff]  ;;  %v18284_v34 = vld [vmem:[#allocation82_spill] sm:$0xff] }
 0x53e   : > { %v2689_v53 = vpop.f32.mrb[170].mxu1  ;;  %3822 = vmatmul.mubr.f32.gmra.mrb[232].mxu1 %v3248_v37  ;;  %v18285_v2 = vld [vmem:[#allocation83_spill] sm:$0xff]  ;;  %v2969_v37 = vld [vmem:[%s18001_s8 + $0x50] sm:$0xff] }
 0x53f   : > { %v2690_v18 = vadd.f32 %v2689_v53, %v13540_v24  ;;  %10711 = vmatprep.subr.bf16.mxu0 %v10710_v3  ;;  %v2691_v49 = vpop.f32.mrb[171].mxu1  ;;  %v2955_v40 = vmax.f32 %v2923_v16, 0.0  ;;  %v3210_v3 = vld [vmem:[%s18003_s10 + $0x250] sm:$0xff]  ;;  %v3215_v53 = vld [vmem:[%s18003_s10 + $0x278] sm:$0xff]  ;;  %v2968_v16 = vld [vmem:[%s18001_s8 + $0x48] sm:$0xff] }
 0x540   : > { %10713 = vmatpush3.bf16.msra.mxu0 %v13677_v58  ;;  %v3253_v58 = vld [vmem:[%s18003_s10 + $0x3a8] sm:$0xff]  ;;  %v2967_v49 = vld [vmem:[%s18001_s8 + $0x40] sm:$0xff] }
 0x541   : > { %v2924_v28 = vadd.f32 %v18279_v22, %v2690_v18  ;;  %3826 = vmatprep.mubr.f32.mxu1 %v3253_v58  ;;  %v3214_v18 = vld [vmem:[%s18003_s10 + $0x270] sm:$0xff]  ;;  %v2970_v22 = vld [vmem:[%s18001_s8 + $0x58] sm:$0xff] }
 0x542   : > { %v2694_v30 = vpop.f32.mrb[172].mxu1  ;;  %3827 = vmatmul.mubr.f32.gmra.mrb[234].mxu1 %v3252_v25  ;;  %v2974_v58 = vld [vmem:[%s18001_s8 + $0x78] sm:$0xff]  ;;  %v2973_v25 = vld [vmem:[%s18001_s8 + $0x70] sm:$0xff] }
 0x543   : > { %v2695_v9 = vadd.f32 %v2694_v30, %v13543_v60  ;;  %v2696_v24 = vpop.f32.mrb[173].mxu1  ;;  %v2956_v56 = vmax.f32 %v2924_v28, 0.0  ;;  %3831 = vmatprep.mubr.f32.mxu1 %v3257_v10  ;;  %v3218_v28 = vld [vmem:[%s18003_s10 + $0x290] sm:$0xff]  ;;  %v3223_v30 = vld [vmem:[%s18003_s10 + $0x2b8] sm:$0xff]  ;;  %v3265_v10 = vld [vmem:[%s18004_s11 + $0x8] sm:$0xff] }
 0x544   : > { %v3222_v24 = vld [vmem:[%s18003_s10 + $0x2b0] sm:$0xff] }
 0x545   : > { %v10714_v51 = vpack.c.bf16 %v2956_v56, %v2955_v40  ;;  %v2925_v44 = vadd.f32 %v18280_v26, %v2695_v9  ;;  %v2972_v9 = vld [vmem:[%s18001_s8 + $0x68] sm:$0xff]  ;;  %v2971_v40 = vld [vmem:[%s18001_s8 + $0x60] sm:$0xff]  ;;  %v3227_v56 = vld [vmem:[%s18003_s10 + $0x2d8] sm:$0xff] }
 0x546   : > { %v2699_v32 = vpop.f32.mrb[174].mxu1  ;;  %3832 = vmatmul.mubr.f32.gmra.mrb[236].mxu1 %v3256_v13  ;;  %v3264_v26 = vld [vmem:[%s18004_s11] sm:$0xff]  ;;  %v3238_v13 = vld [vmem:[%s18003_s10 + $0x330] sm:$0xff] }
 0x547   : > { %v2700_v29 = vadd.f32 %v2699_v32, %v13546_v27  ;;  %10715 = vmatprep.subr.bf16.mxu0 %v10714_v51  ;;  %v2701_v60 = vpop.f32.mrb[175].mxu1  ;;  %v2957_v54 = vmax.f32 %v2925_v44, 0.0  ;;  %v3261_v27 = vld [vmem:[%s18003_s10 + $0x3e8] sm:$0xff]  ;;  %v3226_v51 = vld [vmem:[%s18003_s10 + $0x2d0] sm:$0xff]  ;;  %v3231_v32 = vld [vmem:[%s18003_s10 + $0x2f8] sm:$0xff] }
 0x548   : > { %10717 = vmatpush3.bf16.msra.mxu0 %v13699_v59  ;;  %3836 = vmatprep.mubr.f32.mxu1 %v3261_v27  ;;  %v3260_v59 = vld [vmem:[%s18003_s10 + $0x3e0] sm:$0xff]  ;;  %v3230_v44 = vld [vmem:[%s18003_s10 + $0x2f0] sm:$0xff] }
 0x549   : > { %v2926_v43 = vadd.f32 %v18281_v46, %v2700_v29  ;;  %v3235_v29 = vld [vmem:[%s18003_s10 + $0x318] sm:$0xff]  ;;  %v3234_v60 = vld [vmem:[%s18003_s10 + $0x310] sm:$0xff]  ;;  %v3268_v27 = vld [vmem:[%s18004_s11 + $0x20] sm:$0xff] }
 0x54a   : > { %3837 = vmatmul.mubr.f32.gmra.mrb[238].mxu1 %v3260_v59  ;;  %v3239_v46 = vld [vmem:[%s18003_s10 + $0x338] sm:$0xff]  ;;  %v3269_v59 = vld [vmem:[%s18004_s11 + $0x28] sm:$0xff] }
 0x54b   : > { %v2958_v19 = vmax.f32 %v2926_v43, 0.0  ;;  %3986 = vmatprep.mubr.f32.mxu1 %v3203_v0  ;;  %v3266_v43 = vld [vmem:[%s18004_s11 + $0x10] sm:$0xff] }
 0x54c   : > { %v3270_v0 = vld [vmem:[%s18004_s11 + $0x30] sm:$0xff] }
 0x54d   : > { %v10718_v8 = vpack.c.bf16 %v2958_v19, %v2957_v54  ;;  %v3267_v54 = vld [vmem:[%s18004_s11 + $0x18] sm:$0xff] }
 0x54e   : > { %3987 = vmatmul.mubr.f32.vlgmr.msra.gmra.mrb[240].mxu1 %v3202_v7  ;;  %v3243_v19 = vld [vmem:[%s18003_s10 + $0x358] sm:$0xff] }
 0x54f   : > { %10719 = vmatprep.subr.bf16.mxu0 %v10718_v8  ;;  %3991 = vmatprep.mubr.f32.mxu1 %v3207_v23  ;;  %v3242_v8 = vld [vmem:[%s18003_s10 + $0x350] sm:$0xff]  ;;  %v3271_v7 = vld [vmem:[%s18004_s11 + $0x38] sm:$0xff]  ;;  %v3272_v23 = vld [vmem:[%s18004_s11 + $0x40] sm:$0xff] }
 0x550   : > { %10721 = vmatpush3.bf16.msra.mxu0 %v13721_v42  ;;  %v2961_v42 = vld [vmem:[%s18001_s8 + $0x10] sm:$0xff] }
 0x551   : > { %10723 = vmatprep.subr.bf16.mxu0 %v18282_v55 }
 0x552   : > { %3992 = vmatmul.mubr.f32.gmra.mrb[242].mxu1 %v3206_v41  ;;  %v3273_v41 = vld [vmem:[%s18004_s11 + $0x48] sm:$0xff] }
 0x553   : > { %3088 = vmatmul.mubr.f32.vlgmr.msra.gmra.mrb[64].mxu0 %v2959_v57  ;;  %3996 = vmatprep.mubr.f32.mxu1 %v3211_v36  ;;  %v3247_v57 = vld [vmem:[%s18003_s10 + $0x378] sm:$0xff]  ;;  %v3274_v36 = vld [vmem:[%s18004_s11 + $0x50] sm:$0xff] }
 0x554   : > { %10725 = vmatpush3.bf16.msra.mxu0 %v18282_v55  ;;  %3092 = vmatprep.mubr.f32.mxu0 %v2962_v1  ;;  %v3246_v1 = vld [vmem:[%s18003_s10 + $0x370] sm:$0xff] }
 0x555   : > { %10727 = vmatprep.subr.bf16.mxu0 %v18283_v20 }
 0x556   : > { %3997 = vmatmul.mubr.f32.gmra.mrb[244].mxu1 %v3210_v3  ;;  %v3275_v3 = vld [vmem:[%s18004_s11 + $0x58] sm:$0xff] }
 0x557   : > { %3093 = vmatmul.mubr.f32.gmra.mrb[66].mxu0 %v2961_v42  ;;  %4001 = vmatprep.mubr.f32.mxu1 %v3215_v53  ;;  %v3251_v42 = vld [vmem:[%s18003_s10 + $0x398] sm:$0xff]  ;;  %v3276_v53 = vld [vmem:[%s18004_s11 + $0x60] sm:$0xff] }
 0x558   : > { %10729 = vmatpush3.bf16.msra.mxu0 %v18283_v20  ;;  %3097 = vmatprep.mubr.f32.mxu0 %v2964_v48  ;;  %v3250_v48 = vld [vmem:[%s18003_s10 + $0x390] sm:$0xff] }
 0x559   : > { %10731 = vmatprep.subr.bf16.mxu0 %v18284_v34 }
 0x55a   : > { %4002 = vmatmul.mubr.f32.gmra.mrb[246].mxu1 %v3214_v18  ;;  %v3277_v18 = vld [vmem:[%s18004_s11 + $0x68] sm:$0xff] }
 0x55b   : > { %3098 = vmatmul.mubr.f32.gmra.mrb[68].mxu0 %v2963_v31  ;;  %4006 = vmatprep.mubr.f32.mxu1 %v3219_v63  ;;  %v3255_v31 = vld [vmem:[%s18003_s10 + $0x3b8] sm:$0xff]  ;;  %v3278_v63 = vld [vmem:[%s18004_s11 + $0x70] sm:$0xff] }
 0x55c   : > { %10733 = vmatpush3.bf16.msra.mxu0 %v18284_v34  ;;  %3102 = vmatprep.mubr.f32.mxu0 %v2966_v38  ;;  %v3254_v38 = vld [vmem:[%s18003_s10 + $0x3b0] sm:$0xff] }
 0x55d   : > { %10735 = vmatprep.subr.bf16.mxu0 %v18285_v2 }
 0x55e   : > { %4007 = vmatmul.mubr.f32.gmra.mrb[248].mxu1 %v3218_v28  ;;  %v3279_v28 = vld [vmem:[%s18004_s11 + $0x78] sm:$0xff] }
 0x55f   : > { %3103 = vmatmul.mubr.f32.gmra.mrb[70].mxu0 %v2965_v21  ;;  %4011 = vmatprep.mubr.f32.mxu1 %v3223_v30  ;;  %v3259_v21 = vld [vmem:[%s18003_s10 + $0x3d8] sm:$0xff]  ;;  %v3281_v30 = vld [vmem:[%s18004_s11 + $0x88] sm:$0xff] }
 0x560   : > { %10737 = vmatpush3.bf16.msra.mxu0 %v18285_v2  ;;  %3107 = vmatprep.mubr.f32.mxu0 %v2968_v16  ;;  %v3258_v16 = vld [vmem:[%s18003_s10 + $0x3d0] sm:$0xff] }
 0x561   : > { %10786 = vmatprep.subr.bf16.mxu0 %v18222_v4 }
 0x562   : > { %4012 = vmatmul.mubr.f32.gmra.mrb[250].mxu1 %v3222_v24  ;;  %v3283_v24 = vld [vmem:[%s18004_s11 + $0x98] sm:$0xff] }
 0x563   : > { %3108 = vmatmul.mubr.f32.gmra.mrb[72].mxu0 %v2967_v49  ;;  %4016 = vmatprep.mubr.f32.mxu1 %v3227_v56  ;;  %v3263_v49 = vld [vmem:[%s18003_s10 + $0x3f8] sm:$0xff]  ;;  %v3285_v56 = vld [vmem:[%s18004_s11 + $0xa8] sm:$0xff] }
 0x564   : > { %3112 = vmatprep.mubr.f32.mxu0 %v2970_v22  ;;  %v3262_v22 = vld [vmem:[%s18003_s10 + $0x3f0] sm:$0xff] }
 0x566   : > { %4017 = vmatmul.mubr.f32.gmra.mrb[252].mxu1 %v3226_v51  ;;  %v3287_v51 = vld [vmem:[%s18004_s11 + $0xb8] sm:$0xff] }
 0x567   : > { %3113 = vmatmul.mubr.f32.gmra.mrb[74].mxu0 %v2969_v37  ;;  %4021 = vmatprep.mubr.f32.mxu1 %v3231_v32  ;;  %v3280_v37 = vld [vmem:[%s18004_s11 + $0x80] sm:$0xff]  ;;  %v3289_v32 = vld [vmem:[%s18004_s11 + $0xc8] sm:$0xff] }
 0x568   : > { %3117 = vmatprep.mubr.f32.mxu0 %v2972_v9  ;;  %v3282_v9 = vld [vmem:[%s18004_s11 + $0x90] sm:$0xff] }
 0x56a   : > { %4022 = vmatmul.mubr.f32.gmra.mrb[254].mxu1 %v3230_v44  ;;  %v3291_v44 = vld [vmem:[%s18004_s11 + $0xd8] sm:$0xff] }
 0x56b   : > { %3118 = vmatmul.mubr.f32.gmra.mrb[76].mxu0 %v2971_v40  ;;  %4026 = vmatprep.mubr.f32.mxu1 %v3235_v29  ;;  %v3284_v40 = vld [vmem:[%s18004_s11 + $0xa0] sm:$0xff] }
 0x56c   : > { %3122 = vmatprep.mubr.f32.mxu0 %v2974_v58  ;;  %v3286_v58 = vld [vmem:[%s18004_s11 + $0xb0] sm:$0xff]  ;;  %v3292_v29 = vld [vmem:[%s18004_s11 + $0xe0] sm:$0xff] }
 0x56e   : > { %4027 = vmatmul.mubr.f32.gmra.mrb[0].mxu1 %v3234_v60  ;;  %v3293_v60 = vld [vmem:[%s18004_s11 + $0xe8] sm:$0xff] }
 0x56f   : > { %3123 = vmatmul.mubr.f32.gmra.mrb[78].mxu0 %v2973_v25  ;;  %4031 = vmatprep.mubr.f32.mxu1 %v3239_v46  ;;  %v3288_v25 = vld [vmem:[%s18004_s11 + $0xc0] sm:$0xff]  ;;  %v3295_v46 = vld [vmem:[%s18004_s11 + $0xf8] sm:$0xff] }
 0x570   : > { %10002 = vmatprep.mubr.msk.f32.mxu0 %vm1931_vm0, %v3264_v26  ;;  %v3290_v26 = vld [vmem:[%s18004_s11 + $0xd0] sm:$0xff] }
 0x572   : > { %4032 = vmatmul.mubr.f32.gmra.mrb[2].mxu1 %v3238_v13  ;;  %v3138_v13 = vld [vmem:[%s18003_s10 + $0x10] sm:$0xff] }
 0x573   : > { %10003 = vmatmul.mubr.msk.f32.vlgmr.msra.gmra.mrb[80].mxu0 %vm1931_vm0, %v3265_v10  ;;  %4036 = vmatprep.mubr.f32.mxu1 %v3243_v19  ;;  %v3294_v10 = vld [vmem:[%s18004_s11 + $0xf0] sm:$0xff] }
 0x574   : > { %10788 = vmatpush1.bf16.msra.mxu0 %v18234_v50  ;;  %10005 = vmatprep.mubr.msk.f32.mxu0 %vm1931_vm0, %v3266_v43  ;;  %v3139_v43 = vld [vmem:[%s18003_s10 + $0x18] sm:$0xff]  ;;  %v3142_v19 = vld [vmem:[%s18003_s10 + $0x30] sm:$0xff] }
 0x575   : > { %10789 = vmatprep.subr.bf16.mxu0 %v18222_v4 }
 0x576   : > { %4037 = vmatmul.mubr.f32.gmra.mrb[4].mxu1 %v3242_v8  ;;  %v3146_v8 = vld [vmem:[%s18003_s10 + $0x50] sm:$0xff] }
 0x577   : > { %10006 = vmatmul.mubr.msk.f32.gmra.mrb[82].mxu0 %vm1931_vm0, %v3267_v54  ;;  %4041 = vmatprep.mubr.f32.mxu1 %v3247_v57  ;;  %v3143_v54 = vld [vmem:[%s18003_s10 + $0x38] sm:$0xff]  ;;  %v3150_v57 = vld [vmem:[%s18003_s10 + $0x70] sm:$0xff] }
 0x578   : > { %10791 = vmatpush1.bf16.msra.mxu0 %v18235_v47  ;;  %10008 = vmatprep.mubr.msk.f32.mxu0 %vm1931_vm0, %v3268_v27  ;;  %v3147_v27 = vld [vmem:[%s18003_s10 + $0x58] sm:$0xff] }
 0x579   : > { %10792 = vmatprep.subr.bf16.mxu0 %v18222_v4 }
 0x57a   : > { %4042 = vmatmul.mubr.f32.gmra.mrb[6].mxu1 %v3246_v1  ;;  %v3154_v1 = vld [vmem:[%s18003_s10 + $0x90] sm:$0xff] }
 0x57b   : > { %10009 = vmatmul.mubr.msk.f32.gmra.mrb[84].mxu0 %vm1931_vm0, %v3269_v59  ;;  %4046 = vmatprep.mubr.f32.mxu1 %v3251_v42  ;;  %v3151_v59 = vld [vmem:[%s18003_s10 + $0x78] sm:$0xff]  ;;  %v3158_v42 = vld [vmem:[%s18003_s10 + $0xb0] sm:$0xff] }
 0x57c   : > { %10794 = vmatpush1.bf16.msra.mxu0 %v18236_v52  ;;  %10011 = vmatprep.mubr.msk.f32.mxu0 %vm1931_vm0, %v3270_v0  ;;  %v3155_v0 = vld [vmem:[%s18003_s10 + $0x98] sm:$0xff] }
 0x57d   : > { %10795 = vmatprep.subr.bf16.mxu0 %v18222_v4 }
 0x57e   : > { %4047 = vmatmul.mubr.f32.gmra.mrb[8].mxu1 %v3250_v48  ;;  %v3162_v48 = vld [vmem:[%s18003_s10 + $0xd0] sm:$0xff] }
 0x57f   : > { %10012 = vmatmul.mubr.msk.f32.gmra.mrb[86].mxu0 %vm1931_vm0, %v3271_v7  ;;  %4051 = vmatprep.mubr.f32.mxu1 %v3255_v31  ;;  %v3159_v7 = vld [vmem:[%s18003_s10 + $0xb8] sm:$0xff]  ;;  %v3166_v31 = vld [vmem:[%s18003_s10 + $0xf0] sm:$0xff] }
 0x580   : > { %10797 = vmatpush1.bf16.msra.mxu0 %v18237_v12  ;;  %10014 = vmatprep.mubr.msk.f32.mxu0 %vm1931_vm0, %v3272_v23  ;;  %v3163_v23 = vld [vmem:[%s18003_s10 + $0xd8] sm:$0xff] }
 0x581   : > { %10798 = vmatprep.subr.bf16.mxu0 %v18222_v4 }
 0x582   : > { %4052 = vmatmul.mubr.f32.gmra.mrb[10].mxu1 %v3254_v38  ;;  %v4067_v38 = vld [vmem:[%s18005_s12] sm:$0xff] }
 0x583   : > { %10015 = vmatmul.mubr.msk.f32.gmra.mrb[88].mxu0 %vm1931_vm0, %v3273_v41  ;;  %4056 = vmatprep.mubr.f32.mxu1 %v3259_v21  ;;  %v3167_v41 = vld [vmem:[%s18003_s10 + $0xf8] sm:$0xff] }
 0x584   : > { %10800 = vmatpush1.bf16.msra.mxu0 %v18238_v14  ;;  %10017 = vmatprep.mubr.msk.f32.mxu0 %vm1931_vm0, %v3274_v36  ;;  %v3171_v36 = vld [vmem:[%s18003_s10 + $0x118] sm:$0xff]  ;;  %v18288_v14 = vld [vmem:[#allocation68_spill] sm:$0xff] }
 0x585   : > { %10801 = vmatprep.subr.bf16.mxu0 %v18222_v4  ;;  %v3175_v21 = vld [vmem:[%s18003_s10 + $0x138] sm:$0xff] }
 0x586   : > { %4057 = vmatmul.mubr.f32.gmra.mrb[12].mxu1 %v3258_v16  ;;  %v3179_v16 = vld [vmem:[%s18003_s10 + $0x158] sm:$0xff] }
 0x587   : > { %10018 = vmatmul.mubr.msk.f32.gmra.mrb[90].mxu0 %vm1931_vm0, %v3275_v3  ;;  %4061 = vmatprep.mubr.f32.mxu1 %v3263_v49  ;;  %v3170_v3 = vld [vmem:[%s18003_s10 + $0x110] sm:$0xff]  ;;  %v3183_v49 = vld [vmem:[%s18003_s10 + $0x178] sm:$0xff] }
 0x588   : > { %10803 = vmatpush1.bf16.msra.mxu0 %v18239_v35  ;;  %10020 = vmatprep.mubr.msk.f32.mxu0 %vm1931_vm0, %v3276_v53  ;;  %v3174_v53 = vld [vmem:[%s18003_s10 + $0x130] sm:$0xff] }
 0x589   : > { %10804 = vmatprep.subr.bf16.mxu0 %v18222_v4 }
 0x58a   : > { %4062 = vmatmul.mubr.f32.gmra.mrb[14].mxu1 %v3262_v22  ;;  %v3187_v22 = vld [vmem:[%s18003_s10 + $0x198] sm:$0xff] }
 0x58b   : > { %10021 = vmatmul.mubr.msk.f32.gmra.mrb[92].mxu0 %vm1931_vm0, %v3277_v18  ;;  %10066 = vmatprep.mubr.msk.f32.mxu1 %vm1931_vm0, %v4067_v38  ;;  %v3178_v18 = vld [vmem:[%s18003_s10 + $0x150] sm:$0xff] }
 0x58c   : > { %10806 = vmatpush1.bf16.msra.mxu0 %v18240_v39  ;;  %10023 = vmatprep.mubr.msk.f32.mxu0 %vm1931_vm0, %v3278_v63  ;;  %v3182_v63 = vld [vmem:[%s18003_s10 + $0x170] sm:$0xff] }
 0x58d   : > { %10807 = vmatprep.subr.bf16.mxu0 %v18222_v4 }
 0x58f   : > { %10024 = vmatmul.mubr.msk.f32.gmra.mrb[94].mxu0 %vm1931_vm0, %v3279_v28  ;;  %v3186_v28 = vld [vmem:[%s18003_s10 + $0x190] sm:$0xff] }
 0x590   : > { %10809 = vmatpush1.bf16.msra.mxu0 %v18241_v6  ;;  %10026 = vmatprep.mubr.msk.f32.mxu0 %vm1931_vm0, %v3280_v37  ;;  %v3191_v37 = vld [vmem:[%s18003_s10 + $0x1b8] sm:$0xff] }
 0x591   : > { %10810 = vmatprep.subr.bf16.mxu0 %v18222_v4 }
 0x593   : > { %10027 = vmatmul.mubr.msk.f32.gmra.mrb[96].mxu0 %vm1931_vm0, %v3281_v30 }
 0x594   : > { %10812 = vmatpush1.bf16.msra.mxu0 %v18242_v15  ;;  %10029 = vmatprep.mubr.msk.f32.mxu0 %vm1931_vm0, %v3282_v9 }
 0x595   : > { %10813 = vmatprep.subr.bf16.mxu0 %v18222_v4 }
 0x597   : > { %10030 = vmatmul.mubr.msk.f32.gmra.mrb[98].mxu0 %vm1931_vm0, %v3283_v24  ;;  %v3190_v24 = vld [vmem:[%s18003_s10 + $0x1b0] sm:$0xff] }
 0x598   : > { %10815 = vmatpush1.bf16.msra.mxu0 %v18243_v33  ;;  %10032 = vmatprep.mubr.msk.f32.mxu0 %vm1931_vm0, %v3284_v40  ;;  %v3195_v40 = vld [vmem:[%s18003_s10 + $0x1d8] sm:$0xff] }
 0x599   : > { %10816 = vmatprep.subr.bf16.mxu0 %v18222_v4 }
 0x59b   : > { %10033 = vmatmul.mubr.msk.f32.gmra.mrb[100].mxu0 %vm1931_vm0, %v3285_v56 }
 0x59c   : > { %10818 = vmatpush1.bf16.msra.mxu0 %v18244_v61  ;;  %10035 = vmatprep.mubr.msk.f32.mxu0 %vm1931_vm0, %v3286_v58 }
 0x59d   : > { %10819 = vmatprep.subr.bf16.mxu0 %v18222_v4 }
 0x59f   : > { %10036 = vmatmul.mubr.msk.f32.gmra.mrb[102].mxu0 %vm1931_vm0, %v3287_v51  ;;  %v14256_v30 = vpop.f32.mrb[176].mxu1  ;;  %v3194_v51 = vld [vmem:[%s18003_s10 + $0x1d0] sm:$0xff] }
 0x5a0   : > { %10821 = vmatpush1.bf16.msra.mxu0 %v18245_v62  ;;  %10038 = vmatprep.mubr.msk.f32.mxu0 %vm1931_vm0, %v3288_v25  ;;  %v3685_v9 = vpop.f32.mrb[177].mxu1  ;;  %v3199_v25 = vld [vmem:[%s18003_s10 + $0x1f8] sm:$0xff] }
 0x5a1   : > { %10822 = vmatprep.subr.bf16.mxu0 %v18222_v4 }
 0x5a3   : > { %10039 = vmatmul.mubr.msk.f32.gmra.mrb[104].mxu0 %vm1931_vm0, %v3289_v32  ;;  %v14264_v56 = vpop.f32.mrb[178].mxu1 }
 0x5a4   : > { %10824 = vmatpush1.bf16.msra.mxu0 %v18246_v11  ;;  %10041 = vmatprep.mubr.msk.f32.mxu0 %vm1931_vm0, %v3290_v26  ;;  %v3690_v58 = vpop.f32.mrb[179].mxu1 }
 0x5a5   : > { %10825 = vmatprep.subr.bf16.mxu0 %v18222_v4 }
 0x5a7   : > { %10042 = vmatmul.mubr.msk.f32.gmra.mrb[106].mxu0 %vm1931_vm0, %v3291_v44  ;;  %v14272_v32 = vpop.f32.mrb[180].mxu1 }
 0x5a8   : > { %10827 = vmatpush1.bf16.msra.mxu0 %v18247_v17  ;;  %10044 = vmatprep.mubr.msk.f32.mxu0 %vm1931_vm0, %v3292_v29  ;;  %v3695_v26 = vpop.f32.mrb[181].mxu1  ;;  %v3198_v29 = vld [vmem:[%s18003_s10 + $0x1f0] sm:$0xff] }
 0x5a9   : > { %10828 = vmatprep.subr.bf16.mxu0 %v18222_v4 }
 0x5ab   : > { %10045 = vmatmul.mubr.msk.f32.gmra.mrb[108].mxu0 %vm1931_vm0, %v3293_v60  ;;  %v14274_v44 = vpop.f32.mrb[182].mxu1 }
 0x5ac   : > { %10830 = vmatpush1.bf16.msra.mxu0 %v18248_v45  ;;  %10047 = vmatprep.mubr.msk.f32.mxu0 %vm1931_vm0, %v3294_v10  ;;  %v3700_v60 = vpop.f32.mrb[183].mxu1  ;;  %v18286_v45 = vld [vmem:[#allocation66_spill] sm:$0xff] }
 0x5ad   : > { %10831 = vmatprep.subr.bf16.mxu0 %v18222_v4 }
 0x5af   : > { %10048 = vmatmul.mubr.msk.f32.gmra.mrb[110].mxu0 %vm1931_vm0, %v3295_v46  ;;  %v14279_v10 = vpop.f32.mrb[184].mxu1 }
 0x5b0   : > { %10833 = vmatpush1.bf16.msra.mxu0 %v18249_v5  ;;  %3906 = vmatprep.mubr.f32.mxu0 %v3139_v43  ;;  %v3705_v46 = vpop.f32.mrb[185].mxu1 }
 0x5b3   : > { %3907 = vmatmul.mubr.f32.vlgmr.msra.gmra.mrb[112].mxu0 %v3138_v13  ;;  %v14281_v43 = vpop.f32.mrb[186].mxu1 }
 0x5b4   : > { %3911 = vmatprep.mubr.f32.mxu0 %v3143_v54  ;;  %v3710_v13 = vpop.f32.mrb[187].mxu1 }
 0x5b7   : > { %3912 = vmatmul.mubr.f32.gmra.mrb[114].mxu0 %v3142_v19  ;;  %v14283_v54 = vpop.f32.mrb[188].mxu1 }
 0x5b8   : > { %3916 = vmatprep.mubr.f32.mxu0 %v3147_v27  ;;  %v3715_v19 = vpop.f32.mrb[189].mxu1 }
 0x5bb   : > { %3917 = vmatmul.mubr.f32.gmra.mrb[116].mxu0 %v3146_v8  ;;  %v14285_v27 = vpop.f32.mrb[190].mxu1 }
 0x5bc   : > { %3921 = vmatprep.mubr.f32.mxu0 %v3151_v59  ;;  %v3720_v8 = vpop.f32.mrb[191].mxu1 }
 0x5bf   : > { %3922 = vmatmul.mubr.f32.gmra.mrb[118].mxu0 %v3150_v57  ;;  %v14287_v59 = vpop.f32.mrb[192].mxu1 }
 0x5c0   : > { %3926 = vmatprep.mubr.f32.mxu0 %v3155_v0  ;;  %v3725_v57 = vpop.f32.mrb[193].mxu1 }
 0x5c3   : > { %3927 = vmatmul.mubr.f32.gmra.mrb[120].mxu0 %v3154_v1  ;;  %v14289_v0 = vpop.f32.mrb[194].mxu1 }
 0x5c4   : > { %3931 = vmatprep.mubr.f32.mxu0 %v3159_v7  ;;  %v3730_v1 = vpop.f32.mrb[195].mxu1 }
 0x5c7   : > { %3932 = vmatmul.mubr.f32.gmra.mrb[122].mxu0 %v3158_v42  ;;  %v14291_v7 = vpop.f32.mrb[196].mxu1 }
 0x5c8   : > { %3936 = vmatprep.mubr.f32.mxu0 %v3163_v23  ;;  %v3735_v42 = vpop.f32.mrb[197].mxu1 }
 0x5cb   : > { %3937 = vmatmul.mubr.f32.gmra.mrb[124].mxu0 %v3162_v48  ;;  %v14293_v23 = vpop.f32.mrb[198].mxu1 }
 0x5cc   : > { %3941 = vmatprep.mubr.f32.mxu0 %v3167_v41  ;;  %v3740_v48 = vpop.f32.mrb[199].mxu1 }
 0x5cf   : > { %3942 = vmatmul.mubr.f32.gmra.mrb[126].mxu0 %v3166_v31  ;;  %v14295_v41 = vpop.f32.mrb[200].mxu1 }
 0x5d0   : > { %3946 = vmatprep.mubr.f32.mxu0 %v3171_v36  ;;  %v3745_v31 = vpop.f32.mrb[201].mxu1 }
 0x5d3   : > { %3947 = vmatmul.mubr.f32.gmra.mrb[128].mxu0 %v3170_v3  ;;  %v14297_v36 = vpop.f32.mrb[202].mxu1 }
 0x5d4   : > { %3951 = vmatprep.mubr.f32.mxu0 %v3175_v21  ;;  %v3750_v38 = vpop.f32.mrb[203].mxu1 }
 0x5d7   : > { %3952 = vmatmul.mubr.f32.gmra.mrb[130].mxu0 %v3174_v53  ;;  %v14299_v3 = vpop.f32.mrb[204].mxu1 }
 0x5d8   : > { %3956 = vmatprep.mubr.f32.mxu0 %v3179_v16  ;;  %v3755_v21 = vpop.f32.mrb[205].mxu1 }
 0x5db   : > { %3957 = vmatmul.mubr.f32.gmra.mrb[132].mxu0 %v3178_v18  ;;  %v14301_v53 = vpop.f32.mrb[206].mxu1 }
 0x5dc   : > { %3961 = vmatprep.mubr.f32.mxu0 %v3183_v49  ;;  %v3760_v16 = vpop.f32.mrb[207].mxu1 }
 0x5df   : > { %3962 = vmatmul.mubr.f32.gmra.mrb[134].mxu0 %v3182_v63  ;;  %v14303_v18 = vpop.f32.mrb[208].mxu1 }
 0x5e0   : > { %3966 = vmatprep.mubr.f32.mxu0 %v3187_v22  ;;  %v3765_v49 = vpop.f32.mrb[209].mxu1 }
 0x5e3   : > { %3967 = vmatmul.mubr.f32.gmra.mrb[136].mxu0 %v3186_v28  ;;  %v14305_v63 = vpop.f32.mrb[210].mxu1 }
 0x5e4   : > { %3971 = vmatprep.mubr.f32.mxu0 %v3191_v37  ;;  %v3770_v22 = vpop.f32.mrb[211].mxu1 }
 0x5e7   : > { %3972 = vmatmul.mubr.f32.gmra.mrb[138].mxu0 %v3190_v24  ;;  %v14307_v28 = vpop.f32.mrb[212].mxu1 }
 0x5e8   : > { %3976 = vmatprep.mubr.f32.mxu0 %v3195_v40  ;;  %v3775_v37 = vpop.f32.mrb[213].mxu1 }
 0x5eb   : > { %3977 = vmatmul.mubr.f32.gmra.mrb[140].mxu0 %v3194_v51 }
 0x5ec   : > { %3981 = vmatprep.mubr.f32.mxu0 %v3199_v25 }
 0x5ed   : > { %v14309_v9 = vpop.f32.mrb[214].mxu1 }
 0x5ee   : > { %v3780_v24 = vpop.f32.mrb[215].mxu1 }
 0x5ef   : > { %3982 = vmatmul.mubr.f32.gmra.mrb[142].mxu0 %v3198_v29 }
 0x5f1   : > { %v14311_v40 = vpop.f32.mrb[216].mxu1 }
 0x5f2   : > { %v3785_v58 = vpop.f32.mrb[217].mxu1 }
 0x5f5   : > { %v14313_v51 = vpop.f32.mrb[218].mxu1 }
 0x5f6   : > { %v3790_v25 = vpop.f32.mrb[219].mxu1 }
 0x5f9   : > { %v14315_v26 = vpop.f32.mrb[220].mxu1 }
 0x5fa   : > { %v3795_v29 = vpop.f32.mrb[221].mxu1 }
 0x5fd   : > { %v14317_v60 = vpop.f32.mrb[222].mxu1 }
 0x5fe   : > { %v3800_v46 = vpop.f32.mrb[223].mxu1 }
 0x601   : > { %v14319_v13 = vpop.f32.mrb[224].mxu1 }
 0x602   : > { %v3805_v19 = vpop.f32.mrb[225].mxu1 }
 0x605   : > { %v14321_v8 = vpop.f32.mrb[226].mxu1 }
 0x606   : > { %v3810_v57 = vpop.f32.mrb[227].mxu1 }
 0x609   : > { %v14323_v1 = vpop.f32.mrb[228].mxu1 }
 0x60a   : > { %v3815_v42 = vpop.f32.mrb[229].mxu1 }
 0x60d   : > { %v14325_v48 = vpop.f32.mrb[230].mxu1 }
 0x60e   : > { %v3820_v31 = vpop.f32.mrb[231].mxu1 }
 0x611   : > { %v14327_v38 = vpop.f32.mrb[232].mxu1 }
 0x612   : > { %v3825_v21 = vpop.f32.mrb[233].mxu1 }
 0x615   : > { %v14329_v16 = vpop.f32.mrb[234].mxu1 }
 0x616   : > { %v3830_v49 = vpop.f32.mrb[235].mxu1 }
 0x619   : > { %v14331_v22 = vpop.f32.mrb[236].mxu1 }
 0x61a   : > { %v3835_v37 = vpop.f32.mrb[237].mxu1 }
 0x61b   : > { %v18287_v37 = vld [vmem:[#allocation67_spill] sm:$0xff] }
 0x61d   : > { %v14333_v24 = vpop.f32.mrb[238].mxu1 }
 0x61e   : > { %v3840_v58 = vpop.f32.mrb[239].mxu1 }
 0x621   : > { %v14335_v25 = vpop.f32.mrb[240].mxu1 }
 0x622   : > { %v3990_v46 = vpop.f32.mrb[241].mxu1 }
 0x625   : > { %v14337_v42 = vpop.f32.mrb[242].mxu1 }
 0x626   : > { %v9546_v29 = vpop.f32.mrb[64].mxu0  ;;  %v3995_v5 = vpop.f32.mrb[243].mxu1 }
 0x627   : > { %v9547_v19 = vpop.f32.mrb[65].mxu0 }
 0x628   : > { %v9548_v57 = vadd.f32 %v9547_v19, %v9546_v29 }
 0x629   : > { %v14340_v11 = vpop.f32.mrb[244].mxu1 }
 0x62a   : > { %v9549_v31 = vpop.f32.mrb[66].mxu0  ;;  %v3090_v17 = vadd.f32 %v9548_v57, %v18286_v45  ;;  %v4000_v58 = vpop.f32.mrb[245].mxu1 }
 0x62b   : > { %v9550_v21 = vpop.f32.mrb[67].mxu0 }
 0x62c   : > { %v9551_v49 = vadd.f32 %v9550_v21, %v9549_v31  ;;  %v3128_v15 = vmax.f32 %v3090_v17, 0.0  ;;  %v18289_v21 = vld [vmem:[#allocation69_spill] sm:$0xff] }
 0x62d   : > { %v14343_v39 = vpop.f32.mrb[246].mxu1 }
 0x62e   : > { %v3095_v62 = vadd.f32 %v9551_v49, %v18287_v37  ;;  %v9552_v61 = vpop.f32.mrb[68].mxu0  ;;  %v4005_v5 = vpop.f32.mrb[247].mxu1 }
 0x62f   : > { %v9553_v33 = vpop.f32.mrb[69].mxu0 }
 0x630   : > { %v3129_v6 = vmax.f32 %v3095_v62, 0.0  ;;  %v9554_v46 = vadd.f32 %v9553_v33, %v9552_v61 }
 0x631   : > { %v14350_v31 = vpop.f32.mrb[248].mxu1 }
 0x632   : > { %v9555_v29 = vpop.f32.mrb[70].mxu0  ;;  %v14345_v19 = vpack.c.bf16 %v3129_v6, %v3128_v15  ;;  %v3100_v45 = vadd.f32 %v9554_v46, %v18288_v14  ;;  %v4010_v33 = vpop.f32.mrb[249].mxu1  ;;  %v18290_v46 = vld [vmem:[#allocation70_spill] sm:$0xff] }
 0x633   : > { %v9556_v35 = vpop.f32.mrb[71].mxu0 }
 0x634   : > { %v9557_v57 = vadd.f32 %v9556_v35, %v9555_v29  ;;  %10835 = vmatprep.subr.bf16.mxu1 %v14345_v19  ;;  %v3130_v49 = vmax.f32 %v3100_v45, 0.0 }
 0x635   : > { %10837 = vmatpush3.bf16.msra.mxu1 %v14345_v19  ;;  %v14353_v15 = vpop.f32.mrb[250].mxu1 }
 0x636   : > { %v3105_v17 = vadd.f32 %v9557_v57, %v18289_v21  ;;  %v9558_v62 = vpop.f32.mrb[72].mxu0  ;;  %v4015_v14 = vpop.f32.mrb[251].mxu1  ;;  %v18291_v21 = vld [vmem:[#allocation71_spill] sm:$0xff] }
 0x637   : > { %v9559_v61 = vpop.f32.mrb[73].mxu0 }
 0x638   : > { %v3131_v37 = vmax.f32 %v3105_v17, 0.0  ;;  %v9560_v6 = vadd.f32 %v9559_v61, %v9558_v62 }
 0x639   : > { %v14360_v57 = vpop.f32.mrb[252].mxu1 }
 0x63a   : > { %v9561_v58 = vpop.f32.mrb[74].mxu0  ;;  %v14355_v5 = vpack.c.bf16 %v3131_v37, %v3130_v49  ;;  %v3110_v29 = vadd.f32 %v9560_v6, %v18290_v46  ;;  %v4020_v62 = vpop.f32.mrb[253].mxu1 }
 0x63b   : > { %v9562_v35 = vpop.f32.mrb[75].mxu0 }
 0x63c   : > { %v9563_v12 = vadd.f32 %v9562_v35, %v9561_v58  ;;  %10839 = vmatprep.subr.bf16.mxu1 %v14355_v5  ;;  %v3132_v61 = vmax.f32 %v3110_v29, 0.0  ;;  %v18292_v35 = vld [vmem:[#allocation72_spill] sm:$0xff] }
 0x63d   : > { %10841 = vmatpush3.bf16.msra.mxu1 %v14355_v5  ;;  %v14363_v37 = vpop.f32.mrb[254].mxu1 }
 0x63e   : > { %v3115_v45 = vadd.f32 %v9563_v12, %v18291_v21  ;;  %v9564_v17 = vpop.f32.mrb[76].mxu0  ;;  %v4025_v6 = vpop.f32.mrb[255].mxu1  ;;  %v18293_v21 = vld [vmem:[#allocation73_spill] sm:$0xff] }
 0x63f   : > { %v9565_v33 = vpop.f32.mrb[77].mxu0 }
 0x640   : > { %v3133_v52 = vmax.f32 %v3115_v45, 0.0  ;;  %v9566_v49 = vadd.f32 %v9565_v33, %v9564_v17 }
 0x641   : > { %v14370_v12 = vpop.f32.mrb[0].mxu1 }
 0x642   : > { %v9567_v14 = vpop.f32.mrb[78].mxu0  ;;  %v14365_v47 = vpack.c.bf16 %v3133_v52, %v3132_v61  ;;  %v3120_v46 = vadd.f32 %v9566_v49, %v18292_v35  ;;  %v4030_v17 = vpop.f32.mrb[1].mxu1 }
 0x643   : > { %v9568_v58 = vpop.f32.mrb[79].mxu0  ;;  %v18294_v17 = vld [vmem:[#allocation2_spill] sm:$0xff] }
 0x644   : > { %v9569_v50 = vadd.f32 %v9568_v58, %v9567_v14  ;;  %10843 = vmatprep.subr.bf16.mxu1 %v14365_v47  ;;  %v3134_v52 = vmax.f32 %v3120_v46, 0.0 }
 0x645   : > { %10845 = vmatpush3.bf16.msra.mxu1 %v14365_v47  ;;  %v14379_v49 = vpop.f32.mrb[2].mxu1 }
 0x646   : > { %v3125_v29 = vadd.f32 %v9569_v50, %v18293_v21  ;;  %v10004_v45 = vpop.f32.mrb[80].mxu0  ;;  %v4035_v35 = vpop.f32.mrb[3].mxu1 }
 0x647   : > { %v3458_v62 = vpop.f32.mrb[81].mxu0  ;;  %v14374_v33 = vadd.f32 %v10004_v45, %v14264_v56 }
 0x648   : > { %v3135_v61 = vmax.f32 %v3125_v29, 0.0  ;;  %v14377_v6 = vadd.f32 %v14256_v30, %v3458_v62  ;;  %v4068_v30 = vld [vmem:[%s18005_s12 + $0x8] sm:$0xff]  ;;  %v4070_v62 = vld [vmem:[%s18005_s12 + $0x18] sm:$0xff] }
 0x649   : > { %v14394_v46 = vpop.f32.mrb[4].mxu1 }
 0x64a   : > { %v14381_v14 = vpack.c.bf16 %v3135_v61, %v3134_v52  ;;  %v10007_v58 = vpop.f32.mrb[82].mxu0  ;;  %v4040_v29 = vpop.f32.mrb[5].mxu1 }
 0x64b   : > { %v3468_v2 = vpop.f32.mrb[83].mxu0  ;;  %v14384_v50 = vadd.f32 %v10007_v58, %v14274_v44  ;;  %v4069_v44 = vld [vmem:[%s18005_s12 + $0x10] sm:$0xff] }
 0x64c   : > { %10847 = vmatprep.subr.bf16.mxu1 %v14381_v14  ;;  %v14388_v56 = vadd.f32 %v14272_v32, %v3468_v2 }
 0x64d   : > { %10849 = vmatpush3.bf16.msra.mxu1 %v14381_v14  ;;  %v14412_v52 = vpop.f32.mrb[6].mxu1 }
 0x64e   : > { %10898 = vmatprep.subr.bf16.mxu1 %v18222_v4  ;;  %v10010_v21 = vpop.f32.mrb[84].mxu0  ;;  %v4045_v58 = vpop.f32.mrb[7].mxu1 }
 0x64f   : > { %v3478_v45 = vpop.f32.mrb[85].mxu0  ;;  %v14401_v2 = vadd.f32 %v10010_v21, %v14281_v43  ;;  %v4071_v43 = vld [vmem:[%s18005_s12 + $0x20] sm:$0xff]  ;;  %v4072_v21 = vld [vmem:[%s18005_s12 + $0x28] sm:$0xff]  ;;  %v4074_v58 = vld [vmem:[%s18005_s12 + $0x38] sm:$0xff] }
 0x650   : > { %10067 = vmatmul.mubr.msk.f32.vlgmr.msra.gmra.mrb[16].mxu1 %vm1931_vm0, %v4068_v30  ;;  %v14405_v32 = vadd.f32 %v14279_v10, %v3478_v45 }
 0x651   : > { %10900 = vmatpush1.bf16.msra.mxu1 %v18294_v17  ;;  %10069 = vmatprep.mubr.msk.f32.mxu1 %vm1931_vm0, %v4069_v44  ;;  %v18295_v44 = vld [vmem:[#allocation3_spill] sm:$0xff]  ;;  %v14430_v29 = vpop.f32.mrb[8].mxu1 }
 0x652   : > { %10901 = vmatprep.subr.bf16.mxu1 %v18222_v4  ;;  %v10013_v61 = vpop.f32.mrb[86].mxu0  ;;  %v4050_v17 = vpop.f32.mrb[9].mxu1 }
 0x653   : > { %v3488_v10 = vpop.f32.mrb[87].mxu0  ;;  %v14419_v35 = vadd.f32 %v10013_v61, %v14285_v27  ;;  %v4073_v27 = vld [vmem:[%s18005_s12 + $0x30] sm:$0xff]  ;;  %v18297_v17 = vld [vmem:[#allocation5_spill] sm:$0xff] }
 0x654   : > { %10070 = vmatmul.mubr.msk.f32.gmra.mrb[18].mxu1 %vm1931_vm0, %v4070_v62  ;;  %v14423_v30 = vadd.f32 %v14283_v54, %v3488_v10  ;;  %v18296_v61 = vld [vmem:[#allocation4_spill] sm:$0xff] }
 0x655   : > { %10903 = vmatpush1.bf16.msra.mxu1 %v18295_v44  ;;  %10072 = vmatprep.mubr.msk.f32.mxu1 %vm1931_vm0, %v4071_v43  ;;  %v14448_v10 = vpop.f32.mrb[10].mxu1 }
 0x656   : > { %10904 = vmatprep.subr.bf16.mxu1 %v18222_v4  ;;  %v10016_v45 = vpop.f32.mrb[88].mxu0 }
 0x657   : > { %v3498_v54 = vpop.f32.mrb[89].mxu0  ;;  %v14437_v62 = vadd.f32 %v10016_v45, %v14289_v0  ;;  %v4075_v0 = vld [vmem:[%s18005_s12 + $0x40] sm:$0xff] }
 0x658   : > { %10073 = vmatmul.mubr.msk.f32.gmra.mrb[20].mxu1 %vm1931_vm0, %v4072_v21  ;;  %v14441_v43 = vadd.f32 %v14287_v59, %v3498_v54  ;;  %v4055_v21 = vpop.f32.mrb[11].mxu1  ;;  %v4076_v54 = vld [vmem:[%s18005_s12 + $0x48] sm:$0xff] }
 0x659   : > { %10906 = vmatpush1.bf16.msra.mxu1 %v18296_v61  ;;  %10075 = vmatprep.mubr.msk.f32.mxu1 %vm1931_vm0, %v4073_v27  ;;  %v14466_v61 = vpop.f32.mrb[12].mxu1 }
 0x65a   : > { %10907 = vmatprep.subr.bf16.mxu1 %v18222_v4  ;;  %v10019_v44 = vpop.f32.mrb[90].mxu0 }
 0x65b   : > { %v3508_v59 = vpop.f32.mrb[91].mxu0  ;;  %v14455_v45 = vadd.f32 %v10019_v44, %v14293_v23  ;;  %v4077_v23 = vld [vmem:[%s18005_s12 + $0x50] sm:$0xff]  ;;  %v4060_v44 = vpop.f32.mrb[13].mxu1 }
 0x65c   : > { %10076 = vmatmul.mubr.msk.f32.gmra.mrb[22].mxu1 %vm1931_vm0, %v4074_v58  ;;  %v14459_v27 = vadd.f32 %v14291_v7, %v3508_v59  ;;  %v18298_v59 = vld [vmem:[#allocation6_spill] sm:$0xff] }
 0x65d   : > { %10909 = vmatpush1.bf16.msra.mxu1 %v18297_v17  ;;  %10078 = vmatprep.mubr.msk.f32.mxu1 %vm1931_vm0, %v4075_v0  ;;  %v4078_v17 = vld [vmem:[%s18005_s12 + $0x58] sm:$0xff]  ;;  %v14484_v34 = vpop.f32.mrb[14].mxu1 }
 0x65e   : > { %10910 = vmatprep.subr.bf16.mxu1 %v18222_v4  ;;  %v10022_v58 = vpop.f32.mrb[92].mxu0 }
 0x65f   : > { %v3518_v7 = vpop.f32.mrb[93].mxu0  ;;  %v14473_v21 = vadd.f32 %v10022_v58, %v14297_v36  ;;  %v4079_v36 = vld [vmem:[%s18005_s12 + $0x60] sm:$0xff]  ;;  %v4065_v58 = vpop.f32.mrb[15].mxu1 }
 0x660   : > { %10079 = vmatmul.mubr.msk.f32.gmra.mrb[24].mxu1 %vm1931_vm0, %v4076_v54  ;;  %v14477_v0 = vadd.f32 %v14295_v41, %v3518_v7  ;;  %v18299_v7 = vld [vmem:[#allocation7_spill] sm:$0xff] }
 0x661   : > { %10912 = vmatpush1.bf16.msra.mxu1 %v18298_v59  ;;  %10081 = vmatprep.mubr.msk.f32.mxu1 %vm1931_vm0, %v4077_v23  ;;  %v4080_v59 = vld [vmem:[%s18005_s12 + $0x68] sm:$0xff] }
 0x662   : > { %10913 = vmatprep.subr.bf16.mxu1 %v18222_v4  ;;  %v10025_v54 = vpop.f32.mrb[94].mxu0 }
 0x663   : > { %v3528_v41 = vpop.f32.mrb[95].mxu0  ;;  %v14491_v44 = vadd.f32 %v10025_v54, %v14301_v53  ;;  %v4081_v53 = vld [vmem:[%s18005_s12 + $0x70] sm:$0xff] }
 0x664   : > { %10082 = vmatmul.mubr.msk.f32.gmra.mrb[26].mxu1 %vm1931_vm0, %v4078_v17  ;;  %v14495_v23 = vadd.f32 %v14299_v3, %v3528_v41  ;;  %v18300_v41 = vld [vmem:[#allocation8_spill] sm:$0xff] }
 0x665   : > { %10915 = vmatpush1.bf16.msra.mxu1 %v18299_v7  ;;  %10084 = vmatprep.mubr.msk.f32.mxu1 %vm1931_vm0, %v4079_v36  ;;  %v4082_v36 = vld [vmem:[%s18005_s12 + $0x78] sm:$0xff] }
 0x666   : > { %10916 = vmatprep.subr.bf16.mxu1 %v18222_v4  ;;  %v10028_v54 = vpop.f32.mrb[96].mxu0 }
 0x667   : > { %v3538_v58 = vpop.f32.mrb[97].mxu0  ;;  %v3769_v17 = vadd.f32 %v10028_v54, %v14305_v63  ;;  %v4083_v63 = vld [vmem:[%s18005_s12 + $0x80] sm:$0xff] }
 0x668   : > { %10085 = vmatmul.mubr.msk.f32.gmra.mrb[28].mxu1 %vm1931_vm0, %v4080_v59  ;;  %v3764_v3 = vadd.f32 %v14303_v18, %v3538_v58 }
 0x669   : > { %10918 = vmatpush1.bf16.msra.mxu1 %v18300_v41  ;;  %10087 = vmatprep.mubr.msk.f32.mxu1 %vm1931_vm0, %v4081_v53  ;;  %v14515_v7 = vadd.f32 %v14337_v42, %v3769_v17  ;;  %v18301_v41 = vld [vmem:[#allocation9_spill] sm:$0xff]  ;;  %v4084_v42 = vld [vmem:[%s18005_s12 + $0x88] sm:$0xff] }
 0x66a   : > { %10919 = vmatprep.subr.bf16.mxu1 %v18222_v4  ;;  %v10031_v59 = vpop.f32.mrb[98].mxu0  ;;  %v14522_v18 = vadd.f32 %v14335_v25, %v3764_v3 }
 0x66b   : > { %v3548_v54 = vpop.f32.mrb[99].mxu0  ;;  %v3779_v53 = vadd.f32 %v10031_v59, %v14309_v9  ;;  %v4085_v9 = vld [vmem:[%s18005_s12 + $0x90] sm:$0xff]  ;;  %v18302_v59 = vld [vmem:[#allocation10_spill] sm:$0xff] }
 0x66c   : > { %10088 = vmatmul.mubr.msk.f32.gmra.mrb[30].mxu1 %vm1931_vm0, %v4082_v36  ;;  %v3774_v58 = vadd.f32 %v14307_v28, %v3548_v54 }
 0x66d   : > { %10921 = vmatpush1.bf16.msra.mxu1 %v18301_v41  ;;  %10090 = vmatprep.mubr.msk.f32.mxu1 %vm1931_vm0, %v4083_v63  ;;  %v14533_v17 = vadd.f32 %v14343_v39, %v3779_v53  ;;  %v4086_v39 = vld [vmem:[%s18005_s12 + $0x98] sm:$0xff] }
 0x66e   : > { %10922 = vmatprep.subr.bf16.mxu1 %v18222_v4  ;;  %v10034_v25 = vpop.f32.mrb[100].mxu0  ;;  %v14540_v28 = vadd.f32 %v14340_v11, %v3774_v58  ;;  %v4087_v11 = vld [vmem:[%s18005_s12 + $0xa0] sm:$0xff] }
 0x66f   : > { %v3558_v3 = vpop.f32.mrb[101].mxu0  ;;  %v3789_v36 = vadd.f32 %v10034_v25, %v14313_v51 }
 0x670   : > { %10091 = vmatmul.mubr.msk.f32.gmra.mrb[32].mxu1 %vm1931_vm0, %v4084_v42  ;;  %v3784_v63 = vadd.f32 %v14311_v40, %v3558_v3  ;;  %v18303_v42 = vld [vmem:[#allocation11_spill] sm:$0xff] }
 0x671   : > { %10924 = vmatpush1.bf16.msra.mxu1 %v18302_v59  ;;  %10093 = vmatprep.mubr.msk.f32.mxu1 %vm1931_vm0, %v4085_v9  ;;  %v14551_v54 = vadd.f32 %v14353_v15, %v3789_v36  ;;  %v4088_v15 = vld [vmem:[%s18005_s12 + $0xa8] sm:$0xff] }
 0x672   : > { %10925 = vmatprep.subr.bf16.mxu1 %v18222_v4  ;;  %v10037_v51 = vpop.f32.mrb[102].mxu0  ;;  %v14558_v40 = vadd.f32 %v14350_v31, %v3784_v63  ;;  %v18304_v63 = vld [vmem:[#allocation12_spill] sm:$0xff] }
 0x673   : > { %v3568_v53 = vpop.f32.mrb[103].mxu0  ;;  %v3799_v58 = vadd.f32 %v10037_v51, %v14317_v60  ;;  %v4089_v60 = vld [vmem:[%s18005_s12 + $0xb0] sm:$0xff] }
 0x674   : > { %10094 = vmatmul.mubr.msk.f32.gmra.mrb[34].mxu1 %vm1931_vm0, %v4086_v39  ;;  %v3794_v41 = vadd.f32 %v14315_v26, %v3568_v53  ;;  %v18305_v53 = vld [vmem:[#allocation13_spill] sm:$0xff] }
 0x675   : > { %10927 = vmatpush1.bf16.msra.mxu1 %v18303_v42  ;;  %10096 = vmatprep.mubr.msk.f32.mxu1 %vm1931_vm0, %v4087_v11  ;;  %v14569_v9 = vadd.f32 %v14363_v37, %v3799_v58  ;;  %v4090_v37 = vld [vmem:[%s18005_s12 + $0xb8] sm:$0xff] }
 0x676   : > { %10928 = vmatprep.subr.bf16.mxu1 %v18222_v4  ;;  %v10040_v31 = vpop.f32.mrb[104].mxu0  ;;  %v14576_v26 = vadd.f32 %v14360_v57, %v3794_v41 }
 0x677   : > { %v3578_v25 = vpop.f32.mrb[105].mxu0  ;;  %v3809_v3 = vadd.f32 %v10040_v31, %v14321_v8  ;;  %v4091_v8 = vld [vmem:[%s18005_s12 + $0xc0] sm:$0xff] }
 0x678   : > { %10097 = vmatmul.mubr.msk.f32.gmra.mrb[36].mxu1 %vm1931_vm0, %v4088_v15  ;;  %v3804_v36 = vadd.f32 %v14319_v13, %v3578_v25 }
 0x679   : > { %10930 = vmatpush1.bf16.msra.mxu1 %v18304_v63  ;;  %10099 = vmatprep.mubr.msk.f32.mxu1 %vm1931_vm0, %v4089_v60  ;;  %v14587_v59 = vadd.f32 %v14379_v49, %v3809_v3  ;;  %v4092_v49 = vld [vmem:[%s18005_s12 + $0xc8] sm:$0xff]  ;;  %v18306_v60 = vld [vmem:[#allocation14_spill] sm:$0xff] }
 0x67a   : > { %10931 = vmatprep.subr.bf16.mxu1 %v18222_v4  ;;  %v10043_v57 = vpop.f32.mrb[106].mxu0  ;;  %v14594_v13 = vadd.f32 %v14370_v12, %v3804_v36  ;;  %v18307_v63 = vld [vmem:[#allocation15_spill] sm:$0xff] }
 0x67b   : > { %v3588_v39 = vpop.f32.mrb[107].mxu0  ;;  %v3819_v11 = vadd.f32 %v10043_v57, %v14325_v48  ;;  %v4093_v48 = vld [vmem:[%s18005_s12 + $0xd0] sm:$0xff] }
 0x67c   : > { %10100 = vmatmul.mubr.msk.f32.gmra.mrb[38].mxu1 %vm1931_vm0, %v4090_v37  ;;  %v3814_v51 = vadd.f32 %v14323_v1, %v3588_v39  ;;  %v18308_v39 = vld [vmem:[#allocation16_spill] sm:$0xff] }
 0x67d   : > { %10933 = vmatpush1.bf16.msra.mxu1 %v18305_v53  ;;  %10102 = vmatprep.mubr.msk.f32.mxu1 %vm1931_vm0, %v4091_v8  ;;  %v14605_v58 = vadd.f32 %v14412_v52, %v3819_v11  ;;  %v4094_v52 = vld [vmem:[%s18005_s12 + $0xd8] sm:$0xff] }
 0x67e   : > { %10934 = vmatprep.subr.bf16.mxu1 %v18222_v4  ;;  %v10046_v12 = vpop.f32.mrb[108].mxu0  ;;  %v14612_v1 = vadd.f32 %v14394_v46, %v3814_v51  ;;  %v18309_v53 = vld [vmem:[#allocation17_spill] sm:$0xff] }
 0x67f   : > { %v3598_v41 = vpop.f32.mrb[109].mxu0  ;;  %v3829_v42 = vadd.f32 %v10046_v12, %v14329_v16  ;;  %v4095_v16 = vld [vmem:[%s18005_s12 + $0xe0] sm:$0xff] }
 0x680   : > { %10103 = vmatmul.mubr.msk.f32.gmra.mrb[40].mxu1 %vm1931_vm0, %v4092_v49  ;;  %v3824_v15 = vadd.f32 %v14327_v38, %v3598_v41  ;;  %v4885_v49 = vld [vmem:[%s18009_s16] sm:$0xff] }
 0x681   : > { %10936 = vmatpush1.bf16.msra.mxu1 %v18306_v60  ;;  %10105 = vmatprep.mubr.msk.f32.mxu1 %vm1931_vm0, %v4093_v48  ;;  %v14623_v31 = vadd.f32 %v14448_v10, %v3829_v42  ;;  %v4096_v10 = vld [vmem:[%s18005_s12 + $0xe8] sm:$0xff]  ;;  %v4889_v42 = vld [vmem:[%s18009_s16 + $0x20] sm:$0xff] }
 0x682   : > { %v10049_v46 = vpop.f32.mrb[110].mxu0  ;;  %10937 = vmatprep.subr.bf16.mxu1 %v18222_v4  ;;  %v14630_v38 = vadd.f32 %v14430_v29, %v3824_v15  ;;  %v4890_v48 = vld [vmem:[%s18009_s16 + $0x28] sm:$0xff] }
 0x683   : > { %v3608_v25 = vpop.f32.mrb[111].mxu0  ;;  %v3839_v3 = vadd.f32 %v10049_v46, %v14333_v24  ;;  %v4097_v24 = vld [vmem:[%s18005_s12 + $0xf0] sm:$0xff]  ;;  %v4894_v60 = vld [vmem:[%s18009_s16 + $0x48] sm:$0xff] }
 0x684   : > { %10106 = vmatmul.mubr.msk.f32.gmra.mrb[42].mxu1 %vm1931_vm0, %v4094_v52  ;;  %v3834_v36 = vadd.f32 %v14331_v22, %v3608_v25 }
 0x685   : > { %10939 = vmatpush1.bf16.msra.mxu1 %v18307_v63  ;;  %10108 = vmatprep.mubr.msk.f32.mxu1 %vm1931_vm0, %v4095_v16  ;;  %v14641_v37 = vadd.f32 %v14484_v34, %v3839_v3  ;;  %v4098_v34 = vld [vmem:[%s18005_s12 + $0xf8] sm:$0xff]  ;;  %v4898_v16 = vld [vmem:[%s18009_s16 + $0x68] sm:$0xff] }
 0x686   : > { %v3908_v29 = vpop.f32.mrb[112].mxu0  ;;  %10940 = vmatprep.subr.bf16.mxu1 %v18222_v4  ;;  %v14648_v22 = vadd.f32 %v14466_v61, %v3834_v36  ;;  %v4886_v61 = vld [vmem:[%s18009_s16 + $0x8] sm:$0xff] }
 0x687   : > { %v3910_v8 = vpop.f32.mrb[113].mxu0  ;;  %v14651_v57 = vadd.f32 %v3908_v29, %v14377_v6  ;;  %v4902_v36 = vld [vmem:[%s18009_s16 + $0x88] sm:$0xff] }
 0x688   : > { %10109 = vmatmul.mubr.msk.f32.gmra.mrb[44].mxu1 %vm1931_vm0, %v4096_v10  ;;  %v4906_v29 = vld [vmem:[%s18009_s16 + $0xa8] sm:$0xff] }
 0x689   : > { %10942 = vmatpush1.bf16.msra.mxu1 %v18308_v39  ;;  %10111 = vmatprep.mubr.msk.f32.mxu1 %vm1931_vm0, %v4097_v24 }
 0x68a   : > { %v3913_v11 = vpop.f32.mrb[114].mxu0  ;;  %10943 = vmatprep.subr.bf16.mxu1 %v18222_v4 }
 0x68b   : > { %v3915_v51 = vpop.f32.mrb[115].mxu0  ;;  %v14664_v6 = vadd.f32 %v3913_v11, %v14374_v33 }
 0x68c   : > { %10112 = vmatmul.mubr.msk.f32.gmra.mrb[46].mxu1 %vm1931_vm0, %v4098_v34  ;;  %v4910_v34 = vld [vmem:[%s18009_s16 + $0xc8] sm:$0xff] }
 0x68d   : > { %10945 = vmatpush1.bf16.msra.mxu1 %v18309_v53  ;;  %5846 = vmatprep.mubr.f32.mxu1 %v4886_v61  ;;  %v4914_v53 = vld [vmem:[%s18009_s16 + $0xe8] sm:$0xff] }
 0x68e   : > { %v3918_v12 = vpop.f32.mrb[116].mxu0  ;;  %10995 = vmatprep.subr.bf16.mxu1 %v14345_v19 }
 0x68f   : > { %v3920_v41 = vpop.f32.mrb[117].mxu0  ;;  %v14676_v33 = vadd.f32 %v3918_v12, %v14388_v56 }
 0x690   : > { %5847 = vmatmul.mubr.f32.vlgmr.msra.gmra.mrb[48].mxu1 %v4885_v49  ;;  %v4918_v41 = vld [vmem:[%s18009_s16 + $0x108] sm:$0xff] }
 0x691   : > { %10997 = vmatpush3.bf16.msra.mxu1 %v14345_v19  ;;  %5851 = vmatprep.mubr.f32.mxu1 %v4890_v48  ;;  %v4893_v19 = vld [vmem:[%s18009_s16 + $0x40] sm:$0xff] }
 0x692   : > { %v3923_v15 = vpop.f32.mrb[118].mxu0  ;;  %10999 = vmatprep.subr.bf16.mxu1 %v14355_v5 }
 0x693   : > { %v3925_v52 = vpop.f32.mrb[119].mxu0  ;;  %v14687_v46 = vadd.f32 %v3923_v15, %v14384_v50 }
 0x694   : > { %5852 = vmatmul.mubr.f32.gmra.mrb[50].mxu1 %v4889_v42  ;;  %v4922_v52 = vld [vmem:[%s18009_s16 + $0x128] sm:$0xff] }
 0x695   : > { %11001 = vmatpush3.bf16.msra.mxu1 %v14355_v5  ;;  %5856 = vmatprep.mubr.f32.mxu1 %v4894_v60  ;;  %v4897_v5 = vld [vmem:[%s18009_s16 + $0x60] sm:$0xff] }
 0x696   : > { %v3928_v56 = vpop.f32.mrb[120].mxu0  ;;  %11003 = vmatprep.subr.bf16.mxu1 %v14365_v47 }
 0x697   : > { %v3930_v25 = vpop.f32.mrb[121].mxu0  ;;  %v14698_v3 = vadd.f32 %v3928_v56, %v14405_v32 }
 0x698   : > { %5857 = vmatmul.mubr.f32.gmra.mrb[52].mxu1 %v4893_v19  ;;  %v4926_v25 = vld [vmem:[%s18009_s16 + $0x148] sm:$0xff] }
 0x699   : > { %11005 = vmatpush3.bf16.msra.mxu1 %v14365_v47  ;;  %5861 = vmatprep.mubr.f32.mxu1 %v4898_v16  ;;  %v4901_v47 = vld [vmem:[%s18009_s16 + $0x80] sm:$0xff] }
 0x69a   : > { %v3933_v50 = vpop.f32.mrb[122].mxu0  ;;  %11007 = vmatprep.subr.bf16.mxu1 %v14381_v14 }
 0x69b   : > { %v3935_v63 = vpop.f32.mrb[123].mxu0  ;;  %v14709_v10 = vadd.f32 %v3933_v50, %v14401_v2 }
 0x69c   : > { %5862 = vmatmul.mubr.f32.gmra.mrb[54].mxu1 %v4897_v5  ;;  %v4930_v63 = vld [vmem:[%s18009_s16 + $0x168] sm:$0xff] }
 0x69d   : > { %11009 = vmatpush3.bf16.msra.mxu1 %v14381_v14  ;;  %5866 = vmatprep.mubr.f32.mxu1 %v4902_v36  ;;  %v4905_v14 = vld [vmem:[%s18009_s16 + $0xa0] sm:$0xff] }
 0x69e   : > { %v3938_v32 = vpop.f32.mrb[124].mxu0 }
 0x69f   : > { %v3940_v24 = vpop.f32.mrb[125].mxu0  ;;  %v14719_v8 = vadd.f32 %v3938_v32, %v14423_v30  ;;  %v4909_v30 = vld [vmem:[%s18009_s16 + $0xc0] sm:$0xff] }
 0x6a0   : > { %5867 = vmatmul.mubr.f32.gmra.mrb[56].mxu1 %v4901_v47 }
 0x6a1   : > { %5871 = vmatprep.mubr.f32.mxu1 %v4906_v29 }
 0x6a2   : > { %v3943_v2 = vpop.f32.mrb[126].mxu0 }
 0x6a3   : > { %v3945_v39 = vpop.f32.mrb[127].mxu0  ;;  %v14728_v11 = vadd.f32 %v3943_v2, %v14419_v35  ;;  %v4913_v35 = vld [vmem:[%s18009_s16 + $0xe0] sm:$0xff] }
 0x6a4   : > { %5872 = vmatmul.mubr.f32.gmra.mrb[58].mxu1 %v4905_v14  ;;  %v4934_v14 = vld [vmem:[%s18009_s16 + $0x188] sm:$0xff] }
 0x6a5   : > { %5876 = vmatprep.mubr.f32.mxu1 %v4910_v34 }
 0x6a6   : > { %v3948_v61 = vpop.f32.mrb[128].mxu0 }
 0x6a7   : > { %v3950_v51 = vpop.f32.mrb[129].mxu0  ;;  %v14737_v49 = vadd.f32 %v3948_v61, %v14441_v43  ;;  %v4917_v43 = vld [vmem:[%s18009_s16 + $0x100] sm:$0xff] }
 0x6a8   : > { %5877 = vmatmul.mubr.f32.gmra.mrb[60].mxu1 %v4909_v30  ;;  %v4937_v30 = vld [vmem:[%s18009_s16 + $0x1a0] sm:$0xff] }
 0x6a9   : > { %5881 = vmatprep.mubr.f32.mxu1 %v4914_v53  ;;  %v4942_v53 = vld [vmem:[%s18009_s16 + $0x1c8] sm:$0xff] }
 0x6aa   : > { %v3953_v12 = vpop.f32.mrb[130].mxu0 }
 0x6ab   : > { %v3955_v48 = vpop.f32.mrb[131].mxu0  ;;  %v14746_v42 = vadd.f32 %v3953_v12, %v14437_v62  ;;  %v4921_v62 = vld [vmem:[%s18009_s16 + $0x120] sm:$0xff]  ;;  %v4946_v12 = vld [vmem:[%s18009_s16 + $0x1e8] sm:$0xff] }
 0x6ac   : > { %5882 = vmatmul.mubr.f32.gmra.mrb[62].mxu1 %v4913_v35  ;;  %v4941_v35 = vld [vmem:[%s18009_s16 + $0x1c0] sm:$0xff]  ;;  %v4950_v48 = vld [vmem:[%s18009_s16 + $0x208] sm:$0xff] }
 0x6ad   : > { %5886 = vmatprep.mubr.f32.mxu1 %v4918_v41  ;;  %v4949_v41 = vld [vmem:[%s18009_s16 + $0x200] sm:$0xff] }
 0x6ae   : > { %v3958_v15 = vpop.f32.mrb[132].mxu0 }
 0x6af   : > { %v3960_v60 = vpop.f32.mrb[133].mxu0  ;;  %v14755_v19 = vadd.f32 %v3958_v15, %v14459_v27  ;;  %v4925_v27 = vld [vmem:[%s18009_s16 + $0x140] sm:$0xff] }
 0x6b0   : > { %5887 = vmatmul.mubr.f32.gmra.mrb[64].mxu1 %v4917_v43  ;;  %v4954_v43 = vld [vmem:[%s18009_s16 + $0x228] sm:$0xff]  ;;  %v4953_v15 = vld [vmem:[%s18009_s16 + $0x220] sm:$0xff] }
 0x6b1   : > { %5891 = vmatprep.mubr.f32.mxu1 %v4922_v52  ;;  %v4958_v60 = vld [vmem:[%s18009_s16 + $0x248] sm:$0xff]  ;;  %v4957_v52 = vld [vmem:[%s18009_s16 + $0x240] sm:$0xff] }
 0x6b2   : > { %v3963_v56 = vpop.f32.mrb[134].mxu0 }
 0x6b3   : > { %v3965_v16 = vpop.f32.mrb[135].mxu0  ;;  %v14764_v5 = vadd.f32 %v3963_v56, %v14455_v45  ;;  %v4929_v45 = vld [vmem:[%s18009_s16 + $0x160] sm:$0xff] }
 0x6b4   : > { %5892 = vmatmul.mubr.f32.gmra.mrb[66].mxu1 %v4921_v62  ;;  %v4962_v62 = vld [vmem:[%s18009_s16 + $0x268] sm:$0xff]  ;;  %v4961_v56 = vld [vmem:[%s18009_s16 + $0x260] sm:$0xff] }
 0x6b5   : > { %5896 = vmatprep.mubr.f32.mxu1 %v4926_v25  ;;  %v4966_v16 = vld [vmem:[%s18009_s16 + $0x288] sm:$0xff]  ;;  %v4965_v25 = vld [vmem:[%s18009_s16 + $0x280] sm:$0xff] }
 0x6b6   : > { %v3968_v50 = vpop.f32.mrb[136].mxu0 }
 0x6b7   : > { %v3970_v36 = vpop.f32.mrb[137].mxu0  ;;  %v14773_v47 = vadd.f32 %v3968_v50, %v14477_v0  ;;  %v4933_v0 = vld [vmem:[%s18009_s16 + $0x180] sm:$0xff] }
 0x6b8   : > { %5897 = vmatmul.mubr.f32.gmra.mrb[68].mxu1 %v4925_v27  ;;  %v4970_v27 = vld [vmem:[%s18009_s16 + $0x2a8] sm:$0xff]  ;;  %v4969_v50 = vld [vmem:[%s18009_s16 + $0x2a0] sm:$0xff] }
 0x6b9   : > { %5901 = vmatprep.mubr.f32.mxu1 %v4930_v63  ;;  %v4974_v36 = vld [vmem:[%s18009_s16 + $0x2c8] sm:$0xff]  ;;  %v4973_v63 = vld [vmem:[%s18009_s16 + $0x2c0] sm:$0xff] }
 0x6ba   : > { %v3973_v32 = vpop.f32.mrb[138].mxu0 }
 0x6bb   : > { %v3975_v29 = vpop.f32.mrb[139].mxu0  ;;  %v14779_v24 = vadd.f32 %v3973_v32, %v14473_v21  ;;  %v4938_v21 = vld [vmem:[%s18009_s16 + $0x1a8] sm:$0xff]  ;;  %v4977_v32 = vld [vmem:[%s18009_s16 + $0x2e0] sm:$0xff] }
 0x6bc   : > { %5902 = vmatmul.mubr.f32.gmra.mrb[70].mxu1 %v4929_v45  ;;  %v4978_v45 = vld [vmem:[%s18009_s16 + $0x2e8] sm:$0xff] }
 0x6bd   : > { %5906 = vmatprep.mubr.f32.mxu1 %v4934_v14  ;;  %v4709_v29 = vld [vmem:[%s18007_s14 + $0x8] sm:$0xff] }
 0x6be   : > { %v3978_v2 = vpop.f32.mrb[140].mxu0  ;;  %v4982_v14 = vld [vmem:[%s18009_s16 + $0x308] sm:$0xff]  ;;  %4836 = vmatprep.mubr.f32.mxu0 %v4709_v29  ;;  %v5017_v29 = vld [vmem:[%s18009_s16 + $0x420] sm:$0xff] }
 0x6bf   : > { %v3980_v39 = vpop.f32.mrb[141].mxu0  ;;  %v14788_v34 = vadd.f32 %v3978_v2, %v14495_v23  ;;  %v4986_v2 = vld [vmem:[%s18009_s16 + $0x328] sm:$0xff] }
 0x6c0   : > { %5907 = vmatmul.mubr.f32.gmra.mrb[72].mxu1 %v4933_v0  ;;  %v4981_v0 = vld [vmem:[%s18009_s16 + $0x300] sm:$0xff] }
 0x6c1   : > { %5911 = vmatprep.mubr.f32.mxu1 %v4938_v21  ;;  %v4985_v39 = vld [vmem:[%s18009_s16 + $0x320] sm:$0xff]  ;;  %v4990_v21 = vld [vmem:[%s18009_s16 + $0x348] sm:$0xff] }
 0x6c2   : > { %v3983_v61 = vpop.f32.mrb[142].mxu0 }
 0x6c3   : > { %v14797_v51 = vadd.f32 %v3983_v61, %v14491_v44  ;;  %v3985_v23 = vpop.f32.mrb[143].mxu0  ;;  %v4945_v44 = vld [vmem:[%s18009_s16 + $0x1e0] sm:$0xff]  ;;  %v4994_v61 = vld [vmem:[%s18009_s16 + $0x368] sm:$0xff] }
 0x6c4   : > { %5912 = vmatmul.mubr.f32.gmra.mrb[74].mxu1 %v4937_v30  ;;  %v4989_v30 = vld [vmem:[%s18009_s16 + $0x340] sm:$0xff] }
 0x6c5   : > { %5916 = vmatprep.mubr.f32.mxu1 %v4942_v53  ;;  %v14883_v53 = vpop.permute.xlu1 %4501  ;;  %v4993_v23 = vld [vmem:[%s18009_s16 + $0x360] sm:$0xff] }
 0x6c8   : > { %5917 = vmatmul.mubr.f32.gmra.mrb[76].mxu1 %v4941_v35  ;;  %v14888_v35 = vpop.permute.xlu0 %4496 }
 0x6c9   : > { %5921 = vmatprep.mubr.f32.mxu1 %v4946_v12  ;;  %v4998_v12 = vld [vmem:[%s18009_s16 + $0x388] sm:$0xff] }
 0x6cc   : > { %5922 = vmatmul.mubr.f32.gmra.mrb[78].mxu1 %v4945_v44  ;;  %v4997_v44 = vld [vmem:[%s18009_s16 + $0x380] sm:$0xff] }
 0x6cd   : > { %5926 = vmatprep.mubr.f32.mxu1 %v4950_v48  ;;  %v14896_v48 = vpop.permute.xlu1 %4591 }
 0x6d0   : > { %5927 = vmatmul.mubr.f32.gmra.mrb[80].mxu1 %v4949_v41  ;;  %v5002_v41 = vld [vmem:[%s18009_s16 + $0x3a8] sm:$0xff] }
 0x6d1   : > { %5931 = vmatprep.mubr.f32.mxu1 %v4954_v43  ;;  %v14901_v43 = vpop.permute.xlu0 %4586 }
 0x6d4   : > { %5932 = vmatmul.mubr.f32.gmra.mrb[82].mxu1 %v4953_v15  ;;  %v5001_v15 = vld [vmem:[%s18009_s16 + $0x3a0] sm:$0xff] }
 0x6d5   : > { %5936 = vmatprep.mubr.f32.mxu1 %v4958_v60  ;;  %v5006_v60 = vld [vmem:[%s18009_s16 + $0x3c8] sm:$0xff] }
 0x6d8   : > { %5937 = vmatmul.mubr.f32.gmra.mrb[84].mxu1 %v4957_v52  ;;  %v14909_v52 = vpop.permute.xlu1 %4511 }
 0x6d9   : > { %5941 = vmatprep.mubr.f32.mxu1 %v4962_v62  ;;  %v5005_v62 = vld [vmem:[%s18009_s16 + $0x3c0] sm:$0xff] }
 0x6dc   : > { %5942 = vmatmul.mubr.f32.gmra.mrb[86].mxu1 %v4961_v56  ;;  %v14914_v56 = vpop.permute.xlu0 %4506 }
 0x6dd   : > { %5946 = vmatprep.mubr.f32.mxu1 %v4966_v16  ;;  %v5010_v16 = vld [vmem:[%s18009_s16 + $0x3e8] sm:$0xff] }
 0x6e0   : > { %5947 = vmatmul.mubr.f32.gmra.mrb[88].mxu1 %v4965_v25  ;;  %v5009_v25 = vld [vmem:[%s18009_s16 + $0x3e0] sm:$0xff] }
 0x6e1   : > { %5951 = vmatprep.mubr.f32.mxu1 %v4970_v27  ;;  %v14922_v27 = vpop.permute.xlu1 %4601 }
 0x6e4   : > { %5952 = vmatmul.mubr.f32.gmra.mrb[90].mxu1 %v4969_v50  ;;  %v5014_v50 = vld [vmem:[%s18009_s16 + $0x408] sm:$0xff] }
 0x6e5   : > { %5956 = vmatprep.mubr.f32.mxu1 %v4974_v36  ;;  %v14927_v36 = vpop.permute.xlu0 %4596 }
 0x6e8   : > { %5957 = vmatmul.mubr.f32.gmra.mrb[92].mxu1 %v4973_v63  ;;  %v5013_v63 = vld [vmem:[%s18009_s16 + $0x400] sm:$0xff] }
 0x6e9   : > { %5961 = vmatprep.mubr.f32.mxu1 %v4978_v45  ;;  %v5018_v45 = vld [vmem:[%s18009_s16 + $0x428] sm:$0xff] }
 0x6ec   : > { %5962 = vmatmul.mubr.f32.gmra.mrb[94].mxu1 %v4977_v32  ;;  %v14935_v32 = vpop.permute.xlu1 %4521 }
 0x6ed   : > { %5966 = vmatprep.mubr.f32.mxu1 %v4982_v14  ;;  %v14940_v14 = vpop.permute.xlu0 %4516 }
 0x6f0   : > { %5967 = vmatmul.mubr.f32.gmra.mrb[96].mxu1 %v4981_v0  ;;  %v5022_v0 = vld [vmem:[%s18009_s16 + $0x448] sm:$0xff] }
 0x6f1   : > { %5971 = vmatprep.mubr.f32.mxu1 %v4986_v2  ;;  %v5021_v2 = vld [vmem:[%s18009_s16 + $0x440] sm:$0xff] }
 0x6f4   : > { %5972 = vmatmul.mubr.f32.gmra.mrb[98].mxu1 %v4985_v39  ;;  %v14948_v39 = vpop.permute.xlu1 %4611 }
 0x6f5   : > { %5976 = vmatprep.mubr.f32.mxu1 %v4990_v21  ;;  %v5026_v21 = vld [vmem:[%s18009_s16 + $0x468] sm:$0xff] }
 0x6f8   : > { %5977 = vmatmul.mubr.f32.gmra.mrb[100].mxu1 %v4989_v30  ;;  %v14953_v30 = vpop.permute.xlu0 %4606 }
 0x6f9   : > { %5981 = vmatprep.mubr.f32.mxu1 %v4994_v61  ;;  %v5025_v61 = vld [vmem:[%s18009_s16 + $0x460] sm:$0xff] }
 0x6fc   : > { %5982 = vmatmul.mubr.f32.gmra.mrb[102].mxu1 %v4993_v23  ;;  %v5030_v23 = vld [vmem:[%s18009_s16 + $0x488] sm:$0xff] }
 0x6fd   : > { %5986 = vmatprep.mubr.f32.mxu1 %v4998_v12  ;;  %v14961_v12 = vpop.permute.xlu1 %4531 }
 0x700   : > { %5987 = vmatmul.mubr.f32.gmra.mrb[104].mxu1 %v4997_v44  ;;  %v5029_v44 = vld [vmem:[%s18009_s16 + $0x480] sm:$0xff] }
 0x701   : > { %5991 = vmatprep.mubr.f32.mxu1 %v5002_v41  ;;  %v14966_v41 = vpop.permute.xlu0 %4526 }
 0x704   : > { %5992 = vmatmul.mubr.f32.gmra.mrb[106].mxu1 %v5001_v15  ;;  %v5034_v15 = vld [vmem:[%s18009_s16 + $0x4a8] sm:$0xff] }
 0x705   : > { %5996 = vmatprep.mubr.f32.mxu1 %v5006_v60  ;;  %v5033_v60 = vld [vmem:[%s18009_s16 + $0x4a0] sm:$0xff] }
 0x708   : > { %5997 = vmatmul.mubr.f32.gmra.mrb[108].mxu1 %v5005_v62  ;;  %v14974_v62 = vpop.permute.xlu1 %4621 }
 0x709   : > { %6001 = vmatprep.mubr.f32.mxu1 %v5010_v16 }
 0x70c   : > { %6002 = vmatmul.mubr.f32.gmra.mrb[110].mxu1 %v5009_v25  ;;  %v5038_v25 = vld [vmem:[%s18009_s16 + $0x4c8] sm:$0xff] }
 0x70d   : > { %6006 = vmatprep.mubr.f32.mxu1 %v5014_v50  ;;  %v14979_v50 = vpop.permute.xlu0 %4616 }
 0x710   : > { %6007 = vmatmul.mubr.f32.gmra.mrb[112].mxu1 %v5013_v63 }
 0x711   : > { %6011 = vmatprep.mubr.f32.mxu1 %v5018_v45 }
 0x714   : > { %6012 = vmatmul.mubr.f32.gmra.mrb[114].mxu1 %v5017_v29 }
 0x715   : > { %6016 = vmatprep.mubr.f32.mxu1 %v5022_v0  ;;  %v5037_v0 = vld [vmem:[%s18009_s16 + $0x4c0] sm:$0xff] }
 0x718   : > { %6017 = vmatmul.mubr.f32.gmra.mrb[116].mxu1 %v5021_v2  ;;  %v18310_v2 = vld [vmem:[#allocation77_spill] sm:$0xff] }
 0x719   : > { %6021 = vmatprep.mubr.f32.mxu1 %v5026_v21 }
 0x71c   : > { %6022 = vmatmul.mubr.f32.gmra.mrb[118].mxu1 %v5025_v61  ;;  %v18311_v61 = vld [vmem:[#allocation76_spill] sm:$0xff] }
 0x71d   : > { %6026 = vmatprep.mubr.f32.mxu1 %v5030_v23 }
 0x720   : > { %6027 = vmatmul.mubr.f32.gmra.mrb[120].mxu1 %v5029_v44 }
 0x721   : > { %6031 = vmatprep.mubr.f32.mxu1 %v5034_v15  ;;  %v5042_v15 = vld [vmem:[%s18009_s16 + $0x4e8] sm:$0xff] }
 0x723   : > { %v10068_v16 = vpop.f32.mrb[16].mxu1 }
 0x724   : > { %v4421_v63 = vadd.f32 %v10068_v16, %v14664_v6  ;;  %v4261_v45 = vpop.f32.mrb[17].mxu1  ;;  %6032 = vmatmul.mubr.f32.gmra.mrb[122].mxu1 %v5033_v60 }
 0x725   : > { %v4420_v29 = vadd.f32 %v4261_v45, %v14651_v57  ;;  %6036 = vmatprep.mubr.f32.mxu1 %v5038_v25  ;;  %v4542_v57 = vpop.permute.xlu1 %4541  ;;  %v4537_v45 = vpop.permute.xlu0 %4536 }
 0x726   : > { %v4645_v21 = vadd.f32 %v18310_v2, %v4421_v63  ;;  %v5041_v63 = vld [vmem:[%s18009_s16 + $0x4e0] sm:$0xff] }
 0x727   : > { %v4644_v23 = vadd.f32 %v18311_v61, %v4420_v29  ;;  %v10071_v44 = vpop.f32.mrb[18].mxu1 }
 0x728   : > { %v4677_v4 = vmax.f32 %v4645_v21, 0.0  ;;  %v4423_v6 = vadd.f32 %v10071_v44, %v14687_v46  ;;  %v4271_v60 = vpop.f32.mrb[19].mxu1  ;;  %6037 = vmatmul.mubr.f32.gmra.mrb[124].mxu1 %v5037_v0  ;;  %v5046_v46 = vld [vmem:[%s18009_s16 + $0x508] sm:$0xff] }
 0x729   : > { %v4676_v16 = vmax.f32 %v4644_v23, 0.0  ;;  %v4422_v25 = vadd.f32 %v4271_v60, %v14676_v33  ;;  %6041 = vmatprep.mubr.f32.mxu1 %v5042_v15 }
 0x72a   : > { %v4647_v29 = vadd.f32 %v14883_v53, %v4423_v6 }
 0x72b   : > { %v14997_v2 = vpack.c.bf16 %v4677_v4, %v4676_v16  ;;  %v4646_v21 = vadd.f32 %v14888_v35, %v4422_v25  ;;  %v10074_v61 = vpop.f32.mrb[20].mxu1  ;;  %v5045_v4 = vld [vmem:[%s18009_s16 + $0x500] sm:$0xff]  ;;  %v15009_v35 = vpop.permute.xlu1 %4631 }
 0x72c   : > { %v4679_v0 = vmax.f32 %v4647_v29, 0.0  ;;  %v4425_v33 = vadd.f32 %v10074_v61, %v14709_v10  ;;  %v4281_v23 = vpop.f32.mrb[21].mxu1  ;;  %6042 = vmatmul.mubr.f32.gmra.mrb[126].mxu1 %v5041_v63  ;;  %v5050_v10 = vld [vmem:[%s18009_s16 + $0x528] sm:$0xff]  ;;  %v15017_v25 = vpop.permute.xlu0 %4626 }
 0x72d   : > { %v4678_v44 = vmax.f32 %v4646_v21, 0.0  ;;  %v4424_v15 = vadd.f32 %v4281_v23, %v14698_v3  ;;  %6046 = vmatprep.mubr.f32.mxu1 %v5046_v46 }
 0x72e   : > { %v4649_v53 = vadd.f32 %v14909_v52, %v4425_v33 }
 0x72f   : > { %v15011_v6 = vpack.c.bf16 %v4679_v0, %v4678_v44  ;;  %v4648_v60 = vadd.f32 %v14914_v56, %v4424_v15  ;;  %v10077_v16 = vpop.f32.mrb[22].mxu1  ;;  %v5049_v56 = vld [vmem:[%s18009_s16 + $0x520] sm:$0xff]  ;;  %v4552_v15 = vpop.permute.xlu1 %4551 }
 0x730   : > { %v4681_v3 = vmax.f32 %v4649_v53, 0.0  ;;  %v4427_v63 = vadd.f32 %v10077_v16, %v14728_v11  ;;  %v4291_v29 = vpop.f32.mrb[23].mxu1  ;;  %6047 = vmatmul.mubr.f32.gmra.mrb[128].mxu1 %v5045_v4  ;;  %v5054_v11 = vld [vmem:[%s18009_s16 + $0x548] sm:$0xff] }
 0x731   : > { %v4680_v21 = vmax.f32 %v4648_v60, 0.0  ;;  %v4426_v52 = vadd.f32 %v4291_v29, %v14719_v8  ;;  %6051 = vmatprep.mubr.f32.mxu1 %v5050_v10 }
 0x732   : > { %v4651_v61 = vadd.f32 %v14935_v32, %v4427_v63  ;;  %v5053_v32 = vld [vmem:[%s18009_s16 + $0x540] sm:$0xff] }
 0x733   : > { %v15025_v46 = vpack.c.bf16 %v4681_v3, %v4680_v21  ;;  %v4650_v0 = vadd.f32 %v14940_v14, %v4426_v52  ;;  %v10080_v33 = vpop.f32.mrb[24].mxu1  ;;  %v4547_v14 = vpop.permute.xlu0 %4546 }
 0x734   : > { %v4683_v23 = vmax.f32 %v4651_v61, 0.0  ;;  %v4429_v44 = vadd.f32 %v10080_v33, %v14746_v42  ;;  %v4301_v8 = vpop.f32.mrb[25].mxu1  ;;  %6052 = vmatmul.mubr.f32.gmra.mrb[130].mxu1 %v5049_v56  ;;  %v5058_v42 = vld [vmem:[%s18009_s16 + $0x568] sm:$0xff] }
 0x735   : > { %v4682_v4 = vmax.f32 %v4650_v0, 0.0  ;;  %v4428_v53 = vadd.f32 %v4301_v8, %v14737_v49  ;;  %6056 = vmatprep.mubr.f32.mxu1 %v5054_v11 }
 0x736   : > { %v4653_v60 = vadd.f32 %v14961_v12, %v4429_v44  ;;  %v5057_v12 = vld [vmem:[%s18009_s16 + $0x560] sm:$0xff] }
 0x737   : > { %v15037_v16 = vpack.c.bf16 %v4683_v23, %v4682_v4  ;;  %v4652_v10 = vadd.f32 %v14966_v41, %v4428_v53  ;;  %v10083_v3 = vpop.f32.mrb[26].mxu1  ;;  %v15048_v41 = vpop.permute.xlu1 %4641 }
 0x738   : > { %v4685_v63 = vmax.f32 %v4653_v60, 0.0  ;;  %v4431_v49 = vadd.f32 %v10083_v3, %v14764_v5  ;;  %v4311_v29 = vpop.f32.mrb[27].mxu1  ;;  %6057 = vmatmul.mubr.f32.gmra.mrb[132].mxu1 %v5053_v32  ;;  %v5062_v5 = vld [vmem:[%s18009_s16 + $0x588] sm:$0xff]  ;;  %v15055_v11 = vpop.permute.xlu0 %4636 }
 0x739   : > { %v4684_v21 = vmax.f32 %v4652_v10, 0.0  ;;  %v4430_v52 = vadd.f32 %v4311_v29, %v14755_v19  ;;  %6061 = vmatprep.mubr.f32.mxu1 %v5058_v42  ;;  %v5066_v10 = vld [vmem:[%s18009_s16 + $0x5a8] sm:$0xff] }
 0x73a   : > { %v4655_v56 = vadd.f32 %v4542_v57, %v4431_v49 }
 0x73b   : > { %v15050_v61 = vpack.c.bf16 %v4685_v63, %v4684_v21  ;;  %v4654_v0 = vadd.f32 %v4537_v45, %v4430_v52  ;;  %v10086_v33 = vpop.f32.mrb[28].mxu1  ;;  %v5061_v45 = vld [vmem:[%s18009_s16 + $0x580] sm:$0xff] }
 0x73c   : > { %v4687_v23 = vmax.f32 %v4655_v56, 0.0  ;;  %v4433_v19 = vadd.f32 %v10086_v33, %v14779_v24  ;;  %v4321_v44 = vpop.f32.mrb[29].mxu1  ;;  %6062 = vmatmul.mubr.f32.gmra.mrb[134].mxu1 %v5057_v12 }
 0x73d   : > { %v4686_v8 = vmax.f32 %v4654_v0, 0.0  ;;  %v4432_v57 = vadd.f32 %v4321_v44, %v14773_v47  ;;  %6066 = vmatprep.mubr.f32.mxu1 %v5062_v5  ;;  %v4562_v47 = vpop.permute.xlu1 %4561 }
 0x73e   : > { %v4657_v4 = vadd.f32 %v4552_v15, %v4433_v19  ;;  %v5065_v15 = vld [vmem:[%s18009_s16 + $0x5a0] sm:$0xff]  ;;  %v18312_v19 = vld [vmem:[#allocation75_spill] sm:$0xff] }
 0x73f   : > { %v15062_v53 = vpack.c.bf16 %v4687_v23, %v4686_v8  ;;  %v4656_v32 = vadd.f32 %v4547_v14, %v4432_v57  ;;  %v10089_v60 = vpop.f32.mrb[30].mxu1  ;;  %v4557_v14 = vpop.permute.xlu0 %4556  ;;  %v5069_v23 = vld [vmem:[%s18009_s16 + $0x5c0] sm:$0xff] }
 0x740   : > { %v4689_v24 = vmax.f32 %v4657_v4, 0.0  ;;  %v4435_v3 = vadd.f32 %v10089_v60, %v14797_v51  ;;  %v4331_v42 = vpop.f32.mrb[31].mxu1  ;;  %6067 = vmatmul.mubr.f32.gmra.mrb[136].mxu1 %v5061_v45  ;;  %v5070_v51 = vld [vmem:[%s18009_s16 + $0x5c8] sm:$0xff]  ;;  %v18313_v57 = vld [vmem:[#allocation74_spill] sm:$0xff] }
 0x741   : > { %v4688_v63 = vmax.f32 %v4656_v32, 0.0  ;;  %v4434_v49 = vadd.f32 %v4331_v42, %v14788_v34  ;;  %6071 = vmatprep.mubr.f32.mxu1 %v5066_v10  ;;  %v18314_v42 = vld [vmem:[#allocation79_spill] sm:$0xff] }
 0x742   : > { %v4659_v29 = vadd.f32 %v4562_v47, %v4435_v3  ;;  %v5073_v3 = vld [vmem:[%s18009_s16 + $0x5e0] sm:$0xff] }
 0x743   : > { %v15072_v21 = vpack.c.bf16 %v4689_v24, %v4688_v63  ;;  %v4658_v52 = vadd.f32 %v4557_v14, %v4434_v49  ;;  %v10092_v12 = vpop.f32.mrb[32].mxu1  ;;  %v18315_v63 = vld [vmem:[#allocation78_spill] sm:$0xff] }
 0x744   : > { %v4691_v56 = vmax.f32 %v4659_v29, 0.0  ;;  %v4437_v0 = vadd.f32 %v10092_v12, %v14515_v7  ;;  %v4341_v33 = vpop.f32.mrb[33].mxu1  ;;  %6072 = vmatmul.mubr.f32.gmra.mrb[138].mxu1 %v5065_v15  ;;  %v5074_v7 = vld [vmem:[%s18009_s16 + $0x5e8] sm:$0xff] }
 0x745   : > { %v4690_v34 = vmax.f32 %v4658_v52, 0.0  ;;  %v4436_v5 = vadd.f32 %v4341_v33, %v14522_v18  ;;  %6076 = vmatprep.mubr.f32.mxu1 %v5070_v51 }
 0x746   : > { %v4661_v44 = vadd.f32 %v18312_v19, %v4437_v0 }
 0x747   : > { %v15083_v8 = vpack.c.bf16 %v4691_v56, %v4690_v34  ;;  %v4660_v45 = vadd.f32 %v18313_v57, %v4436_v5  ;;  %v10095_v4 = vpop.f32.mrb[34].mxu1  ;;  %v5077_v56 = vld [vmem:[%s18009_s16 + $0x600] sm:$0xff] }
 0x748   : > { %v4693_v32 = vmax.f32 %v4661_v44, 0.0  ;;  %v4439_v60 = vadd.f32 %v10095_v4, %v14533_v17  ;;  %v4351_v18 = vpop.f32.mrb[35].mxu1  ;;  %6077 = vmatmul.mubr.f32.gmra.mrb[140].mxu1 %v5069_v23  ;;  %v5078_v17 = vld [vmem:[%s18009_s16 + $0x608] sm:$0xff] }
 0x749   : > { %v4692_v10 = vmax.f32 %v4660_v45, 0.0  ;;  %v4438_v24 = vadd.f32 %v4351_v18, %v14540_v28  ;;  %6081 = vmatprep.mubr.f32.mxu1 %v5074_v7 }
 0x74a   : > { %v4663_v47 = vadd.f32 %v18314_v42, %v4439_v60 }
 0x74b   : > { %v4662_v49 = vadd.f32 %v18315_v63, %v4438_v24  ;;  %v10098_v15 = vpop.f32.mrb[36].mxu1  ;;  %v10850_v14 = vpack.c.bf16 %v4693_v32, %v4692_v10 }
 0x74c   : > { %v4695_v29 = vmax.f32 %v4663_v47, 0.0  ;;  %v4441_v52 = vadd.f32 %v10098_v15, %v14551_v54  ;;  %v4361_v12 = vpop.f32.mrb[37].mxu1  ;;  %6082 = vmatmul.mubr.f32.gmra.mrb[142].mxu1 %v5073_v3  ;;  %v5082_v54 = vld [vmem:[%s18009_s16 + $0x628] sm:$0xff] }
 0x74d   : > { %v4694_v28 = vmax.f32 %v4662_v49, 0.0  ;;  %v4440_v51 = vadd.f32 %v4361_v12, %v14558_v40  ;;  %10851 = vmatprep.subr.bf16.mxu0 %v10850_v14  ;;  %6086 = vmatprep.mubr.f32.mxu1 %v5078_v17 }
 0x74e   : > { %v4665_v0 = vadd.f32 %v14896_v48, %v4441_v52  ;;  %10853 = vmatpush3.bf16.msra.mxu0 %v14997_v2  ;;  %v5081_v48 = vld [vmem:[%s18009_s16 + $0x620] sm:$0xff] }
 0x74f   : > { %v4664_v33 = vadd.f32 %v14901_v43, %v4440_v51  ;;  %v10101_v34 = vpop.f32.mrb[38].mxu1  ;;  %v10854_v5 = vpack.c.bf16 %v4695_v29, %v4694_v28 }
 0x750   : > { %v4697_v23 = vmax.f32 %v4665_v0, 0.0  ;;  %v4443_v40 = vadd.f32 %v10101_v34, %v14569_v9  ;;  %v4371_v19 = vpop.f32.mrb[39].mxu1  ;;  %6087 = vmatmul.mubr.f32.gmra.mrb[144].mxu1 %v5077_v56  ;;  %v5086_v9 = vld [vmem:[%s18009_s16 + $0x648] sm:$0xff] }
 0x751   : > { %v4696_v44 = vmax.f32 %v4664_v33, 0.0  ;;  %v4442_v57 = vadd.f32 %v4371_v19, %v14576_v26  ;;  %10855 = vmatprep.subr.bf16.mxu0 %v10854_v5  ;;  %6091 = vmatprep.mubr.f32.mxu1 %v5082_v54  ;;  %v5101_v54 = vld [vmem:[%s18009_s16 + $0x6c0] sm:$0xff]  ;;  %v4710_v19 = vld [vmem:[%s18007_s14 + $0x10] sm:$0xff] }
 0x752   : > { %v4667_v43 = vadd.f32 %v14922_v27, %v4443_v40  ;;  %10857 = vmatpush3.bf16.msra.mxu0 %v15011_v6  ;;  %v5085_v27 = vld [vmem:[%s18009_s16 + $0x640] sm:$0xff]  ;;  %v5110_v40 = vld [vmem:[%s18009_s16 + $0x708] sm:$0xff] }
 0x753   : > { %v4666_v2 = vadd.f32 %v14927_v36, %v4442_v57  ;;  %v10104_v45 = vpop.f32.mrb[40].mxu1  ;;  %v10858_v4 = vpack.c.bf16 %v4697_v23, %v4696_v44  ;;  %v4708_v23 = vld [vmem:[%s18007_s14] sm:$0xff]  ;;  %v4713_v44 = vld [vmem:[%s18007_s14 + $0x28] sm:$0xff] }
 0x754   : > { %v4699_v7 = vmax.f32 %v4667_v43, 0.0  ;;  %v4445_v26 = vadd.f32 %v10104_v45, %v14587_v59  ;;  %v4381_v32 = vpop.f32.mrb[41].mxu1  ;;  %6092 = vmatmul.mubr.f32.gmra.mrb[146].mxu1 %v5081_v48  ;;  %v5090_v59 = vld [vmem:[%s18009_s16 + $0x668] sm:$0xff]  ;;  %v4712_v48 = vld [vmem:[%s18007_s14 + $0x20] sm:$0xff] }
 0x755   : > { %v4698_v60 = vmax.f32 %v4666_v2, 0.0  ;;  %v4444_v18 = vadd.f32 %v4381_v32, %v14594_v13  ;;  %10859 = vmatprep.subr.bf16.mxu0 %v10858_v4  ;;  %6096 = vmatprep.mubr.f32.mxu1 %v5086_v9  ;;  %v5114_v57 = vld [vmem:[%s18009_s16 + $0x728] sm:$0xff]  ;;  %v18316_v43 = vld [vmem:[#allocation82_spill] sm:$0xff]  ;;  %v4715_v2 = vld [vmem:[%s18007_s14 + $0x38] sm:$0xff] }
 0x756   : > { %v4669_v36 = vadd.f32 %v14948_v39, %v4445_v26  ;;  %10861 = vmatpush3.bf16.msra.mxu0 %v15025_v46  ;;  %v5089_v39 = vld [vmem:[%s18009_s16 + $0x660] sm:$0xff]  ;;  %v5118_v45 = vld [vmem:[%s18009_s16 + $0x748] sm:$0xff]  ;;  %v4714_v4 = vld [vmem:[%s18007_s14 + $0x30] sm:$0xff] }
 0x757   : > { %v4668_v6 = vadd.f32 %v14953_v30, %v4444_v18  ;;  %v10107_v10 = vpop.f32.mrb[42].mxu1  ;;  %v10862_v24 = vpack.c.bf16 %v4699_v7, %v4698_v60  ;;  %v18317_v9 = vld [vmem:[#allocation83_spill] sm:$0xff]  ;;  %v5121_v32 = vld [vmem:[%s18009_s16 + $0x760] sm:$0xff]  ;;  %v4719_v18 = vld [vmem:[%s18007_s14 + $0x58] sm:$0xff] }
 0x758   : > { %v4701_v3 = vmax.f32 %v4669_v36, 0.0  ;;  %v4447_v13 = vadd.f32 %v10107_v10, %v14605_v58  ;;  %v4391_v42 = vpop.f32.mrb[43].mxu1  ;;  %6097 = vmatmul.mubr.f32.gmra.mrb[148].mxu1 %v5085_v27  ;;  %v5094_v58 = vld [vmem:[%s18009_s16 + $0x688] sm:$0xff]  ;;  %v4716_v60 = vld [vmem:[%s18007_s14 + $0x40] sm:$0xff]  ;;  %v18318_v27 = vmov 0.0|0.0   ;;  %v4718_v10 = vld [vmem:[%s18007_s14 + $0x50] sm:$0xff] }
 0x759   : > { %v4700_v47 = vmax.f32 %v4668_v6, 0.0  ;;  %v4446_v63 = vadd.f32 %v4391_v42, %v14612_v1  ;;  %10863 = vmatprep.subr.bf16.mxu0 %v10862_v24  ;;  %6101 = vmatprep.mubr.f32.mxu1 %v5090_v59  ;;  %v4717_v7 = vld [vmem:[%s18007_s14 + $0x48] sm:$0xff]  ;;  %v5125_v6 = vld [vmem:[%s18009_s16 + $0x780] sm:$0xff]  ;;  %v4723_v42 = vld [vmem:[%s18007_s14 + $0x78] sm:$0xff] }
 0x75a   : > { %v4671_v30 = vadd.f32 %v14974_v62, %v4447_v13  ;;  %10865 = vmatpush3.bf16.msra.mxu0 %v15037_v16  ;;  %v5093_v62 = vld [vmem:[%s18009_s16 + $0x680] sm:$0xff]  ;;  %v5122_v26 = vld [vmem:[%s18009_s16 + $0x768] sm:$0xff] }
 0x75b   : > { %v4670_v46 = vadd.f32 %v14979_v50, %v4446_v63  ;;  %v10110_v49 = vpop.f32.mrb[44].mxu1  ;;  %v10866_v15 = vpack.c.bf16 %v4701_v3, %v4700_v47  ;;  %v5126_v36 = vld [vmem:[%s18009_s16 + $0x788] sm:$0xff]  ;;  %v5129_v3 = vld [vmem:[%s18009_s16 + $0x7a0] sm:$0xff] }
 0x75c   : > { %v4703_v14 = vmax.f32 %v4671_v30, 0.0  ;;  %v4449_v1 = vadd.f32 %v10110_v49, %v14623_v31  ;;  %v4401_v17 = vpop.f32.mrb[45].mxu1  ;;  %6102 = vmatmul.mubr.f32.gmra.mrb[150].mxu1 %v5089_v39  ;;  %v5098_v31 = vld [vmem:[%s18009_s16 + $0x6a8] sm:$0xff]  ;;  %v4720_v13 = vld [vmem:[%s18007_s14 + $0x60] sm:$0xff]  ;;  %v4722_v39 = vld [vmem:[%s18007_s14 + $0x70] sm:$0xff] }
 0x75d   : > { %v4702_v29 = vmax.f32 %v4670_v46, 0.0  ;;  %v4448_v52 = vadd.f32 %v4401_v17, %v14630_v38  ;;  %10867 = vmatprep.subr.bf16.mxu0 %v10866_v15  ;;  %6106 = vmatprep.mubr.f32.mxu1 %v5094_v58  ;;  %v4721_v24 = vld [vmem:[%s18007_s14 + $0x68] sm:$0xff]  ;;  %v5133_v63 = vld [vmem:[%s18009_s16 + $0x7c0] sm:$0xff]  ;;  %v5143_v58 = vld [vmem:[%s18010_s17 + $0x10] sm:$0xff] }
 0x75e   : > { %v4673_v50 = vadd.f32 %v15009_v35, %v4449_v1  ;;  %10869 = vmatpush3.bf16.msra.mxu0 %v15050_v61  ;;  %v5097_v35 = vld [vmem:[%s18009_s16 + $0x6a0] sm:$0xff]  ;;  %v5130_v59 = vld [vmem:[%s18009_s16 + $0x7a8] sm:$0xff]  ;;  %v5144_v17 = vld [vmem:[%s18010_s17 + $0x18] sm:$0xff] }
 0x75f   : > { %v4672_v16 = vadd.f32 %v15017_v25, %v4448_v52  ;;  %v10113_v12 = vpop.f32.mrb[46].mxu1  ;;  %v10870_v28 = vpack.c.bf16 %v4703_v14, %v4702_v29  ;;  %v5134_v47 = vld [vmem:[%s18009_s16 + $0x7c8] sm:$0xff]  ;;  %v5141_v30 = vld [vmem:[%s18010_s17] sm:$0xff] }
 0x760   : > { %v4705_v51 = vmax.f32 %v4673_v50, 0.0  ;;  %v4451_v38 = vadd.f32 %v10113_v12, %v14641_v37  ;;  %v4411_v56 = vpop.f32.mrb[47].mxu1  ;;  %6107 = vmatmul.mubr.f32.gmra.mrb[152].mxu1 %v5093_v62  ;;  %v5102_v37 = vld [vmem:[%s18009_s16 + $0x6c8] sm:$0xff]  ;;  %v5137_v49 = vld [vmem:[%s18009_s16 + $0x7e0] sm:$0xff]  ;;  %v6554_v12 = vld [vmem:[%s18011_s18 + $0x10] sm:$0xff] }
 0x761   : > { %v4704_v0 = vmax.f32 %v4672_v16, 0.0  ;;  %v4450_v33 = vadd.f32 %v4411_v56, %v14648_v22  ;;  %10871 = vmatprep.subr.bf16.mxu0 %v10870_v28  ;;  %6111 = vmatprep.mubr.f32.mxu1 %v5098_v31  ;;  %v5138_v46 = vld [vmem:[%s18009_s16 + $0x7e8] sm:$0xff]  ;;  %v6552_v14 = vld [vmem:[%s18011_s18] sm:$0xff]  ;;  %v5147_v16 = vld [vmem:[%s18010_s17 + $0x30] sm:$0xff] }
 0x762   : > { %v4675_v25 = vadd.f32 %v15048_v41, %v4451_v38  ;;  %10873 = vmatpush3.bf16.msra.mxu0 %v15062_v53  ;;  %v5105_v53 = vld [vmem:[%s18009_s16 + $0x6e0] sm:$0xff]  ;;  %v5142_v15 = vld [vmem:[%s18010_s17 + $0x8] sm:$0xff]  ;;  %v6555_v28 = vld [vmem:[%s18011_s18 + $0x18] sm:$0xff] }
 0x763   : > { %v4674_v61 = vadd.f32 %v15055_v11, %v4450_v33  ;;  %v10874_v34 = vpack.c.bf16 %v4705_v51, %v4704_v0  ;;  %v5106_v11 = vld [vmem:[%s18009_s16 + $0x6e8] sm:$0xff]  ;;  %v18319_v29 = vld [vmem:[#allocation18_spill] sm:$0xff]  ;;  %v5148_v31 = vld [vmem:[%s18010_s17 + $0x38] sm:$0xff] }
 0x764   : > { %v4707_v5 = vmax.f32 %v4675_v25, 0.0  ;;  %6112 = vmatmul.mubr.f32.gmra.mrb[154].mxu1 %v5097_v35  ;;  %v6553_v1 = vld [vmem:[%s18011_s18 + $0x8] sm:$0xff]  ;;  %v5145_v52 = vld [vmem:[%s18010_s17 + $0x20] sm:$0xff]  ;;  %v18321_v51 = vld [vmem:[#allocation20_spill] sm:$0xff] }
 0x765   : > { %v4706_v22 = vmax.f32 %v4674_v61, 0.0  ;;  %10875 = vmatprep.subr.bf16.mxu0 %v10874_v34  ;;  %6116 = vmatprep.mubr.f32.mxu1 %v5102_v37  ;;  %v5146_v62 = vld [vmem:[%s18010_s17 + $0x28] sm:$0xff]  ;;  %v5149_v38 = vld [vmem:[%s18010_s17 + $0x40] sm:$0xff]  ;;  %v18322_v0 = vld [vmem:[#allocation21_spill] sm:$0xff] }
 0x766   : > { %10877 = vmatpush3.bf16.msra.mxu0 %v15072_v21  ;;  %v4711_v21 = vld [vmem:[%s18007_s14 + $0x18] sm:$0xff]  ;;  %v18320_v50 = vld [vmem:[#allocation19_spill] sm:$0xff]  ;;  %v5151_v33 = vld [vmem:[%s18010_s17 + $0x50] sm:$0xff] }
 0x767   : > { %v10878_v41 = vpack.c.bf16 %v4707_v5, %v4706_v22  ;;  %v5150_v56 = vld [vmem:[%s18010_s17 + $0x48] sm:$0xff]  ;;  %v6556_v35 = vld [vmem:[%s18011_s18 + $0x20] sm:$0xff]  ;;  %v5152_v61 = vld [vmem:[%s18010_s17 + $0x58] sm:$0xff] }
 0x768   : > { %6117 = vmatmul.mubr.f32.gmra.mrb[156].mxu1 %v5101_v54  ;;  %v6557_v25 = vld [vmem:[%s18011_s18 + $0x28] sm:$0xff]  ;;  %v18323_v34 = vld [vmem:[#allocation22_spill] sm:$0xff]  ;;  %v5155_v54 = vld [vmem:[%s18010_s17 + $0x70] sm:$0xff] }
 0x769   : > { %10879 = vmatprep.subr.bf16.mxu0 %v10878_v41  ;;  %6121 = vmatprep.mubr.f32.mxu1 %v5106_v11  ;;  %v5153_v37 = vld [vmem:[%s18010_s17 + $0x60] sm:$0xff]  ;;  %v5154_v5 = vld [vmem:[%s18010_s17 + $0x68] sm:$0xff]  ;;  %v6558_v41 = vld [vmem:[%s18011_s18 + $0x30] sm:$0xff] }
 0x76a   : > { %10881 = vmatpush3.bf16.msra.mxu0 %v15083_v8  ;;  %v5109_v8 = vld [vmem:[%s18009_s16 + $0x700] sm:$0xff]  ;;  %v18324_v22 = vld [vmem:[#allocation23_spill] sm:$0xff]  ;;  %v6559_v11 = vld [vmem:[%s18011_s18 + $0x38] sm:$0xff] }
 0x76b   : > { %10883 = vmatprep.subr.bf16.mxu0 %v18282_v55 }
 0x76c   : > { %6122 = vmatmul.mubr.f32.gmra.mrb[158].mxu1 %v5105_v53  ;;  %v5156_v53 = vld [vmem:[%s18010_s17 + $0x78] sm:$0xff] }
 0x76d   : > { %4837 = vmatmul.mubr.f32.vlgmr.msra.gmra.mrb[144].mxu0 %v4708_v23  ;;  %6126 = vmatprep.mubr.f32.mxu1 %v5110_v40  ;;  %v18325_v23 = vld [vmem:[#allocation24_spill] sm:$0xff]  ;;  %v5158_v40 = vld [vmem:[%s18010_s17 + $0x88] sm:$0xff] }
 0x76e   : > { %10885 = vmatpush3.bf16.msra.mxu0 %v18282_v55  ;;  %4841 = vmatprep.mubr.f32.mxu0 %v4711_v21  ;;  %v5113_v55 = vld [vmem:[%s18009_s16 + $0x720] sm:$0xff] }
 0x76f   : > { %10887 = vmatprep.subr.bf16.mxu0 %v18283_v20  ;;  %v5157_v21 = vld [vmem:[%s18010_s17 + $0x80] sm:$0xff] }
 0x770   : > { %6127 = vmatmul.mubr.f32.gmra.mrb[160].mxu1 %v5109_v8  ;;  %v18326_v8 = vld [vmem:[#allocation25_spill] sm:$0xff] }
 0x771   : > { %4842 = vmatmul.mubr.f32.gmra.mrb[146].mxu0 %v4710_v19  ;;  %6131 = vmatprep.mubr.f32.mxu1 %v5114_v57  ;;  %v5159_v19 = vld [vmem:[%s18010_s17 + $0x90] sm:$0xff]  ;;  %v6561_v57 = vld [vmem:[%s18011_s18 + $0x48] sm:$0xff] }
 0x772   : > { %10889 = vmatpush3.bf16.msra.mxu0 %v18283_v20  ;;  %4846 = vmatprep.mubr.f32.mxu0 %v4713_v44  ;;  %v5117_v20 = vld [vmem:[%s18009_s16 + $0x740] sm:$0xff] }
 0x773   : > { %10891 = vmatprep.subr.bf16.mxu0 %v18316_v43  ;;  %v6560_v44 = vld [vmem:[%s18011_s18 + $0x40] sm:$0xff] }
 0x774   : > { %6132 = vmatmul.mubr.f32.gmra.mrb[162].mxu1 %v5113_v55  ;;  %v5160_v55 = vld [vmem:[%s18010_s17 + $0x98] sm:$0xff] }
 0x775   : > { %4847 = vmatmul.mubr.f32.gmra.mrb[148].mxu0 %v4712_v48  ;;  %6136 = vmatprep.mubr.f32.mxu1 %v5118_v45  ;;  %v18327_v48 = vld [vmem:[#allocation26_spill] sm:$0xff]  ;;  %v18328_v45 = vld [vmem:[#allocation27_spill] sm:$0xff] }
 0x776   : > { %10893 = vmatpush3.bf16.msra.mxu0 %v18316_v43  ;;  %4851 = vmatprep.mubr.f32.mxu0 %v4715_v2  ;;  %v5161_v43 = vld [vmem:[%s18010_s17 + $0xa0] sm:$0xff]  ;;  %v5162_v2 = vld [vmem:[%s18010_s17 + $0xa8] sm:$0xff] }
 0x777   : > { %10895 = vmatprep.subr.bf16.mxu0 %v18317_v9 }
 0x778   : > { %6137 = vmatmul.mubr.f32.gmra.mrb[164].mxu1 %v5117_v20  ;;  %v5163_v20 = vld [vmem:[%s18010_s17 + $0xb0] sm:$0xff] }
 0x779   : > { %4852 = vmatmul.mubr.f32.gmra.mrb[150].mxu0 %v4714_v4  ;;  %6141 = vmatprep.mubr.f32.mxu1 %v5122_v26  ;;  %v6562_v4 = vld [vmem:[%s18011_s18 + $0x50] sm:$0xff] }
 0x77a   : > { %10897 = vmatpush3.bf16.msra.mxu0 %v18317_v9  ;;  %4856 = vmatprep.mubr.f32.mxu0 %v4717_v7  ;;  %v6563_v9 = vld [vmem:[%s18011_s18 + $0x58] sm:$0xff]  ;;  %v18329_v26 = vld [vmem:[#allocation28_spill] sm:$0xff] }
 0x77b   : > { %10946 = vmatprep.subr.bf16.mxu0 %v18318_v27  ;;  %v5164_v7 = vld [vmem:[%s18010_s17 + $0xb8] sm:$0xff] }
 0x77c   : > { %6142 = vmatmul.mubr.f32.gmra.mrb[166].mxu1 %v5121_v32  ;;  %v5165_v32 = vld [vmem:[%s18010_s17 + $0xc0] sm:$0xff] }
 0x77d   : > { %4857 = vmatmul.mubr.f32.gmra.mrb[152].mxu0 %v4716_v60  ;;  %6146 = vmatprep.mubr.f32.mxu1 %v5126_v36  ;;  %v5166_v60 = vld [vmem:[%s18010_s17 + $0xc8] sm:$0xff]  ;;  %v5167_v36 = vld [vmem:[%s18010_s17 + $0xd0] sm:$0xff] }
 0x77e   : > { %4861 = vmatprep.mubr.f32.mxu0 %v4719_v18  ;;  %v18330_v18 = vld [vmem:[#allocation29_spill] sm:$0xff] }
 0x780   : > { %6147 = vmatmul.mubr.f32.gmra.mrb[168].mxu1 %v5125_v6  ;;  %v6564_v6 = vld [vmem:[%s18011_s18 + $0x60] sm:$0xff] }
 0x781   : > { %4862 = vmatmul.mubr.f32.gmra.mrb[154].mxu0 %v4718_v10  ;;  %6151 = vmatprep.mubr.f32.mxu1 %v5130_v59  ;;  %v6565_v10 = vld [vmem:[%s18011_s18 + $0x68] sm:$0xff]  ;;  %v18331_v59 = vld [vmem:[#allocation30_spill] sm:$0xff] }
 0x782   : > { %4866 = vmatprep.mubr.f32.mxu0 %v4721_v24  ;;  %v5168_v24 = vld [vmem:[%s18010_s17 + $0xd8] sm:$0xff] }
 0x784   : > { %6152 = vmatmul.mubr.f32.gmra.mrb[170].mxu1 %v5129_v3  ;;  %v5169_v3 = vld [vmem:[%s18010_s17 + $0xe0] sm:$0xff] }
 0x785   : > { %4867 = vmatmul.mubr.f32.gmra.mrb[156].mxu0 %v4720_v13  ;;  %6156 = vmatprep.mubr.f32.mxu1 %v5134_v47  ;;  %v5170_v13 = vld [vmem:[%s18010_s17 + $0xe8] sm:$0xff]  ;;  %v5171_v47 = vld [vmem:[%s18010_s17 + $0xf0] sm:$0xff] }
 0x786   : > { %4871 = vmatprep.mubr.f32.mxu0 %v4723_v42  ;;  %v18332_v42 = vld [vmem:[#allocation31_spill] sm:$0xff] }
 0x788   : > { %6157 = vmatmul.mubr.f32.gmra.mrb[172].mxu1 %v5133_v63  ;;  %v6566_v63 = vld [vmem:[%s18011_s18 + $0x70] sm:$0xff] }
 0x789   : > { %4872 = vmatmul.mubr.f32.gmra.mrb[158].mxu0 %v4722_v39  ;;  %6161 = vmatprep.mubr.f32.mxu1 %v5138_v46  ;;  %v6567_v39 = vld [vmem:[%s18011_s18 + $0x78] sm:$0xff]  ;;  %v18333_v46 = vld [vmem:[#allocation32_spill] sm:$0xff] }
 0x78a   : > { %10130 = vmatprep.mubr.msk.f32.mxu0 %vm1931_vm0, %v5141_v30  ;;  %v5172_v30 = vld [vmem:[%s18010_s17 + $0xf8] sm:$0xff] }
 0x78c   : > { %6162 = vmatmul.mubr.f32.gmra.mrb[174].mxu1 %v5137_v49  ;;  %v5173_v49 = vld [vmem:[%s18010_s17 + $0x100] sm:$0xff] }
 0x78d   : > { %10131 = vmatmul.mubr.msk.f32.vlgmr.msra.gmra.mrb[160].mxu0 %vm1931_vm0, %v5142_v15  ;;  %10242 = vmatprep.mubr.msk.f32.mxu1 %vm1931_vm0, %v6552_v14  ;;  %v5174_v15 = vld [vmem:[%s18010_s17 + $0x108] sm:$0xff]  ;;  %v5175_v14 = vld [vmem:[%s18010_s17 + $0x110] sm:$0xff] }
 0x78e   : > { %10133 = vmatprep.mubr.msk.f32.mxu0 %vm1931_vm0, %v5143_v58  ;;  %10948 = vmatpush1.bf16.msra.mxu0 %v18319_v29  ;;  %v18334_v58 = vld [vmem:[#allocation33_spill] sm:$0xff]  ;;  %v5177_v29 = vld [vmem:[%s18010_s17 + $0x120] sm:$0xff] }
 0x78f   : > { %10949 = vmatprep.subr.bf16.mxu0 %v18318_v27 }
 0x790   : > { %10243 = vmatmul.mubr.msk.f32.vlgmr.msra.gmra.mrb[176].mxu1 %vm1931_vm0, %v6553_v1  ;;  %v6569_v1 = vld [vmem:[%s18011_s18 + $0x88] sm:$0xff] }
 0x791   : > { %10134 = vmatmul.mubr.msk.f32.gmra.mrb[162].mxu0 %vm1931_vm0, %v5144_v17  ;;  %10245 = vmatprep.mubr.msk.f32.mxu1 %vm1931_vm0, %v6554_v12  ;;  %v5176_v17 = vld [vmem:[%s18010_s17 + $0x118] sm:$0xff] }
 0x792   : > { %10136 = vmatprep.mubr.msk.f32.mxu0 %vm1931_vm0, %v5145_v52  ;;  %10951 = vmatpush1.bf16.msra.mxu0 %v18320_v50  ;;  %v5178_v52 = vld [vmem:[%s18010_s17 + $0x128] sm:$0xff]  ;;  %v6570_v50 = vld [vmem:[%s18011_s18 + $0x90] sm:$0xff]  ;;  %v5180_v12 = vld [vmem:[%s18010_s17 + $0x138] sm:$0xff] }
 0x793   : > { %10952 = vmatprep.subr.bf16.mxu0 %v18318_v27 }
 0x794   : > { %10246 = vmatmul.mubr.msk.f32.gmra.mrb[178].mxu1 %vm1931_vm0, %v6555_v28  ;;  %v5181_v28 = vld [vmem:[%s18010_s17 + $0x140] sm:$0xff] }
 0x795   : > { %10137 = vmatmul.mubr.msk.f32.gmra.mrb[164].mxu0 %vm1931_vm0, %v5146_v62  ;;  %10248 = vmatprep.mubr.msk.f32.mxu1 %vm1931_vm0, %v6556_v35  ;;  %v5179_v62 = vld [vmem:[%s18010_s17 + $0x130] sm:$0xff]  ;;  %v5185_v35 = vld [vmem:[%s18010_s17 + $0x160] sm:$0xff] }
 0x796   : > { %10139 = vmatprep.mubr.msk.f32.mxu0 %vm1931_vm0, %v5147_v16  ;;  %10954 = vmatpush1.bf16.msra.mxu0 %v18321_v51  ;;  %v6571_v16 = vld [vmem:[%s18011_s18 + $0x98] sm:$0xff]  ;;  %v5183_v51 = vld [vmem:[%s18010_s17 + $0x150] sm:$0xff] }
 0x797   : > { %10955 = vmatprep.subr.bf16.mxu0 %v18318_v27 }
 0x798   : > { %10249 = vmatmul.mubr.msk.f32.gmra.mrb[180].mxu1 %vm1931_vm0, %v6557_v25 }
 0x799   : > { %10140 = vmatmul.mubr.msk.f32.gmra.mrb[166].mxu0 %vm1931_vm0, %v5148_v31  ;;  %10251 = vmatprep.mubr.msk.f32.mxu1 %vm1931_vm0, %v6558_v41  ;;  %v5182_v31 = vld [vmem:[%s18010_s17 + $0x148] sm:$0xff]  ;;  %v6574_v41 = vld [vmem:[%s18011_s18 + $0xb0] sm:$0xff] }
 0x79a   : > { %10142 = vmatprep.mubr.msk.f32.mxu0 %vm1931_vm0, %v5149_v38  ;;  %10957 = vmatpush1.bf16.msra.mxu0 %v18322_v0  ;;  %v6572_v38 = vld [vmem:[%s18011_s18 + $0xa0] sm:$0xff]  ;;  %v5184_v0 = vld [vmem:[%s18010_s17 + $0x158] sm:$0xff] }
 0x79b   : > { %10958 = vmatprep.subr.bf16.mxu0 %v18318_v27 }
 0x79c   : > { %10252 = vmatmul.mubr.msk.f32.gmra.mrb[182].mxu1 %vm1931_vm0, %v6559_v11 }
 0x79d   : > { %10143 = vmatmul.mubr.msk.f32.gmra.mrb[168].mxu0 %vm1931_vm0, %v5150_v56  ;;  %10254 = vmatprep.mubr.msk.f32.mxu1 %vm1931_vm0, %v6560_v44  ;;  %v6573_v56 = vld [vmem:[%s18011_s18 + $0xa8] sm:$0xff] }
 0x79e   : > { %10145 = vmatprep.mubr.msk.f32.mxu0 %vm1931_vm0, %v5151_v33  ;;  %10960 = vmatpush1.bf16.msra.mxu0 %v18323_v34  ;;  %v15572_v33 = vpop.f32.mrb[48].mxu1 }
 0x79f   : > { %10961 = vmatprep.subr.bf16.mxu0 %v18318_v27  ;;  %v5850_v25 = vpop.f32.mrb[49].mxu1 }
 0x7a0   : > { %10255 = vmatmul.mubr.msk.f32.gmra.mrb[184].mxu1 %vm1931_vm0, %v6561_v57  ;;  %v6582_v25 = vld [vmem:[%s18011_s18 + $0xf0] sm:$0xff] }
 0x7a1   : > { %10146 = vmatmul.mubr.msk.f32.gmra.mrb[170].mxu0 %vm1931_vm0, %v5152_v61  ;;  %10257 = vmatprep.mubr.msk.f32.mxu1 %vm1931_vm0, %v6562_v4  ;;  %v15577_v61 = vpop.f32.mrb[50].mxu1  ;;  %v6577_v4 = vld [vmem:[%s18011_s18 + $0xc8] sm:$0xff] }
 0x7a2   : > { %10148 = vmatprep.mubr.msk.f32.mxu0 %vm1931_vm0, %v5153_v37  ;;  %10963 = vmatpush1.bf16.msra.mxu0 %v18324_v22  ;;  %v5855_v34 = vpop.f32.mrb[51].mxu1  ;;  %v5186_v37 = vld [vmem:[%s18010_s17 + $0x168] sm:$0xff]  ;;  %v5187_v22 = vld [vmem:[%s18010_s17 + $0x170] sm:$0xff] }
 0x7a3   : > { %10964 = vmatprep.subr.bf16.mxu0 %v18318_v27 }
 0x7a4   : > { %10258 = vmatmul.mubr.msk.f32.gmra.mrb[186].mxu1 %vm1931_vm0, %v6563_v9 }
 0x7a5   : > { %10149 = vmatmul.mubr.msk.f32.gmra.mrb[172].mxu0 %vm1931_vm0, %v5154_v5  ;;  %10260 = vmatprep.mubr.msk.f32.mxu1 %vm1931_vm0, %v6564_v6  ;;  %v15584_v5 = vpop.f32.mrb[52].mxu1  ;;  %v5194_v6 = vld [vmem:[%s18010_s17 + $0x1a8] sm:$0xff] }
 0x7a6   : > { %10151 = vmatprep.mubr.msk.f32.mxu0 %vm1931_vm0, %v5155_v54  ;;  %10966 = vmatpush1.bf16.msra.mxu0 %v18325_v23  ;;  %v5860_v54 = vpop.f32.mrb[53].mxu1 }
 0x7a7   : > { %10967 = vmatprep.subr.bf16.mxu0 %v18318_v27  ;;  %v15592_v11 = vpop.f32.mrb[54].mxu1  ;;  %v5204_v54 = vld [vmem:[%s18010_s17 + $0x1f8] sm:$0xff] }
 0x7a8   : > { %10261 = vmatmul.mubr.msk.f32.gmra.mrb[188].mxu1 %vm1931_vm0, %v6565_v10  ;;  %v5865_v23 = vpop.f32.mrb[55].mxu1 }
 0x7a9   : > { %10152 = vmatmul.mubr.msk.f32.gmra.mrb[174].mxu0 %vm1931_vm0, %v5156_v53  ;;  %10263 = vmatprep.mubr.msk.f32.mxu1 %vm1931_vm0, %v6566_v63  ;;  %v6575_v53 = vld [vmem:[%s18011_s18 + $0xb8] sm:$0xff] }
 0x7aa   : > { %10154 = vmatprep.mubr.msk.f32.mxu0 %vm1931_vm0, %v5157_v21  ;;  %10969 = vmatpush1.bf16.msra.mxu0 %v18326_v8  ;;  %v5188_v21 = vld [vmem:[%s18010_s17 + $0x178] sm:$0xff]  ;;  %v5189_v8 = vld [vmem:[%s18010_s17 + $0x180] sm:$0xff] }
 0x7ab   : > { %10970 = vmatprep.subr.bf16.mxu0 %v18318_v27  ;;  %v5196_v63 = vld [vmem:[%s18010_s17 + $0x1b8] sm:$0xff] }
 0x7ac   : > { %10264 = vmatmul.mubr.msk.f32.gmra.mrb[190].mxu1 %vm1931_vm0, %v6567_v39 }
 0x7ad   : > { %10155 = vmatmul.mubr.msk.f32.gmra.mrb[176].mxu0 %vm1931_vm0, %v5158_v40  ;;  %v15604_v40 = vpop.f32.mrb[56].mxu1 }
 0x7ae   : > { %10157 = vmatprep.mubr.msk.f32.mxu0 %vm1931_vm0, %v5159_v19  ;;  %10972 = vmatpush1.bf16.msra.mxu0 %v18327_v48  ;;  %v5870_v19 = vpop.f32.mrb[57].mxu1 }
 0x7af   : > { %10973 = vmatprep.subr.bf16.mxu0 %v18318_v27  ;;  %v15609_v44 = vpop.f32.mrb[58].mxu1  ;;  %v4887_v19 = vld [vmem:[%s18009_s16 + $0x10] sm:$0xff] }
 0x7b0   : > { %v5875_v57 = vpop.f32.mrb[59].mxu1 }
 0x7b1   : > { %10158 = vmatmul.mubr.msk.f32.gmra.mrb[178].mxu0 %vm1931_vm0, %v5160_v55  ;;  %v5190_v55 = vld [vmem:[%s18010_s17 + $0x188] sm:$0xff]  ;;  %v15616_v48 = vpop.f32.mrb[60].mxu1 }
 0x7b2   : > { %10160 = vmatprep.mubr.msk.f32.mxu0 %vm1931_vm0, %v5161_v43  ;;  %10975 = vmatpush1.bf16.msra.mxu0 %v18328_v45  ;;  %v5191_v43 = vld [vmem:[%s18010_s17 + $0x190] sm:$0xff]  ;;  %v6576_v45 = vld [vmem:[%s18011_s18 + $0xc0] sm:$0xff] }
 0x7b3   : > { %10976 = vmatprep.subr.bf16.mxu0 %v18318_v27 }
 0x7b5   : > { %10161 = vmatmul.mubr.msk.f32.gmra.mrb[180].mxu0 %vm1931_vm0, %v5162_v2  ;;  %v5880_v2 = vpop.f32.mrb[61].mxu1 }
 0x7b6   : > { %10163 = vmatprep.mubr.msk.f32.mxu0 %vm1931_vm0, %v5163_v20  ;;  %10978 = vmatpush1.bf16.msra.mxu0 %v18329_v26  ;;  %v15624_v20 = vpop.f32.mrb[62].mxu1  ;;  %v6584_v2 = vld [vmem:[%s18011_s18 + $0x100] sm:$0xff] }
 0x7b7   : > { %10979 = vmatprep.subr.bf16.mxu0 %v18318_v27  ;;  %v5885_v9 = vpop.f32.mrb[63].mxu1 }
 0x7b8   : > { %v15636_v26 = vpop.f32.mrb[64].mxu1 }
 0x7b9   : > { %10164 = vmatmul.mubr.msk.f32.gmra.mrb[182].mxu0 %vm1931_vm0, %v5164_v7  ;;  %v5192_v7 = vld [vmem:[%s18010_s17 + $0x198] sm:$0xff] }
 0x7ba   : > { %10166 = vmatprep.mubr.msk.f32.mxu0 %vm1931_vm0, %v5165_v32  ;;  %10981 = vmatpush1.bf16.msra.mxu0 %v18330_v18  ;;  %v5193_v32 = vld [vmem:[%s18010_s17 + $0x1a0] sm:$0xff] }
 0x7bb   : > { %10982 = vmatprep.subr.bf16.mxu0 %v18318_v27 }
 0x7bd   : > { %10167 = vmatmul.mubr.msk.f32.gmra.mrb[184].mxu0 %vm1931_vm0, %v5166_v60  ;;  %v5890_v60 = vpop.f32.mrb[65].mxu1 }
 0x7be   : > { %10169 = vmatprep.mubr.msk.f32.mxu0 %vm1931_vm0, %v5167_v36  ;;  %10984 = vmatpush1.bf16.msra.mxu0 %v18331_v59  ;;  %v15641_v18 = vpop.f32.mrb[66].mxu1  ;;  %v4896_v60 = vld [vmem:[%s18009_s16 + $0x58] sm:$0xff] }
 0x7bf   : > { %10985 = vmatprep.subr.bf16.mxu0 %v18318_v27  ;;  %v5895_v36 = vpop.f32.mrb[67].mxu1 }
 0x7c0   : > { %v15648_v10 = vpop.f32.mrb[68].mxu1 }
 0x7c1   : > { %10170 = vmatmul.mubr.msk.f32.gmra.mrb[186].mxu0 %vm1931_vm0, %v5168_v24  ;;  %v5195_v24 = vld [vmem:[%s18010_s17 + $0x1b0] sm:$0xff]  ;;  %v5900_v59 = vpop.f32.mrb[69].mxu1 }
 0x7c2   : > { %10172 = vmatprep.mubr.msk.f32.mxu0 %vm1931_vm0, %v5169_v3  ;;  %10987 = vmatpush1.bf16.msra.mxu0 %v18332_v42  ;;  %v6578_v3 = vld [vmem:[%s18011_s18 + $0xd0] sm:$0xff]  ;;  %v6579_v42 = vld [vmem:[%s18011_s18 + $0xd8] sm:$0xff] }
 0x7c3   : > { %10988 = vmatprep.subr.bf16.mxu0 %v18318_v27  ;;  %v4895_v59 = vld [vmem:[%s18009_s16 + $0x50] sm:$0xff] }
 0x7c5   : > { %10173 = vmatmul.mubr.msk.f32.gmra.mrb[188].mxu0 %vm1931_vm0, %v5170_v13  ;;  %v15656_v13 = vpop.f32.mrb[70].mxu1 }
 0x7c6   : > { %10175 = vmatprep.mubr.msk.f32.mxu0 %vm1931_vm0, %v5171_v47  ;;  %10990 = vmatpush1.bf16.msra.mxu0 %v18333_v46  ;;  %v5905_v47 = vpop.f32.mrb[71].mxu1 }
 0x7c7   : > { %10991 = vmatprep.subr.bf16.mxu0 %v18318_v27  ;;  %v6568_v27 = vld [vmem:[%s18011_s18 + $0x80] sm:$0xff]  ;;  %v15668_v39 = vpop.f32.mrb[72].mxu1 }
 0x7c8   : > { %10266 = vmatprep.mubr.msk.f32.mxu1 %vm1931_vm0, %v6568_v27  ;;  %v5910_v46 = vpop.f32.mrb[73].mxu1  ;;  %v5199_v27 = vld [vmem:[%s18010_s17 + $0x1d0] sm:$0xff] }
 0x7c9   : > { %10176 = vmatmul.mubr.msk.f32.gmra.mrb[190].mxu0 %vm1931_vm0, %v5172_v30  ;;  %10267 = vmatmul.mubr.msk.f32.gmra.mrb[192].mxu1 %vm1931_vm0, %v6569_v1  ;;  %v5197_v30 = vld [vmem:[%s18010_s17 + $0x1c0] sm:$0xff]  ;;  %v6587_v46 = vld [vmem:[%s18011_s18 + $0x118] sm:$0xff] }
 0x7ca   : > { %10178 = vmatprep.mubr.msk.f32.mxu0 %vm1931_vm0, %v5173_v49  ;;  %10993 = vmatpush1.bf16.msra.mxu0 %v18334_v58  ;;  %v15673_v49 = vpop.f32.mrb[74].mxu1  ;;  %v5198_v58 = vld [vmem:[%s18010_s17 + $0x1c8] sm:$0xff] }
 0x7cb   : > { %10269 = vmatprep.mubr.msk.f32.mxu1 %vm1931_vm0, %v6570_v50  ;;  %v5200_v50 = vld [vmem:[%s18010_s17 + $0x1d8] sm:$0xff] }
 0x7cd   : > { %10179 = vmatmul.mubr.msk.f32.gmra.mrb[192].mxu0 %vm1931_vm0, %v5174_v15  ;;  %10270 = vmatmul.mubr.msk.f32.gmra.mrb[194].mxu1 %vm1931_vm0, %v6571_v16  ;;  %v5915_v15 = vpop.f32.mrb[75].mxu1 }
 0x7ce   : > { %10181 = vmatprep.mubr.msk.f32.mxu0 %vm1931_vm0, %v5175_v14  ;;  %10272 = vmatprep.mubr.msk.f32.mxu1 %vm1931_vm0, %v6572_v38  ;;  %v15680_v14 = vpop.f32.mrb[76].mxu1  ;;  %v5202_v38 = vld [vmem:[%s18010_s17 + $0x1e8] sm:$0xff] }
 0x7cf   : > { %v5920_v1 = vpop.f32.mrb[77].mxu1 }
 0x7d0   : > { %v4904_v1 = vld [vmem:[%s18009_s16 + $0x98] sm:$0xff] }
 0x7d1   : > { %10182 = vmatmul.mubr.msk.f32.gmra.mrb[194].mxu0 %vm1931_vm0, %v5176_v17  ;;  %10273 = vmatmul.mubr.msk.f32.gmra.mrb[196].mxu1 %vm1931_vm0, %v6573_v56  ;;  %v6580_v17 = vld [vmem:[%s18011_s18 + $0xe0] sm:$0xff] }
 0x7d2   : > { %10184 = vmatprep.mubr.msk.f32.mxu0 %vm1931_vm0, %v5177_v29  ;;  %10275 = vmatprep.mubr.msk.f32.mxu1 %vm1931_vm0, %v6574_v41  ;;  %v15688_v29 = vpop.f32.mrb[78].mxu1 }
 0x7d5   : > { %10185 = vmatmul.mubr.msk.f32.gmra.mrb[196].mxu0 %vm1931_vm0, %v5178_v52  ;;  %10276 = vmatmul.mubr.msk.f32.gmra.mrb[198].mxu1 %vm1931_vm0, %v6575_v53  ;;  %v6581_v52 = vld [vmem:[%s18011_s18 + $0xe8] sm:$0xff]  ;;  %v4888_v53 = vld [vmem:[%s18009_s16 + $0x18] sm:$0xff] }
 0x7d6   : > { %10187 = vmatprep.mubr.msk.f32.mxu0 %vm1931_vm0, %v5179_v62  ;;  %10278 = vmatprep.mubr.msk.f32.mxu1 %vm1931_vm0, %v6576_v45  ;;  %v5925_v62 = vpop.f32.mrb[79].mxu1 }
 0x7d7   : > { %v15700_v16 = vpop.f32.mrb[80].mxu1 }
 0x7d9   : > { %10188 = vmatmul.mubr.msk.f32.gmra.mrb[198].mxu0 %vm1931_vm0, %v5180_v12  ;;  %10279 = vmatmul.mubr.msk.f32.gmra.mrb[200].mxu1 %vm1931_vm0, %v6577_v4  ;;  %v5201_v12 = vld [vmem:[%s18010_s17 + $0x1e0] sm:$0xff]  ;;  %v6585_v4 = vld [vmem:[%s18011_s18 + $0x108] sm:$0xff] }
 0x7da   : > { %10190 = vmatprep.mubr.msk.f32.mxu0 %vm1931_vm0, %v5181_v28  ;;  %10281 = vmatprep.mubr.msk.f32.mxu1 %vm1931_vm0, %v6578_v3  ;;  %v5930_v28 = vpop.f32.mrb[81].mxu1 }
 0x7db   : > { %v4908_v28 = vld [vmem:[%s18009_s16 + $0xb8] sm:$0xff] }
 0x7dd   : > { %10191 = vmatmul.mubr.msk.f32.gmra.mrb[200].mxu0 %vm1931_vm0, %v5182_v31  ;;  %10282 = vmatmul.mubr.msk.f32.gmra.mrb[202].mxu1 %vm1931_vm0, %v6579_v42  ;;  %v15705_v31 = vpop.f32.mrb[82].mxu1  ;;  %v4900_v42 = vld [vmem:[%s18009_s16 + $0x78] sm:$0xff] }
 0x7de   : > { %10193 = vmatprep.mubr.msk.f32.mxu0 %vm1931_vm0, %v5183_v51  ;;  %10284 = vmatprep.mubr.msk.f32.mxu1 %vm1931_vm0, %v6580_v17  ;;  %v5935_v51 = vpop.f32.mrb[83].mxu1 }
 0x7df   : > { %v15712_v56 = vpop.f32.mrb[84].mxu1 }
 0x7e1   : > { %10194 = vmatmul.mubr.msk.f32.gmra.mrb[202].mxu0 %vm1931_vm0, %v5184_v0  ;;  %10285 = vmatmul.mubr.msk.f32.gmra.mrb[204].mxu1 %vm1931_vm0, %v6581_v52  ;;  %v5203_v0 = vld [vmem:[%s18010_s17 + $0x1f0] sm:$0xff] }
 0x7e2   : > { %10196 = vmatprep.mubr.msk.f32.mxu0 %vm1931_vm0, %v5185_v35  ;;  %v5940_v35 = vpop.f32.mrb[85].mxu1  ;;  %10287 = vmatprep.mubr.msk.f32.mxu1 %vm1931_vm0, %v6582_v25 }
 0x7e3   : > { %v15720_v34 = vpop.f32.mrb[86].mxu1  ;;  %v6589_v35 = vld [vmem:[%s18011_s18 + $0x128] sm:$0xff] }
 0x7e5   : > { %10197 = vmatmul.mubr.msk.f32.gmra.mrb[204].mxu0 %vm1931_vm0, %v5186_v37  ;;  %v6583_v37 = vld [vmem:[%s18011_s18 + $0xf8] sm:$0xff] }
 0x7e6   : > { %10199 = vmatprep.mubr.msk.f32.mxu0 %vm1931_vm0, %v5187_v22  ;;  %v5945_v22 = vpop.f32.mrb[87].mxu1  ;;  %10288 = vmatmul.mubr.msk.f32.gmra.mrb[206].mxu1 %vm1931_vm0, %v6583_v37  ;;  %v4907_v37 = vld [vmem:[%s18009_s16 + $0xb0] sm:$0xff] }
 0x7e7   : > { %v15732_v41 = vpop.f32.mrb[88].mxu1  ;;  %10290 = vmatprep.mubr.msk.f32.mxu1 %vm1931_vm0, %v6584_v2 }
 0x7e8   : > { %v5950_v23 = vpop.f32.mrb[89].mxu1 }
 0x7e9   : > { %10200 = vmatmul.mubr.msk.f32.gmra.mrb[206].mxu0 %vm1931_vm0, %v5188_v21  ;;  %v15737_v21 = vpop.f32.mrb[90].mxu1 }
 0x7ea   : > { %10202 = vmatprep.mubr.msk.f32.mxu0 %vm1931_vm0, %v5189_v8  ;;  %v5955_v8 = vpop.f32.mrb[91].mxu1  ;;  %10291 = vmatmul.mubr.msk.f32.gmra.mrb[208].mxu1 %vm1931_vm0, %v6585_v4  ;;  %v6590_v4 = vld [vmem:[%s18011_s18 + $0x130] sm:$0xff] }
 0x7eb   : > { %v15743_v57 = vpop.f32.mrb[92].mxu1 }
 0x7ed   : > { %10203 = vmatmul.mubr.msk.f32.gmra.mrb[208].mxu0 %vm1931_vm0, %v5190_v55  ;;  %v4892_v55 = vld [vmem:[%s18009_s16 + $0x38] sm:$0xff] }
 0x7ee   : > { %10205 = vmatprep.mubr.msk.f32.mxu0 %vm1931_vm0, %v5191_v43  ;;  %v5960_v43 = vpop.f32.mrb[93].mxu1 }
 0x7ef   : > { %v15751_v45 = vpop.f32.mrb[94].mxu1  ;;  %v4916_v43 = vld [vmem:[%s18009_s16 + $0xf8] sm:$0xff] }
 0x7f0   : > { %v5965_v9 = vpop.f32.mrb[95].mxu1 }
 0x7f1   : > { %10206 = vmatmul.mubr.msk.f32.gmra.mrb[210].mxu0 %vm1931_vm0, %v5192_v7  ;;  %v4891_v7 = vld [vmem:[%s18009_s16 + $0x30] sm:$0xff] }
 0x7f2   : > { %10208 = vmatprep.mubr.msk.f32.mxu0 %vm1931_vm0, %v5193_v32  ;;  %v15761_v32 = vpop.f32.mrb[96].mxu1 }
 0x7f3   : > { %v5970_v36 = vpop.f32.mrb[97].mxu1 }
 0x7f4   : > { %v4915_v36 = vld [vmem:[%s18009_s16 + $0xf0] sm:$0xff] }
 0x7f5   : > { %10209 = vmatmul.mubr.msk.f32.gmra.mrb[212].mxu0 %vm1931_vm0, %v5194_v6  ;;  %v15766_v6 = vpop.f32.mrb[98].mxu1 }
 0x7f6   : > { %10211 = vmatprep.mubr.msk.f32.mxu0 %vm1931_vm0, %v5195_v24  ;;  %v5975_v24 = vpop.f32.mrb[99].mxu1 }
 0x7f7   : > { %v15771_v3 = vpop.f32.mrb[100].mxu1 }
 0x7f8   : > { %v5980_v47 = vpop.f32.mrb[101].mxu1 }
 0x7f9   : > { %10212 = vmatmul.mubr.msk.f32.gmra.mrb[214].mxu0 %vm1931_vm0, %v5196_v63  ;;  %v6586_v63 = vld [vmem:[%s18011_s18 + $0x110] sm:$0xff] }
 0x7fa   : > { %10214 = vmatprep.mubr.msk.f32.mxu0 %vm1931_vm0, %v5197_v30  ;;  %v15779_v30 = vpop.f32.mrb[102].mxu1  ;;  %10293 = vmatprep.mubr.msk.f32.mxu1 %vm1931_vm0, %v6586_v63 }
 0x7fb   : > { %v5985_v15 = vpop.f32.mrb[103].mxu1  ;;  %10294 = vmatmul.mubr.msk.f32.gmra.mrb[210].mxu1 %vm1931_vm0, %v6587_v46  ;;  %v4919_v46 = vld [vmem:[%s18009_s16 + $0x110] sm:$0xff] }
 0x7fd   : > { %10215 = vmatmul.mubr.msk.f32.gmra.mrb[216].mxu0 %vm1931_vm0, %v5198_v58  ;;  %v4899_v58 = vld [vmem:[%s18009_s16 + $0x70] sm:$0xff] }
 0x7fe   : > { %10217 = vmatprep.mubr.msk.f32.mxu0 %vm1931_vm0, %v5199_v27  ;;  %v15789_v27 = vpop.f32.mrb[104].mxu1 }
 0x7ff   : > { %v5990_v17 = vpop.f32.mrb[105].mxu1 }
 0x800   : > { %v15794_v52 = vpop.f32.mrb[106].mxu1  ;;  %v6592_v17 = vld [vmem:[%s18011_s18 + $0x140] sm:$0xff] }
 0x801   : > { %10218 = vmatmul.mubr.msk.f32.gmra.mrb[218].mxu0 %vm1931_vm0, %v5200_v50  ;;  %v5995_v62 = vpop.f32.mrb[107].mxu1  ;;  %v4903_v50 = vld [vmem:[%s18009_s16 + $0x90] sm:$0xff] }
 0x802   : > { %10220 = vmatprep.mubr.msk.f32.mxu0 %vm1931_vm0, %v5201_v12  ;;  %v15799_v12 = vpop.f32.mrb[108].mxu1 }
 0x803   : > { %v6000_v51 = vpop.f32.mrb[109].mxu1 }
 0x804   : > { %v4923_v51 = vld [vmem:[%s18009_s16 + $0x130] sm:$0xff] }
 0x805   : > { %10221 = vmatmul.mubr.msk.f32.gmra.mrb[220].mxu0 %vm1931_vm0, %v5202_v38  ;;  %v6588_v38 = vld [vmem:[%s18011_s18 + $0x120] sm:$0xff] }
 0x806   : > { %10223 = vmatprep.mubr.msk.f32.mxu0 %vm1931_vm0, %v5203_v0  ;;  %v15807_v0 = vpop.f32.mrb[110].mxu1  ;;  %10296 = vmatprep.mubr.msk.f32.mxu1 %vm1931_vm0, %v6588_v38 }
 0x807   : > { %v6005_v25 = vpop.f32.mrb[111].mxu1  ;;  %10297 = vmatmul.mubr.msk.f32.gmra.mrb[212].mxu1 %vm1931_vm0, %v6589_v35  ;;  %v4928_v35 = vld [vmem:[%s18009_s16 + $0x158] sm:$0xff] }
 0x808   : > { %v15817_v22 = vpop.f32.mrb[112].mxu1  ;;  %10299 = vmatprep.mubr.msk.f32.mxu1 %vm1931_vm0, %v6590_v4 }
 0x809   : > { %10224 = vmatmul.mubr.msk.f32.gmra.mrb[222].mxu0 %vm1931_vm0, %v5204_v54  ;;  %v4912_v54 = vld [vmem:[%s18009_s16 + $0xd8] sm:$0xff] }
 0x80a   : > { %6231 = vmatprep.mubr.f32.mxu0 %v4888_v53  ;;  %v6010_v53 = vpop.f32.mrb[113].mxu1 }
 0x80b   : > { %v15822_v23 = vpop.f32.mrb[114].mxu1  ;;  %v4927_v53 = vld [vmem:[%s18009_s16 + $0x150] sm:$0xff] }
 0x80c   : > { %v6015_v8 = vpop.f32.mrb[115].mxu1 }
 0x80d   : > { %6232 = vmatmul.mubr.f32.vlgmr.msra.gmra.mrb[224].mxu0 %v4887_v19  ;;  %v4911_v19 = vld [vmem:[%s18009_s16 + $0xd0] sm:$0xff] }
 0x80e   : > { %6236 = vmatprep.mubr.f32.mxu0 %v4892_v55  ;;  %v15827_v55 = vpop.f32.mrb[116].mxu1 }
 0x80f   : > { %v6020_v2 = vpop.f32.mrb[117].mxu1 }
 0x810   : > { %v15835_v9 = vpop.f32.mrb[118].mxu1  ;;  %v6594_v2 = vld [vmem:[%s18011_s18 + $0x150] sm:$0xff] }
 0x811   : > { %6237 = vmatmul.mubr.f32.gmra.mrb[226].mxu0 %v4891_v7  ;;  %v6591_v7 = vld [vmem:[%s18011_s18 + $0x138] sm:$0xff] }
 0x812   : > { %6241 = vmatprep.mubr.f32.mxu0 %v4896_v60  ;;  %v6025_v60 = vpop.f32.mrb[119].mxu1  ;;  %10300 = vmatmul.mubr.msk.f32.gmra.mrb[214].mxu1 %vm1931_vm0, %v6591_v7  ;;  %v6595_v7 = vld [vmem:[%s18011_s18 + $0x158] sm:$0xff] }
 0x813   : > { %v15845_v24 = vpop.f32.mrb[120].mxu1  ;;  %10302 = vmatprep.mubr.msk.f32.mxu1 %vm1931_vm0, %v6592_v17 }
 0x815   : > { %6242 = vmatmul.mubr.f32.gmra.mrb[228].mxu0 %v4895_v59  ;;  %v4920_v59 = vld [vmem:[%s18009_s16 + $0x118] sm:$0xff] }
 0x816   : > { %6246 = vmatprep.mubr.f32.mxu0 %v4900_v42  ;;  %v6030_v42 = vpop.f32.mrb[121].mxu1 }
 0x817   : > { %v15850_v47 = vpop.f32.mrb[122].mxu1  ;;  %v4936_v42 = vld [vmem:[%s18009_s16 + $0x198] sm:$0xff] }
 0x818   : > { %v6035_v63 = vpop.f32.mrb[123].mxu1 }
 0x819   : > { %6247 = vmatmul.mubr.f32.gmra.mrb[230].mxu0 %v4899_v58  ;;  %v15855_v15 = vpop.f32.mrb[124].mxu1  ;;  %v4924_v58 = vld [vmem:[%s18009_s16 + $0x138] sm:$0xff] }
 0x81a   : > { %6251 = vmatprep.mubr.f32.mxu0 %v4904_v1  ;;  %v6040_v1 = vpop.f32.mrb[125].mxu1 }
 0x81b   : > { %v15863_v62 = vpop.f32.mrb[126].mxu1  ;;  %v4935_v1 = vld [vmem:[%s18009_s16 + $0x190] sm:$0xff] }
 0x81d   : > { %6252 = vmatmul.mubr.f32.gmra.mrb[232].mxu0 %v4903_v50  ;;  %v6593_v50 = vld [vmem:[%s18011_s18 + $0x148] sm:$0xff] }
 0x81e   : > { %6256 = vmatprep.mubr.f32.mxu0 %v4908_v28  ;;  %v6045_v28 = vpop.f32.mrb[127].mxu1  ;;  %10303 = vmatmul.mubr.msk.f32.gmra.mrb[216].mxu1 %vm1931_vm0, %v6593_v50  ;;  %v4940_v50 = vld [vmem:[%s18009_s16 + $0x1b8] sm:$0xff] }
 0x81f   : > { %v15873_v38 = vpop.f32.mrb[128].mxu1  ;;  %10305 = vmatprep.mubr.msk.f32.mxu1 %vm1931_vm0, %v6594_v2 }
 0x820   : > { %v6050_v25 = vpop.f32.mrb[129].mxu1 }
 0x821   : > { %6257 = vmatmul.mubr.f32.gmra.mrb[234].mxu0 %v4907_v37  ;;  %v15878_v37 = vpop.f32.mrb[130].mxu1  ;;  %v6597_v25 = vld [vmem:[%s18011_s18 + $0x168] sm:$0xff] }
 0x822   : > { %6261 = vmatprep.mubr.f32.mxu0 %v4912_v54  ;;  %v6055_v54 = vpop.f32.mrb[131].mxu1  ;;  %10306 = vmatmul.mubr.msk.f32.gmra.mrb[218].mxu1 %vm1931_vm0, %v6595_v7 }
 0x823   : > { %v15883_v8 = vpop.f32.mrb[132].mxu1 }
 0x825   : > { %6262 = vmatmul.mubr.f32.gmra.mrb[236].mxu0 %v4911_v19  ;;  %v4932_v19 = vld [vmem:[%s18009_s16 + $0x178] sm:$0xff] }
 0x826   : > { %6266 = vmatprep.mubr.f32.mxu0 %v4916_v43  ;;  %v6060_v43 = vpop.f32.mrb[133].mxu1 }
 0x827   : > { %v15891_v4 = vpop.f32.mrb[134].mxu1  ;;  %v4944_v43 = vld [vmem:[%s18009_s16 + $0x1d8] sm:$0xff] }
 0x828   : > { %v6065_v60 = vpop.f32.mrb[135].mxu1 }
 0x829   : > { %6267 = vmatmul.mubr.f32.gmra.mrb[238].mxu0 %v4915_v36  ;;  %v4931_v36 = vld [vmem:[%s18009_s16 + $0x170] sm:$0xff] }
 0x82a   : > { %6271 = vmatprep.mubr.f32.mxu0 %v4920_v59  ;;  %v15901_v59 = vpop.f32.mrb[136].mxu1 }
 0x82b   : > { %v6070_v63 = vpop.f32.mrb[137].mxu1 }
 0x82d   : > { %6272 = vmatmul.mubr.f32.gmra.mrb[240].mxu0 %v4919_v46  ;;  %v15906_v46 = vpop.f32.mrb[138].mxu1 }
 0x82e   : > { %6276 = vmatprep.mubr.f32.mxu0 %v4924_v58  ;;  %v6075_v58 = vpop.f32.mrb[139].mxu1 }
 0x82f   : > { %v15911_v17 = vpop.f32.mrb[140].mxu1  ;;  %v4943_v58 = vld [vmem:[%s18009_s16 + $0x1d0] sm:$0xff] }
 0x830   : > { %18335 = vst [vmem:[#allocation36_spill] sm:$0xff] %v15911_v17  ;;  %v6080_v28 = vpop.f32.mrb[141].mxu1 }
 0x831   : > { %6277 = vmatmul.mubr.f32.gmra.mrb[242].mxu0 %v4923_v51  ;;  %v6596_v51 = vld [vmem:[%s18011_s18 + $0x160] sm:$0xff]  ;;  %v4948_v28 = vld [vmem:[%s18009_s16 + $0x1f8] sm:$0xff] }
 0x832   : > { %6281 = vmatprep.mubr.f32.mxu0 %v4928_v35  ;;  %v15919_v35 = vpop.f32.mrb[142].mxu1  ;;  %10308 = vmatprep.mubr.msk.f32.mxu1 %vm1931_vm0, %v6596_v51 }
 0x833   : > { %18336 = vst [vmem:[#allocation37_spill] sm:$0xff] %v15919_v35  ;;  %v6085_v54 = vpop.f32.mrb[143].mxu1  ;;  %10309 = vmatmul.mubr.msk.f32.gmra.mrb[220].mxu1 %vm1931_vm0, %v6597_v25 }
 0x834   : > { %v6598_v54 = vld [vmem:[%s18011_s18 + $0x170] sm:$0xff] }
 0x835   : > { %6282 = vmatmul.mubr.f32.gmra.mrb[244].mxu0 %v4927_v53  ;;  %v4939_v53 = vld [vmem:[%s18009_s16 + $0x1b0] sm:$0xff]  ;;  %10311 = vmatprep.mubr.msk.f32.mxu1 %vm1931_vm0, %v6598_v54 }
 0x836   : > { %6286 = vmatprep.mubr.f32.mxu0 %v4932_v19  ;;  %v15929_v19 = vpop.f32.mrb[144].mxu1 }
 0x837   : > { %18337 = vst [vmem:[#allocation40_spill] sm:$0xff] %v15929_v19  ;;  %v6090_v2 = vpop.f32.mrb[145].mxu1 }
 0x838   : > { %v15934_v60 = vpop.f32.mrb[146].mxu1  ;;  %v6599_v2 = vld [vmem:[%s18011_s18 + $0x178] sm:$0xff] }
 0x839   : > { %6287 = vmatmul.mubr.f32.gmra.mrb[246].mxu0 %v4931_v36  ;;  %18338 = vst [vmem:[#allocation41_spill] sm:$0xff] %v15934_v60  ;;  %10312 = vmatmul.mubr.msk.f32.gmra.mrb[222].mxu1 %vm1931_vm0, %v6599_v2 }
 0x83a   : > { %6291 = vmatprep.mubr.f32.mxu0 %v4936_v42  ;;  %v6095_v42 = vpop.f32.mrb[147].mxu1 }
 0x83d   : > { %6292 = vmatmul.mubr.f32.gmra.mrb[248].mxu0 %v4935_v1  ;;  %v15939_v1 = vpop.f32.mrb[148].mxu1 }
 0x83e   : > { %6296 = vmatprep.mubr.f32.mxu0 %v4940_v50  ;;  %18339 = vst [vmem:[#allocation44_spill] sm:$0xff] %v15939_v1  ;;  %v4735_v50 = vpop.permute.xlu0 %4734  ;;  %v6100_v51 = vpop.f32.mrb[149].mxu1 }
 0x83f   : > { %v4947_v51 = vld [vmem:[%s18009_s16 + $0x1f0] sm:$0xff] }
 0x840   : > { %v9682_v7 = vpop.f32.mrb[144].mxu0 }
 0x841   : > { %v9683_v36 = vpop.f32.mrb[145].mxu0  ;;  %6297 = vmatmul.mubr.f32.gmra.mrb[250].mxu0 %v4939_v53  ;;  %v15947_v53 = vpop.f32.mrb[150].mxu1 }
 0x842   : > { %v9684_v63 = vadd.f32 %v9683_v36, %v9682_v7  ;;  %6301 = vmatprep.mubr.f32.mxu0 %v4944_v43  ;;  %18340 = vst [vmem:[#allocation45_spill] sm:$0xff] %v15947_v53  ;;  %v6105_v7 = vpop.f32.mrb[151].mxu1  ;;  %v4740_v53 = vpop.permute.xlu1 %4739 }
 0x843   : > { %v15957_v1 = vpop.f32.mrb[152].mxu1  ;;  %v4745_v17 = vpop.permute.xlu0 %4744 }
 0x844   : > { %v9685_v25 = vpop.f32.mrb[146].mxu0  ;;  %v4839_v36 = vadd.f32 %v9684_v63, %v4735_v50  ;;  %18341 = vst [vmem:[#allocation48_spill] sm:$0xff] %v15957_v1  ;;  %v6110_v54 = vpop.f32.mrb[153].mxu1 }
 0x845   : > { %v9686_v43 = vpop.f32.mrb[147].mxu0  ;;  %6302 = vmatmul.mubr.f32.gmra.mrb[252].mxu0 %v4943_v58  ;;  %v4952_v58 = vld [vmem:[%s18009_s16 + $0x218] sm:$0xff]  ;;  %v15962_v7 = vpop.f32.mrb[154].mxu1 }
 0x846   : > { %v9687_v42 = vadd.f32 %v9686_v43, %v9685_v25  ;;  %6306 = vmatprep.mubr.f32.mxu0 %v4948_v28  ;;  %18342 = vst [vmem:[#allocation49_spill] sm:$0xff] %v15962_v7  ;;  %v6115_v50 = vpop.f32.mrb[155].mxu1  ;;  %v4951_v25 = vld [vmem:[%s18009_s16 + $0x210] sm:$0xff]  ;;  %v4877_v43 = vmax.f32 %v4839_v36, 0.0 }
 0x847   : > { %v15967_v1 = vpop.f32.mrb[156].mxu1  ;;  %v4755_v35 = vpop.permute.xlu0 %4754 }
 0x848   : > { %v4844_v19 = vadd.f32 %v9687_v42, %v4740_v53  ;;  %v9688_v60 = vpop.f32.mrb[148].mxu0  ;;  %18343 = vst [vmem:[#allocation52_spill] sm:$0xff] %v15967_v1  ;;  %v4956_v53 = vld [vmem:[%s18009_s16 + $0x238] sm:$0xff]  ;;  %v6120_v42 = vpop.f32.mrb[157].mxu1 }
 0x849   : > { %v9689_v63 = vpop.f32.mrb[149].mxu0  ;;  %6307 = vmatmul.mubr.f32.gmra.mrb[254].mxu0 %v4947_v51  ;;  %v15975_v51 = vpop.f32.mrb[158].mxu1 }
 0x84a   : > { %v9690_v28 = vadd.f32 %v9689_v63, %v9688_v60  ;;  %6311 = vmatprep.mubr.f32.mxu0 %v4952_v58  ;;  %v4878_v2 = vmax.f32 %v4844_v19, 0.0  ;;  %v6600_v60 = vld [vmem:[%s18011_s18 + $0x180] sm:$0xff]  ;;  %18344 = vst [vmem:[#allocation53_spill] sm:$0xff] %v15975_v51  ;;  %v6601_v19 = vld [vmem:[%s18011_s18 + $0x188] sm:$0xff]  ;;  %v6125_v36 = vpop.f32.mrb[159].mxu1  ;;  %v4750_v42 = vpop.permute.xlu1 %4749 }
 0x84b   : > { %10314 = vmatprep.mubr.msk.f32.mxu1 %vm1931_vm0, %v6600_v60 }
 0x84c   : > { %v9691_v54 = vpop.f32.mrb[150].mxu0  ;;  %v11010_v7 = vpack.c.bf16 %v4878_v2, %v4877_v43  ;;  %v4849_v63 = vadd.f32 %v9690_v28, %v4745_v17  ;;  %v4955_v43 = vld [vmem:[%s18009_s16 + $0x230] sm:$0xff]  ;;  %v15984_v2 = vpop.f32.mrb[160].mxu1  ;;  %10315 = vmatmul.mubr.msk.f32.gmra.mrb[224].mxu1 %vm1931_vm0, %v6601_v19  ;;  %v4964_v19 = vld [vmem:[%s18009_s16 + $0x278] sm:$0xff] }
 0x84d   : > { %v9692_v58 = vpop.f32.mrb[151].mxu0  ;;  %6312 = vmatmul.mubr.f32.gmra.mrb[0].mxu0 %v4951_v25  ;;  %18345 = vst [vmem:[#allocation56_spill] sm:$0xff] %v15984_v2  ;;  %v4960_v25 = vld [vmem:[%s18009_s16 + $0x258] sm:$0xff]  ;;  %v6130_v60 = vpop.f32.mrb[161].mxu1 }
 0x84e   : > { %v9693_v50 = vadd.f32 %v9692_v58, %v9691_v54  ;;  %11011 = vmatprep.subr.bf16.mxu0 %v11010_v7  ;;  %6316 = vmatprep.mubr.f32.mxu0 %v4956_v53  ;;  %v15990_v28 = vpop.f32.mrb[162].mxu1  ;;  %v4879_v2 = vmax.f32 %v4849_v63, 0.0  ;;  %v6603_v63 = vld [vmem:[%s18011_s18 + $0x198] sm:$0xff] }
 0x84f   : > { %11013 = vmatpush3.bf16.msra.mxu0 %v11010_v7  ;;  %v6135_v54 = vpop.f32.mrb[163].mxu1  ;;  %v4959_v7 = vld [vmem:[%s18009_s16 + $0x250] sm:$0xff] }
 0x850   : > { %v4854_v36 = vadd.f32 %v9693_v50, %v4750_v42  ;;  %v9694_v17 = vpop.f32.mrb[152].mxu0  ;;  %v15995_v51 = vpop.f32.mrb[164].mxu1 }
 0x851   : > { %v9695_v53 = vpop.f32.mrb[153].mxu0  ;;  %6317 = vmatmul.mubr.f32.gmra.mrb[2].mxu0 %v4955_v43  ;;  %18346 = vst [vmem:[#allocation57_spill] sm:$0xff] %v15995_v51  ;;  %v6140_v50 = vpop.f32.mrb[165].mxu1  ;;  %v6602_v43 = vld [vmem:[%s18011_s18 + $0x190] sm:$0xff] }
 0x852   : > { %v9696_v58 = vadd.f32 %v9695_v53, %v9694_v17  ;;  %6321 = vmatprep.mubr.f32.mxu0 %v4960_v25  ;;  %v4880_v1 = vmax.f32 %v4854_v36, 0.0  ;;  %v16003_v25 = vpop.f32.mrb[166].mxu1  ;;  %10317 = vmatprep.mubr.msk.f32.mxu1 %vm1931_vm0, %v6602_v43  ;;  %v4760_v50 = vpop.permute.xlu1 %4759 }
 0x853   : > { %v6145_v36 = vpop.f32.mrb[167].mxu1  ;;  %10318 = vmatmul.mubr.msk.f32.gmra.mrb[226].mxu1 %vm1931_vm0, %v6603_v63  ;;  %v4972_v63 = vld [vmem:[%s18009_s16 + $0x2b8] sm:$0xff] }
 0x854   : > { %v9697_v42 = vpop.f32.mrb[154].mxu0  ;;  %v11014_v60 = vpack.c.bf16 %v4880_v1, %v4879_v2  ;;  %v4859_v53 = vadd.f32 %v9696_v58, %v4755_v35  ;;  %v4963_v1 = vld [vmem:[%s18009_s16 + $0x270] sm:$0xff]  ;;  %v16012_v2 = vpop.f32.mrb[168].mxu1 }
 0x855   : > { %v9698_v17 = vpop.f32.mrb[155].mxu0  ;;  %6322 = vmatmul.mubr.f32.gmra.mrb[4].mxu0 %v4959_v7  ;;  %18347 = vst [vmem:[#allocation60_spill] sm:$0xff] %v16012_v2  ;;  %v4968_v7 = vld [vmem:[%s18009_s16 + $0x298] sm:$0xff]  ;;  %v6150_v43 = vpop.f32.mrb[169].mxu1 }
 0x856   : > { %v9699_v54 = vadd.f32 %v9698_v17, %v9697_v42  ;;  %11015 = vmatprep.subr.bf16.mxu0 %v11014_v60  ;;  %6326 = vmatprep.mubr.f32.mxu0 %v4964_v19  ;;  %v4881_v2 = vmax.f32 %v4859_v53, 0.0  ;;  %v6605_v53 = vld [vmem:[%s18011_s18 + $0x1a8] sm:$0xff] }
 0x857   : > { %11017 = vmatpush3.bf16.msra.mxu0 %v11014_v60  ;;  %v16018_v58 = vpop.f32.mrb[170].mxu1  ;;  %v4967_v60 = vld [vmem:[%s18009_s16 + $0x290] sm:$0xff] }
 0x858   : > { %v4864_v36 = vadd.f32 %v9699_v54, %v4760_v50  ;;  %v9700_v35 = vpop.f32.mrb[156].mxu0  ;;  %18348 = vst [vmem:[#allocation61_spill] sm:$0xff] %v16018_v58  ;;  %v6155_v42 = vpop.f32.mrb[171].mxu1 }
 0x859   : > { %v9701_v19 = vpop.f32.mrb[157].mxu0  ;;  %6327 = vmatmul.mubr.f32.gmra.mrb[6].mxu0 %v4963_v1  ;;  %v6604_v1 = vld [vmem:[%s18011_s18 + $0x1a0] sm:$0xff] }
 0x85a   : > { %v9702_v17 = vadd.f32 %v9701_v19, %v9700_v35  ;;  %6331 = vmatprep.mubr.f32.mxu0 %v4968_v7  ;;  %v4882_v51 = vmax.f32 %v4864_v36, 0.0  ;;  %v4765_v7 = vpop.permute.xlu0 %4764  ;;  %10320 = vmatprep.mubr.msk.f32.mxu1 %vm1931_vm0, %v6604_v1 }
 0x85b   : > { %v16026_v43 = vpop.f32.mrb[172].mxu1  ;;  %10321 = vmatmul.mubr.msk.f32.gmra.mrb[228].mxu1 %vm1931_vm0, %v6605_v53  ;;  %v4980_v53 = vld [vmem:[%s18009_s16 + $0x2f8] sm:$0xff] }
 0x85c   : > { %18349 = vst [vmem:[#allocation64_spill] sm:$0xff] %v16026_v43  ;;  %v9703_v54 = vpop.f32.mrb[158].mxu0  ;;  %v11018_v50 = vpack.c.bf16 %v4882_v51, %v4881_v2  ;;  %v6160_v35 = vpop.f32.mrb[173].mxu1  ;;  %v4869_v36 = vadd.f32 %v9702_v17, %v4765_v7  ;;  %v4971_v51 = vld [vmem:[%s18009_s16 + $0x2b0] sm:$0xff] }
 0x85d   : > { %v9704_v19 = vpop.f32.mrb[159].mxu0  ;;  %6332 = vmatmul.mubr.f32.gmra.mrb[8].mxu0 %v4967_v60  ;;  %v4770_v2 = vpop.permute.xlu1 %4769  ;;  %v4976_v60 = vld [vmem:[%s18009_s16 + $0x2d8] sm:$0xff] }
 0x85e   : > { %v9705_v42 = vadd.f32 %v9704_v19, %v9703_v54  ;;  %11019 = vmatprep.subr.bf16.mxu0 %v11018_v50  ;;  %6336 = vmatprep.mubr.f32.mxu0 %v4972_v63  ;;  %v4883_v7 = vmax.f32 %v4869_v36, 0.0 }
 0x85f   : > { %11021 = vmatpush3.bf16.msra.mxu0 %v11018_v50  ;;  %v16042_v1 = vpop.f32.mrb[174].mxu1  ;;  %v4975_v50 = vld [vmem:[%s18009_s16 + $0x2d0] sm:$0xff] }
 0x860   : > { %v4874_v35 = vadd.f32 %v9705_v42, %v4770_v2  ;;  %v10132_v43 = vpop.f32.mrb[160].mxu0  ;;  %v6165_v17 = vpop.f32.mrb[175].mxu1  ;;  %v6606_v2 = vld [vmem:[%s18011_s18 + $0x1b0] sm:$0xff] }
 0x861   : > { %6337 = vmatmul.mubr.f32.gmra.mrb[10].mxu0 %v4971_v51  ;;  %v16045_v63 = vadd.f32 %v10132_v43, %v15577_v61  ;;  %v5463_v54 = vpop.f32.mrb[161].mxu0  ;;  %10323 = vmatprep.mubr.msk.f32.mxu1 %vm1931_vm0, %v6606_v2 }
 0x862   : > { %6341 = vmatprep.mubr.f32.mxu0 %v4976_v60  ;;  %v4884_v19 = vmax.f32 %v4874_v35, 0.0  ;;  %v16051_v58 = vadd.f32 %v15572_v33, %v5463_v54  ;;  %v6607_v60 = vld [vmem:[%s18011_s18 + $0x1b8] sm:$0xff]  ;;  %v4979_v35 = vld [vmem:[%s18009_s16 + $0x2f0] sm:$0xff] }
 0x863   : > { %v16056_v42 = vpop.f32.mrb[176].mxu1  ;;  %10324 = vmatmul.mubr.msk.f32.gmra.mrb[230].mxu1 %vm1931_vm0, %v6607_v60 }
 0x864   : > { %v11022_v51 = vpack.c.bf16 %v4884_v19, %v4883_v7  ;;  %v10135_v61 = vpop.f32.mrb[162].mxu0  ;;  %v16058_v43 = vpop.f32.mrb[177].mxu1  ;;  %v4983_v19 = vld [vmem:[%s18009_s16 + $0x310] sm:$0xff] }
 0x865   : > { %6342 = vmatmul.mubr.f32.gmra.mrb[12].mxu0 %v4975_v50  ;;  %v16064_v36 = vadd.f32 %v10135_v61, %v15592_v11  ;;  %v5473_v33 = vpop.f32.mrb[163].mxu0  ;;  %v4984_v11 = vld [vmem:[%s18009_s16 + $0x318] sm:$0xff] }
 0x866   : > { %11023 = vmatprep.subr.bf16.mxu0 %v11022_v51  ;;  %6346 = vmatprep.mubr.f32.mxu0 %v4980_v53  ;;  %v16074_v17 = vadd.f32 %v15584_v5, %v5473_v33 }
 0x867   : > { %11025 = vmatpush3.bf16.msra.mxu0 %v11022_v51  ;;  %v16089_v53 = vpop.f32.mrb[178].mxu1  ;;  %v4988_v51 = vld [vmem:[%s18009_s16 + $0x338] sm:$0xff] }
 0x868   : > { %v10138_v54 = vpop.f32.mrb[164].mxu0  ;;  %v16094_v61 = vpop.f32.mrb[179].mxu1 }
 0x869   : > { %6347 = vmatmul.mubr.f32.gmra.mrb[14].mxu0 %v4979_v35  ;;  %v16081_v50 = vadd.f32 %v10138_v54, %v15609_v44  ;;  %v5483_v7 = vpop.f32.mrb[165].mxu0  ;;  %v6608_v44 = vld [vmem:[%s18011_s18 + $0x1c0] sm:$0xff]  ;;  %v4987_v35 = vld [vmem:[%s18009_s16 + $0x330] sm:$0xff] }
 0x86a   : > { %6351 = vmatprep.mubr.f32.mxu0 %v4984_v11  ;;  %v16087_v5 = vadd.f32 %v15604_v40, %v5483_v7  ;;  %10326 = vmatprep.mubr.msk.f32.mxu1 %vm1931_vm0, %v6608_v44  ;;  %v6609_v40 = vld [vmem:[%s18011_s18 + $0x1c8] sm:$0xff]  ;;  %v4996_v44 = vld [vmem:[%s18009_s16 + $0x378] sm:$0xff] }
 0x86b   : > { %10327 = vmatmul.mubr.msk.f32.gmra.mrb[232].mxu1 %vm1931_vm0, %v6609_v40 }
 0x86c   : > { %v10141_v2 = vpop.f32.mrb[166].mxu0 }
 0x86d   : > { %6352 = vmatmul.mubr.f32.gmra.mrb[16].mxu0 %v4983_v19  ;;  %v16100_v33 = vadd.f32 %v10141_v2, %v15624_v20  ;;  %v5493_v60 = vpop.f32.mrb[167].mxu0  ;;  %v4992_v20 = vld [vmem:[%s18009_s16 + $0x358] sm:$0xff]  ;;  %v16125_v2 = vpop.f32.mrb[180].mxu1 }
 0x86e   : > { %6356 = vmatprep.mubr.f32.mxu0 %v4988_v51  ;;  %v16110_v11 = vadd.f32 %v15616_v48, %v5493_v60  ;;  %v4991_v51 = vld [vmem:[%s18009_s16 + $0x350] sm:$0xff]  ;;  %v16130_v60 = vpop.f32.mrb[181].mxu1 }
 0x870   : > { %v10144_v54 = vpop.f32.mrb[168].mxu0 }
 0x871   : > { %6357 = vmatmul.mubr.f32.gmra.mrb[18].mxu0 %v4987_v35  ;;  %v16117_v7 = vadd.f32 %v10144_v54, %v15641_v18  ;;  %v5503_v19 = vpop.f32.mrb[169].mxu0  ;;  %v6610_v18 = vld [vmem:[%s18011_s18 + $0x1d0] sm:$0xff] }
 0x872   : > { %6361 = vmatprep.mubr.f32.mxu0 %v4992_v20  ;;  %v16123_v48 = vadd.f32 %v15636_v26, %v5503_v19  ;;  %10329 = vmatprep.mubr.msk.f32.mxu1 %vm1931_vm0, %v6610_v18  ;;  %v6611_v26 = vld [vmem:[%s18011_s18 + $0x1d8] sm:$0xff]  ;;  %v4995_v54 = vld [vmem:[%s18009_s16 + $0x370] sm:$0xff] }
 0x873   : > { %10330 = vmatmul.mubr.msk.f32.gmra.mrb[234].mxu1 %vm1931_vm0, %v6611_v26  ;;  %v5004_v26 = vld [vmem:[%s18009_s16 + $0x3b8] sm:$0xff] }
 0x874   : > { %v10147_v40 = vpop.f32.mrb[170].mxu0 }
 0x875   : > { %6362 = vmatmul.mubr.f32.gmra.mrb[20].mxu0 %v4991_v51  ;;  %v16136_v35 = vadd.f32 %v10147_v40, %v15656_v13  ;;  %v5513_v20 = vpop.f32.mrb[171].mxu0  ;;  %v5000_v13 = vld [vmem:[%s18009_s16 + $0x398] sm:$0xff] }
 0x876   : > { %6366 = vmatprep.mubr.f32.mxu0 %v4996_v44  ;;  %v16146_v19 = vadd.f32 %v15648_v10, %v5513_v20  ;;  %v4999_v44 = vld [vmem:[%s18009_s16 + $0x390] sm:$0xff]  ;;  %v16161_v20 = vpop.f32.mrb[182].mxu1 }
 0x877   : > { %18350 = vst [vmem:[#allocation65_spill] sm:$0xff] %v16136_v35  ;;  %v16166_v35 = vpop.f32.mrb[183].mxu1 }
 0x878   : > { %v10150_v51 = vpop.f32.mrb[172].mxu0 }
 0x879   : > { %6367 = vmatmul.mubr.f32.gmra.mrb[22].mxu0 %v4995_v54  ;;  %v16153_v40 = vadd.f32 %v10150_v51, %v15673_v49  ;;  %v5523_v18 = vpop.f32.mrb[173].mxu0  ;;  %v6612_v49 = vld [vmem:[%s18011_s18 + $0x1e0] sm:$0xff] }
 0x87a   : > { %6371 = vmatprep.mubr.f32.mxu0 %v5000_v13  ;;  %v16159_v10 = vadd.f32 %v15668_v39, %v5523_v18  ;;  %10332 = vmatprep.mubr.msk.f32.mxu1 %vm1931_vm0, %v6612_v49  ;;  %v6613_v39 = vld [vmem:[%s18011_s18 + $0x1e8] sm:$0xff]  ;;  %v5003_v18 = vld [vmem:[%s18009_s16 + $0x3b0] sm:$0xff] }
 0x87b   : > { %18351 = vst [vmem:[#allocation34_spill] sm:$0xff] %v16153_v40  ;;  %10333 = vmatmul.mubr.msk.f32.gmra.mrb[236].mxu1 %vm1931_vm0, %v6613_v39  ;;  %v5012_v39 = vld [vmem:[%s18009_s16 + $0x3f8] sm:$0xff] }
 0x87c   : > { %v10153_v54 = vpop.f32.mrb[174].mxu0 }
 0x87d   : > { %6372 = vmatmul.mubr.f32.gmra.mrb[24].mxu0 %v4999_v44  ;;  %v16172_v13 = vadd.f32 %v10153_v54, %v15688_v29  ;;  %v5533_v51 = vpop.f32.mrb[175].mxu0  ;;  %v5008_v29 = vld [vmem:[%s18009_s16 + $0x3d8] sm:$0xff] }
 0x87e   : > { %6376 = vmatprep.mubr.f32.mxu0 %v5004_v26  ;;  %v16182_v40 = vadd.f32 %v15680_v14, %v5533_v51  ;;  %v5007_v26 = vld [vmem:[%s18009_s16 + $0x3d0] sm:$0xff]  ;;  %v16197_v51 = vpop.f32.mrb[184].mxu1 }
 0x87f   : > { %18352 = vst [vmem:[#allocation35_spill] sm:$0xff] %v16172_v13  ;;  %v16202_v13 = vpop.f32.mrb[185].mxu1 }
 0x880   : > { %v10156_v44 = vpop.f32.mrb[176].mxu0 }
 0x881   : > { %6377 = vmatmul.mubr.f32.gmra.mrb[26].mxu0 %v5003_v18  ;;  %v16189_v54 = vadd.f32 %v10156_v44, %v15705_v31  ;;  %v5543_v49 = vpop.f32.mrb[177].mxu0  ;;  %v6614_v31 = vld [vmem:[%s18011_s18 + $0x1f0] sm:$0xff] }
 0x882   : > { %6381 = vmatprep.mubr.f32.mxu0 %v5008_v29  ;;  %v16195_v14 = vadd.f32 %v15700_v16, %v5543_v49  ;;  %10335 = vmatprep.mubr.msk.f32.mxu1 %vm1931_vm0, %v6614_v31  ;;  %v6615_v16 = vld [vmem:[%s18011_s18 + $0x1f8] sm:$0xff]  ;;  %v5011_v49 = vld [vmem:[%s18009_s16 + $0x3f0] sm:$0xff] }
 0x883   : > { %18353 = vst [vmem:[#allocation38_spill] sm:$0xff] %v16189_v54  ;;  %10336 = vmatmul.mubr.msk.f32.gmra.mrb[238].mxu1 %vm1931_vm0, %v6615_v16  ;;  %v5020_v16 = vld [vmem:[%s18009_s16 + $0x438] sm:$0xff] }
 0x884   : > { %v10159_v18 = vpop.f32.mrb[178].mxu0 }
 0x885   : > { %6382 = vmatmul.mubr.f32.gmra.mrb[28].mxu0 %v5007_v26  ;;  %v16208_v29 = vadd.f32 %v10159_v18, %v15720_v34  ;;  %v5553_v44 = vpop.f32.mrb[179].mxu0  ;;  %v5016_v34 = vld [vmem:[%s18009_s16 + $0x418] sm:$0xff] }
 0x886   : > { %6386 = vmatprep.mubr.f32.mxu0 %v5012_v39  ;;  %v16218_v54 = vadd.f32 %v15712_v56, %v5553_v44  ;;  %v5015_v39 = vld [vmem:[%s18009_s16 + $0x410] sm:$0xff]  ;;  %v16233_v44 = vpop.f32.mrb[186].mxu1 }
 0x887   : > { %18354 = vst [vmem:[#allocation39_spill] sm:$0xff] %v16208_v29  ;;  %v16238_v29 = vpop.f32.mrb[187].mxu1 }
 0x888   : > { %v10162_v26 = vpop.f32.mrb[180].mxu0 }
 0x889   : > { %6387 = vmatmul.mubr.f32.gmra.mrb[30].mxu0 %v5011_v49  ;;  %v16225_v18 = vadd.f32 %v10162_v26, %v15737_v21  ;;  %v5563_v31 = vpop.f32.mrb[181].mxu0 }
 0x88a   : > { %6391 = vmatprep.mubr.f32.mxu0 %v5016_v34  ;;  %v16231_v56 = vadd.f32 %v15732_v41, %v5563_v31  ;;  %v5019_v41 = vld [vmem:[%s18009_s16 + $0x430] sm:$0xff]  ;;  %v5024_v31 = vld [vmem:[%s18009_s16 + $0x458] sm:$0xff] }
 0x88b   : > { %18355 = vst [vmem:[#allocation42_spill] sm:$0xff] %v16225_v18 }
 0x88c   : > { %v10165_v49 = vpop.f32.mrb[182].mxu0 }
 0x88d   : > { %6392 = vmatmul.mubr.f32.gmra.mrb[32].mxu0 %v5015_v39  ;;  %v16241_v21 = vadd.f32 %v10165_v49, %v15751_v45  ;;  %v5573_v34 = vpop.f32.mrb[183].mxu0 }
 0x88e   : > { %6396 = vmatprep.mubr.f32.mxu0 %v5020_v16  ;;  %v16247_v26 = vadd.f32 %v15743_v57, %v5573_v34  ;;  %v5023_v16 = vld [vmem:[%s18009_s16 + $0x450] sm:$0xff]  ;;  %v16261_v57 = vpop.f32.mrb[188].mxu1  ;;  %v5028_v34 = vld [vmem:[%s18009_s16 + $0x478] sm:$0xff] }
 0x88f   : > { %18356 = vst [vmem:[#allocation43_spill] sm:$0xff] %v16241_v21  ;;  %v16266_v21 = vpop.f32.mrb[189].mxu1 }
 0x890   : > { %v10168_v18 = vpop.f32.mrb[184].mxu0 }
 0x891   : > { %6397 = vmatmul.mubr.f32.gmra.mrb[34].mxu0 %v5019_v41  ;;  %v16253_v39 = vadd.f32 %v10168_v18, %v15766_v6  ;;  %v5583_v45 = vpop.f32.mrb[185].mxu0 }
 0x892   : > { %6401 = vmatprep.mubr.f32.mxu0 %v5024_v31  ;;  %v16259_v49 = vadd.f32 %v15761_v32, %v5583_v45  ;;  %v5027_v32 = vld [vmem:[%s18009_s16 + $0x470] sm:$0xff]  ;;  %v5032_v45 = vld [vmem:[%s18009_s16 + $0x498] sm:$0xff] }
 0x893   : > { %18357 = vst [vmem:[#allocation46_spill] sm:$0xff] %v16253_v39 }
 0x894   : > { %v10171_v41 = vpop.f32.mrb[186].mxu0 }
 0x895   : > { %6402 = vmatmul.mubr.f32.gmra.mrb[36].mxu0 %v5023_v16  ;;  %v16269_v6 = vadd.f32 %v10171_v41, %v15779_v30  ;;  %v5593_v18 = vpop.f32.mrb[187].mxu0 }
 0x896   : > { %6406 = vmatprep.mubr.f32.mxu0 %v5028_v34  ;;  %v16275_v31 = vadd.f32 %v15771_v3, %v5593_v18  ;;  %v5031_v34 = vld [vmem:[%s18009_s16 + $0x490] sm:$0xff]  ;;  %v16289_v3 = vpop.f32.mrb[190].mxu1  ;;  %v5036_v18 = vld [vmem:[%s18009_s16 + $0x4b8] sm:$0xff] }
 0x897   : > { %18358 = vst [vmem:[#allocation47_spill] sm:$0xff] %v16269_v6  ;;  %v16294_v6 = vpop.f32.mrb[191].mxu1 }
 0x898   : > { %v10174_v39 = vpop.f32.mrb[188].mxu0 }
 0x899   : > { %6407 = vmatmul.mubr.f32.gmra.mrb[38].mxu0 %v5027_v32  ;;  %v16281_v16 = vadd.f32 %v10174_v39, %v15794_v52  ;;  %v5603_v30 = vpop.f32.mrb[189].mxu0 }
 0x89a   : > { %6411 = vmatprep.mubr.f32.mxu0 %v5032_v45  ;;  %v16287_v41 = vadd.f32 %v15789_v27, %v5603_v30  ;;  %v5035_v27 = vld [vmem:[%s18009_s16 + $0x4b0] sm:$0xff]  ;;  %v5040_v30 = vld [vmem:[%s18009_s16 + $0x4d8] sm:$0xff] }
 0x89b   : > { %18359 = vst [vmem:[#allocation50_spill] sm:$0xff] %v16281_v16 }
 0x89c   : > { %v10177_v32 = vpop.f32.mrb[190].mxu0 }
 0x89d   : > { %6412 = vmatmul.mubr.f32.gmra.mrb[40].mxu0 %v5031_v34  ;;  %v16297_v52 = vadd.f32 %v10177_v32, %v15807_v0  ;;  %v5613_v39 = vpop.f32.mrb[191].mxu0  ;;  %v16311_v32 = vpop.f32.mrb[192].mxu1 }
 0x89e   : > { %6416 = vmatprep.mubr.f32.mxu0 %v5036_v18  ;;  %v16303_v45 = vadd.f32 %v15799_v12, %v5613_v39  ;;  %v5039_v18 = vld [vmem:[%s18009_s16 + $0x4d0] sm:$0xff]  ;;  %v16319_v39 = vpop.f32.mrb[193].mxu1 }
 0x89f   : > { %18360 = vst [vmem:[#allocation51_spill] sm:$0xff] %v16297_v52 }
 0x8a0   : > { %v10180_v16 = vpop.f32.mrb[192].mxu0 }
 0x8a1   : > { %6417 = vmatmul.mubr.f32.gmra.mrb[42].mxu0 %v5035_v27  ;;  %v16309_v34 = vadd.f32 %v10180_v16, %v15822_v23  ;;  %v5623_v0 = vpop.f32.mrb[193].mxu0  ;;  %v5044_v27 = vld [vmem:[%s18009_s16 + $0x4f8] sm:$0xff] }
 0x8a2   : > { %6421 = vmatprep.mubr.f32.mxu0 %v5040_v30  ;;  %v16317_v12 = vadd.f32 %v15817_v22, %v5623_v0  ;;  %v5043_v30 = vld [vmem:[%s18009_s16 + $0x4f0] sm:$0xff]  ;;  %v5048_v0 = vld [vmem:[%s18009_s16 + $0x518] sm:$0xff] }
 0x8a3   : > { %18361 = vst [vmem:[#allocation54_spill] sm:$0xff] %v16309_v34 }
 0x8a4   : > { %18362 = vst [vmem:[#allocation55_spill] sm:$0xff] %v16317_v12  ;;  %v10183_v52 = vpop.f32.mrb[194].mxu0  ;;  %v18401_v12 = vld [vmem:[#allocation61_spill] sm:$0xff] }
 0x8a5   : > { %6422 = vmatmul.mubr.f32.gmra.mrb[44].mxu0 %v5039_v18  ;;  %v16325_v23 = vadd.f32 %v10183_v52, %v15835_v9  ;;  %v5633_v16 = vpop.f32.mrb[195].mxu0  ;;  %v16339_v52 = vpop.f32.mrb[194].mxu1 }
 0x8a6   : > { %6426 = vmatprep.mubr.f32.mxu0 %v5044_v27  ;;  %v16331_v22 = vadd.f32 %v15827_v55, %v5633_v16  ;;  %v5047_v27 = vld [vmem:[%s18009_s16 + $0x510] sm:$0xff]  ;;  %v16347_v16 = vpop.f32.mrb[195].mxu1 }
 0x8a7   : > { %18363 = vst [vmem:[#allocation58_spill] sm:$0xff] %v16325_v23 }
 0x8a8   : > { %18364 = vst [vmem:[#allocation59_spill] sm:$0xff] %v16331_v22  ;;  %v10186_v34 = vpop.f32.mrb[196].mxu0  ;;  %v18393_v22 = vld [vmem:[#allocation52_spill] sm:$0xff] }
 0x8a9   : > { %6427 = vmatmul.mubr.f32.gmra.mrb[46].mxu0 %v5043_v30  ;;  %v16337_v18 = vadd.f32 %v10186_v34, %v15850_v47  ;;  %v5643_v9 = vpop.f32.mrb[197].mxu0  ;;  %v5052_v30 = vld [vmem:[%s18009_s16 + $0x538] sm:$0xff] }
 0x8aa   : > { %6431 = vmatprep.mubr.f32.mxu0 %v5048_v0  ;;  %v16345_v55 = vadd.f32 %v15845_v24, %v5643_v9  ;;  %v5051_v0 = vld [vmem:[%s18009_s16 + $0x530] sm:$0xff]  ;;  %v5056_v9 = vld [vmem:[%s18009_s16 + $0x558] sm:$0xff] }
 0x8ab   : > { %18365 = vst [vmem:[#allocation62_spill] sm:$0xff] %v16337_v18 }
 0x8ac   : > { %18366 = vst [vmem:[#allocation63_spill] sm:$0xff] %v16345_v55  ;;  %v10189_v23 = vpop.f32.mrb[198].mxu0  ;;  %v18387_v55 = vld [vmem:[#allocation49_spill] sm:$0xff] }
 0x8ad   : > { %6432 = vmatmul.mubr.f32.gmra.mrb[48].mxu0 %v5047_v27  ;;  %v16353_v47 = vadd.f32 %v10189_v23, %v15863_v62  ;;  %v5653_v34 = vpop.f32.mrb[199].mxu0  ;;  %v16367_v23 = vpop.f32.mrb[196].mxu1 }
 0x8ae   : > { %6436 = vmatprep.mubr.f32.mxu0 %v5052_v30  ;;  %v16359_v24 = vadd.f32 %v15855_v15, %v5653_v34  ;;  %v5055_v30 = vld [vmem:[%s18009_s16 + $0x550] sm:$0xff]  ;;  %v16375_v34 = vpop.f32.mrb[197].mxu1 }
 0x8af   : > { %18367 = vst [vmem:[#allocation80_spill] sm:$0xff] %v16353_v47 }
 0x8b0   : > { %18368 = vst [vmem:[#allocation81_spill] sm:$0xff] %v16359_v24  ;;  %v10192_v18 = vpop.f32.mrb[200].mxu0  ;;  %v18385_v24 = vld [vmem:[#allocation44_spill] sm:$0xff] }
 0x8b1   : > { %6437 = vmatmul.mubr.f32.gmra.mrb[50].mxu0 %v5051_v0  ;;  %v16365_v27 = vadd.f32 %v10192_v18, %v15878_v37  ;;  %v5663_v62 = vpop.f32.mrb[201].mxu0  ;;  %v5060_v0 = vld [vmem:[%s18009_s16 + $0x578] sm:$0xff] }
 0x8b2   : > { %6441 = vmatprep.mubr.f32.mxu0 %v5056_v9  ;;  %v16373_v15 = vadd.f32 %v15873_v38, %v5663_v62  ;;  %v5059_v9 = vld [vmem:[%s18009_s16 + $0x570] sm:$0xff]  ;;  %v5064_v62 = vld [vmem:[%s18009_s16 + $0x598] sm:$0xff] }
 0x8b3   : > { %18369 = vst [vmem:[#allocation66_spill] sm:$0xff] %v16365_v27 }
 0x8b4   : > { %18370 = vst [vmem:[#allocation67_spill] sm:$0xff] %v16373_v15  ;;  %v10195_v47 = vpop.f32.mrb[202].mxu0  ;;  %v18379_v15 = vld [vmem:[#allocation41_spill] sm:$0xff] }
 0x8b5   : > { %6442 = vmatmul.mubr.f32.gmra.mrb[52].mxu0 %v5055_v30  ;;  %v16381_v37 = vadd.f32 %v10195_v47, %v15891_v4  ;;  %v5673_v18 = vpop.f32.mrb[203].mxu0  ;;  %v16395_v47 = vpop.f32.mrb[198].mxu1 }
 0x8b6   : > { %6446 = vmatprep.mubr.f32.mxu0 %v5060_v0  ;;  %v16387_v38 = vadd.f32 %v15883_v8, %v5673_v18  ;;  %v5063_v0 = vld [vmem:[%s18009_s16 + $0x590] sm:$0xff]  ;;  %v16403_v18 = vpop.f32.mrb[199].mxu1 }
 0x8b7   : > { %18371 = vst [vmem:[#allocation68_spill] sm:$0xff] %v16381_v37 }
 0x8b8   : > { %18372 = vst [vmem:[#allocation69_spill] sm:$0xff] %v16387_v38  ;;  %v10198_v27 = vpop.f32.mrb[204].mxu0  ;;  %v18377_v38 = vld [vmem:[#allocation36_spill] sm:$0xff] }
 0x8b9   : > { %6447 = vmatmul.mubr.f32.gmra.mrb[54].mxu0 %v5059_v9  ;;  %v16393_v30 = vadd.f32 %v10198_v27, %v15906_v46  ;;  %v5683_v4 = vpop.f32.mrb[205].mxu0  ;;  %v5068_v9 = vld [vmem:[%s18009_s16 + $0x5b8] sm:$0xff] }
 0x8ba   : > { %6451 = vmatprep.mubr.f32.mxu0 %v5064_v62  ;;  %v16401_v8 = vadd.f32 %v15901_v59, %v5683_v4  ;;  %v18375_v46 = vld [vmem:[#allocation37_spill] sm:$0xff]  ;;  %v5067_v62 = vld [vmem:[%s18009_s16 + $0x5b0] sm:$0xff] }
 0x8bb   : > { %18373 = vst [vmem:[#allocation70_spill] sm:$0xff] %v16393_v30  ;;  %v5072_v4 = vld [vmem:[%s18009_s16 + $0x5d8] sm:$0xff] }
 0x8bc   : > { %18374 = vst [vmem:[#allocation71_spill] sm:$0xff] %v16401_v8  ;;  %v10201_v37 = vpop.f32.mrb[206].mxu0 }
 0x8bd   : > { %6452 = vmatmul.mubr.f32.gmra.mrb[56].mxu0 %v5063_v0  ;;  %v16409_v27 = vadd.f32 %v10201_v37, %v18375_v46  ;;  %v5693_v30 = vpop.f32.mrb[207].mxu0  ;;  %v16423_v46 = vpop.f32.mrb[200].mxu1 }
 0x8be   : > { %6456 = vmatprep.mubr.f32.mxu0 %v5068_v9  ;;  %v16415_v59 = vadd.f32 %v18377_v38, %v5693_v30  ;;  %v5071_v9 = vld [vmem:[%s18009_s16 + $0x5d0] sm:$0xff]  ;;  %v16431_v30 = vpop.f32.mrb[201].mxu1 }
 0x8bf   : > { %18376 = vst [vmem:[#allocation72_spill] sm:$0xff] %v16409_v27  ;;  %v18381_v27 = vld [vmem:[#allocation40_spill] sm:$0xff] }
 0x8c0   : > { %18378 = vst [vmem:[#allocation73_spill] sm:$0xff] %v16415_v59  ;;  %v10204_v8 = vpop.f32.mrb[208].mxu0 }
 0x8c1   : > { %6457 = vmatmul.mubr.f32.gmra.mrb[58].mxu0 %v5067_v62  ;;  %v16421_v0 = vadd.f32 %v10204_v8, %v18379_v15  ;;  %v5703_v37 = vpop.f32.mrb[209].mxu0  ;;  %v5076_v62 = vld [vmem:[%s18009_s16 + $0x5f8] sm:$0xff] }
 0x8c2   : > { %6461 = vmatprep.mubr.f32.mxu0 %v5072_v4  ;;  %v16429_v38 = vadd.f32 %v18381_v27, %v5703_v37  ;;  %v18383_v15 = vld [vmem:[#allocation45_spill] sm:$0xff]  ;;  %v5075_v4 = vld [vmem:[%s18009_s16 + $0x5f0] sm:$0xff] }
 0x8c3   : > { %18380 = vst [vmem:[#allocation2_spill] sm:$0xff] %v16421_v0  ;;  %v5080_v37 = vld [vmem:[%s18009_s16 + $0x618] sm:$0xff] }
 0x8c4   : > { %18382 = vst [vmem:[#allocation3_spill] sm:$0xff] %v16429_v38  ;;  %v10207_v59 = vpop.f32.mrb[210].mxu0 }
 0x8c5   : > { %6462 = vmatmul.mubr.f32.gmra.mrb[60].mxu0 %v5071_v9  ;;  %v16437_v8 = vadd.f32 %v10207_v59, %v18383_v15  ;;  %v5713_v0 = vpop.f32.mrb[211].mxu0  ;;  %v16451_v15 = vpop.f32.mrb[202].mxu1 }
 0x8c6   : > { %6466 = vmatprep.mubr.f32.mxu0 %v5076_v62  ;;  %v16443_v27 = vadd.f32 %v18385_v24, %v5713_v0  ;;  %v5079_v62 = vld [vmem:[%s18009_s16 + $0x610] sm:$0xff]  ;;  %v16459_v0 = vpop.f32.mrb[203].mxu1 }
 0x8c7   : > { %18384 = vst [vmem:[#allocation4_spill] sm:$0xff] %v16437_v8  ;;  %v18389_v8 = vld [vmem:[#allocation48_spill] sm:$0xff] }
 0x8c8   : > { %18386 = vst [vmem:[#allocation5_spill] sm:$0xff] %v16443_v27  ;;  %v10210_v38 = vpop.f32.mrb[212].mxu0 }
 0x8c9   : > { %6467 = vmatmul.mubr.f32.gmra.mrb[62].mxu0 %v5075_v4  ;;  %v16449_v9 = vadd.f32 %v10210_v38, %v18387_v55  ;;  %v5723_v59 = vpop.f32.mrb[213].mxu0  ;;  %v5084_v4 = vld [vmem:[%s18009_s16 + $0x638] sm:$0xff] }
 0x8ca   : > { %6471 = vmatprep.mubr.f32.mxu0 %v5080_v37  ;;  %v16457_v24 = vadd.f32 %v18389_v8, %v5723_v59  ;;  %v18391_v55 = vld [vmem:[#allocation53_spill] sm:$0xff]  ;;  %v5083_v37 = vld [vmem:[%s18009_s16 + $0x630] sm:$0xff] }
 0x8cb   : > { %18388 = vst [vmem:[#allocation6_spill] sm:$0xff] %v16449_v9  ;;  %v5088_v59 = vld [vmem:[%s18009_s16 + $0x658] sm:$0xff] }
 0x8cc   : > { %18390 = vst [vmem:[#allocation7_spill] sm:$0xff] %v16457_v24  ;;  %v10213_v27 = vpop.f32.mrb[214].mxu0 }
 0x8cd   : > { %6472 = vmatmul.mubr.f32.gmra.mrb[64].mxu0 %v5079_v62  ;;  %v16465_v38 = vadd.f32 %v10213_v27, %v18391_v55  ;;  %v5733_v9 = vpop.f32.mrb[215].mxu0  ;;  %v16479_v55 = vpop.f32.mrb[204].mxu1 }
 0x8ce   : > { %6476 = vmatprep.mubr.f32.mxu0 %v5084_v4  ;;  %v16471_v8 = vadd.f32 %v18393_v22, %v5733_v9  ;;  %v5087_v4 = vld [vmem:[%s18009_s16 + $0x650] sm:$0xff]  ;;  %v16487_v9 = vpop.f32.mrb[205].mxu1 }
 0x8cf   : > { %18392 = vst [vmem:[#allocation8_spill] sm:$0xff] %v16465_v38  ;;  %v18396_v38 = vld [vmem:[#allocation56_spill] sm:$0xff] }
 0x8d0   : > { %18394 = vst [vmem:[#allocation9_spill] sm:$0xff] %v16471_v8  ;;  %v10216_v24 = vpop.f32.mrb[216].mxu0 }
 0x8d1   : > { %6477 = vmatmul.mubr.f32.gmra.mrb[66].mxu0 %v5083_v37  ;;  %v16477_v62 = vadd.f32 %v10216_v24, %v15990_v28  ;;  %v5743_v27 = vpop.f32.mrb[217].mxu0  ;;  %v5092_v37 = vld [vmem:[%s18009_s16 + $0x678] sm:$0xff] }
 0x8d2   : > { %6481 = vmatprep.mubr.f32.mxu0 %v5088_v59  ;;  %v16485_v22 = vadd.f32 %v18396_v38, %v5743_v27  ;;  %v5091_v59 = vld [vmem:[%s18009_s16 + $0x670] sm:$0xff]  ;;  %v5096_v27 = vld [vmem:[%s18009_s16 + $0x698] sm:$0xff] }
 0x8d3   : > { %18395 = vst [vmem:[#allocation10_spill] sm:$0xff] %v16477_v62  ;;  %v18399_v62 = vld [vmem:[#allocation57_spill] sm:$0xff] }
 0x8d4   : > { %18397 = vst [vmem:[#allocation11_spill] sm:$0xff] %v16485_v22  ;;  %v10219_v8 = vpop.f32.mrb[218].mxu0 }
 0x8d5   : > { %6482 = vmatmul.mubr.f32.gmra.mrb[68].mxu0 %v5087_v4  ;;  %v16493_v28 = vadd.f32 %v10219_v8, %v16003_v25  ;;  %v5753_v24 = vpop.f32.mrb[219].mxu0  ;;  %v16507_v8 = vpop.f32.mrb[206].mxu1 }
 0x8d6   : > { %6486 = vmatprep.mubr.f32.mxu0 %v5092_v37  ;;  %v16499_v38 = vadd.f32 %v18399_v62, %v5753_v24  ;;  %18403 = vst [vmem:[#allocation15_spill] sm:$0xff] %v16507_v8  ;;  %v18404_v37 = vld [vmem:[#allocation60_spill] sm:$0xff]  ;;  %v16515_v24 = vpop.f32.mrb[207].mxu1 }
 0x8d7   : > { %18398 = vst [vmem:[#allocation12_spill] sm:$0xff] %v16493_v28  ;;  %v5095_v62 = vld [vmem:[%s18009_s16 + $0x690] sm:$0xff]  ;;  %18406 = vst [vmem:[#allocation17_spill] sm:$0xff] %v16515_v24  ;;  %v16533_v24 = vpop.f32.mrb[208].mxu1 }
 0x8d8   : > { %18400 = vst [vmem:[#allocation13_spill] sm:$0xff] %v16499_v38  ;;  %v10222_v22 = vpop.f32.mrb[220].mxu0 }
 0x8d9   : > { %6487 = vmatmul.mubr.f32.gmra.mrb[70].mxu0 %v5091_v59  ;;  %v16505_v4 = vadd.f32 %v10222_v22, %v18401_v12  ;;  %v5763_v25 = vpop.f32.mrb[221].mxu0  ;;  %v5100_v59 = vld [vmem:[%s18009_s16 + $0x6b8] sm:$0xff] }
 0x8da   : > { %6491 = vmatprep.mubr.f32.mxu0 %v5096_v27  ;;  %v16510_v28 = vadd.f32 %v18404_v37, %v5763_v25  ;;  %v18407_v27 = vld [vmem:[#allocation64_spill] sm:$0xff]  ;;  %v5104_v37 = vld [vmem:[%s18009_s16 + $0x6d8] sm:$0xff] }
 0x8db   : > { %18402 = vst [vmem:[#allocation14_spill] sm:$0xff] %v16505_v4  ;;  %v5099_v25 = vld [vmem:[%s18009_s16 + $0x6b0] sm:$0xff] }
 0x8dc   : > { %18405 = vst [vmem:[#allocation16_spill] sm:$0xff] %v16510_v28  ;;  %v10225_v38 = vpop.f32.mrb[222].mxu0 }
 0x8dd   : > { %6492 = vmatmul.mubr.f32.gmra.mrb[72].mxu0 %v5095_v62  ;;  %v5773_v12 = vpop.f32.mrb[223].mxu0  ;;  %v16521_v22 = vadd.f32 %v10225_v38, %v16042_v1  ;;  %v5103_v1 = vld [vmem:[%s18009_s16 + $0x6d0] sm:$0xff]  ;;  %v16538_v38 = vpop.f32.mrb[209].mxu1 }
 0x8de   : > { %v16524_v4 = vadd.f32 %v18407_v27, %v5773_v12  ;;  %6496 = vmatprep.mubr.f32.mxu0 %v5100_v59  ;;  %v5108_v12 = vld [vmem:[%s18009_s16 + $0x6f8] sm:$0xff] }
 0x8e0   : > { %v6233_v28 = vpop.f32.mrb[224].mxu0 }
 0x8e1   : > { %v6234_v8 = vadd.f32 %v6233_v28, %v16051_v58  ;;  %6497 = vmatmul.mubr.f32.gmra.mrb[74].mxu0 %v5099_v25  ;;  %v6235_v62 = vpop.f32.mrb[225].mxu0  ;;  %v5107_v25 = vld [vmem:[%s18009_s16 + $0x6f0] sm:$0xff] }
 0x8e2   : > { %6501 = vmatprep.mubr.f32.mxu0 %v5104_v37  ;;  %v5112_v37 = vld [vmem:[%s18009_s16 + $0x718] sm:$0xff] }
 0x8e3   : > { %v16541_v59 = vadd.f32 %v16058_v43, %v6234_v8 }
 0x8e4   : > { %v6238_v27 = vpop.f32.mrb[226].mxu0 }
 0x8e5   : > { %18408 = vst [vmem:[#allocation77_spill] sm:$0xff] %v16541_v59  ;;  %v6239_v58 = vadd.f32 %v6238_v27, %v16045_v63  ;;  %6502 = vmatmul.mubr.f32.gmra.mrb[76].mxu0 %v5103_v1  ;;  %v6240_v28 = vpop.f32.mrb[227].mxu0  ;;  %v16557_v63 = vpop.f32.mrb[210].mxu1  ;;  %v5111_v1 = vld [vmem:[%s18009_s16 + $0x710] sm:$0xff] }
 0x8e6   : > { %6506 = vmatprep.mubr.f32.mxu0 %v5108_v12  ;;  %v16562_v12 = vpop.f32.mrb[211].mxu1  ;;  %v5115_v28 = vld [vmem:[%s18009_s16 + $0x730] sm:$0xff] }
 0x8e7   : > { %v16554_v43 = vadd.f32 %v16056_v42, %v6239_v58  ;;  %v5116_v42 = vld [vmem:[%s18009_s16 + $0x738] sm:$0xff] }
 0x8e8   : > { %v6243_v8 = vpop.f32.mrb[228].mxu0 }
 0x8e9   : > { %v6244_v62 = vadd.f32 %v6243_v8, %v16074_v17  ;;  %6507 = vmatmul.mubr.f32.gmra.mrb[78].mxu0 %v5107_v25  ;;  %v6245_v59 = vpop.f32.mrb[229].mxu0  ;;  %v5120_v25 = vld [vmem:[%s18009_s16 + $0x758] sm:$0xff] }
 0x8ea   : > { %6511 = vmatprep.mubr.f32.mxu0 %v5112_v37 }
 0x8eb   : > { %v16565_v27 = vadd.f32 %v16094_v61, %v6244_v62 }
 0x8ec   : > { %v6248_v58 = vpop.f32.mrb[230].mxu0 }
 0x8ed   : > { %v6249_v17 = vadd.f32 %v6248_v58, %v16064_v36  ;;  %6512 = vmatmul.mubr.f32.gmra.mrb[80].mxu0 %v5111_v1  ;;  %v6250_v59 = vpop.f32.mrb[231].mxu0  ;;  %v16581_v36 = vpop.f32.mrb[212].mxu1  ;;  %v5119_v1 = vld [vmem:[%s18009_s16 + $0x750] sm:$0xff] }
 0x8ee   : > { %6516 = vmatprep.mubr.f32.mxu0 %v5116_v42  ;;  %v16586_v42 = vpop.f32.mrb[213].mxu1 }
 0x8ef   : > { %v16578_v61 = vadd.f32 %v16089_v53, %v6249_v17  ;;  %v5124_v53 = vld [vmem:[%s18009_s16 + $0x778] sm:$0xff] }
 0x8f0   : > { %v6253_v37 = vpop.f32.mrb[232].mxu0 }
 0x8f1   : > { %v6254_v8 = vadd.f32 %v6253_v37, %v16087_v5  ;;  %6517 = vmatmul.mubr.f32.gmra.mrb[82].mxu0 %v5115_v28  ;;  %v6255_v62 = vpop.f32.mrb[233].mxu0  ;;  %v5123_v28 = vld [vmem:[%s18009_s16 + $0x770] sm:$0xff] }
 0x8f2   : > { %6521 = vmatprep.mubr.f32.mxu0 %v5120_v25  ;;  %v5128_v25 = vld [vmem:[%s18009_s16 + $0x798] sm:$0xff] }
 0x8f3   : > { %v16589_v58 = vadd.f32 %v16130_v60, %v6254_v8 }
 0x8f4   : > { %v6258_v17 = vpop.f32.mrb[234].mxu0 }
 0x8f5   : > { %v6259_v5 = vadd.f32 %v6258_v17, %v16081_v50  ;;  %6522 = vmatmul.mubr.f32.gmra.mrb[84].mxu0 %v5119_v1  ;;  %v6260_v59 = vpop.f32.mrb[235].mxu0  ;;  %v16605_v50 = vpop.f32.mrb[214].mxu1  ;;  %v5127_v1 = vld [vmem:[%s18009_s16 + $0x790] sm:$0xff] }
 0x8f6   : > { %6526 = vmatprep.mubr.f32.mxu0 %v5124_v53  ;;  %v16610_v53 = vpop.f32.mrb[215].mxu1 }
 0x8f7   : > { %v16602_v60 = vadd.f32 %v16125_v2, %v6259_v5  ;;  %v5132_v2 = vld [vmem:[%s18009_s16 + $0x7b8] sm:$0xff] }
 0x8f8   : > { %v6263_v37 = vpop.f32.mrb[236].mxu0 }
 0x8f9   : > { %v6264_v8 = vadd.f32 %v6263_v37, %v16110_v11  ;;  %6527 = vmatmul.mubr.f32.gmra.mrb[86].mxu0 %v5123_v28  ;;  %v6265_v62 = vpop.f32.mrb[237].mxu0  ;;  %v5131_v28 = vld [vmem:[%s18009_s16 + $0x7b0] sm:$0xff] }
 0x8fa   : > { %6531 = vmatprep.mubr.f32.mxu0 %v5128_v25  ;;  %v5136_v25 = vld [vmem:[%s18009_s16 + $0x7d8] sm:$0xff] }
 0x8fb   : > { %v16613_v17 = vadd.f32 %v16166_v35, %v6264_v8 }
 0x8fc   : > { %v6268_v5 = vpop.f32.mrb[238].mxu0 }
 0x8fd   : > { %v6269_v11 = vadd.f32 %v6268_v5, %v16100_v33  ;;  %6532 = vmatmul.mubr.f32.gmra.mrb[88].mxu0 %v5127_v1  ;;  %v6270_v59 = vpop.f32.mrb[239].mxu0  ;;  %v16629_v33 = vpop.f32.mrb[216].mxu1  ;;  %v5135_v1 = vld [vmem:[%s18009_s16 + $0x7d0] sm:$0xff] }
 0x8fe   : > { %6536 = vmatprep.mubr.f32.mxu0 %v5132_v2  ;;  %v16634_v2 = vpop.f32.mrb[217].mxu1 }
 0x8ff   : > { %v16626_v35 = vadd.f32 %v16161_v20, %v6269_v11  ;;  %v5140_v20 = vld [vmem:[%s18009_s16 + $0x7f8] sm:$0xff] }
 0x900   : > { %v6273_v37 = vpop.f32.mrb[240].mxu0 }
 0x901   : > { %v6274_v8 = vadd.f32 %v6273_v37, %v16123_v48  ;;  %6537 = vmatmul.mubr.f32.gmra.mrb[90].mxu0 %v5131_v28  ;;  %v6275_v62 = vpop.f32.mrb[241].mxu0  ;;  %v5139_v28 = vld [vmem:[%s18009_s16 + $0x7f0] sm:$0xff] }
 0x902   : > { %6541 = vmatprep.mubr.f32.mxu0 %v5136_v25  ;;  %v7257_v25 = vld [vmem:[%s18012_s19] sm:$0xff] }
 0x903   : > { %v16637_v5 = vadd.f32 %v16202_v13, %v6274_v8 }
 0x904   : > { %v6278_v11 = vpop.f32.mrb[242].mxu0 }
 0x905   : > { %v6279_v48 = vadd.f32 %v6278_v11, %v16117_v7  ;;  %6542 = vmatmul.mubr.f32.gmra.mrb[92].mxu0 %v5135_v1  ;;  %v6280_v59 = vpop.f32.mrb[243].mxu0  ;;  %v16653_v7 = vpop.f32.mrb[218].mxu1  ;;  %v7258_v1 = vld [vmem:[%s18012_s19 + $0x8] sm:$0xff] }
 0x906   : > { %6546 = vmatprep.mubr.f32.mxu0 %v5140_v20  ;;  %v16659_v20 = vpop.f32.mrb[219].mxu1 }
 0x907   : > { %v16650_v13 = vadd.f32 %v16197_v51, %v6279_v48  ;;  %v7259_v51 = vld [vmem:[%s18012_s19 + $0x10] sm:$0xff]  ;;  %v18409_v48 = vld [vmem:[#allocation65_spill] sm:$0xff] }
 0x908   : > { %v6283_v37 = vpop.f32.mrb[244].mxu0 }
 0x909   : > { %v6284_v8 = vadd.f32 %v6283_v37, %v16146_v19  ;;  %6547 = vmatmul.mubr.f32.gmra.mrb[94].mxu0 %v5139_v28  ;;  %v6285_v62 = vpop.f32.mrb[245].mxu0 }
 0x90a   : > { %10354 = vmatprep.mubr.msk.f32.mxu0 %vm1931_vm0, %v7257_v25  ;;  %v7260_v25 = vld [vmem:[%s18012_s19 + $0x18] sm:$0xff] }
 0x90b   : > { %v16662_v11 = vadd.f32 %v16238_v29, %v6284_v8  ;;  %v7261_v29 = vld [vmem:[%s18012_s19 + $0x20] sm:$0xff] }
 0x90c   : > { %v6288_v19 = vpop.f32.mrb[246].mxu0 }
 0x90d   : > { %v6289_v59 = vadd.f32 %v6288_v19, %v18409_v48  ;;  %10355 = vmatmul.mubr.msk.f32.vlgmr.msra.gmra.mrb[96].mxu0 %vm1931_vm0, %v7258_v1  ;;  %v6290_v28 = vpop.f32.mrb[247].mxu0  ;;  %v16681_v19 = vpop.f32.mrb[220].mxu1 }
 0x90e   : > { %10357 = vmatprep.mubr.msk.f32.mxu0 %vm1931_vm0, %v7259_v51  ;;  %v7262_v51 = vld [vmem:[%s18012_s19 + $0x28] sm:$0xff]  ;;  %v16687_v48 = vpop.f32.mrb[221].mxu1 }
 0x90f   : > { %v16677_v37 = vadd.f32 %v16233_v44, %v6289_v59  ;;  %v18411_v59 = vld [vmem:[#allocation34_spill] sm:$0xff] }
 0x910   : > { %v6293_v8 = vpop.f32.mrb[248].mxu0 }
 0x911   : > { %v6294_v62 = vadd.f32 %v6293_v8, %v16159_v10  ;;  %10358 = vmatmul.mubr.msk.f32.gmra.mrb[98].mxu0 %vm1931_vm0, %v7260_v25  ;;  %v6295_v1 = vpop.f32.mrb[249].mxu0  ;;  %v7263_v10 = vld [vmem:[%s18012_s19 + $0x30] sm:$0xff] }
 0x912   : > { %10360 = vmatprep.mubr.msk.f32.mxu0 %vm1931_vm0, %v7261_v29  ;;  %v7264_v29 = vld [vmem:[%s18012_s19 + $0x38] sm:$0xff] }
 0x913   : > { %v16690_v28 = vadd.f32 %v16266_v21, %v6294_v62  ;;  %v7265_v21 = vld [vmem:[%s18012_s19 + $0x40] sm:$0xff] }
 0x914   : > { %v6298_v44 = vpop.f32.mrb[250].mxu0 }
 0x915   : > { %18410 = vst [vmem:[#allocation76_spill] sm:$0xff] %v16690_v28  ;;  %v6299_v25 = vadd.f32 %v6298_v44, %v18411_v59  ;;  %10361 = vmatmul.mubr.msk.f32.gmra.mrb[100].mxu0 %vm1931_vm0, %v7262_v51  ;;  %v6300_v8 = vpop.f32.mrb[251].mxu0  ;;  %v16709_v44 = vpop.f32.mrb[222].mxu1 }
 0x916   : > { %10363 = vmatprep.mubr.msk.f32.mxu0 %vm1931_vm0, %v7263_v10  ;;  %v7266_v10 = vld [vmem:[%s18012_s19 + $0x48] sm:$0xff]  ;;  %v16715_v59 = vpop.f32.mrb[223].mxu1 }
 0x917   : > { %v16705_v62 = vadd.f32 %v16261_v57, %v6299_v25  ;;  %v18413_v25 = vld [vmem:[#allocation35_spill] sm:$0xff] }
 0x918   : > { %v6303_v1 = vpop.f32.mrb[252].mxu0 }
 0x919   : > { %v6304_v28 = vadd.f32 %v6303_v1, %v16182_v40  ;;  %10364 = vmatmul.mubr.msk.f32.gmra.mrb[102].mxu0 %vm1931_vm0, %v7264_v29  ;;  %v6305_v51 = vpop.f32.mrb[253].mxu0  ;;  %v7267_v40 = vld [vmem:[%s18012_s19 + $0x50] sm:$0xff] }
 0x91a   : > { %10366 = vmatprep.mubr.msk.f32.mxu0 %vm1931_vm0, %v7265_v21  ;;  %v7268_v21 = vld [vmem:[%s18012_s19 + $0x58] sm:$0xff] }
 0x91b   : > { %v16718_v8 = vadd.f32 %v16294_v6, %v6304_v28  ;;  %v7269_v6 = vld [vmem:[%s18012_s19 + $0x60] sm:$0xff] }
 0x91c   : > { %v6308_v57 = vpop.f32.mrb[254].mxu0 }
 0x91d   : > { %18412 = vst [vmem:[#allocation75_spill] sm:$0xff] %v16718_v8  ;;  %v6309_v29 = vadd.f32 %v6308_v57, %v18413_v25  ;;  %10367 = vmatmul.mubr.msk.f32.gmra.mrb[104].mxu0 %vm1931_vm0, %v7266_v10  ;;  %v6310_v1 = vpop.f32.mrb[255].mxu0 }
 0x91e   : > { %10369 = vmatprep.mubr.msk.f32.mxu0 %vm1931_vm0, %v7267_v40  ;;  %v7270_v40 = vld [vmem:[%s18012_s19 + $0x68] sm:$0xff]  ;;  %v18415_v1 = vld [vmem:[#allocation38_spill] sm:$0xff] }
 0x91f   : > { %v16733_v28 = vadd.f32 %v16289_v3, %v6309_v29  ;;  %v16741_v57 = vpop.f32.mrb[224].mxu1  ;;  %v7271_v3 = vld [vmem:[%s18012_s19 + $0x70] sm:$0xff] }
 0x920   : > { %v6313_v51 = vpop.f32.mrb[0].mxu0  ;;  %v16749_v29 = vpop.f32.mrb[225].mxu1 }
 0x921   : > { %v6314_v8 = vadd.f32 %v6313_v51, %v16195_v14  ;;  %10370 = vmatmul.mubr.msk.f32.gmra.mrb[106].mxu0 %vm1931_vm0, %v7268_v21  ;;  %v6315_v10 = vpop.f32.mrb[1].mxu0  ;;  %v7272_v51 = vld [vmem:[%s18012_s19 + $0x78] sm:$0xff] }
 0x922   : > { %10372 = vmatprep.mubr.msk.f32.mxu0 %vm1931_vm0, %v7269_v6 }
 0x923   : > { %v16744_v25 = vadd.f32 %v16319_v39, %v6314_v8  ;;  %v7273_v39 = vld [vmem:[%s18012_s19 + $0x80] sm:$0xff] }
 0x924   : > { %v6318_v14 = vpop.f32.mrb[2].mxu0 }
 0x925   : > { %18414 = vst [vmem:[#allocation74_spill] sm:$0xff] %v16744_v25  ;;  %v6319_v21 = vadd.f32 %v6318_v14, %v18415_v1  ;;  %10373 = vmatmul.mubr.msk.f32.gmra.mrb[108].mxu0 %vm1931_vm0, %v7270_v40  ;;  %v6320_v6 = vpop.f32.mrb[3].mxu0 }
 0x926   : > { %10375 = vmatprep.mubr.msk.f32.mxu0 %vm1931_vm0, %v7271_v3  ;;  %v7274_v3 = vld [vmem:[%s18012_s19 + $0x88] sm:$0xff]  ;;  %v16769_v14 = vpop.f32.mrb[226].mxu1 }
 0x927   : > { %v16761_v8 = vadd.f32 %v16311_v32, %v6319_v21  ;;  %v7275_v32 = vld [vmem:[%s18012_s19 + $0x90] sm:$0xff]  ;;  %v16777_v21 = vpop.f32.mrb[227].mxu1  ;;  %v18417_v6 = vld [vmem:[#allocation39_spill] sm:$0xff] }
 0x928   : > { %v6323_v10 = vpop.f32.mrb[4].mxu0 }
 0x929   : > { %v6324_v25 = vadd.f32 %v6323_v10, %v16218_v54  ;;  %10376 = vmatmul.mubr.msk.f32.gmra.mrb[110].mxu0 %vm1931_vm0, %v7272_v51  ;;  %v6325_v40 = vpop.f32.mrb[5].mxu0  ;;  %v7276_v10 = vld [vmem:[%s18012_s19 + $0x98] sm:$0xff] }
 0x92a   : > { %10378 = vmatprep.mubr.msk.f32.mxu0 %vm1931_vm0, %v7273_v39 }
 0x92b   : > { %v16772_v1 = vadd.f32 %v16347_v16, %v6324_v25  ;;  %v7277_v16 = vld [vmem:[%s18012_s19 + $0xa0] sm:$0xff] }
 0x92c   : > { %v6328_v54 = vpop.f32.mrb[6].mxu0 }
 0x92d   : > { %18416 = vst [vmem:[#allocation79_spill] sm:$0xff] %v16772_v1  ;;  %v6329_v51 = vadd.f32 %v6328_v54, %v18417_v6  ;;  %10379 = vmatmul.mubr.msk.f32.gmra.mrb[112].mxu0 %vm1931_vm0, %v7274_v3  ;;  %v6330_v39 = vpop.f32.mrb[7].mxu0 }
 0x92e   : > { %10381 = vmatprep.mubr.msk.f32.mxu0 %vm1931_vm0, %v7275_v32  ;;  %v7278_v32 = vld [vmem:[%s18012_s19 + $0xa8] sm:$0xff]  ;;  %v16797_v54 = vpop.f32.mrb[228].mxu1  ;;  %v18419_v39 = vld [vmem:[#allocation42_spill] sm:$0xff] }
 0x92f   : > { %v16789_v25 = vadd.f32 %v16339_v52, %v6329_v51  ;;  %v7279_v52 = vld [vmem:[%s18012_s19 + $0xb0] sm:$0xff]  ;;  %v16805_v51 = vpop.f32.mrb[229].mxu1 }
 0x930   : > { %v6333_v40 = vpop.f32.mrb[8].mxu0 }
 0x931   : > { %v6334_v1 = vadd.f32 %v6333_v40, %v16231_v56  ;;  %10382 = vmatmul.mubr.msk.f32.gmra.mrb[114].mxu0 %vm1931_vm0, %v7276_v10  ;;  %v6335_v3 = vpop.f32.mrb[9].mxu0  ;;  %v7280_v40 = vld [vmem:[%s18012_s19 + $0xb8] sm:$0xff] }
 0x932   : > { %10384 = vmatprep.mubr.msk.f32.mxu0 %vm1931_vm0, %v7277_v16 }
 0x933   : > { %v16800_v6 = vadd.f32 %v16375_v34, %v6334_v1  ;;  %v7281_v34 = vld [vmem:[%s18012_s19 + $0xc0] sm:$0xff] }
 0x934   : > { %v6338_v56 = vpop.f32.mrb[10].mxu0 }
 0x935   : > { %18418 = vst [vmem:[#allocation78_spill] sm:$0xff] %v16800_v6  ;;  %v6339_v10 = vadd.f32 %v6338_v56, %v18419_v39  ;;  %10385 = vmatmul.mubr.msk.f32.gmra.mrb[116].mxu0 %vm1931_vm0, %v7278_v32  ;;  %v6340_v16 = vpop.f32.mrb[11].mxu0 }
 0x936   : > { %10387 = vmatprep.mubr.msk.f32.mxu0 %vm1931_vm0, %v7279_v52  ;;  %v7282_v52 = vld [vmem:[%s18012_s19 + $0xc8] sm:$0xff]  ;;  %v16825_v56 = vpop.f32.mrb[230].mxu1 }
 0x937   : > { %v16817_v1 = vadd.f32 %v16367_v23, %v6339_v10  ;;  %v7283_v23 = vld [vmem:[%s18012_s19 + $0xd0] sm:$0xff]  ;;  %v16833_v10 = vpop.f32.mrb[231].mxu1  ;;  %v18421_v16 = vld [vmem:[#allocation43_spill] sm:$0xff] }
 0x938   : > { %v6343_v3 = vpop.f32.mrb[12].mxu0 }
 0x939   : > { %v6344_v6 = vadd.f32 %v6343_v3, %v16247_v26  ;;  %10388 = vmatmul.mubr.msk.f32.gmra.mrb[118].mxu0 %vm1931_vm0, %v7280_v40  ;;  %v6345_v32 = vpop.f32.mrb[13].mxu0  ;;  %v7284_v3 = vld [vmem:[%s18012_s19 + $0xd8] sm:$0xff] }
 0x93a   : > { %10390 = vmatprep.mubr.msk.f32.mxu0 %vm1931_vm0, %v7281_v34 }
 0x93b   : > { %v16828_v39 = vadd.f32 %v16403_v18, %v6344_v6  ;;  %v7285_v18 = vld [vmem:[%s18012_s19 + $0xe0] sm:$0xff] }
 0x93c   : > { %v6348_v26 = vpop.f32.mrb[14].mxu0 }
 0x93d   : > { %18420 = vst [vmem:[#allocation82_spill] sm:$0xff] %v16828_v39  ;;  %v6349_v40 = vadd.f32 %v6348_v26, %v18421_v16  ;;  %10391 = vmatmul.mubr.msk.f32.gmra.mrb[120].mxu0 %vm1931_vm0, %v7282_v52  ;;  %v6350_v34 = vpop.f32.mrb[15].mxu0 }
 0x93e   : > { %10393 = vmatprep.mubr.msk.f32.mxu0 %vm1931_vm0, %v7283_v23  ;;  %v16849_v26 = vpop.f32.mrb[232].mxu1  ;;  %v7286_v23 = vld [vmem:[%s18012_s19 + $0xe8] sm:$0xff] }
 0x93f   : > { %v16845_v6 = vadd.f32 %v16395_v47, %v6349_v40  ;;  %v16855_v16 = vpop.f32.mrb[233].mxu1  ;;  %v18423_v40 = vld [vmem:[#allocation46_spill] sm:$0xff] }
 0x940   : > { %v6353_v32 = vpop.f32.mrb[16].mxu0 }
 0x941   : > { %v6354_v39 = vadd.f32 %v6353_v32, %v16259_v49  ;;  %10394 = vmatmul.mubr.msk.f32.gmra.mrb[122].mxu0 %vm1931_vm0, %v7284_v3  ;;  %v6355_v52 = vpop.f32.mrb[17].mxu0  ;;  %v7287_v49 = vld [vmem:[%s18012_s19 + $0xf0] sm:$0xff] }
 0x942   : > { %10396 = vmatprep.mubr.msk.f32.mxu0 %vm1931_vm0, %v7285_v18  ;;  %v7288_v18 = vld [vmem:[%s18012_s19 + $0xf8] sm:$0xff] }
 0x943   : > { %v16858_v34 = vadd.f32 %v16431_v30, %v6354_v39  ;;  %v7289_v30 = vld [vmem:[%s18012_s19 + $0x100] sm:$0xff] }
 0x944   : > { %v6358_v47 = vpop.f32.mrb[18].mxu0 }
 0x945   : > { %18422 = vst [vmem:[#allocation83_spill] sm:$0xff] %v16858_v34  ;;  %v6359_v3 = vadd.f32 %v6358_v47, %v18423_v40  ;;  %10397 = vmatmul.mubr.msk.f32.gmra.mrb[124].mxu0 %vm1931_vm0, %v7286_v23  ;;  %v6360_v32 = vpop.f32.mrb[19].mxu0 }
 0x946   : > { %10399 = vmatprep.mubr.msk.f32.mxu0 %vm1931_vm0, %v7287_v49  ;;  %v16877_v47 = vpop.f32.mrb[234].mxu1  ;;  %v7290_v49 = vld [vmem:[%s18012_s19 + $0x108] sm:$0xff] }
 0x947   : > { %v16873_v39 = vadd.f32 %v16423_v46, %v6359_v3  ;;  %v16883_v40 = vpop.f32.mrb[235].mxu1  ;;  %v18426_v3 = vld [vmem:[#allocation47_spill] sm:$0xff] }
 0x948   : > { %v6363_v52 = vpop.f32.mrb[20].mxu0 }
 0x949   : > { %18424 = vst [vmem:[#allocation18_spill] sm:$0xff] %v16873_v39  ;;  %v6364_v34 = vadd.f32 %v6363_v52, %v16275_v31  ;;  %10400 = vmatmul.mubr.msk.f32.gmra.mrb[126].mxu0 %vm1931_vm0, %v7288_v18  ;;  %v6365_v23 = vpop.f32.mrb[21].mxu0  ;;  %v7291_v31 = vld [vmem:[%s18012_s19 + $0x110] sm:$0xff] }
 0x94a   : > { %10402 = vmatprep.mubr.msk.f32.mxu0 %vm1931_vm0, %v7289_v30  ;;  %v7292_v30 = vld [vmem:[%s18012_s19 + $0x118] sm:$0xff] }
 0x94b   : > { %v16886_v32 = vadd.f32 %v16459_v0, %v6364_v34  ;;  %v7293_v0 = vld [vmem:[%s18012_s19 + $0x120] sm:$0xff] }
 0x94c   : > { %v6368_v46 = vpop.f32.mrb[22].mxu0 }
 0x94d   : > { %18425 = vst [vmem:[#allocation19_spill] sm:$0xff] %v16886_v32  ;;  %v6369_v18 = vadd.f32 %v6368_v46, %v18426_v3  ;;  %10403 = vmatmul.mubr.msk.f32.gmra.mrb[128].mxu0 %vm1931_vm0, %v7290_v49  ;;  %v6370_v52 = vpop.f32.mrb[23].mxu0 }
 0x94e   : > { %10405 = vmatprep.mubr.msk.f32.mxu0 %vm1931_vm0, %v7291_v31  ;;  %v16905_v46 = vpop.f32.mrb[236].mxu1  ;;  %v7294_v31 = vld [vmem:[%s18012_s19 + $0x128] sm:$0xff] }
 0x94f   : > { %v16901_v34 = vadd.f32 %v16451_v15, %v6369_v18  ;;  %v16911_v3 = vpop.f32.mrb[237].mxu1  ;;  %v18429_v18 = vld [vmem:[#allocation50_spill] sm:$0xff] }
 0x950   : > { %v6373_v23 = vpop.f32.mrb[24].mxu0 }
 0x951   : > { %18427 = vst [vmem:[#allocation20_spill] sm:$0xff] %v16901_v34  ;;  %v6374_v32 = vadd.f32 %v6373_v23, %v16287_v41  ;;  %10406 = vmatmul.mubr.msk.f32.gmra.mrb[130].mxu0 %vm1931_vm0, %v7292_v30  ;;  %v6375_v49 = vpop.f32.mrb[25].mxu0  ;;  %v7295_v41 = vld [vmem:[%s18012_s19 + $0x130] sm:$0xff] }
 0x952   : > { %10408 = vmatprep.mubr.msk.f32.mxu0 %vm1931_vm0, %v7293_v0  ;;  %v7296_v0 = vld [vmem:[%s18012_s19 + $0x138] sm:$0xff] }
 0x953   : > { %v16914_v52 = vadd.f32 %v16487_v9, %v6374_v32  ;;  %v7297_v9 = vld [vmem:[%s18012_s19 + $0x140] sm:$0xff] }
 0x954   : > { %v6378_v15 = vpop.f32.mrb[26].mxu0 }
 0x955   : > { %18428 = vst [vmem:[#allocation21_spill] sm:$0xff] %v16914_v52  ;;  %v6379_v30 = vadd.f32 %v6378_v15, %v18429_v18  ;;  %10409 = vmatmul.mubr.msk.f32.gmra.mrb[132].mxu0 %vm1931_vm0, %v7294_v31  ;;  %v6380_v23 = vpop.f32.mrb[27].mxu0 }
 0x956   : > { %10411 = vmatprep.mubr.msk.f32.mxu0 %vm1931_vm0, %v7295_v41  ;;  %v16933_v15 = vpop.f32.mrb[238].mxu1  ;;  %v7298_v41 = vld [vmem:[%s18012_s19 + $0x148] sm:$0xff]  ;;  %v18431_v23 = vld [vmem:[#allocation17_spill] sm:$0xff] }
 0x957   : > { %v16929_v32 = vadd.f32 %v16479_v55, %v6379_v30  ;;  %v16939_v18 = vpop.f32.mrb[239].mxu1  ;;  %v18433_v30 = vld [vmem:[#allocation51_spill] sm:$0xff] }
 0x958   : > { %v6383_v49 = vpop.f32.mrb[28].mxu0 }
 0x959   : > { %18430 = vst [vmem:[#allocation22_spill] sm:$0xff] %v16929_v32  ;;  %v6384_v52 = vadd.f32 %v6383_v49, %v16303_v45  ;;  %10412 = vmatmul.mubr.msk.f32.gmra.mrb[134].mxu0 %vm1931_vm0, %v7296_v0  ;;  %v6385_v31 = vpop.f32.mrb[29].mxu0  ;;  %v7299_v45 = vld [vmem:[%s18012_s19 + $0x150] sm:$0xff]  ;;  %v18435_v32 = vld [vmem:[#allocation55_spill] sm:$0xff] }
 0x95a   : > { %10414 = vmatprep.mubr.msk.f32.mxu0 %vm1931_vm0, %v7297_v9  ;;  %v7300_v9 = vld [vmem:[%s18012_s19 + $0x158] sm:$0xff]  ;;  %v18434_v31 = vld [vmem:[#allocation15_spill] sm:$0xff] }
 0x95b   : > { %v16942_v34 = vadd.f32 %v18431_v23, %v6384_v52  ;;  %v7301_v52 = vld [vmem:[%s18012_s19 + $0x160] sm:$0xff] }
 0x95c   : > { %v6388_v55 = vpop.f32.mrb[30].mxu0 }
 0x95d   : > { %18432 = vst [vmem:[#allocation23_spill] sm:$0xff] %v16942_v34  ;;  %v6389_v0 = vadd.f32 %v6388_v55, %v18433_v30  ;;  %10415 = vmatmul.mubr.msk.f32.gmra.mrb[136].mxu0 %vm1931_vm0, %v7298_v41  ;;  %v6390_v49 = vpop.f32.mrb[31].mxu0  ;;  %v7303_v30 = vld [vmem:[%s18012_s19 + $0x170] sm:$0xff] }
 0x95e   : > { %10417 = vmatprep.mubr.msk.f32.mxu0 %vm1931_vm0, %v7299_v45  ;;  %v7302_v45 = vld [vmem:[%s18012_s19 + $0x168] sm:$0xff]  ;;  %v18436_v49 = vld [vmem:[#allocation54_spill] sm:$0xff] }
 0x95f   : > { %v16957_v23 = vadd.f32 %v18434_v31, %v6389_v0 }
 0x960   : > { %v6393_v34 = vpop.f32.mrb[32].mxu0 }
 0x961   : > { %v6394_v39 = vadd.f32 %v6393_v34, %v18435_v32  ;;  %10418 = vmatmul.mubr.msk.f32.gmra.mrb[138].mxu0 %vm1931_vm0, %v7300_v9  ;;  %v6395_v41 = vpop.f32.mrb[33].mxu0  ;;  %v7304_v32 = vld [vmem:[%s18012_s19 + $0x178] sm:$0xff] }
 0x962   : > { %10420 = vmatprep.mubr.msk.f32.mxu0 %vm1931_vm0, %v7301_v52  ;;  %v18437_v52 = vld [vmem:[#allocation59_spill] sm:$0xff] }
 0x963   : > { %v16966_v55 = vadd.f32 %v16538_v38, %v6394_v39  ;;  %v7305_v38 = vld [vmem:[%s18012_s19 + $0x180] sm:$0xff] }
 0x964   : > { %v6398_v0 = vpop.f32.mrb[34].mxu0 }
 0x965   : > { %v6399_v31 = vadd.f32 %v6398_v0, %v18436_v49  ;;  %10421 = vmatmul.mubr.msk.f32.gmra.mrb[140].mxu0 %vm1931_vm0, %v7302_v45  ;;  %v6400_v34 = vpop.f32.mrb[35].mxu0 }
 0x966   : > { %10423 = vmatprep.mubr.msk.f32.mxu0 %vm1931_vm0, %v7303_v30  ;;  %v7306_v30 = vld [vmem:[%s18012_s19 + $0x188] sm:$0xff] }
 0x967   : > { %v16981_v39 = vadd.f32 %v16533_v24, %v6399_v31  ;;  %v7307_v24 = vld [vmem:[%s18012_s19 + $0x190] sm:$0xff]  ;;  %v18438_v31 = vld [vmem:[#allocation58_spill] sm:$0xff] }
 0x968   : > { %v6403_v9 = vpop.f32.mrb[36].mxu0 }
 0x969   : > { %v6404_v41 = vadd.f32 %v6403_v9, %v18437_v52  ;;  %10424 = vmatmul.mubr.msk.f32.gmra.mrb[142].mxu0 %vm1931_vm0, %v7304_v32  ;;  %v6405_v45 = vpop.f32.mrb[37].mxu0 }
 0x96a   : > { %10426 = vmatprep.mubr.msk.f32.mxu0 %vm1931_vm0, %v7305_v38  ;;  %v7308_v38 = vld [vmem:[%s18012_s19 + $0x198] sm:$0xff] }
 0x96b   : > { %v16990_v0 = vadd.f32 %v16562_v12, %v6404_v41  ;;  %v7309_v12 = vld [vmem:[%s18012_s19 + $0x1a0] sm:$0xff]  ;;  %v18439_v41 = vld [vmem:[#allocation63_spill] sm:$0xff] }
 0x96c   : > { %v6408_v49 = vpop.f32.mrb[38].mxu0 }
 0x96d   : > { %v6409_v34 = vadd.f32 %v6408_v49, %v18438_v31  ;;  %10427 = vmatmul.mubr.msk.f32.gmra.mrb[144].mxu0 %vm1931_vm0, %v7306_v30  ;;  %v6410_v32 = vpop.f32.mrb[39].mxu0 }
 0x96e   : > { %10429 = vmatprep.mubr.msk.f32.mxu0 %vm1931_vm0, %v7307_v24  ;;  %v7310_v24 = vld [vmem:[%s18012_s19 + $0x1a8] sm:$0xff] }
 0x96f   : > { %v17005_v9 = vadd.f32 %v16557_v63, %v6409_v34  ;;  %v7311_v63 = vld [vmem:[%s18012_s19 + $0x1b0] sm:$0xff]  ;;  %v18440_v34 = vld [vmem:[#allocation62_spill] sm:$0xff] }
 0x970   : > { %v6413_v52 = vpop.f32.mrb[40].mxu0 }
 0x971   : > { %v6414_v45 = vadd.f32 %v6413_v52, %v18439_v41  ;;  %10430 = vmatmul.mubr.msk.f32.gmra.mrb[146].mxu0 %vm1931_vm0, %v7308_v38  ;;  %v6415_v30 = vpop.f32.mrb[41].mxu0 }
 0x972   : > { %10432 = vmatprep.mubr.msk.f32.mxu0 %vm1931_vm0, %v7309_v12  ;;  %v7312_v12 = vld [vmem:[%s18012_s19 + $0x1b8] sm:$0xff] }
 0x973   : > { %v17014_v49 = vadd.f32 %v16586_v42, %v6414_v45  ;;  %v7313_v42 = vld [vmem:[%s18012_s19 + $0x1c0] sm:$0xff]  ;;  %v18441_v45 = vld [vmem:[#allocation81_spill] sm:$0xff] }
 0x974   : > { %v6418_v31 = vpop.f32.mrb[42].mxu0 }
 0x975   : > { %v6419_v32 = vadd.f32 %v6418_v31, %v18440_v34  ;;  %10433 = vmatmul.mubr.msk.f32.gmra.mrb[148].mxu0 %vm1931_vm0, %v7310_v24  ;;  %v6420_v38 = vpop.f32.mrb[43].mxu0 }
 0x976   : > { %10435 = vmatprep.mubr.msk.f32.mxu0 %vm1931_vm0, %v7311_v63  ;;  %v7314_v63 = vld [vmem:[%s18012_s19 + $0x1c8] sm:$0xff] }
 0x977   : > { %v17029_v52 = vadd.f32 %v16581_v36, %v6419_v32  ;;  %v7315_v36 = vld [vmem:[%s18012_s19 + $0x1d0] sm:$0xff] }
 0x978   : > { %v6423_v41 = vpop.f32.mrb[44].mxu0  ;;  %v18443_v32 = vld [vmem:[#allocation80_spill] sm:$0xff] }
 0x979   : > { %v6424_v30 = vadd.f32 %v6423_v41, %v18441_v45  ;;  %10436 = vmatmul.mubr.msk.f32.gmra.mrb[150].mxu0 %vm1931_vm0, %v7312_v12  ;;  %v6425_v24 = vpop.f32.mrb[45].mxu0 }
 0x97a   : > { %10438 = vmatprep.mubr.msk.f32.mxu0 %vm1931_vm0, %v7313_v42  ;;  %v7316_v42 = vld [vmem:[%s18012_s19 + $0x1d8] sm:$0xff] }
 0x97b   : > { %v17038_v31 = vadd.f32 %v16610_v53, %v6424_v30  ;;  %v7317_v53 = vld [vmem:[%s18012_s19 + $0x1e0] sm:$0xff]  ;;  %v18445_v30 = vld [vmem:[#allocation67_spill] sm:$0xff] }
 0x97c   : > { %v6428_v34 = vpop.f32.mrb[46].mxu0 }
 0x97d   : > { %18442 = vst [vmem:[#allocation24_spill] sm:$0xff] %v17038_v31  ;;  %v6429_v38 = vadd.f32 %v6428_v34, %v18443_v32  ;;  %10439 = vmatmul.mubr.msk.f32.gmra.mrb[152].mxu0 %vm1931_vm0, %v7314_v63  ;;  %v6430_v12 = vpop.f32.mrb[47].mxu0 }
 0x97e   : > { %10441 = vmatprep.mubr.msk.f32.mxu0 %vm1931_vm0, %v7315_v36  ;;  %v7318_v36 = vld [vmem:[%s18012_s19 + $0x1e8] sm:$0xff] }
 0x97f   : > { %v17053_v41 = vadd.f32 %v16605_v50, %v6429_v38  ;;  %v7319_v50 = vld [vmem:[%s18012_s19 + $0x1f0] sm:$0xff]  ;;  %v18447_v38 = vld [vmem:[#allocation66_spill] sm:$0xff] }
 0x980   : > { %v6433_v45 = vpop.f32.mrb[48].mxu0 }
 0x981   : > { %18444 = vst [vmem:[#allocation25_spill] sm:$0xff] %v17053_v41  ;;  %v6434_v24 = vadd.f32 %v6433_v45, %v18445_v30  ;;  %10442 = vmatmul.mubr.msk.f32.gmra.mrb[154].mxu0 %vm1931_vm0, %v7316_v42  ;;  %v6435_v63 = vpop.f32.mrb[49].mxu0  ;;  %v18449_v30 = vld [vmem:[#allocation69_spill] sm:$0xff]  ;;  %v18451_v41 = vld [vmem:[#allocation71_spill] sm:$0xff] }
 0x982   : > { %10444 = vmatprep.mubr.msk.f32.mxu0 %vm1931_vm0, %v7317_v53  ;;  %v7320_v53 = vld [vmem:[%s18012_s19 + $0x1f8] sm:$0xff] }
 0x983   : > { %v17062_v34 = vadd.f32 %v16634_v2, %v6434_v24 }
 0x984   : > { %v6438_v32 = vpop.f32.mrb[50].mxu0 }
 0x985   : > { %18446 = vst [vmem:[#allocation26_spill] sm:$0xff] %v17062_v34  ;;  %v6439_v12 = vadd.f32 %v6438_v32, %v18447_v38  ;;  %10445 = vmatmul.mubr.msk.f32.gmra.mrb[156].mxu0 %vm1931_vm0, %v7318_v36  ;;  %v6440_v42 = vpop.f32.mrb[51].mxu0  ;;  %v18450_v38 = vld [vmem:[#allocation68_spill] sm:$0xff] }
 0x986   : > { %10447 = vmatprep.mubr.msk.f32.mxu0 %vm1931_vm0, %v7319_v50 }
 0x987   : > { %v17074_v45 = vadd.f32 %v16629_v33, %v6439_v12 }
 0x988   : > { %v6443_v2 = vpop.f32.mrb[52].mxu0 }
 0x989   : > { %18448 = vst [vmem:[#allocation27_spill] sm:$0xff] %v17074_v45  ;;  %v6444_v24 = vadd.f32 %v6443_v2, %v18449_v30  ;;  %10448 = vmatmul.mubr.msk.f32.gmra.mrb[158].mxu0 %vm1931_vm0, %v7320_v53  ;;  %v6445_v63 = vpop.f32.mrb[53].mxu0  ;;  %v18453_v53 = vld [vmem:[#allocation70_spill] sm:$0xff] }
 0x98b   : > { %v17079_v32 = vadd.f32 %v16659_v20, %v6444_v24 }
 0x98c   : > { %v6448_v36 = vpop.f32.mrb[54].mxu0 }
 0x98d   : > { %v6449_v42 = vadd.f32 %v6448_v36, %v18450_v38  ;;  %v6450_v50 = vpop.f32.mrb[55].mxu0  ;;  %v18455_v36 = vld [vmem:[#allocation73_spill] sm:$0xff] }
 0x98f   : > { %v17083_v34 = vadd.f32 %v16653_v7, %v6449_v42 }
 0x990   : > { %v6453_v31 = vpop.f32.mrb[56].mxu0 }
 0x991   : > { %v6454_v33 = vadd.f32 %v6453_v31, %v18451_v41  ;;  %v6455_v12 = vpop.f32.mrb[57].mxu0  ;;  %v18457_v31 = vld [vmem:[#allocation72_spill] sm:$0xff] }
 0x993   : > { %v17087_v45 = vadd.f32 %v16687_v48, %v6454_v33 }
 0x994   : > { %v6458_v2 = vpop.f32.mrb[58].mxu0 }
 0x995   : > { %18452 = vst [vmem:[#allocation28_spill] sm:$0xff] %v17087_v45  ;;  %v6459_v30 = vadd.f32 %v6458_v2, %v18453_v53  ;;  %v6460_v63 = vpop.f32.mrb[59].mxu0  ;;  %v18459_v2 = vld [vmem:[#allocation3_spill] sm:$0xff] }
 0x997   : > { %v17091_v20 = vadd.f32 %v16681_v19, %v6459_v30  ;;  %v17105_v30 = vpop.permute.xlu1 %8033 }
 0x998   : > { %v6463_v24 = vpop.f32.mrb[60].mxu0 }
 0x999   : > { %18454 = vst [vmem:[#allocation29_spill] sm:$0xff] %v17091_v20  ;;  %v6464_v38 = vadd.f32 %v6463_v24, %v18455_v36  ;;  %v6465_v50 = vpop.f32.mrb[61].mxu0  ;;  %v17107_v36 = vpop.permute.xlu0 %8028 }
 0x99b   : > { %v17095_v7 = vadd.f32 %v16715_v59, %v6464_v38  ;;  %v18461_v59 = vld [vmem:[#allocation2_spill] sm:$0xff] }
 0x99c   : > { %v6468_v42 = vpop.f32.mrb[62].mxu0 }
 0x99d   : > { %18456 = vst [vmem:[#allocation30_spill] sm:$0xff] %v17095_v7  ;;  %v6469_v41 = vadd.f32 %v6468_v42, %v18457_v31  ;;  %v6470_v12 = vpop.f32.mrb[63].mxu0  ;;  %v18463_v31 = vld [vmem:[#allocation5_spill] sm:$0xff] }
 0x99f   : > { %v17099_v48 = vadd.f32 %v16709_v44, %v6469_v41 }
 0x9a0   : > { %v6473_v33 = vpop.f32.mrb[64].mxu0 }
 0x9a1   : > { %18458 = vst [vmem:[#allocation31_spill] sm:$0xff] %v17099_v48  ;;  %v6474_v53 = vadd.f32 %v6473_v33, %v18459_v2  ;;  %v6475_v63 = vpop.f32.mrb[65].mxu0  ;;  %v17114_v33 = vpop.permute.xlu1 %8043 }
 0x9a2   : > { %v17116_v2 = vpop.permute.xlu0 %8038  ;;  %v18465_v63 = vld [vmem:[#allocation4_spill] sm:$0xff] }
 0x9a3   : > { %v17103_v19 = vadd.f32 %v16749_v29, %v6474_v53 }
 0x9a4   : > { %v6478_v24 = vpop.f32.mrb[66].mxu0 }
 0x9a5   : > { %18460 = vst [vmem:[#allocation32_spill] sm:$0xff] %v17103_v19  ;;  %v6479_v38 = vadd.f32 %v6478_v24, %v18461_v59  ;;  %v6480_v50 = vpop.f32.mrb[67].mxu0 }
 0x9a6   : > { %v18467_v50 = vld [vmem:[#allocation7_spill] sm:$0xff] }
 0x9a7   : > { %v17111_v42 = vadd.f32 %v16741_v57, %v6479_v38  ;;  %v17125_v57 = vpop.permute.xlu1 %8053  ;;  %v17127_v38 = vpop.permute.xlu0 %8048 }
 0x9a8   : > { %v6483_v44 = vpop.f32.mrb[68].mxu0 }
 0x9a9   : > { %18462 = vst [vmem:[#allocation33_spill] sm:$0xff] %v17111_v42  ;;  %v6484_v41 = vadd.f32 %v6483_v44, %v18463_v31  ;;  %v6485_v12 = vpop.f32.mrb[69].mxu0 }
 0x9ab   : > { %v17119_v29 = vadd.f32 %v16777_v21, %v6484_v41  ;;  %v18469_v41 = vld [vmem:[#allocation6_spill] sm:$0xff] }
 0x9ac   : > { %v6488_v53 = vpop.f32.mrb[70].mxu0 }
 0x9ad   : > { %18464 = vst [vmem:[#allocation37_spill] sm:$0xff] %v17119_v29  ;;  %v6489_v19 = vadd.f32 %v6488_v53, %v18465_v63  ;;  %v6490_v7 = vpop.f32.mrb[71].mxu0  ;;  %v17134_v53 = vpop.permute.xlu1 %8063  ;;  %v18471_v63 = vld [vmem:[#allocation9_spill] sm:$0xff] }
 0x9ae   : > { %v17136_v7 = vpop.permute.xlu0 %8058 }
 0x9af   : > { %v17123_v24 = vadd.f32 %v16769_v14, %v6489_v19 }
 0x9b0   : > { %v6493_v59 = vpop.f32.mrb[72].mxu0 }
 0x9b1   : > { %18466 = vst [vmem:[#allocation36_spill] sm:$0xff] %v17123_v24  ;;  %v6494_v44 = vadd.f32 %v6493_v59, %v18467_v50  ;;  %v6495_v31 = vpop.f32.mrb[73].mxu0 }
 0x9b3   : > { %v17131_v12 = vadd.f32 %v16805_v51, %v6494_v44  ;;  %v17145_v51 = vpop.permute.xlu1 %8073  ;;  %v17147_v44 = vpop.permute.xlu0 %8068 }
 0x9b4   : > { %v6498_v21 = vpop.f32.mrb[74].mxu0 }
 0x9b5   : > { %18468 = vst [vmem:[#allocation41_spill] sm:$0xff] %v17131_v12  ;;  %v6499_v29 = vadd.f32 %v6498_v21, %v18469_v41  ;;  %v6500_v42 = vpop.f32.mrb[75].mxu0 }
 0x9b6   : > { %v18473_v42 = vld [vmem:[#allocation8_spill] sm:$0xff] }
 0x9b7   : > { %v17139_v14 = vadd.f32 %v16797_v54, %v6499_v29  ;;  %v18475_v29 = vld [vmem:[#allocation11_spill] sm:$0xff] }
 0x9b8   : > { %v6503_v19 = vpop.f32.mrb[76].mxu0 }
 0x9b9   : > { %18470 = vst [vmem:[#allocation40_spill] sm:$0xff] %v17139_v14  ;;  %v6504_v24 = vadd.f32 %v6503_v19, %v18471_v63  ;;  %v6505_v48 = vpop.f32.mrb[77].mxu0  ;;  %v17154_v19 = vpop.permute.xlu1 %8083  ;;  %v18477_v63 = vld [vmem:[#allocation10_spill] sm:$0xff] }
 0x9ba   : > { %v17156_v48 = vpop.permute.xlu0 %8078 }
 0x9bb   : > { %v17143_v59 = vadd.f32 %v16833_v10, %v6504_v24 }
 0x9bc   : > { %v6508_v50 = vpop.f32.mrb[78].mxu0 }
 0x9bd   : > { %18472 = vst [vmem:[#allocation45_spill] sm:$0xff] %v17143_v59  ;;  %v6509_v31 = vadd.f32 %v6508_v50, %v18473_v42  ;;  %v6510_v21 = vpop.f32.mrb[79].mxu0 }
 0x9bf   : > { %v17151_v41 = vadd.f32 %v16825_v56, %v6509_v31  ;;  %v17165_v56 = vpop.permute.xlu1 %8093  ;;  %v17167_v31 = vpop.permute.xlu0 %8088 }
 0x9c0   : > { %v6513_v54 = vpop.f32.mrb[80].mxu0 }
 0x9c1   : > { %18474 = vst [vmem:[#allocation44_spill] sm:$0xff] %v17151_v41  ;;  %v6514_v12 = vadd.f32 %v6513_v54, %v18475_v29  ;;  %v6515_v14 = vpop.f32.mrb[81].mxu0 }
 0x9c2   : > { %v18479_v14 = vld [vmem:[#allocation13_spill] sm:$0xff] }
 0x9c3   : > { %v17159_v10 = vadd.f32 %v16855_v16, %v6514_v12  ;;  %v18481_v12 = vld [vmem:[#allocation12_spill] sm:$0xff] }
 0x9c4   : > { %v6518_v24 = vpop.f32.mrb[82].mxu0 }
 0x9c5   : > { %18476 = vst [vmem:[#allocation49_spill] sm:$0xff] %v17159_v10  ;;  %v6519_v59 = vadd.f32 %v6518_v24, %v18477_v63  ;;  %v6520_v45 = vpop.f32.mrb[83].mxu0  ;;  %v17174_v24 = vpop.permute.xlu1 %8103  ;;  %v18482_v63 = vld [vmem:[#allocation16_spill] sm:$0xff] }
 0x9c6   : > { %v17176_v45 = vpop.permute.xlu0 %8098 }
 0x9c7   : > { %v17163_v50 = vadd.f32 %v16849_v26, %v6519_v59 }
 0x9c8   : > { %v6523_v42 = vpop.f32.mrb[84].mxu0 }
 0x9c9   : > { %18478 = vst [vmem:[#allocation48_spill] sm:$0xff] %v17163_v50  ;;  %v6524_v21 = vadd.f32 %v6523_v42, %v18479_v14  ;;  %v6525_v54 = vpop.f32.mrb[85].mxu0 }
 0x9cb   : > { %v17171_v29 = vadd.f32 %v16883_v40, %v6524_v21  ;;  %v17185_v40 = vpop.permute.xlu1 %8113  ;;  %v17187_v21 = vpop.permute.xlu0 %8108 }
 0x9cc   : > { %v6528_v16 = vpop.f32.mrb[86].mxu0 }
 0x9cd   : > { %18480 = vst [vmem:[#allocation53_spill] sm:$0xff] %v17171_v29  ;;  %v6529_v10 = vadd.f32 %v6528_v16, %v18481_v12  ;;  %v6530_v41 = vpop.f32.mrb[87].mxu0 }
 0x9ce   : > { %v18484_v41 = vld [vmem:[#allocation14_spill] sm:$0xff] }
 0x9cf   : > { %v17179_v26 = vadd.f32 %v16877_v47, %v6529_v10 }
 0x9d0   : > { %v6533_v59 = vpop.f32.mrb[88].mxu0 }
 0x9d1   : > { %v6534_v50 = vadd.f32 %v6533_v59, %v18482_v63  ;;  %v6535_v20 = vpop.f32.mrb[89].mxu0  ;;  %v17194_v59 = vpop.permute.xlu1 %8123  ;;  %v8607_v63 = vlaneseq }
 0x9d3   : > { %v17183_v42 = vadd.f32 %v16911_v3, %v6534_v50  ;;  %v17196_v3 = vpop.permute.xlu0 %8118 }
 0x9d4   : > { %v6538_v14 = vpop.f32.mrb[90].mxu0 }
 0x9d5   : > { %18483 = vst [vmem:[#allocation52_spill] sm:$0xff] %v17183_v42  ;;  %v6539_v54 = vadd.f32 %v6538_v14, %v18484_v41  ;;  %v6540_v16 = vpop.f32.mrb[91].mxu0 }
 0x9d7   : > { %v17191_v12 = vadd.f32 %v16905_v46, %v6539_v54  ;;  %v17205_v54 = vpop.permute.xlu1 %8133  ;;  %v17209_v16 = vpop.permute.xlu0 %8128 }
 0x9d8   : > { %v6543_v47 = vpop.f32.mrb[92].mxu0 }
 0x9d9   : > { %v6544_v10 = vadd.f32 %v6543_v47, %v16524_v4  ;;  %v6545_v29 = vpop.f32.mrb[93].mxu0 }
 0x9da   : > { %v17207_v29 = vand.u32 127, %v8607_v63 }
 0x9db   : > { %v17199_v20 = vadd.f32 %v16939_v18, %v6544_v10  ;;  %v18486_v18 = vld [vmem:[#allocation77_spill] sm:$0xff] }
 0x9dc   : > { %v6548_v50 = vpop.f32.mrb[94].mxu0  ;;  %vm8612_vm1 = vcmp.lt.s32.totalorder %v17207_v29, 60 }
 0x9dd   : > { %18485 = vst [vmem:[#allocation56_spill] sm:$0xff] %v17199_v20  ;;  %v6549_v14 = vadd.f32 %v6548_v50, %v16521_v22  ;;  %v6550_v41 = vpop.f32.mrb[95].mxu0 }
 0x9de   : > { %v17226_v41 = vpop.permute.xlu0 %8138 }
 0x9df   : > { %v17203_v46 = vadd.f32 %v16933_v15, %v6549_v14  ;;  %v17223_v14 = vpop.permute.xlu1 %8143 }
 0x9e0   : > { %v10356_v4 = vpop.f32.mrb[96].mxu0 }
 0x9e1   : > { %v7899_v47 = vadd.f32 %v10356_v4, %v16554_v43  ;;  %v7579_v42 = vpop.f32.mrb[97].mxu0 }
 0x9e2   : > { %v7898_v10 = vadd.f32 %v7579_v42, %v18486_v18 }
 0x9e3   : > { %v8347_v20 = vadd.f32 %v17105_v30, %v7899_v47 }
 0x9e4   : > { %v8346_v22 = vadd.f32 %v17107_v36, %v7898_v10  ;;  %v10359_v15 = vpop.f32.mrb[98].mxu0  ;;  %v11209_v10 = vmov 0.0  }
 0x9e5   : > { %v8411_v50 = vmax.f32 %v8347_v20, 0.0  ;;  %v7901_v43 = vadd.f32 %v10359_v15, %v16578_v61  ;;  %v7589_v63 = vpop.f32.mrb[99].mxu0  ;;  %8544 = vst.msk [vmem:[%s17248_s4 + $0x8] sm:$0xff] %vm8542_vm2, %v11209_v10  ;;  %8543 = vst.msk [vmem:[%s17248_s4] sm:$0xff] %vm8542_vm2, %v11209_v10  ;;  %v17455_v15 = vpop.permute.xlu1 %8153 }
 0x9e6   : > { %v8410_v30 = vmax.f32 %v8346_v22, 0.0  ;;  %v7900_v42 = vadd.f32 %v7589_v63, %v16565_v27  ;;  %8545 = vst.msk [vmem:[%s17248_s4 + $0x10] sm:$0xff] %vm8542_vm2, %v11209_v10  ;;  %8546 = vst.msk [vmem:[%s17248_s4 + $0x18] sm:$0xff] %vm8542_vm2, %v11209_v10  ;;  %v17462_v63 = vpop.permute.xlu0 %8148 }
 0x9e7   : > { %8475 = vst [vmem:[%s17218_s6 + $0x8] sm:$0xff] %v8411_v50  ;;  %v17230_v4 = vadd.f32 %v17114_v33, %v7901_v43  ;;  %v8678_v36 = vsel %vm8612_vm1, %v8411_v50, 0.0  ;;  %8547 = vst.msk [vmem:[%s17248_s4 + $0x20] sm:$0xff] %vm8542_vm2, %v11209_v10 }
 0x9e8   : > { %8474 = vst [vmem:[%s17218_s6] sm:$0xff] %v8410_v30  ;;  %v17236_v20 = vadd.f32 %v17116_v2, %v7900_v42  ;;  %8743 = vadd.xlane.f32.xlu1 %v8678_v36  ;;  %v10362_v61 = vpop.f32.mrb[100].mxu0  ;;  %v8677_v47 = vsel %vm8612_vm1, %v8410_v30, 0.0  ;;  %8548 = vst.msk [vmem:[%s17248_s4 + $0x28] sm:$0xff] %vm8542_vm2, %v11209_v10 }
 0x9e9   : > { %v8413_v27 = vmax.f32 %v17230_v4, 0.0  ;;  %v17242_v18 = vadd.f32 %v10362_v61, %v16602_v60  ;;  %8741 = vadd.xlane.f32.xlu0 %v8677_v47  ;;  %v7599_v33 = vpop.f32.mrb[101].mxu0  ;;  %8549 = vst.msk [vmem:[%s17248_s4 + $0x30] sm:$0xff] %vm8542_vm2, %v11209_v10  ;;  %8550 = vst.msk [vmem:[%s17248_s4 + $0x38] sm:$0xff] %vm8542_vm2, %v11209_v10 }
 0x9ea   : > { %v8412_v60 = vmax.f32 %v17236_v20, 0.0  ;;  %v17252_v2 = vadd.f32 %v7599_v33, %v16589_v58  ;;  %8551 = vst.msk [vmem:[%s17248_s4 + $0x40] sm:$0xff] %vm8542_vm2, %v11209_v10  ;;  %8552 = vst.msk [vmem:[%s17248_s4 + $0x48] sm:$0xff] %vm8542_vm2, %v11209_v10 }
 0x9eb   : > { %8553 = vst.msk [vmem:[%s17248_s4 + $0x50] sm:$0xff] %vm8542_vm2, %v11209_v10  ;;  %8554 = vst.msk [vmem:[%s17248_s4 + $0x58] sm:$0xff] %vm8542_vm2, %v11209_v10  ;;  %v8351_v58 = vadd.f32 %v17125_v57, %v17242_v18  ;;  %v8680_v22 = vsel %vm8612_vm1, %v8413_v27, 0.0 }
 0x9ec   : > { %8555 = vst.msk [vmem:[%s17248_s4 + $0x60] sm:$0xff] %vm8542_vm2, %v11209_v10  ;;  %8556 = vst.msk [vmem:[%s17248_s4 + $0x68] sm:$0xff] %vm8542_vm2, %v11209_v10  ;;  %v8350_v50 = vadd.f32 %v17127_v38, %v17252_v2  ;;  %v10365_v43 = vpop.f32.mrb[102].mxu0 }
 0x9ed   : > { %8557 = vst.msk [vmem:[%s17248_s4 + $0x70] sm:$0xff] %vm8542_vm2, %v11209_v10  ;;  %8558 = vst.msk [vmem:[%s17248_s4 + $0x78] sm:$0xff] %vm8542_vm2, %v11209_v10  ;;  %v8415_v30 = vmax.f32 %v8351_v58, 0.0  ;;  %v7905_v42 = vadd.f32 %v10365_v43, %v16626_v35  ;;  %8747 = vadd.xlane.f32.xlu0 %v8680_v22  ;;  %v7609_v57 = vpop.f32.mrb[103].mxu0 }
 0x9ee   : > { %8559 = vst.msk [vmem:[%s17248_s4 + $0x80] sm:$0xff] %vm8542_vm2, %v11209_v10  ;;  %8560 = vst.msk [vmem:[%s17248_s4 + $0x88] sm:$0xff] %vm8542_vm2, %v11209_v10  ;;  %v8414_v4 = vmax.f32 %v8350_v50, 0.0  ;;  %v7904_v36 = vadd.f32 %v7609_v57, %v16613_v17 }
 0x9ef   : > { %8561 = vst.msk [vmem:[%s17248_s4 + $0x90] sm:$0xff] %vm8542_vm2, %v11209_v10  ;;  %8562 = vst.msk [vmem:[%s17248_s4 + $0x98] sm:$0xff] %vm8542_vm2, %v11209_v10  ;;  %v8353_v61 = vadd.f32 %v17134_v53, %v7905_v42  ;;  %v17477_v53 = vpop.permute.xlu1 %8163 }
 0x9f0   : > { %8563 = vst.msk [vmem:[%s17248_s4 + $0xa0] sm:$0xff] %vm8542_vm2, %v11209_v10  ;;  %8564 = vst.msk [vmem:[%s17248_s4 + $0xa8] sm:$0xff] %vm8542_vm2, %v11209_v10  ;;  %v8352_v47 = vadd.f32 %v17136_v7, %v7904_v36  ;;  %v10368_v38 = vpop.f32.mrb[104].mxu0  ;;  %v8681_v35 = vsel %vm8612_vm1, %v8414_v4, 0.0 }
 0x9f1   : > { %8565 = vst.msk [vmem:[%s17248_s4 + $0xb0] sm:$0xff] %vm8542_vm2, %v11209_v10  ;;  %8566 = vst.msk [vmem:[%s17248_s4 + $0xb8] sm:$0xff] %vm8542_vm2, %v11209_v10  ;;  %v8417_v18 = vmax.f32 %v8353_v61, 0.0  ;;  %v7907_v17 = vadd.f32 %v10368_v38, %v16650_v13  ;;  %8749 = vadd.xlane.f32.xlu1 %v8681_v35  ;;  %v7619_v33 = vpop.f32.mrb[105].mxu0  ;;  %v8682_v13 = vsel %vm8612_vm1, %v8415_v30, 0.0 }
 0x9f2   : > { %8567 = vst.msk [vmem:[%s17248_s4 + $0xc0] sm:$0xff] %vm8542_vm2, %v11209_v10  ;;  %8568 = vst.msk [vmem:[%s17248_s4 + $0xc8] sm:$0xff] %vm8542_vm2, %v11209_v10  ;;  %v8416_v2 = vmax.f32 %v8352_v47, 0.0  ;;  %v7906_v7 = vadd.f32 %v7619_v33, %v16637_v5 }
 0x9f3   : > { %8569 = vst.msk [vmem:[%s17248_s4 + $0xd0] sm:$0xff] %vm8542_vm2, %v11209_v10  ;;  %8570 = vst.msk [vmem:[%s17248_s4 + $0xd8] sm:$0xff] %vm8542_vm2, %v11209_v10  ;;  %v8355_v20 = vadd.f32 %v17145_v51, %v7907_v17  ;;  %v17494_v57 = vpop.permute.xlu1 %8173 }
 0x9f4   : > { %8571 = vst.msk [vmem:[%s17248_s4 + $0xe0] sm:$0xff] %vm8542_vm2, %v11209_v10  ;;  %8572 = vst.msk [vmem:[%s17248_s4 + $0xe8] sm:$0xff] %vm8542_vm2, %v11209_v10  ;;  %v10371_v58 = vpop.f32.mrb[106].mxu0  ;;  %v8683_v22 = vsel %vm8612_vm1, %v8416_v2, 0.0 }
 0x9f5   : > { %8573 = vst.msk [vmem:[%s17248_s4 + $0xf0] sm:$0xff] %vm8542_vm2, %v11209_v10  ;;  %8574 = vst.msk [vmem:[%s17248_s4 + $0xf8] sm:$0xff] %vm8542_vm2, %v11209_v10  ;;  %v8419_v50 = vmax.f32 %v8355_v20, 0.0  ;;  %v7909_v5 = vadd.f32 %v10371_v58, %v16677_v37  ;;  %8753 = vadd.xlane.f32.xlu1 %v8683_v22  ;;  %v7629_v43 = vpop.f32.mrb[107].mxu0  ;;  %v8684_v37 = vsel %vm8612_vm1, %v8417_v18, 0.0  ;;  %v18488_v58 = vld [vmem:[#allocation75_spill] sm:$0xff] }
 0x9f6   : > { %8575 = vst.msk [vmem:[%s17248_s4 + $0x100] sm:$0xff] %vm8542_vm2, %v11209_v10  ;;  %8576 = vst.msk [vmem:[%s17248_s4 + $0x108] sm:$0xff] %vm8542_vm2, %v11209_v10  ;;  %v7908_v51 = vadd.f32 %v7629_v43, %v16662_v11 }
 0x9f7   : > { %8577 = vst.msk [vmem:[%s17248_s4 + $0x110] sm:$0xff] %vm8542_vm2, %v11209_v10  ;;  %8578 = vst.msk [vmem:[%s17248_s4 + $0x118] sm:$0xff] %vm8542_vm2, %v11209_v10  ;;  %v8686_v33 = vsel %vm8612_vm1, %v8419_v50, 0.0 }
 0x9f8   : > { %8579 = vst.msk [vmem:[%s17248_s4 + $0x120] sm:$0xff] %vm8542_vm2, %v11209_v10  ;;  %8580 = vst.msk [vmem:[%s17248_s4 + $0x128] sm:$0xff] %vm8542_vm2, %v11209_v10 }
 0x9f9   : > { %8581 = vst.msk [vmem:[%s17248_s4 + $0x130] sm:$0xff] %vm8542_vm2, %v11209_v10  ;;  %8582 = vst.msk [vmem:[%s17248_s4 + $0x138] sm:$0xff] %vm8542_vm2, %v11209_v10 }
 0x9fa   : > { %8583 = vst.msk [vmem:[%s17248_s4 + $0x140] sm:$0xff] %vm8542_vm2, %v11209_v10  ;;  %8584 = vst.msk [vmem:[%s17248_s4 + $0x148] sm:$0xff] %vm8542_vm2, %v11209_v10 }
 0x9fb   : > { %8585 = vst.msk [vmem:[%s17248_s4 + $0x150] sm:$0xff] %vm8542_vm2, %v11209_v10  ;;  %8586 = vst.msk [vmem:[%s17248_s4 + $0x158] sm:$0xff] %vm8542_vm2, %v11209_v10 }
 0x9fc   : > { %8587 = vst.msk [vmem:[%s17248_s4 + $0x160] sm:$0xff] %vm8542_vm2, %v11209_v10  ;;  %8588 = vst.msk [vmem:[%s17248_s4 + $0x168] sm:$0xff] %vm8542_vm2, %v11209_v10 }
 0x9fd   : > { %8589 = vst.msk [vmem:[%s17248_s4 + $0x170] sm:$0xff] %vm8542_vm2, %v11209_v10  ;;  %8590 = vst.msk [vmem:[%s17248_s4 + $0x178] sm:$0xff] %vm8542_vm2, %v11209_v10 }
 0x9fe   : > { %8591 = vst.msk [vmem:[%s17248_s4 + $0x180] sm:$0xff] %vm8542_vm2, %v11209_v10  ;;  %8592 = vst.msk [vmem:[%s17248_s4 + $0x188] sm:$0xff] %vm8542_vm2, %v11209_v10 }
 0x9ff   : > { %8593 = vst.msk [vmem:[%s17248_s4 + $0x190] sm:$0xff] %vm8542_vm2, %v11209_v10  ;;  %8594 = vst.msk [vmem:[%s17248_s4 + $0x198] sm:$0xff] %vm8542_vm2, %v11209_v10 }
 0xa00   : > { %8595 = vst.msk [vmem:[%s17248_s4 + $0x1a0] sm:$0xff] %vm8542_vm2, %v11209_v10  ;;  %8596 = vst.msk [vmem:[%s17248_s4 + $0x1a8] sm:$0xff] %vm8542_vm2, %v11209_v10 }
 0xa01   : > { %8597 = vst.msk [vmem:[%s17248_s4 + $0x1b0] sm:$0xff] %vm8542_vm2, %v11209_v10  ;;  %8598 = vst.msk [vmem:[%s17248_s4 + $0x1b8] sm:$0xff] %vm8542_vm2, %v11209_v10 }
 0xa02   : > { %8599 = vst.msk [vmem:[%s17248_s4 + $0x1c0] sm:$0xff] %vm8542_vm2, %v11209_v10  ;;  %8600 = vst.msk [vmem:[%s17248_s4 + $0x1c8] sm:$0xff] %vm8542_vm2, %v11209_v10 }
 0xa03   : > { %8601 = vst.msk [vmem:[%s17248_s4 + $0x1d0] sm:$0xff] %vm8542_vm2, %v11209_v10  ;;  %8602 = vst.msk [vmem:[%s17248_s4 + $0x1d8] sm:$0xff] %vm8542_vm2, %v11209_v10 }
 0xa04   : > { %8603 = vst.msk [vmem:[%s17248_s4 + $0x1e0] sm:$0xff] %vm8542_vm2, %v11209_v10  ;;  %8604 = vst.msk [vmem:[%s17248_s4 + $0x1e8] sm:$0xff] %vm8542_vm2, %v11209_v10 }
 0xa05   : > { %8605 = vst.msk [vmem:[%s17248_s4 + $0x1f0] sm:$0xff] %vm8542_vm2, %v11209_v10  ;;  %8606 = vst.msk [vmem:[%s17248_s4 + $0x1f8] sm:$0xff] %vm8542_vm2, %v11209_v10  ;;  %v17480_v10 = vpop.permute.xlu0 %8158 }
 0xa06   : > { %8477 = vst [vmem:[%s17218_s6 + $0x18] sm:$0xff] %v8413_v27  ;;  %8476 = vst [vmem:[%s17218_s6 + $0x10] sm:$0xff] %v8412_v60  ;;  %v8679_v27 = vsel %vm8612_vm1, %v8412_v60, 0.0  ;;  %v8354_v60 = vadd.f32 %v17147_v44, %v7906_v7  ;;  %v8357_v44 = vadd.f32 %v17154_v19, %v7909_v5 }
 0xa07   : > { %8479 = vst [vmem:[%s17218_s6 + $0x28] sm:$0xff] %v8415_v30  ;;  %8478 = vst [vmem:[%s17218_s6 + $0x20] sm:$0xff] %v8414_v4  ;;  %8745 = vadd.xlane.f32.xlu0 %v8679_v27  ;;  %v8356_v30 = vadd.f32 %v17156_v48, %v7908_v51  ;;  %v10374_v4 = vpop.f32.mrb[108].mxu0  ;;  %v18487_v27 = vld [vmem:[#allocation76_spill] sm:$0xff] }
 0xa08   : > { %8481 = vst [vmem:[%s17218_s6 + $0x38] sm:$0xff] %v8417_v18  ;;  %8480 = vst [vmem:[%s17218_s6 + $0x30] sm:$0xff] %v8416_v2  ;;  %v8418_v42 = vmax.f32 %v8354_v60, 0.0  ;;  %v8421_v11 = vmax.f32 %v8357_v44, 0.0  ;;  %v7911_v47 = vadd.f32 %v10374_v4, %v16705_v62  ;;  %v7639_v19 = vpop.f32.mrb[109].mxu0  ;;  %v17515_v60 = vpop.permute.xlu1 %8183  ;;  %v18489_v4 = vld [vmem:[#allocation74_spill] sm:$0xff] }
 0xa09   : > { %8483 = vst [vmem:[%s17218_s6 + $0x48] sm:$0xff] %v8419_v50  ;;  %v17502_v61 = vpop.permute.xlu0 %8168  ;;  %v8420_v38 = vmax.f32 %v8356_v30, 0.0  ;;  %v7910_v35 = vadd.f32 %v7639_v19, %v18487_v27  ;;  %v10377_v17 = vpop.f32.mrb[110].mxu0 }
 0xa0a   : > { %8482 = vst [vmem:[%s17218_s6 + $0x40] sm:$0xff] %v8418_v42  ;;  %v8685_v36 = vsel %vm8612_vm1, %v8418_v42, 0.0  ;;  %8485 = vst [vmem:[%s17218_s6 + $0x58] sm:$0xff] %v8421_v11  ;;  %v8359_v48 = vadd.f32 %v17165_v56, %v7911_v47  ;;  %v7913_v7 = vadd.f32 %v10377_v17, %v16733_v28  ;;  %v7649_v20 = vpop.f32.mrb[111].mxu0  ;;  %v8688_v28 = vsel %vm8612_vm1, %v8421_v11, 0.0 }
 0xa0b   : > { %8751 = vadd.xlane.f32.xlu0 %v8682_v13  ;;  %8757 = vadd.xlane.f32.xlu1 %v8685_v36  ;;  %8484 = vst [vmem:[%s17218_s6 + $0x50] sm:$0xff] %v8420_v38  ;;  %v8358_v18 = vadd.f32 %v17167_v31, %v7910_v35  ;;  %v8687_v62 = vsel %vm8612_vm1, %v8420_v38, 0.0  ;;  %v7912_v13 = vadd.f32 %v7649_v20, %v18488_v58  ;;  %v10380_v5 = vpop.f32.mrb[112].mxu0  ;;  %v18491_v58 = vld [vmem:[#allocation78_spill] sm:$0xff] }
 0xa0c   : > { %v8423_v2 = vmax.f32 %v8359_v48, 0.0  ;;  %v8361_v22 = vadd.f32 %v17174_v24, %v7913_v7  ;;  %v7915_v51 = vadd.f32 %v10380_v5, %v16761_v8  ;;  %v7659_v44 = vpop.f32.mrb[113].mxu0  ;;  %v18490_v48 = vld [vmem:[#allocation79_spill] sm:$0xff] }
 0xa0d   : > { %v8422_v56 = vmax.f32 %v8358_v18, 0.0  ;;  %v17518_v31 = vpop.permute.xlu0 %8178  ;;  %v8360_v50 = vadd.f32 %v17176_v45, %v7912_v13  ;;  %v7914_v24 = vadd.f32 %v7659_v44, %v18489_v4  ;;  %v10383_v11 = vpop.f32.mrb[114].mxu0 }
 0xa0e   : > { %8487 = vst [vmem:[%s17218_s6 + $0x68] sm:$0xff] %v8423_v2  ;;  %v8425_v42 = vmax.f32 %v8361_v22, 0.0  ;;  %v8363_v45 = vadd.f32 %v17185_v40, %v7915_v51  ;;  %v8690_v8 = vsel %vm8612_vm1, %v8423_v2, 0.0  ;;  %v7917_v27 = vadd.f32 %v10383_v11, %v16789_v25  ;;  %v7669_v40 = vpop.f32.mrb[115].mxu0 }
 0xa0f   : > { %8755 = vadd.xlane.f32.xlu0 %v8684_v37  ;;  %8761 = vadd.xlane.f32.xlu1 %v8687_v62  ;;  %8486 = vst [vmem:[%s17218_s6 + $0x60] sm:$0xff] %v8422_v56  ;;  %v8689_v43 = vsel %vm8612_vm1, %v8422_v56, 0.0  ;;  %v8424_v30 = vmax.f32 %v8360_v50, 0.0  ;;  %v17532_v37 = vpop.permute.xlu1 %8193  ;;  %v8362_v36 = vadd.f32 %v17187_v21, %v7914_v24  ;;  %v7916_v18 = vadd.f32 %v7669_v40, %v18490_v48  ;;  %v18494_v40 = vld [vmem:[#allocation83_spill] sm:$0xff] }
 0xa10   : > { %8489 = vst [vmem:[%s17218_s6 + $0x78] sm:$0xff] %v8425_v42  ;;  %v8427_v38 = vmax.f32 %v8363_v45, 0.0  ;;  %v8365_v21 = vadd.f32 %v17194_v59, %v7917_v27  ;;  %v8692_v62 = vsel %vm8612_vm1, %v8425_v42, 0.0 }
 0xa11   : > { %8488 = vst [vmem:[%s17218_s6 + $0x70] sm:$0xff] %v8424_v30  ;;  %v8691_v47 = vsel %vm8612_vm1, %v8424_v30, 0.0  ;;  %v17540_v19 = vpop.permute.xlu0 %8188  ;;  %v8426_v35 = vmax.f32 %v8362_v36, 0.0  ;;  %v8364_v17 = vadd.f32 %v17196_v3, %v7916_v18  ;;  %v18492_v30 = vld [vmem:[#allocation82_spill] sm:$0xff] }
 0xa12   : > { %8491 = vst [vmem:[%s17218_s6 + $0x88] sm:$0xff] %v8427_v38  ;;  %v8429_v2 = vmax.f32 %v8365_v21, 0.0 }
 0xa13   : > { %8759 = vadd.xlane.f32.xlu0 %v8686_v33  ;;  %8765 = vadd.xlane.f32.xlu1 %v8689_v43  ;;  %8490 = vst [vmem:[%s17218_s6 + $0x80] sm:$0xff] %v8426_v35  ;;  %v10386_v33 = vpop.f32.mrb[116].mxu0  ;;  %v8693_v25 = vsel %vm8612_vm1, %v8426_v35, 0.0  ;;  %v17553_v56 = vpop.permute.xlu1 %8203  ;;  %v8428_v59 = vmax.f32 %v8364_v17, 0.0 }
 0xa14   : > { %v7919_v7 = vadd.f32 %v10386_v33, %v16817_v1  ;;  %v7679_v20 = vpop.f32.mrb[117].mxu0  ;;  %8493 = vst [vmem:[%s17218_s6 + $0x98] sm:$0xff] %v8429_v2  ;;  %v8694_v1 = vsel %vm8612_vm1, %v8427_v38, 0.0 }
 0xa15   : > { %v7918_v13 = vadd.f32 %v7679_v20, %v18491_v58  ;;  %v17556_v3 = vpop.permute.xlu0 %8198  ;;  %8492 = vst [vmem:[%s17218_s6 + $0x90] sm:$0xff] %v8428_v59  ;;  %v10389_v5 = vpop.f32.mrb[118].mxu0  ;;  %v18496_v20 = vld [vmem:[#allocation19_spill] sm:$0xff] }
 0xa16   : > { %v8367_v22 = vadd.f32 %v17205_v54, %v7919_v7  ;;  %v7921_v42 = vadd.f32 %v10389_v5, %v16845_v6  ;;  %v7689_v51 = vpop.f32.mrb[119].mxu0  ;;  %v8696_v6 = vsel %vm8612_vm1, %v8429_v2, 0.0 }
 0xa17   : > { %8763 = vadd.xlane.f32.xlu0 %v8688_v28  ;;  %8769 = vadd.xlane.f32.xlu1 %v8691_v47  ;;  %v8366_v50 = vadd.f32 %v17209_v16, %v7918_v13  ;;  %v8695_v28 = vsel %vm8612_vm1, %v8428_v59, 0.0  ;;  %v7920_v54 = vadd.f32 %v7689_v51, %v18492_v30  ;;  %v17570_v4 = vpop.permute.xlu1 %8213  ;;  %v10392_v45 = vpop.f32.mrb[120].mxu0  ;;  %v18493_v47 = vld [vmem:[#allocation18_spill] sm:$0xff] }
 0xa18   : > { %v8431_v43 = vmax.f32 %v8367_v22, 0.0  ;;  %v8369_v16 = vadd.f32 %v17223_v14, %v7921_v42  ;;  %v7923_v38 = vadd.f32 %v10392_v45, %v18493_v47  ;;  %v7699_v14 = vpop.f32.mrb[121].mxu0 }
 0xa19   : > { %v8430_v44 = vmax.f32 %v8366_v50, 0.0  ;;  %v8368_v24 = vadd.f32 %v17226_v41, %v7920_v54  ;;  %v17578_v11 = vpop.permute.xlu0 %8208  ;;  %v7922_v35 = vadd.f32 %v7699_v14, %v18494_v40  ;;  %v10395_v18 = vpop.f32.mrb[122].mxu0 }
 0xa1a   : > { %8495 = vst [vmem:[%s17218_s6 + $0xa8] sm:$0xff] %v8431_v43  ;;  %v8371_v41 = vadd.f32 %v17455_v15, %v7923_v38  ;;  %v8698_v21 = vsel %vm8612_vm1, %v8431_v43, 0.0  ;;  %v7709_v2 = vpop.f32.mrb[123].mxu0  ;;  %v18499_v38 = vld [vmem:[#allocation23_spill] sm:$0xff] }
 0xa1b   : > { %8767 = vadd.xlane.f32.xlu0 %v8690_v8  ;;  %8773 = vadd.xlane.f32.xlu1 %v8693_v25  ;;  %8494 = vst [vmem:[%s17218_s6 + $0xa0] sm:$0xff] %v8430_v44  ;;  %v8697_v36 = vsel %vm8612_vm1, %v8430_v44, 0.0  ;;  %v8433_v8 = vmax.f32 %v8369_v16, 0.0  ;;  %v8432_v27 = vmax.f32 %v8368_v24, 0.0  ;;  %v8370_v48 = vadd.f32 %v17462_v63, %v7922_v35  ;;  %v17591_v7 = vpop.permute.xlu1 %8223  ;;  %v10398_v22 = vpop.f32.mrb[124].mxu0  ;;  %v18498_v44 = vld [vmem:[#allocation21_spill] sm:$0xff] }
 0xa1c   : > { %v8435_v33 = vmax.f32 %v8371_v41, 0.0  ;;  %v7924_v59 = vadd.f32 %v7709_v2, %v18496_v20  ;;  %v7719_v42 = vpop.f32.mrb[125].mxu0 }
 0xa1d   : > { %8497 = vst [vmem:[%s17218_s6 + $0xb8] sm:$0xff] %v8433_v8  ;;  %8496 = vst [vmem:[%s17218_s6 + $0xb0] sm:$0xff] %v8432_v27  ;;  %v8699_v17 = vsel %vm8612_vm1, %v8432_v27, 0.0  ;;  %v8434_v15 = vmax.f32 %v8370_v48, 0.0  ;;  %v17594_v63 = vpop.permute.xlu0 %8218  ;;  %v8700_v50 = vsel %vm8612_vm1, %v8433_v8, 0.0  ;;  %v10401_v16 = vpop.f32.mrb[126].mxu0 }
 0xa1e   : > { %8499 = vst [vmem:[%s17218_s6 + $0xc8] sm:$0xff] %v8435_v33  ;;  %v8372_v13 = vadd.f32 %v17480_v10, %v7924_v59  ;;  %v8702_v24 = vsel %vm8612_vm1, %v8435_v33, 0.0  ;;  %v7929_v8 = vadd.f32 %v10401_v16, %v16957_v23 }
 0xa1f   : > { %8771 = vadd.xlane.f32.xlu0 %v8692_v62  ;;  %8777 = vadd.xlane.f32.xlu1 %v8695_v28  ;;  %v18495_v62 = vld [vmem:[#allocation20_spill] sm:$0xff]  ;;  %8498 = vst [vmem:[%s17218_s6 + $0xc0] sm:$0xff] %v8434_v15  ;;  %v8701_v5 = vsel %vm8612_vm1, %v8434_v15, 0.0  ;;  %v18497_v28 = vld [vmem:[#allocation22_spill] sm:$0xff]  ;;  %v17608_v30 = vpop.permute.xlu1 %8233 }
 0xa20   : > { %v7925_v25 = vadd.f32 %v10395_v18, %v18495_v62  ;;  %v7927_v43 = vadd.f32 %v10398_v22, %v18497_v28  ;;  %v8436_v51 = vmax.f32 %v8372_v13, 0.0 }
 0xa22   : > { %v8373_v58 = vadd.f32 %v17477_v53, %v7925_v25  ;;  %v7926_v53 = vadd.f32 %v7719_v42, %v18498_v44  ;;  %v8375_v10 = vadd.f32 %v17494_v57, %v7927_v43  ;;  %8500 = vst [vmem:[%s17218_s6 + $0xd0] sm:$0xff] %v8436_v51  ;;  %v8703_v45 = vsel %vm8612_vm1, %v8436_v51, 0.0  ;;  %v7729_v57 = vpop.f32.mrb[127].mxu0 }
 0xa23   : > { %8775 = vadd.xlane.f32.xlu0 %v8694_v1  ;;  %8781 = vadd.xlane.f32.xlu1 %v8697_v36  ;;  %v7928_v14 = vadd.f32 %v7729_v57, %v18499_v38  ;;  %v10404_v40 = vpop.f32.mrb[128].mxu0 }
 0xa24   : > { %v8437_v1 = vmax.f32 %v8373_v58, 0.0  ;;  %v8374_v54 = vadd.f32 %v17502_v61, %v7926_v53  ;;  %v8439_v36 = vmax.f32 %v8375_v10, 0.0  ;;  %v8377_v61 = vadd.f32 %v17515_v60, %v7929_v8  ;;  %v7739_v18 = vpop.f32.mrb[129].mxu0  ;;  %v18500_v10 = vld [vmem:[#allocation25_spill] sm:$0xff] }
 0xa25   : > { %v8376_v27 = vadd.f32 %v17518_v31, %v7928_v14  ;;  %v7931_v48 = vadd.f32 %v10404_v40, %v16981_v39  ;;  %v10407_v25 = vpop.f32.mrb[130].mxu0 }
 0xa26   : > { %8501 = vst [vmem:[%s17218_s6 + $0xd8] sm:$0xff] %v8437_v1  ;;  %v8438_v47 = vmax.f32 %v8374_v54, 0.0  ;;  %8503 = vst [vmem:[%s17218_s6 + $0xe8] sm:$0xff] %v8439_v36  ;;  %v8704_v35 = vsel %vm8612_vm1, %v8437_v1, 0.0  ;;  %v8441_v41 = vmax.f32 %v8377_v61, 0.0  ;;  %v8706_v39 = vsel %vm8612_vm1, %v8439_v36, 0.0 }
 0xa27   : > { %8779 = vadd.xlane.f32.xlu0 %v8696_v6  ;;  %8785 = vadd.xlane.f32.xlu1 %v8699_v17  ;;  %v17616_v6 = vpop.permute.xlu0 %8228  ;;  %v8440_v60 = vmax.f32 %v8376_v27, 0.0  ;;  %v7930_v17 = vadd.f32 %v7739_v18, %v16966_v55  ;;  %v8379_v33 = vadd.f32 %v17532_v37, %v7931_v48  ;;  %v7933_v55 = vadd.f32 %v10407_v25, %v17005_v9  ;;  %v7749_v20 = vpop.f32.mrb[131].mxu0  ;;  %v18502_v61 = vld [vmem:[#allocation27_spill] sm:$0xff] }
 0xa28   : > { %8502 = vst [vmem:[%s17218_s6 + $0xe0] sm:$0xff] %v8438_v47  ;;  %v8705_v23 = vsel %vm8612_vm1, %v8438_v47, 0.0  ;;  %8505 = vst [vmem:[%s17218_s6 + $0xf8] sm:$0xff] %v8441_v41  ;;  %v7932_v37 = vadd.f32 %v7749_v20, %v16990_v0  ;;  %v10410_v22 = vpop.f32.mrb[132].mxu0  ;;  %v8708_v9 = vsel %vm8612_vm1, %v8441_v41, 0.0 }
 0xa29   : > { %8504 = vst [vmem:[%s17218_s6 + $0xf0] sm:$0xff] %v8440_v60  ;;  %v8378_v62 = vadd.f32 %v17540_v19, %v7930_v17  ;;  %v8707_v2 = vsel %vm8612_vm1, %v8440_v60, 0.0  ;;  %v8443_v15 = vmax.f32 %v8379_v33, 0.0  ;;  %v8381_v19 = vadd.f32 %v17553_v56, %v7933_v55  ;;  %v7759_v56 = vpop.f32.mrb[133].mxu0 }
 0xa2a   : > { %v8380_v13 = vadd.f32 %v17556_v3, %v7932_v37  ;;  %v7935_v1 = vadd.f32 %v10410_v22, %v17029_v52  ;;  %v7934_v43 = vadd.f32 %v7759_v56, %v17014_v49  ;;  %v18504_v37 = vld [vmem:[#allocation29_spill] sm:$0xff] }
 0xa2b   : > { %8783 = vadd.xlane.f32.xlu0 %v8698_v21  ;;  %8789 = vadd.xlane.f32.xlu1 %v8701_v5  ;;  %v17629_v21 = vpop.permute.xlu1 %8243  ;;  %v17632_v31 = vpop.permute.xlu0 %8238  ;;  %v8442_v59 = vmax.f32 %v8378_v62, 0.0  ;;  %8507 = vst [vmem:[%s17218_s6 + $0x108] sm:$0xff] %v8443_v15  ;;  %v8445_v0 = vmax.f32 %v8381_v19, 0.0  ;;  %v8710_v44 = vsel %vm8612_vm1, %v8443_v15, 0.0 }
 0xa2c   : > { %v8444_v28 = vmax.f32 %v8380_v13, 0.0  ;;  %v8383_v3 = vadd.f32 %v17570_v4, %v7935_v1  ;;  %v8382_v42 = vadd.f32 %v17578_v11, %v7934_v43  ;;  %v10413_v51 = vpop.f32.mrb[134].mxu0 }
 0xa2d   : > { %8506 = vst [vmem:[%s17218_s6 + $0x100] sm:$0xff] %v8442_v59  ;;  %8509 = vst [vmem:[%s17218_s6 + $0x118] sm:$0xff] %v8445_v0  ;;  %v7937_v54 = vadd.f32 %v10413_v51, %v18500_v10  ;;  %v7769_v49 = vpop.f32.mrb[135].mxu0  ;;  %v8712_v47 = vsel %vm8612_vm1, %v8445_v0, 0.0 }
 0xa2e   : > { %8508 = vst [vmem:[%s17218_s6 + $0x110] sm:$0xff] %v8444_v28  ;;  %v8711_v52 = vsel %vm8612_vm1, %v8444_v28, 0.0  ;;  %v8447_v53 = vmax.f32 %v8383_v3, 0.0  ;;  %v8446_v4 = vmax.f32 %v8382_v42, 0.0  ;;  %v18506_v3 = vld [vmem:[#allocation31_spill] sm:$0xff] }
 0xa2f   : > { %8787 = vadd.xlane.f32.xlu0 %v8700_v50  ;;  %8793 = vadd.xlane.f32.xlu1 %v8703_v45  ;;  %v17646_v58 = vpop.permute.xlu1 %8253  ;;  %v8709_v50 = vsel %vm8612_vm1, %v8442_v59, 0.0  ;;  %v17654_v5 = vpop.permute.xlu0 %8248  ;;  %v8385_v36 = vadd.f32 %v17591_v7, %v7937_v54 }
 0xa30   : > { %8511 = vst [vmem:[%s17218_s6 + $0x128] sm:$0xff] %v8447_v53  ;;  %8510 = vst [vmem:[%s17218_s6 + $0x120] sm:$0xff] %v8446_v4  ;;  %v10416_v57 = vpop.f32.mrb[136].mxu0  ;;  %v8713_v38 = vsel %vm8612_vm1, %v8446_v4, 0.0  ;;  %v8714_v60 = vsel %vm8612_vm1, %v8447_v53, 0.0 }
 0xa31   : > { %v8449_v14 = vmax.f32 %v8385_v36, 0.0  ;;  %v7939_v27 = vadd.f32 %v10416_v57, %v18502_v61  ;;  %v7779_v40 = vpop.f32.mrb[137].mxu0  ;;  %v18508_v36 = vld [vmem:[#allocation33_spill] sm:$0xff] }
 0xa33   : > { %8791 = vadd.xlane.f32.xlu0 %v8702_v24  ;;  %8797 = vadd.xlane.f32.xlu1 %v8705_v23  ;;  %v17667_v16 = vpop.permute.xlu1 %8263  ;;  %v18501_v24 = vld [vmem:[#allocation24_spill] sm:$0xff]  ;;  %v17670_v11 = vpop.permute.xlu0 %8258  ;;  %v18503_v23 = vld [vmem:[#allocation26_spill] sm:$0xff]  ;;  %8513 = vst [vmem:[%s17218_s6 + $0x138] sm:$0xff] %v8449_v14  ;;  %v8716_v20 = vsel %vm8612_vm1, %v8449_v14, 0.0 }
 0xa34   : > { %v7936_v45 = vadd.f32 %v7769_v49, %v18501_v24  ;;  %v7938_v7 = vadd.f32 %v7779_v40, %v18503_v23  ;;  %v10419_v18 = vpop.f32.mrb[138].mxu0  ;;  %v18510_v23 = vld [vmem:[#allocation36_spill] sm:$0xff] }
 0xa35   : > { %v7941_v25 = vadd.f32 %v10419_v18, %v17083_v34 }
 0xa36   : > { %v8384_v8 = vadd.f32 %v17594_v63, %v7936_v45  ;;  %v8387_v63 = vadd.f32 %v17608_v30, %v7939_v27  ;;  %v8386_v48 = vadd.f32 %v17616_v6, %v7938_v7 }
 0xa37   : > { %8795 = vadd.xlane.f32.xlu0 %v8704_v35  ;;  %8801 = vadd.xlane.f32.xlu1 %v8707_v2  ;;  %v8274_v41 = vpop.permute.xlu1 %8273  ;;  %v8269_v33 = vpop.permute.xlu0 %8268  ;;  %v8389_v6 = vadd.f32 %v17629_v21, %v7941_v25  ;;  %v18505_v21 = vld [vmem:[#allocation28_spill] sm:$0xff] }
 0xa38   : > { %v8448_v35 = vmax.f32 %v8384_v8, 0.0  ;;  %v8451_v62 = vmax.f32 %v8387_v63, 0.0  ;;  %v8450_v30 = vmax.f32 %v8386_v48, 0.0 }
 0xa39   : > { %v8453_v59 = vmax.f32 %v8389_v6, 0.0  ;;  %v18512_v6 = vld [vmem:[#allocation40_spill] sm:$0xff] }
 0xa3a   : > { %8512 = vst [vmem:[%s17218_s6 + $0x130] sm:$0xff] %v8448_v35  ;;  %v8715_v17 = vsel %vm8612_vm1, %v8448_v35, 0.0  ;;  %8515 = vst [vmem:[%s17218_s6 + $0x148] sm:$0xff] %v8451_v62  ;;  %v8717_v34 = vsel %vm8612_vm1, %v8450_v30, 0.0  ;;  %v8718_v56 = vsel %vm8612_vm1, %v8451_v62, 0.0 }
 0xa3b   : > { %8799 = vadd.xlane.f32.xlu0 %v8706_v39  ;;  %8805 = vadd.xlane.f32.xlu1 %v8709_v50  ;;  %v7789_v39 = vpop.f32.mrb[139].mxu0  ;;  %8514 = vst [vmem:[%s17218_s6 + $0x140] sm:$0xff] %v8450_v30  ;;  %v8284_v13 = vpop.permute.xlu1 %8283  ;;  %8517 = vst [vmem:[%s17218_s6 + $0x158] sm:$0xff] %v8453_v59  ;;  %v8720_v49 = vsel %vm8612_vm1, %v8453_v59, 0.0 }
 0xa3c   : > { %v7940_v2 = vadd.f32 %v7789_v39, %v17079_v32  ;;  %v10422_v55 = vpop.f32.mrb[140].mxu0  ;;  %v8279_v50 = vpop.permute.xlu0 %8278 }
 0xa3d   : > { %v7943_v19 = vadd.f32 %v10422_v55, %v18504_v37  ;;  %v7799_v32 = vpop.f32.mrb[141].mxu0 }
 0xa3e   : > { %v8388_v15 = vadd.f32 %v17632_v31, %v7940_v2  ;;  %v10425_v1 = vpop.f32.mrb[142].mxu0 }
 0xa3f   : > { %8803 = vadd.xlane.f32.xlu0 %v8708_v9  ;;  %8809 = vadd.xlane.f32.xlu1 %v8711_v52  ;;  %v7942_v9 = vadd.f32 %v7799_v32, %v18505_v21  ;;  %v8391_v31 = vadd.f32 %v17646_v58, %v7943_v19  ;;  %v7945_v42 = vadd.f32 %v10425_v1, %v18506_v3  ;;  %v7809_v51 = vpop.f32.mrb[143].mxu0  ;;  %v18507_v52 = vld [vmem:[#allocation30_spill] sm:$0xff]  ;;  %v8294_v53 = vpop.permute.xlu1 %8293 }
 0xa40   : > { %v8452_v22 = vmax.f32 %v8388_v15, 0.0  ;;  %v7944_v58 = vadd.f32 %v7809_v51, %v18507_v52  ;;  %v10428_v54 = vpop.f32.mrb[144].mxu0  ;;  %v8289_v24 = vpop.permute.xlu0 %8288 }
 0xa41   : > { %v8390_v0 = vadd.f32 %v17654_v5, %v7942_v9  ;;  %v8455_v43 = vmax.f32 %v8391_v31, 0.0  ;;  %v8393_v5 = vadd.f32 %v17667_v16, %v7945_v42  ;;  %v7947_v8 = vadd.f32 %v10428_v54, %v18508_v36  ;;  %v7819_v57 = vpop.f32.mrb[145].mxu0  ;;  %v18514_v31 = vld [vmem:[#allocation44_spill] sm:$0xff] }
 0xa42   : > { %8516 = vst [vmem:[%s17218_s6 + $0x150] sm:$0xff] %v8452_v22  ;;  %v8719_v28 = vsel %vm8612_vm1, %v8452_v22, 0.0  ;;  %v8392_v10 = vadd.f32 %v17670_v11, %v7944_v58 }
 0xa43   : > { %8807 = vadd.xlane.f32.xlu0 %v8710_v44  ;;  %8813 = vadd.xlane.f32.xlu1 %v8713_v38  ;;  %v8454_v44 = vmax.f32 %v8390_v0, 0.0  ;;  %8519 = vst [vmem:[%s17218_s6 + $0x168] sm:$0xff] %v8455_v43  ;;  %v8457_v45 = vmax.f32 %v8393_v5, 0.0  ;;  %v8395_v11 = vadd.f32 %v8274_v41, %v7947_v8  ;;  %v8722_v27 = vsel %vm8612_vm1, %v8455_v43, 0.0  ;;  %v8304_v48 = vpop.permute.xlu1 %8303  ;;  %v18516_v5 = vld [vmem:[#allocation48_spill] sm:$0xff] }
 0xa44   : > { %v8456_v16 = vmax.f32 %v8392_v10, 0.0  ;;  %v10431_v61 = vpop.f32.mrb[146].mxu0 }
 0xa45   : > { %8518 = vst [vmem:[%s17218_s6 + $0x160] sm:$0xff] %v8454_v44  ;;  %v8721_v4 = vsel %vm8612_vm1, %v8454_v44, 0.0  ;;  %8521 = vst [vmem:[%s17218_s6 + $0x178] sm:$0xff] %v8457_v45  ;;  %v8459_v35 = vmax.f32 %v8395_v11, 0.0  ;;  %v7949_v7 = vadd.f32 %v10431_v61, %v18510_v23  ;;  %v7829_v63 = vpop.f32.mrb[147].mxu0  ;;  %v8724_v39 = vsel %vm8612_vm1, %v8457_v45, 0.0 }
 0xa46   : > { %8520 = vst [vmem:[%s17218_s6 + $0x170] sm:$0xff] %v8456_v16  ;;  %v8723_v40 = vsel %vm8612_vm1, %v8456_v16, 0.0 }
 0xa47   : > { %8811 = vadd.xlane.f32.xlu0 %v8712_v47  ;;  %8817 = vadd.xlane.f32.xlu1 %v8715_v17  ;;  %v18509_v47 = vld [vmem:[#allocation32_spill] sm:$0xff]  ;;  %v8299_v17 = vpop.permute.xlu0 %8298  ;;  %8523 = vst [vmem:[%s17218_s6 + $0x188] sm:$0xff] %v8459_v35  ;;  %v8314_v19 = vpop.permute.xlu1 %8313  ;;  %v8726_v22 = vsel %vm8612_vm1, %v8459_v35, 0.0 }
 0xa48   : > { %v7946_v38 = vadd.f32 %v7819_v57, %v18509_v47  ;;  %v10434_v25 = vpop.f32.mrb[148].mxu0 }
 0xa49   : > { %v7951_v15 = vadd.f32 %v10434_v25, %v18512_v6  ;;  %v7839_v55 = vpop.f32.mrb[149].mxu0 }
 0xa4a   : > { %v8394_v14 = vadd.f32 %v8269_v33, %v7946_v38  ;;  %v8397_v33 = vadd.f32 %v8284_v13, %v7949_v7 }
 0xa4b   : > { %8815 = vadd.xlane.f32.xlu0 %v8714_v60  ;;  %8821 = vadd.xlane.f32.xlu1 %v8717_v34  ;;  %v18511_v60 = vld [vmem:[#allocation37_spill] sm:$0xff]  ;;  %v8399_v37 = vadd.f32 %v8294_v53, %v7951_v15  ;;  %v8309_v9 = vpop.permute.xlu0 %8308  ;;  %v8324_v54 = vpop.permute.xlu1 %8323 }
 0xa4c   : > { %v8458_v18 = vmax.f32 %v8394_v14, 0.0  ;;  %v7948_v41 = vadd.f32 %v7829_v63, %v18511_v60  ;;  %v8461_v2 = vmax.f32 %v8397_v33, 0.0  ;;  %v18513_v34 = vld [vmem:[#allocation41_spill] sm:$0xff]  ;;  %v10437_v13 = vpop.f32.mrb[150].mxu0 }
 0xa4d   : > { %v7950_v59 = vadd.f32 %v7839_v55, %v18513_v34  ;;  %v7953_v0 = vadd.f32 %v10437_v13, %v18514_v31  ;;  %v7849_v1 = vpop.f32.mrb[151].mxu0 }
 0xa4e   : > { %8522 = vst [vmem:[%s17218_s6 + $0x180] sm:$0xff] %v8458_v18  ;;  %v8396_v62 = vadd.f32 %v8279_v50, %v7948_v41  ;;  %v8725_v30 = vsel %vm8612_vm1, %v8458_v18, 0.0  ;;  %8525 = vst [vmem:[%s17218_s6 + $0x198] sm:$0xff] %v8461_v2  ;;  %v8463_v50 = vmax.f32 %v8399_v37, 0.0  ;;  %v8728_v44 = vsel %vm8612_vm1, %v8461_v2, 0.0  ;;  %v18520_v37 = vld [vmem:[#allocation56_spill] sm:$0xff] }
 0xa4f   : > { %8819 = vadd.xlane.f32.xlu0 %v8716_v20  ;;  %8825 = vadd.xlane.f32.xlu1 %v8719_v28  ;;  %v8398_v32 = vadd.f32 %v8289_v24, %v7950_v59  ;;  %v18515_v28 = vld [vmem:[#allocation45_spill] sm:$0xff]  ;;  %v8401_v3 = vadd.f32 %v8304_v48, %v7953_v0  ;;  %v8319_v45 = vpop.permute.xlu0 %8318  ;;  %v8334_v23 = vpop.permute.xlu1 %8333 }
 0xa50   : > { %v8460_v20 = vmax.f32 %v8396_v62, 0.0  ;;  %v7952_v43 = vadd.f32 %v7849_v1, %v18515_v28  ;;  %8527 = vst [vmem:[%s17218_s6 + $0x1a8] sm:$0xff] %v8463_v50  ;;  %v10440_v51 = vpop.f32.mrb[152].mxu0  ;;  %v8730_v16 = vsel %vm8612_vm1, %v8463_v50, 0.0  ;;  %v18519_v62 = vld [vmem:[#allocation52_spill] sm:$0xff]  ;;  %v8613_v28 = vld [vmem:[%s17248_s4] sm:$0xff] }
 0xa51   : > { %v8465_v58 = vmax.f32 %v8401_v3, 0.0  ;;  %v7955_v53 = vadd.f32 %v10440_v51, %v18516_v5  ;;  %v7859_v10 = vpop.f32.mrb[153].mxu0  ;;  %v8617_v5 = vld [vmem:[%s17248_s4 + $0x20] sm:$0xff] }
 0xa52   : > { %8524 = vst [vmem:[%s17218_s6 + $0x190] sm:$0xff] %v8460_v20  ;;  %v8727_v21 = vsel %vm8612_vm1, %v8460_v20, 0.0  ;;  %v8400_v42 = vadd.f32 %v8299_v17, %v7952_v43 }
 0xa53   : > { %8823 = vadd.xlane.f32.xlu0 %v8718_v56  ;;  %8829 = vadd.xlane.f32.xlu1 %v8721_v4  ;;  %v8462_v56 = vmax.f32 %v8398_v32, 0.0  ;;  %v18517_v4 = vld [vmem:[#allocation49_spill] sm:$0xff]  ;;  %8529 = vst [vmem:[%s17218_s6 + $0x1b8] sm:$0xff] %v8465_v58  ;;  %v8403_v36 = vadd.f32 %v8314_v19, %v7955_v53  ;;  %v8732_v48 = vsel %vm8612_vm1, %v8465_v58, 0.0  ;;  %v8329_v18 = vpop.permute.xlu0 %8328  ;;  %v8344_v34 = vpop.permute.xlu1 %8343  ;;  %v8615_v58 = vld [vmem:[%s17248_s4 + $0x10] sm:$0xff] }
 0xa54   : > { %v7954_v24 = vadd.f32 %v7859_v10, %v18517_v4  ;;  %v10443_v57 = vpop.f32.mrb[154].mxu0  ;;  %v8618_v4 = vld [vmem:[%s17248_s4 + $0x28] sm:$0xff] }
 0xa55   : > { %8526 = vst [vmem:[%s17218_s6 + $0x1a0] sm:$0xff] %v8462_v56  ;;  %v8729_v52 = vsel %vm8612_vm1, %v8462_v56, 0.0  ;;  %v8467_v38 = vmax.f32 %v8403_v36, 0.0  ;;  %v7957_v11 = vadd.f32 %v10443_v57, %v17179_v26  ;;  %v7869_v14 = vpop.f32.mrb[155].mxu0  ;;  %v8614_v56 = vld [vmem:[%s17248_s4 + $0x8] sm:$0xff] }
 0xa56   : > { %v8402_v8 = vadd.f32 %v8309_v9, %v7954_v24  ;;  %v8619_v24 = vld [vmem:[%s17248_s4 + $0x30] sm:$0xff] }
 0xa57   : > { %8827 = vadd.xlane.f32.xlu0 %v8720_v49  ;;  %8833 = vadd.xlane.f32.xlu1 %v8723_v40  ;;  %v8464_v49 = vmax.f32 %v8400_v42, 0.0  ;;  %8531 = vst [vmem:[%s17218_s6 + $0x1c8] sm:$0xff] %v8467_v38  ;;  %v8405_v35 = vadd.f32 %v8324_v54, %v7957_v11  ;;  %v8734_v6 = vsel %vm8612_vm1, %v8467_v38, 0.0  ;;  %v8339_v32 = vpop.permute.xlu0 %8338 }
 0xa58   : > { %v8466_v61 = vmax.f32 %v8402_v8, 0.0  ;;  %v10446_v63 = vpop.f32.mrb[156].mxu0 }
 0xa59   : > { %8528 = vst [vmem:[%s17218_s6 + $0x1b0] sm:$0xff] %v8464_v49  ;;  %v8731_v47 = vsel %vm8612_vm1, %v8464_v49, 0.0  ;;  %v8469_v60 = vmax.f32 %v8405_v35, 0.0  ;;  %v7959_v41 = vadd.f32 %v10446_v63, %v17191_v12  ;;  %v7879_v17 = vpop.f32.mrb[157].mxu0 }
 0xa5a   : > { %8530 = vst [vmem:[%s17218_s6 + $0x1c0] sm:$0xff] %v8466_v61  ;;  %v8733_v26 = vsel %vm8612_vm1, %v8466_v61, 0.0  ;;  %v7958_v25 = vadd.f32 %v7879_v17, %v18519_v62  ;;  %v8627_v62 = vld [vmem:[%s17248_s4 + $0x70] sm:$0xff] }
 0xa5b   : > { %8831 = vadd.xlane.f32.xlu0 %v8722_v27  ;;  %8837 = vadd.xlane.f32.xlu1 %v8725_v30  ;;  %v18518_v27 = vld [vmem:[#allocation53_spill] sm:$0xff]  ;;  %8533 = vst [vmem:[%s17218_s6 + $0x1d8] sm:$0xff] %v8469_v60 }
 0xa5c   : > { %v7956_v40 = vadd.f32 %v7869_v14, %v18518_v27  ;;  %v8406_v30 = vadd.f32 %v8329_v18, %v7958_v25  ;;  %v10449_v2 = vpop.f32.mrb[158].mxu0  ;;  %v8622_v27 = vld [vmem:[%s17248_s4 + $0x48] sm:$0xff] }
 0xa5d   : > { %v7961_v55 = vadd.f32 %v10449_v2, %v17203_v46  ;;  %v7889_v20 = vpop.f32.mrb[159].mxu0 }
 0xa5e   : > { %v8404_v7 = vadd.f32 %v8319_v45, %v7956_v40  ;;  %v8470_v59 = vmax.f32 %v8406_v30, 0.0  ;;  %v7960_v19 = vadd.f32 %v7889_v20, %v18520_v37  ;;  %v8623_v40 = vld [vmem:[%s17248_s4 + $0x50] sm:$0xff] }
 0xa5f   : > { %8835 = vadd.xlane.f32.xlu0 %v8724_v39  ;;  %8841 = vadd.xlane.f32.xlu1 %v8727_v21  ;;  %v8407_v39 = vadd.f32 %v8334_v23, %v7959_v41  ;;  %v8409_v13 = vadd.f32 %v8344_v34, %v7961_v55  ;;  %v8736_v21 = vsel %vm8612_vm1, %v8469_v60, 0.0  ;;  %v8631_v37 = vld [vmem:[%s17248_s4 + $0x90] sm:$0xff] }
 0xa60   : > { %v8468_v33 = vmax.f32 %v8404_v7, 0.0  ;;  %8534 = vst [vmem:[%s17218_s6 + $0x1e0] sm:$0xff] %v8470_v59  ;;  %v8737_v46 = vsel %vm8612_vm1, %v8470_v59, 0.0  ;;  %v8630_v59 = vld [vmem:[%s17248_s4 + $0x88] sm:$0xff] }
 0xa61   : > { %v8471_v12 = vmax.f32 %v8407_v39, 0.0  ;;  %v8473_v9 = vmax.f32 %v8409_v13, 0.0 }
 0xa62   : > { %8532 = vst [vmem:[%s17218_s6 + $0x1d0] sm:$0xff] %v8468_v33  ;;  %v8735_v15 = vsel %vm8612_vm1, %v8468_v33, 0.0  ;;  %v8626_v33 = vld [vmem:[%s17248_s4 + $0x68] sm:$0xff] }
 0xa63   : > { %8839 = vadd.xlane.f32.xlu0 %v8726_v22  ;;  %8845 = vadd.xlane.f32.xlu1 %v8729_v52  ;;  %8535 = vst [vmem:[%s17218_s6 + $0x1e8] sm:$0xff] %v8471_v12  ;;  %v8408_v22 = vadd.f32 %v8339_v32, %v7960_v19  ;;  %8537 = vst [vmem:[%s17218_s6 + $0x1f8] sm:$0xff] %v8473_v9  ;;  %v8738_v31 = vsel %vm8612_vm1, %v8471_v12, 0.0  ;;  %v8740_v1 = vsel %vm8612_vm1, %v8473_v9, 0.0 }
 0xa65   : > { %v8472_v50 = vmax.f32 %v8408_v22, 0.0 }
 0xa67   : > { %8843 = vadd.xlane.f32.xlu0 %v8728_v44  ;;  %8849 = vadd.xlane.f32.xlu1 %v8731_v47  ;;  %8536 = vst [vmem:[%s17218_s6 + $0x1f0] sm:$0xff] %v8472_v50  ;;  %v8739_v0 = vsel %vm8612_vm1, %v8472_v50, 0.0  ;;  %v8616_v44 = vld [vmem:[%s17248_s4 + $0x18] sm:$0xff]  ;;  %v8621_v47 = vld [vmem:[%s17248_s4 + $0x40] sm:$0xff] }
 0xa6b   : > { %8847 = vadd.xlane.f32.xlu0 %v8730_v16  ;;  %8853 = vadd.xlane.f32.xlu1 %v8733_v26  ;;  %v8620_v16 = vld [vmem:[%s17248_s4 + $0x38] sm:$0xff]  ;;  %v8625_v26 = vld [vmem:[%s17248_s4 + $0x60] sm:$0xff] }
 0xa6f   : > { %8851 = vadd.xlane.f32.xlu0 %v8732_v48  ;;  %8857 = vadd.xlane.f32.xlu1 %v8735_v15  ;;  %v8624_v48 = vld [vmem:[%s17248_s4 + $0x58] sm:$0xff]  ;;  %v8629_v15 = vld [vmem:[%s17248_s4 + $0x80] sm:$0xff] }
 0xa73   : > { %8855 = vadd.xlane.f32.xlu0 %v8734_v6  ;;  %8861 = vadd.xlane.f32.xlu1 %v8737_v46  ;;  %v8628_v6 = vld [vmem:[%s17248_s4 + $0x78] sm:$0xff]  ;;  %v8633_v46 = vld [vmem:[%s17248_s4 + $0xa0] sm:$0xff] }
 0xa75   : > { %v8744_v43 = vpop.xlane.xlu1 %8743 }
 0xa76   : > { %v8870_v3 = vadd.f32 %v8744_v43, %v8614_v56  ;;  %v8742_v42 = vpop.xlane.xlu0 %8741  ;;  %v8635_v56 = vld [vmem:[%s17248_s4 + $0xb0] sm:$0xff] }
 0xa77   : > { %8859 = vadd.xlane.f32.xlu0 %v8736_v21  ;;  %8865 = vadd.xlane.f32.xlu1 %v8739_v0  ;;  %v8869_v51 = vadd.f32 %v8742_v42, %v8613_v28  ;;  %v8632_v21 = vld [vmem:[%s17248_s4 + $0x98] sm:$0xff] }
 0xa78   : > { %8935 = vst.msk [vmem:[%s17248_s4 + $0x8] sm:$0xff] %vm8542_vm2, %v8870_v3 }
 0xa79   : > { %8934 = vst.msk [vmem:[%s17248_s4] sm:$0xff] %vm8542_vm2, %v8869_v51  ;;  %v8636_v51 = vld [vmem:[%s17248_s4 + $0xb8] sm:$0xff] }
 0xa7a   : > { %v8748_v52 = vpop.xlane.xlu0 %8747 }
 0xa7b   : > { %8863 = vadd.xlane.f32.xlu0 %v8738_v31  ;;  %v8872_v29 = vadd.f32 %v8748_v52, %v8616_v44  ;;  %v8637_v44 = vld [vmem:[%s17248_s4 + $0xc0] sm:$0xff] }
 0xa7d   : > { %8937 = vst.msk [vmem:[%s17248_s4 + $0x18] sm:$0xff] %vm8542_vm2, %v8872_v29 }
 0xa7e   : > { %v8750_v10 = vpop.xlane.xlu1 %8749 }
 0xa7f   : > { %8867 = vadd.xlane.f32.xlu0 %v8740_v1  ;;  %v8873_v49 = vadd.f32 %v8750_v10, %v8617_v5  ;;  %v8634_v1 = vld [vmem:[%s17248_s4 + $0xa8] sm:$0xff]  ;;  %v8639_v10 = vld [vmem:[%s17248_s4 + $0xd0] sm:$0xff] }
 0xa81   : > { %8938 = vst.msk [vmem:[%s17248_s4 + $0x20] sm:$0xff] %vm8542_vm2, %v8873_v49 }
 0xa82   : > { %v8754_v36 = vpop.xlane.xlu1 %8753 }
 0xa83   : > { %v8875_v57 = vadd.f32 %v8754_v36, %v8619_v24  ;;  %v8641_v36 = vld [vmem:[%s17248_s4 + $0xe0] sm:$0xff] }
 0xa85   : > { %8940 = vst.msk [vmem:[%s17248_s4 + $0x30] sm:$0xff] %vm8542_vm2, %v8875_v57 }
 0xa94   : > { %v8746_v53 = vpop.xlane.xlu0 %8745 }
 0xa95   : > { %v8871_v54 = vadd.f32 %v8746_v53, %v8615_v58  ;;  %v8638_v53 = vld [vmem:[%s17248_s4 + $0xc8] sm:$0xff] }
 0xa97   : > { %8936 = vst.msk [vmem:[%s17248_s4 + $0x10] sm:$0xff] %vm8542_vm2, %v8871_v54 }
 0xa98   : > { %v8752_v45 = vpop.xlane.xlu0 %8751  ;;  %v8758_v11 = vpop.xlane.xlu1 %8757 }
 0xa99   : > { %v8874_v8 = vadd.f32 %v8752_v45, %v8618_v4  ;;  %v8877_v61 = vadd.f32 %v8758_v11, %v8621_v47  ;;  %v8640_v45 = vld [vmem:[%s17248_s4 + $0xd8] sm:$0xff]  ;;  %v8643_v11 = vld [vmem:[%s17248_s4 + $0xf0] sm:$0xff] }
 0xa9b   : > { %8939 = vst.msk [vmem:[%s17248_s4 + $0x28] sm:$0xff] %vm8542_vm2, %v8874_v8  ;;  %8942 = vst.msk [vmem:[%s17248_s4 + $0x40] sm:$0xff] %vm8542_vm2, %v8877_v61 }
 0xa9c   : > { %v8756_v38 = vpop.xlane.xlu0 %8755  ;;  %v8762_v23 = vpop.xlane.xlu1 %8761 }
 0xa9d   : > { %v8876_v14 = vadd.f32 %v8756_v38, %v8620_v16  ;;  %v8879_v63 = vadd.f32 %v8762_v23, %v8623_v40  ;;  %v8642_v38 = vld [vmem:[%s17248_s4 + $0xe8] sm:$0xff]  ;;  %v8645_v23 = vld [vmem:[%s17248_s4 + $0x100] sm:$0xff] }
 0xa9f   : > { %8941 = vst.msk [vmem:[%s17248_s4 + $0x38] sm:$0xff] %vm8542_vm2, %v8876_v14  ;;  %8944 = vst.msk [vmem:[%s17248_s4 + $0x50] sm:$0xff] %vm8542_vm2, %v8879_v63 }
 0xaa0   : > { %v8760_v35 = vpop.xlane.xlu0 %8759  ;;  %v8766_v60 = vpop.xlane.xlu1 %8765 }
 0xaa1   : > { %v8878_v7 = vadd.f32 %v8760_v35, %v8622_v27  ;;  %v8881_v17 = vadd.f32 %v8766_v60, %v8625_v26  ;;  %v8644_v35 = vld [vmem:[%s17248_s4 + $0xf8] sm:$0xff]  ;;  %v8647_v60 = vld [vmem:[%s17248_s4 + $0x110] sm:$0xff] }
 0xaa3   : > { %8943 = vst.msk [vmem:[%s17248_s4 + $0x48] sm:$0xff] %vm8542_vm2, %v8878_v7  ;;  %8946 = vst.msk [vmem:[%s17248_s4 + $0x60] sm:$0xff] %vm8542_vm2, %v8881_v17 }
 0xaa4   : > { %v8764_v18 = vpop.xlane.xlu0 %8763  ;;  %v8770_v39 = vpop.xlane.xlu1 %8769 }
 0xaa5   : > { %v8880_v41 = vadd.f32 %v8764_v18, %v8624_v48  ;;  %v8883_v2 = vadd.f32 %v8770_v39, %v8627_v62  ;;  %v8646_v18 = vld [vmem:[%s17248_s4 + $0x108] sm:$0xff]  ;;  %v8649_v39 = vld [vmem:[%s17248_s4 + $0x120] sm:$0xff] }
 0xaa7   : > { %8945 = vst.msk [vmem:[%s17248_s4 + $0x58] sm:$0xff] %vm8542_vm2, %v8880_v41  ;;  %8948 = vst.msk [vmem:[%s17248_s4 + $0x70] sm:$0xff] %vm8542_vm2, %v8883_v2 }
 0xaa8   : > { %v8768_v25 = vpop.xlane.xlu0 %8767  ;;  %v8774_v55 = vpop.xlane.xlu1 %8773 }
 0xaa9   : > { %v8882_v30 = vadd.f32 %v8768_v25, %v8626_v33  ;;  %v8885_v34 = vadd.f32 %v8774_v55, %v8629_v15  ;;  %v8648_v25 = vld [vmem:[%s17248_s4 + $0x118] sm:$0xff]  ;;  %v8651_v55 = vld [vmem:[%s17248_s4 + $0x130] sm:$0xff] }
 0xaab   : > { %8947 = vst.msk [vmem:[%s17248_s4 + $0x68] sm:$0xff] %vm8542_vm2, %v8882_v30  ;;  %8950 = vst.msk [vmem:[%s17248_s4 + $0x80] sm:$0xff] %vm8542_vm2, %v8885_v34 }
 0xaac   : > { %v8772_v12 = vpop.xlane.xlu0 %8771  ;;  %v8778_v32 = vpop.xlane.xlu1 %8777 }
 0xaad   : > { %v8884_v20 = vadd.f32 %v8772_v12, %v8628_v6  ;;  %v8887_v22 = vadd.f32 %v8778_v32, %v8631_v37  ;;  %v8650_v12 = vld [vmem:[%s17248_s4 + $0x128] sm:$0xff]  ;;  %v8653_v32 = vld [vmem:[%s17248_s4 + $0x140] sm:$0xff] }
 0xaaf   : > { %8949 = vst.msk [vmem:[%s17248_s4 + $0x78] sm:$0xff] %vm8542_vm2, %v8884_v20  ;;  %8952 = vst.msk [vmem:[%s17248_s4 + $0x90] sm:$0xff] %vm8542_vm2, %v8887_v22 }
 0xab0   : > { %v8776_v19 = vpop.xlane.xlu0 %8775  ;;  %v8782_v50 = vpop.xlane.xlu1 %8781 }
 0xab1   : > { %v8886_v13 = vadd.f32 %v8776_v19, %v8630_v59  ;;  %v8889_v0 = vadd.f32 %v8782_v50, %v8633_v46  ;;  %v8652_v19 = vld [vmem:[%s17248_s4 + $0x138] sm:$0xff]  ;;  %v8655_v50 = vld [vmem:[%s17248_s4 + $0x150] sm:$0xff] }
 0xab3   : > { %8951 = vst.msk [vmem:[%s17248_s4 + $0x88] sm:$0xff] %vm8542_vm2, %v8886_v13  ;;  %8954 = vst.msk [vmem:[%s17248_s4 + $0xa0] sm:$0xff] %vm8542_vm2, %v8889_v0 }
 0xab4   : > { %v8780_v9 = vpop.xlane.xlu0 %8779  ;;  %v8786_v43 = vpop.xlane.xlu1 %8785 }
 0xab5   : > { %v8888_v31 = vadd.f32 %v8780_v9, %v8632_v21  ;;  %v8891_v42 = vadd.f32 %v8786_v43, %v8635_v56  ;;  %v8654_v9 = vld [vmem:[%s17248_s4 + $0x148] sm:$0xff]  ;;  %v8657_v43 = vld [vmem:[%s17248_s4 + $0x160] sm:$0xff] }
 0xab7   : > { %8953 = vst.msk [vmem:[%s17248_s4 + $0x98] sm:$0xff] %vm8542_vm2, %v8888_v31  ;;  %8956 = vst.msk [vmem:[%s17248_s4 + $0xb0] sm:$0xff] %vm8542_vm2, %v8891_v42 }
 0xab8   : > { %v8784_v28 = vpop.xlane.xlu0 %8783  ;;  %v8790_v29 = vpop.xlane.xlu1 %8789 }
 0xab9   : > { %v8890_v3 = vadd.f32 %v8784_v28, %v8634_v1  ;;  %v8893_v5 = vadd.f32 %v8790_v29, %v8637_v44  ;;  %v8656_v28 = vld [vmem:[%s17248_s4 + $0x158] sm:$0xff]  ;;  %v8659_v29 = vld [vmem:[%s17248_s4 + $0x170] sm:$0xff] }
 0xabb   : > { %8955 = vst.msk [vmem:[%s17248_s4 + $0xa8] sm:$0xff] %vm8542_vm2, %v8890_v3  ;;  %8958 = vst.msk [vmem:[%s17248_s4 + $0xc0] sm:$0xff] %vm8542_vm2, %v8893_v5 }
 0xabc   : > { %v8788_v52 = vpop.xlane.xlu0 %8787  ;;  %v8794_v49 = vpop.xlane.xlu1 %8793 }
 0xabd   : > { %v8892_v58 = vadd.f32 %v8788_v52, %v8636_v51  ;;  %v8895_v24 = vadd.f32 %v8794_v49, %v8639_v10  ;;  %v8658_v52 = vld [vmem:[%s17248_s4 + $0x168] sm:$0xff]  ;;  %v8661_v49 = vld [vmem:[%s17248_s4 + $0x180] sm:$0xff] }
 0xabf   : > { %8957 = vst.msk [vmem:[%s17248_s4 + $0xb8] sm:$0xff] %vm8542_vm2, %v8892_v58  ;;  %8960 = vst.msk [vmem:[%s17248_s4 + $0xd0] sm:$0xff] %vm8542_vm2, %v8895_v24 }
 0xac0   : > { %v8792_v54 = vpop.xlane.xlu0 %8791  ;;  %v8798_v57 = vpop.xlane.xlu1 %8797 }
 0xac1   : > { %v8894_v4 = vadd.f32 %v8792_v54, %v8638_v53  ;;  %v8897_v47 = vadd.f32 %v8798_v57, %v8641_v36  ;;  %v8660_v54 = vld [vmem:[%s17248_s4 + $0x178] sm:$0xff]  ;;  %v8663_v57 = vld [vmem:[%s17248_s4 + $0x190] sm:$0xff] }
 0xac3   : > { %8959 = vst.msk [vmem:[%s17248_s4 + $0xc8] sm:$0xff] %vm8542_vm2, %v8894_v4  ;;  %8962 = vst.msk [vmem:[%s17248_s4 + $0xe0] sm:$0xff] %vm8542_vm2, %v8897_v47 }
 0xac4   : > { %v8796_v8 = vpop.xlane.xlu0 %8795  ;;  %v8802_v61 = vpop.xlane.xlu1 %8801 }
 0xac5   : > { %v8896_v16 = vadd.f32 %v8796_v8, %v8640_v45  ;;  %v8899_v40 = vadd.f32 %v8802_v61, %v8643_v11  ;;  %v8662_v8 = vld [vmem:[%s17248_s4 + $0x188] sm:$0xff]  ;;  %v8665_v61 = vld [vmem:[%s17248_s4 + $0x1a0] sm:$0xff] }
 0xac7   : > { %8961 = vst.msk [vmem:[%s17248_s4 + $0xd8] sm:$0xff] %vm8542_vm2, %v8896_v16  ;;  %8964 = vst.msk [vmem:[%s17248_s4 + $0xf0] sm:$0xff] %vm8542_vm2, %v8899_v40 }
 0xac8   : > { %v8800_v14 = vpop.xlane.xlu0 %8799  ;;  %v8806_v63 = vpop.xlane.xlu1 %8805 }
 0xac9   : > { %v8898_v27 = vadd.f32 %v8800_v14, %v8642_v38  ;;  %v8901_v26 = vadd.f32 %v8806_v63, %v8645_v23  ;;  %v8664_v14 = vld [vmem:[%s17248_s4 + $0x198] sm:$0xff]  ;;  %v8667_v63 = vld [vmem:[%s17248_s4 + $0x1b0] sm:$0xff] }
 0xacb   : > { %8963 = vst.msk [vmem:[%s17248_s4 + $0xe8] sm:$0xff] %vm8542_vm2, %v8898_v27  ;;  %8966 = vst.msk [vmem:[%s17248_s4 + $0x100] sm:$0xff] %vm8542_vm2, %v8901_v26 }
 0xacc   : > { %v8804_v7 = vpop.xlane.xlu0 %8803  ;;  %v8810_v17 = vpop.xlane.xlu1 %8809 }
 0xacd   : > { %v8900_v48 = vadd.f32 %v8804_v7, %v8644_v35  ;;  %v8903_v62 = vadd.f32 %v8810_v17, %v8647_v60  ;;  %v8666_v7 = vld [vmem:[%s17248_s4 + $0x1a8] sm:$0xff]  ;;  %v8669_v17 = vld [vmem:[%s17248_s4 + $0x1c0] sm:$0xff] }
 0xacf   : > { %8965 = vst.msk [vmem:[%s17248_s4 + $0xf8] sm:$0xff] %vm8542_vm2, %v8900_v48  ;;  %8968 = vst.msk [vmem:[%s17248_s4 + $0x110] sm:$0xff] %vm8542_vm2, %v8903_v62 }
 0xad0   : > { %v8808_v41 = vpop.xlane.xlu0 %8807  ;;  %v8814_v2 = vpop.xlane.xlu1 %8813 }
 0xad1   : > { %v8902_v33 = vadd.f32 %v8808_v41, %v8646_v18  ;;  %v8905_v15 = vadd.f32 %v8814_v2, %v8649_v39  ;;  %v8668_v41 = vld [vmem:[%s17248_s4 + $0x1b8] sm:$0xff]  ;;  %v8671_v2 = vld [vmem:[%s17248_s4 + $0x1d0] sm:$0xff] }
 0xad3   : > { %8967 = vst.msk [vmem:[%s17248_s4 + $0x108] sm:$0xff] %vm8542_vm2, %v8902_v33  ;;  %8970 = vst.msk [vmem:[%s17248_s4 + $0x120] sm:$0xff] %vm8542_vm2, %v8905_v15 }
 0xad4   : > { %v8812_v30 = vpop.xlane.xlu0 %8811  ;;  %v8818_v34 = vpop.xlane.xlu1 %8817 }
 0xad5   : > { %v8904_v6 = vadd.f32 %v8812_v30, %v8648_v25  ;;  %v8907_v37 = vadd.f32 %v8818_v34, %v8651_v55  ;;  %v8670_v30 = vld [vmem:[%s17248_s4 + $0x1c8] sm:$0xff]  ;;  %v8673_v34 = vld [vmem:[%s17248_s4 + $0x1e0] sm:$0xff] }
 0xad7   : > { %8969 = vst.msk [vmem:[%s17248_s4 + $0x118] sm:$0xff] %vm8542_vm2, %v8904_v6  ;;  %8972 = vst.msk [vmem:[%s17248_s4 + $0x130] sm:$0xff] %vm8542_vm2, %v8907_v37 }
 0xad8   : > { %v8816_v20 = vpop.xlane.xlu0 %8815  ;;  %v8822_v22 = vpop.xlane.xlu1 %8821 }
 0xad9   : > { %v8906_v59 = vadd.f32 %v8816_v20, %v8650_v12  ;;  %v8909_v46 = vadd.f32 %v8822_v22, %v8653_v32  ;;  %v8672_v20 = vld [vmem:[%s17248_s4 + $0x1d8] sm:$0xff]  ;;  %v8675_v22 = vld [vmem:[%s17248_s4 + $0x1f0] sm:$0xff] }
 0xadb   : > { %8971 = vst.msk [vmem:[%s17248_s4 + $0x128] sm:$0xff] %vm8542_vm2, %v8906_v59  ;;  %8974 = vst.msk [vmem:[%s17248_s4 + $0x140] sm:$0xff] %vm8542_vm2, %v8909_v46 }
 0xadc   : > { %v8820_v13 = vpop.xlane.xlu0 %8819  ;;  %v8826_v0 = vpop.xlane.xlu1 %8825 }
 0xadd   : > { %v8908_v21 = vadd.f32 %v8820_v13, %v8652_v19  ;;  %v8911_v56 = vadd.f32 %v8826_v0, %v8655_v50  ;;  %v8674_v13 = vld [vmem:[%s17248_s4 + $0x1e8] sm:$0xff] }
 0xadf   : > { %8973 = vst.msk [vmem:[%s17248_s4 + $0x138] sm:$0xff] %vm8542_vm2, %v8908_v21  ;;  %8976 = vst.msk [vmem:[%s17248_s4 + $0x150] sm:$0xff] %vm8542_vm2, %v8911_v56 }
 0xae0   : > { %v8824_v31 = vpop.xlane.xlu0 %8823  ;;  %v8830_v42 = vpop.xlane.xlu1 %8829 }
 0xae1   : > { %v8910_v1 = vadd.f32 %v8824_v31, %v8654_v9  ;;  %v8913_v44 = vadd.f32 %v8830_v42, %v8657_v43  ;;  %v8676_v31 = vld [vmem:[%s17248_s4 + $0x1f8] sm:$0xff] }
 0xae3   : > { %8975 = vst.msk [vmem:[%s17248_s4 + $0x148] sm:$0xff] %vm8542_vm2, %v8910_v1  ;;  %8978 = vst.msk [vmem:[%s17248_s4 + $0x160] sm:$0xff] %vm8542_vm2, %v8913_v44 }
 0xae4   : > { %v8828_v3 = vpop.xlane.xlu0 %8827  ;;  %v8834_v5 = vpop.xlane.xlu1 %8833 }
 0xae5   : > { %v8912_v51 = vadd.f32 %v8828_v3, %v8656_v28  ;;  %v8915_v10 = vadd.f32 %v8834_v5, %v8659_v29 }
 0xae7   : > { %8977 = vst.msk [vmem:[%s17248_s4 + $0x158] sm:$0xff] %vm8542_vm2, %v8912_v51  ;;  %8980 = vst.msk [vmem:[%s17248_s4 + $0x170] sm:$0xff] %vm8542_vm2, %v8915_v10 }
 0xae8   : > { %v8832_v58 = vpop.xlane.xlu0 %8831  ;;  %v8838_v24 = vpop.xlane.xlu1 %8837 }
 0xae9   : > { %v8914_v53 = vadd.f32 %v8832_v58, %v8658_v52  ;;  %v8917_v36 = vadd.f32 %v8838_v24, %v8661_v49 }
 0xaeb   : > { %8979 = vst.msk [vmem:[%s17248_s4 + $0x168] sm:$0xff] %vm8542_vm2, %v8914_v53  ;;  %8982 = vst.msk [vmem:[%s17248_s4 + $0x180] sm:$0xff] %vm8542_vm2, %v8917_v36 }
 0xaec   : > { %v8836_v4 = vpop.xlane.xlu0 %8835  ;;  %v8842_v47 = vpop.xlane.xlu1 %8841 }
 0xaed   : > { %v8916_v45 = vadd.f32 %v8836_v4, %v8660_v54  ;;  %v8919_v11 = vadd.f32 %v8842_v47, %v8663_v57 }
 0xaef   : > { %8981 = vst.msk [vmem:[%s17248_s4 + $0x178] sm:$0xff] %vm8542_vm2, %v8916_v45  ;;  %8984 = vst.msk [vmem:[%s17248_s4 + $0x190] sm:$0xff] %vm8542_vm2, %v8919_v11 }
 0xaf0   : > { %v8840_v16 = vpop.xlane.xlu0 %8839  ;;  %v8846_v40 = vpop.xlane.xlu1 %8845 }
 0xaf1   : > { %v8918_v38 = vadd.f32 %v8840_v16, %v8662_v8  ;;  %v8921_v23 = vadd.f32 %v8846_v40, %v8665_v61 }
 0xaf3   : > { %8983 = vst.msk [vmem:[%s17248_s4 + $0x188] sm:$0xff] %vm8542_vm2, %v8918_v38  ;;  %8986 = vst.msk [vmem:[%s17248_s4 + $0x1a0] sm:$0xff] %vm8542_vm2, %v8921_v23 }
 0xaf4   : > { %v8844_v27 = vpop.xlane.xlu0 %8843  ;;  %v8850_v26 = vpop.xlane.xlu1 %8849 }
 0xaf5   : > { %v8920_v35 = vadd.f32 %v8844_v27, %v8664_v14  ;;  %v8923_v60 = vadd.f32 %v8850_v26, %v8667_v63 }
 0xaf7   : > { %8985 = vst.msk [vmem:[%s17248_s4 + $0x198] sm:$0xff] %vm8542_vm2, %v8920_v35  ;;  %8988 = vst.msk [vmem:[%s17248_s4 + $0x1b0] sm:$0xff] %vm8542_vm2, %v8923_v60 }
 0xaf8   : > { %v8848_v48 = vpop.xlane.xlu0 %8847  ;;  %v8854_v62 = vpop.xlane.xlu1 %8853 }
 0xaf9   : > { %v8922_v18 = vadd.f32 %v8848_v48, %v8666_v7  ;;  %v8925_v39 = vadd.f32 %v8854_v62, %v8669_v17 }
 0xafb   : > { %8987 = vst.msk [vmem:[%s17248_s4 + $0x1a8] sm:$0xff] %vm8542_vm2, %v8922_v18  ;;  %8990 = vst.msk [vmem:[%s17248_s4 + $0x1c0] sm:$0xff] %vm8542_vm2, %v8925_v39 }
 0xafc   : > { %v8852_v33 = vpop.xlane.xlu0 %8851  ;;  %v8858_v15 = vpop.xlane.xlu1 %8857 }
 0xafd   : > { %v8924_v25 = vadd.f32 %v8852_v33, %v8668_v41  ;;  %v8927_v55 = vadd.f32 %v8858_v15, %v8671_v2 }
 0xaff   : > { %8989 = vst.msk [vmem:[%s17248_s4 + $0x1b8] sm:$0xff] %vm8542_vm2, %v8924_v25  ;;  %8992 = vst.msk [vmem:[%s17248_s4 + $0x1d0] sm:$0xff] %vm8542_vm2, %v8927_v55 }
 0xb00   : > { %v8856_v6 = vpop.xlane.xlu0 %8855  ;;  %v8862_v37 = vpop.xlane.xlu1 %8861 }
 0xb01   : > { %v8926_v12 = vadd.f32 %v8856_v6, %v8670_v30  ;;  %v8929_v32 = vadd.f32 %v8862_v37, %v8673_v34 }
 0xb03   : > { %8991 = vst.msk [vmem:[%s17248_s4 + $0x1c8] sm:$0xff] %vm8542_vm2, %v8926_v12  ;;  %8994 = vst.msk [vmem:[%s17248_s4 + $0x1e0] sm:$0xff] %vm8542_vm2, %v8929_v32 }
 0xb04   : > { %v8860_v59 = vpop.xlane.xlu0 %8859  ;;  %v8866_v46 = vpop.xlane.xlu1 %8865 }
 0xb05   : > { %v8928_v19 = vadd.f32 %v8860_v59, %v8672_v20  ;;  %v8931_v50 = vadd.f32 %v8866_v46, %v8675_v22 }
 0xb07   : > { %8993 = vst.msk [vmem:[%s17248_s4 + $0x1d8] sm:$0xff] %vm8542_vm2, %v8928_v19  ;;  %8996 = vst.msk [vmem:[%s17248_s4 + $0x1f0] sm:$0xff] %vm8542_vm2, %v8931_v50 }
 0xb08   : > { %v8864_v21 = vpop.xlane.xlu0 %8863 }
 0xb09   : > { %v8930_v9 = vadd.f32 %v8864_v21, %v8674_v13 }
 0xb0b   : > { %8995 = vst.msk [vmem:[%s17248_s4 + $0x1e8] sm:$0xff] %vm8542_vm2, %v8930_v9 }
 0xb0c   : > { %v8868_v0 = vpop.xlane.xlu0 %8867 }
 0xb0d   : > { %v8932_v1 = vadd.f32 %v8868_v0, %v8676_v31 }
 0xb0f   : > { %8997 = vst.msk [vmem:[%s17248_s4 + $0x1f8] sm:$0xff] %vm8542_vm2, %v8932_v1 }
 0xb10 PF: > { %s33_s29 = sadd.s32 1, %s11205_s29   ;;  %s18521_s3 = smov %s11201_s28 }
 0xb11   : > { %p30_p5 = scmp.ge.s32.totalorder %s33_s29, 4   ;;  %s18522_s28 = smov %s18524_s30 }
 0xb13   :  { %32 = sbr.rel (!%p30_p5) target bundleno = 10 (0xa), region = 150 }

</bundles_post_ra>
